<compile_context>
chip_gen: v6e
topology: v6e:2x2x1
jax: 0.10.0
libtpu: 0.0.40
codegen_flags: <defaults>
</compile_context>

<pallas_src>
import functools

import jax
import jax.numpy as jnp
from jax import lax
from jax.experimental import pallas as pl
from jax.experimental.pallas import tpu as pltpu

EPS = 1e-5
LANES = 128


def _round_up(x, m):
    return (x + m - 1) // m * m


def _vmem_limit_bytes():
    # Raise the scoped-VMEM limit above the per-generation defaults
    # (16 MiB v5e / 32 MiB v6e,v7x) but stay well under physical capacity
    # (128 MiB v5e/v6e, 64 MiB v7x per TensorCore).
    try:
        cap = pltpu.get_tpu_info().vmem_capacity_bytes
    except Exception:
        cap = 64 * 1024 * 1024
    return int(min(cap * 3 // 4, 96 * 1024 * 1024))


def _pick_tile_h(H, W, Cp, N, vmem_limit):
    """Largest row-tile height (divisor of H) whose conv working set fits."""
    budget = max(vmem_limit // 2, 1 << 20)

    def est(th):
        return ((th + 2) * (W + 2) * Cp * 2      # padded-input scratch (bf16)
                + th * W * Cp * 4                # f32 accumulator
                + 2 * th * W * Cp * 2            # double-buffered body input (bf16)
                + 2 * th * W * Cp * 2            # double-buffered conv output (bf16)
                + 2 * 2 * W * Cp * 2             # double-buffered halo rows
                + 2 * 9 * Cp * Cp * 2            # double-buffered weights (bf16)
                + 2 * 2 * Cp * 4)                # double-buffered stats output

    best = 1
    for th in range(H, 0, -1):
        if H % th == 0 and est(th) <= budget:
            best = th
            break
    # Keep at least 2 grid steps overall so both v7x TensorCores get work.
    if N * (H // best) < 2 and best % 2 == 0:
        best //= 2
    return best


# ----------------------------------------------------------------------------
# Kernel: 3x3 stride-1 conv on one (1, TH, W, Cp) row tile.
#   - zero padding assembled in-kernel in one VMEM scratch (halo rows arrive
#     as separate 1-row blocks, masked at the image boundary)
#   - optional per-channel scale/shift + ReLU applied to the *input* on load
#     (used in pass 2 to fuse BN1+ReLU into conv2)
#   - 3x3 conv = 9 accumulated MXU matmuls over shifted views of the scratch
#   - emits the raw conv tile (bf16, no bias/BN) plus per-tile per-channel
#     (sum, sum-of-squares) so the wrapper can form the batch statistics.
# ----------------------------------------------------------------------------
def _conv_stats_kernel(*refs, TH, W, Cp, fuse_bn_relu):
    if fuse_bn_relu:
        (top_ref, body_ref, bot_ref, scale_ref, shift_ref, w_ref,
         y_ref, stats_ref, xpad_sc) = refs
        scale = scale_ref[...]          # load once per grid step (hoisted)
        shift = shift_ref[...]
    else:
        (top_ref, body_ref, bot_ref, w_ref,
         y_ref, stats_ref, xpad_sc) = refs
        scale = shift = None

    def prep(v):
        if not fuse_bn_relu:
            return v                    # already bf16
        v = v.astype(jnp.float32)
        return jnp.maximum(v * scale + shift, 0.0).astype(jnp.bfloat16)

    h = pl.program_id(1)
    last = pl.num_programs(1) - 1

    # Zero only the 1-column left/right halos; interior and halo rows are
    # fully rewritten below (no full-tile zero fill per step).
    zcol = jnp.zeros((TH + 2, 1, Cp), jnp.bfloat16)
    xpad_sc[:, 0:1, :] = zcol
    xpad_sc[:, W + 1:W + 2, :] = zcol

    xpad_sc[1:TH + 1, 1:W + 1, :] = prep(body_ref[0])

    zrow = jnp.zeros((1, W, Cp), jnp.bfloat16)

    @pl.when(h == 0)
    def _():
        xpad_sc[0:1, 1:W + 1, :] = zrow

    @pl.when(h > 0)
    def _():
        xpad_sc[0:1, 1:W + 1, :] = prep(top_ref[0])

    @pl.when(h == last)
    def _():
        xpad_sc[TH + 1:TH + 2, 1:W + 1, :] = zrow

    @pl.when(h < last)
    def _():
        xpad_sc[TH + 1:TH + 2, 1:W + 1, :] = prep(bot_ref[0])

    # 9 accumulated (TH*W, Cp) x (Cp, Cp) bf16 matmuls, f32 accumulation.
    acc = jnp.zeros((TH * W, Cp), jnp.float32)
    for kh in range(3):
        for kw in range(3):
            lhs = xpad_sc[kh:kh + TH, kw:kw + W, :].reshape(TH * W, Cp)
            acc = acc + jnp.dot(lhs, w_ref[kh * 3 + kw],
                                preferred_element_type=jnp.float32)

    y_ref[0] = acc.reshape(TH, W, Cp).astype(jnp.bfloat16)

    # Per-tile partials for single-pass (E[x^2] - mean^2) batch stats, written
    # as ONE store.
    s1 = jnp.sum(acc, axis=0, keepdims=True)
    s2 = jnp.sum(acc * acc, axis=0, keepdims=True)
    stats_ref[...] = jnp.concatenate([s1, s2], axis=0).reshape(1, 1, 2, Cp)


# ----------------------------------------------------------------------------
# Kernel: out = relu(x + y_raw * scale + shift)   (BN2 + residual + ReLU)
# x and y_raw are bf16 streams; output is f32 (module output dtype).
# ----------------------------------------------------------------------------
def _bn_add_relu_kernel(x_ref, y_ref, scale_ref, shift_ref, out_ref):
    y = y_ref[0].astype(jnp.float32) * scale_ref[...] + shift_ref[...]
    out_ref[0] = jnp.maximum(x_ref[0].astype(jnp.float32) + y, 0.0)


# ----------------------------------------------------------------------------
# Wrapper
# ----------------------------------------------------------------------------
def restnet_basic_block(x_nchw, params, stride=1):
    """Forward pass of RestNetBasicBlock. x_nchw: (N, Cin, H, W) float32."""
    assert stride == 1, "residual add requires stride == 1 (as in the module)"
    w1, b1, g1, be1, w2, b2, g2, be2 = params
    del b1, b2  # conv biases cancel exactly under training-mode BatchNorm
    C = w1.shape[0]
    assert x_nchw.shape[1] == C, "residual add requires in_channels == out_channels"

    N, _, H, W = x_nchw.shape
    Cp = _round_up(C, LANES)                  # lane-dense channel dim
    vmem_limit = _vmem_limit_bytes()
    TH = _pick_tile_h(H, W, Cp, N, vmem_limit)
    HT = H // TH
    count = float(N * H * W)

    # NCHW -> NHWC, channels zero-padded to Cp, streamed as bf16.
    # (Kept because the module interface is NCHW; if the surrounding model can
    # stay NHWC/Cp these two relayout passes disappear.)
    x = jnp.transpose(x_nchw, (0, 2, 3, 1))
    x = jnp.pad(x, ((0, 0), (0, 0), (0, 0), (0, Cp - C))).astype(jnp.bfloat16)

    def prep_w(w):
        # OIHW -> (kh*3+kw, Cin_p, Cout_p), bf16.
        w = jnp.transpose(w, (2, 3, 1, 0))
        w = jnp.pad(w, ((0, 0), (0, 0), (0, Cp - C), (0, Cp - C)))
        return w.reshape(9, Cp, Cp).astype(jnp.bfloat16)

    w1k, w2k = prep_w(w1), prep_w(w2)
    g1p = jnp.pad(g1.astype(jnp.float32), (0, Cp - C))
    g2p = jnp.pad(g2.astype(jnp.float32), (0, Cp - C))
    be1p = jnp.pad(be1.astype(jnp.float32), (0, Cp - C))
    be2p = jnp.pad(be2.astype(jnp.float32), (0, Cp - C))

    grid = (N, HT)
    body_spec = pl.BlockSpec((1, TH, W, Cp), lambda n, h: (n, h, 0, 0))
    top_spec = pl.BlockSpec((1, 1, W, Cp),
                            lambda n, h: (n, jnp.maximum(h * TH - 1, 0), 0, 0))
    bot_spec = pl.BlockSpec((1, 1, W, Cp),
                            lambda n, h: (n, jnp.minimum((h + 1) * TH, H - 1), 0, 0))
    w_spec = pl.BlockSpec((9, Cp, Cp), lambda n, h: (0, 0, 0))
    vec_spec = pl.BlockSpec((1, Cp), lambda n, h: (0, 0))
    stats_spec = pl.BlockSpec((1, 1, 2, Cp), lambda n, h: (n, h, 0, 0))

    cparams = pltpu.CompilerParams(
        dimension_semantics=("parallel", "parallel"),
        vmem_limit_bytes=vmem_limit)

    conv_scratch = [pltpu.VMEM((TH + 2, W + 2, Cp), jnp.bfloat16)]
    conv_out_shapes = (jax.ShapeDtypeStruct((N, H, W, Cp), jnp.bfloat16),
                       jax.ShapeDtypeStruct((N, HT, 2, Cp), jnp.float32))
    conv_out_specs = [body_spec, stats_spec]

    def fold_bn(stats, gamma, beta):
        tot = jnp.sum(stats, axis=(0, 1))                 # (2, Cp) f32
        mean = tot[0] / count
        var = jnp.maximum(tot[1] / count - mean * mean, 0.0)
        scale = gamma * lax.rsqrt(var + EPS)
        shift = beta - mean * scale
        return scale.reshape(1, Cp), shift.reshape(1, Cp)

    # ---- pass 1: conv1 (raw) + batch-stat partials -------------------------
    kern1 = functools.partial(_conv_stats_kernel, TH=TH, W=W, Cp=Cp,
                              fuse_bn_relu=False)
    y1_raw, stats1 = pl.pallas_call(
        kern1,
        out_shape=conv_out_shapes,
        grid=grid,
        in_specs=[top_spec, body_spec, bot_spec, w_spec],
        out_specs=conv_out_specs,
        scratch_shapes=conv_scratch,
        compiler_params=cparams,
    )(x, x, x, w1k)

    scale1, shift1 = fold_bn(stats1, g1p, be1p)

    # ---- pass 2: conv2 with BN1 scale/shift + ReLU fused into the load -----
    kern2 = functools.partial(_conv_stats_kernel, TH=TH, W=W, Cp=Cp,
                              fuse_bn_relu=True)
    y2_raw, stats2 = pl.pallas_call(
        kern2,
        out_shape=conv_out_shapes,
        grid=grid,
        in_specs=[top_spec, body_spec, bot_spec, vec_spec, vec_spec, w_spec],
        out_specs=conv_out_specs,
        scratch_shapes=conv_scratch,
        compiler_params=cparams,
    )(y1_raw, y1_raw, y1_raw, scale1, shift1, w2k)

    scale2, shift2 = fold_bn(stats2, g2p, be2p)

    # ---- pass 3: BN2 scale/shift + residual + ReLU (elementwise, tiled) ----
    out_nhwc = pl.pallas_call(
        _bn_add_relu_kernel,
        out_shape=jax.ShapeDtypeStruct((N, H, W, Cp), jnp.float32),
        grid=grid,
        in_specs=[body_spec, body_spec, vec_spec, vec_spec],
        out_specs=body_spec,
        compiler_params=cparams,
    )(x, y2_raw, scale2, shift2)

    return jnp.transpose(out_nhwc[..., :C], (0, 3, 1, 2))   # back to NCHW


# ----------------------------------------------------------------------------
# Pure-JAX f32 reference (mirrors the PyTorch forward exactly), for validation.
# ----------------------------------------------------------------------------
def _reference(x, params):
    w1, b1, g1, be1, w2, b2, g2, be2 = params

    def conv(x, w, b):
        y = lax.conv_general_dilated(
            x, w, window_strides=(1, 1), padding=((1, 1), (1, 1)),
            dimension_numbers=("NCHW", "OIHW", "NCHW"))
        return y + b[None, :, None, None]

    def bn(y, g, be):
        mean = jnp.mean(y, axis=(0, 2, 3), keepdims=True)
        var = jnp.mean((y - mean) ** 2, axis=(0, 2, 3), keepdims=True)
        return ((y - mean) * lax.rsqrt(var + EPS)
                * g[None, :, None, None] + be[None, :, None, None])

    o = jax.nn.relu(bn(conv(x, w1, b1), g1, be1))
    o = bn(conv(o, w2, b2), g2, be2)
    return jax.nn.relu(x + o)


if __name__ == "__main__":
    N, C, H, W = 2, 4, 16, 16  # in_channels == out_channels, stride = 1
    key = jax.random.PRNGKey(0)
    ks = jax.random.split(key, 9)

    x = jax.random.normal(ks[0], (N, C, H, W), jnp.float32)
    w1 = 0.1 * jax.random.normal(ks[1], (C, C, 3, 3), jnp.float32)   # conv1.weight
    b1 = 0.1 * jax.random.normal(ks[2], (C,), jnp.float32)           # conv1.bias
    g1 = 1.0 + 0.1 * jax.random.normal(ks[3], (C,), jnp.float32)     # bn1.weight
    be1 = 0.1 * jax.random.normal(ks[4], (C,), jnp.float32)          # bn1.bias
    w2 = 0.1 * jax.random.normal(ks[5], (C, C, 3, 3), jnp.float32)   # conv2.weight
    b2 = 0.1 * jax.random.normal(ks[6], (C,), jnp.float32)           # conv2.bias
    g2 = 1.0 + 0.1 * jax.random.normal(ks[7], (C,), jnp.float32)     # bn2.weight
    be2 = 0.1 * jax.random.normal(ks[8], (C,), jnp.float32)          # bn2.bias
    params = (w1, b1, g1, be1, w2, b2, g2, be2)

    fwd = jax.jit(lambda xx, pp: restnet_basic_block(xx, pp, stride=1))
    out = jax.block_until_ready(fwd(x, params))
    ref = jax.block_until_ready(_reference(x, params))

    assert out.shape == (N, C, H, W)
    err = float(jnp.max(jnp.abs(out - ref)))
    # Streamed tensors and MXU operands are bf16 (f32 accumulation, f32 BN
    # statistics); tolerance reflects bf16 operand precision.
    assert jnp.allclose(out, ref, atol=6e-2, rtol=6e-2), f"max abs err {err}"
    print("KERNEL_OK")
</pallas_src>

<mosaic_0001>
module attributes {stable_mosaic.version = 11 : i64} {
  func.func @_conv_stats_kernel(%arg0: i32, %arg1: i32, %arg2: memref<1x1x16x128xbf16, #tpu.memory_space<vmem>>, %arg3: memref<1x16x16x128xbf16, #tpu.memory_space<vmem>>, %arg4: memref<1x1x16x128xbf16, #tpu.memory_space<vmem>>, %arg5: memref<9x128x128xbf16, #tpu.memory_space<vmem>>, %arg6: memref<1x16x16x128xbf16, #tpu.memory_space<vmem>>, %arg7: memref<1x1x2x128xf32, #tpu.memory_space<vmem>>, %arg8: memref<18x18x128xbf16, #tpu.memory_space<vmem>>) attributes {dimension_semantics = [#tpu.dimension_semantics<parallel>, #tpu.dimension_semantics<parallel>], iteration_bounds = array<i64: 2, 1>, scalar_prefetch = 0 : i64, scratch_operands = 1 : i64, tpu.core_type = #tpu.core_type<tc>, window_params = [{transform_indices = @transform_0, window_bounds = array<i64: 1, 1, 16, 128>}, {transform_indices = @transform_1, window_bounds = array<i64: 1, 16, 16, 128>}, {transform_indices = @transform_2, window_bounds = array<i64: 1, 1, 16, 128>}, {pipeline_mode = #tpu.pipeline_mode<synchronous>, transform_indices = @transform_3, window_bounds = array<i64: 9, 128, 128>}, {transform_indices = @transform_4, window_bounds = array<i64: 1, 16, 16, 128>}, {transform_indices = @transform_5, window_bounds = array<i64: 1, 1, 2, 128>}]} {
    %cst = arith.constant 0.000000e+00 : bf16
    %0 = vector.broadcast %cst : bf16 to vector<18x1x128xbf16>
    %c0 = arith.constant 0 : index
    %c0_0 = arith.constant 0 : index
    %c0_1 = arith.constant 0 : index
    %1 = vector.load %arg8[%c0, %c0_0, %c0_1] : memref<18x18x128xbf16, #tpu.memory_space<vmem>>, vector<18x1x128xbf16>
    tpu.vector_store %arg8[%c0, %c0_0, %c0_1], %0 {strides = array<i32>} : memref<18x18x128xbf16, #tpu.memory_space<vmem>>, vector<18x1x128xbf16>,
    %c0_2 = arith.constant 0 : index
    %c17 = arith.constant 17 : index
    %c0_3 = arith.constant 0 : index
    %2 = vector.load %arg8[%c0_2, %c17, %c0_3] : memref<18x18x128xbf16, #tpu.memory_space<vmem>>, vector<18x1x128xbf16>
    tpu.vector_store %arg8[%c0_2, %c17, %c0_3], %0 {strides = array<i32>} : memref<18x18x128xbf16, #tpu.memory_space<vmem>>, vector<18x1x128xbf16>,
    %c0_4 = arith.constant 0 : index
    %c0_5 = arith.constant 0 : index
    %c0_6 = arith.constant 0 : index
    %c0_7 = arith.constant 0 : index
    %3 = vector.load %arg3[%c0_4, %c0_5, %c0_6, %c0_7] : memref<1x16x16x128xbf16, #tpu.memory_space<vmem>>, vector<1x16x16x128xbf16>
    %4 = vector.shape_cast %3 : vector<1x16x16x128xbf16> to vector<16x16x128xbf16>
    %c1 = arith.constant 1 : index
    %c1_8 = arith.constant 1 : index
    %c0_9 = arith.constant 0 : index
    %5 = vector.load %arg8[%c1, %c1_8, %c0_9] : memref<18x18x128xbf16, #tpu.memory_space<vmem>>, vector<16x16x128xbf16>
    tpu.vector_store %arg8[%c1, %c1_8, %c0_9], %4 {strides = array<i32>} : memref<18x18x128xbf16, #tpu.memory_space<vmem>>, vector<16x16x128xbf16>,
    %cst_10 = arith.constant 0.000000e+00 : bf16
    %6 = vector.broadcast %cst_10 : bf16 to vector<1x16x128xbf16>
    %c0_i32 = arith.constant 0 : i32
    %7 = arith.cmpi eq, %arg1, %c0_i32 : i32
    %8 = arith.extui %7 : i1 to i32
    %c0_i32_11 = arith.constant 0 : i32
    %9 = arith.cmpi ne, %8, %c0_i32_11 : i32
    scf.if %9 {
      %c0_85 = arith.constant 0 : index
      %c1_86 = arith.constant 1 : index
      %c0_87 = arith.constant 0 : index
      %87 = vector.load %arg8[%c0_85, %c1_86, %c0_87] : memref<18x18x128xbf16, #tpu.memory_space<vmem>>, vector<1x16x128xbf16>
      tpu.vector_store %arg8[%c0_85, %c1_86, %c0_87], %6 {strides = array<i32>} : memref<18x18x128xbf16, #tpu.memory_space<vmem>>, vector<1x16x128xbf16>,
    } else {
    }
    %c0_i32_12 = arith.constant 0 : i32
    %10 = arith.cmpi sgt, %arg1, %c0_i32_12 : i32
    %11 = arith.extui %10 : i1 to i32
    %c0_i32_13 = arith.constant 0 : i32
    %12 = arith.cmpi ne, %11, %c0_i32_13 : i32
    scf.if %12 {
      %c0_85 = arith.constant 0 : index
      %c0_86 = arith.constant 0 : index
      %c0_87 = arith.constant 0 : index
      %c0_88 = arith.constant 0 : index
      %87 = vector.load %arg2[%c0_85, %c0_86, %c0_87, %c0_88] : memref<1x1x16x128xbf16, #tpu.memory_space<vmem>>, vector<1x1x16x128xbf16>
      %88 = vector.shape_cast %87 : vector<1x1x16x128xbf16> to vector<1x16x128xbf16>
      %c0_89 = arith.constant 0 : index
      %c1_90 = arith.constant 1 : index
      %c0_91 = arith.constant 0 : index
      %89 = vector.load %arg8[%c0_89, %c1_90, %c0_91] : memref<18x18x128xbf16, #tpu.memory_space<vmem>>, vector<1x16x128xbf16>
      tpu.vector_store %arg8[%c0_89, %c1_90, %c0_91], %88 {strides = array<i32>} : memref<18x18x128xbf16, #tpu.memory_space<vmem>>, vector<1x16x128xbf16>,
    } else {
    }
    %c0_i32_14 = arith.constant 0 : i32
    %13 = arith.cmpi eq, %arg1, %c0_i32_14 : i32
    %14 = arith.extui %13 : i1 to i32
    %c0_i32_15 = arith.constant 0 : i32
    %15 = arith.cmpi ne, %14, %c0_i32_15 : i32
    scf.if %15 {
      %c17_85 = arith.constant 17 : index
      %c1_86 = arith.constant 1 : index
      %c0_87 = arith.constant 0 : index
      %87 = vector.load %arg8[%c17_85, %c1_86, %c0_87] : memref<18x18x128xbf16, #tpu.memory_space<vmem>>, vector<1x16x128xbf16>
      tpu.vector_store %arg8[%c17_85, %c1_86, %c0_87], %6 {strides = array<i32>} : memref<18x18x128xbf16, #tpu.memory_space<vmem>>, vector<1x16x128xbf16>,
    } else {
    }
    %c0_i32_16 = arith.constant 0 : i32
    %16 = arith.cmpi slt, %arg1, %c0_i32_16 : i32
    %17 = arith.extui %16 : i1 to i32
    %c0_i32_17 = arith.constant 0 : i32
    %18 = arith.cmpi ne, %17, %c0_i32_17 : i32
    scf.if %18 {
      %c0_85 = arith.constant 0 : index
      %c0_86 = arith.constant 0 : index
      %c0_87 = arith.constant 0 : index
      %c0_88 = arith.constant 0 : index
      %87 = vector.load %arg4[%c0_85, %c0_86, %c0_87, %c0_88] : memref<1x1x16x128xbf16, #tpu.memory_space<vmem>>, vector<1x1x16x128xbf16>
      %88 = vector.shape_cast %87 : vector<1x1x16x128xbf16> to vector<1x16x128xbf16>
      %c17_89 = arith.constant 17 : index
      %c1_90 = arith.constant 1 : index
      %c0_91 = arith.constant 0 : index
      %89 = vector.load %arg8[%c17_89, %c1_90, %c0_91] : memref<18x18x128xbf16, #tpu.memory_space<vmem>>, vector<1x16x128xbf16>
      tpu.vector_store %arg8[%c17_89, %c1_90, %c0_91], %88 {strides = array<i32>} : memref<18x18x128xbf16, #tpu.memory_space<vmem>>, vector<1x16x128xbf16>,
    } else {
    }
    %cst_18 = arith.constant 0.000000e+00 : f32
    %19 = vector.broadcast %cst_18 : f32 to vector<256x128xf32>
    %c0_19 = arith.constant 0 : index
    %c0_20 = arith.constant 0 : index
    %c0_21 = arith.constant 0 : index
    %20 = vector.load %arg8[%c0_19, %c0_20, %c0_21] : memref<18x18x128xbf16, #tpu.memory_space<vmem>>, vector<16x16x128xbf16>
    %21 = vector.shape_cast %20 : vector<16x16x128xbf16> to vector<256x128xbf16>
    %c0_22 = arith.constant 0 : index
    %c0_23 = arith.constant 0 : index
    %c0_24 = arith.constant 0 : index
    %22 = vector.load %arg5[%c0_22, %c0_23, %c0_24] : memref<9x128x128xbf16, #tpu.memory_space<vmem>>, vector<1x128x128xbf16>
    %23 = vector.shape_cast %22 : vector<1x128x128xbf16> to vector<128x128xbf16>
    %cst_25 = arith.constant dense<0.000000e+00> : vector<256x128xf32>
    %24 = tpu.matmul %21, %23, %cst_25 {dimension_numbers = #tpu.dot_dimension_numbers<[1], [0], [0], [1], [0, 0, 1, 1], [], []>} : vector<256x128xbf16>, vector<128x128xbf16>, vector<256x128xf32> -> vector<256x128xf32>
    %25 = arith.addf %19, %24 : vector<256x128xf32>
    %c0_26 = arith.constant 0 : index
    %c1_27 = arith.constant 1 : index
    %c0_28 = arith.constant 0 : index
    %26 = vector.load %arg8[%c0_26, %c1_27, %c0_28] : memref<18x18x128xbf16, #tpu.memory_space<vmem>>, vector<16x16x128xbf16>
    %27 = vector.shape_cast %26 : vector<16x16x128xbf16> to vector<256x128xbf16>
    %c1_29 = arith.constant 1 : index
    %c0_30 = arith.constant 0 : index
    %c0_31 = arith.constant 0 : index
    %28 = vector.load %arg5[%c1_29, %c0_30, %c0_31] : memref<9x128x128xbf16, #tpu.memory_space<vmem>>, vector<1x128x128xbf16>
    %29 = vector.shape_cast %28 : vector<1x128x128xbf16> to vector<128x128xbf16>
    %cst_32 = arith.constant dense<0.000000e+00> : vector<256x128xf32>
    %30 = tpu.matmul %27, %29, %cst_32 {dimension_numbers = #tpu.dot_dimension_numbers<[1], [0], [0], [1], [0, 0, 1, 1], [], []>} : vector<256x128xbf16>, vector<128x128xbf16>, vector<256x128xf32> -> vector<256x128xf32>
    %31 = arith.addf %25, %30 : vector<256x128xf32>
    %c0_33 = arith.constant 0 : index
    %c2 = arith.constant 2 : index
    %c0_34 = arith.constant 0 : index
    %32 = vector.load %arg8[%c0_33, %c2, %c0_34] : memref<18x18x128xbf16, #tpu.memory_space<vmem>>, vector<16x16x128xbf16>
    %33 = vector.shape_cast %32 : vector<16x16x128xbf16> to vector<256x128xbf16>
    %c2_35 = arith.constant 2 : index
    %c0_36 = arith.constant 0 : index
    %c0_37 = arith.constant 0 : index
    %34 = vector.load %arg5[%c2_35, %c0_36, %c0_37] : memref<9x128x128xbf16, #tpu.memory_space<vmem>>, vector<1x128x128xbf16>
    %35 = vector.shape_cast %34 : vector<1x128x128xbf16> to vector<128x128xbf16>
    %cst_38 = arith.constant dense<0.000000e+00> : vector<256x128xf32>
    %36 = tpu.matmul %33, %35, %cst_38 {dimension_numbers = #tpu.dot_dimension_numbers<[1], [0], [0], [1], [0, 0, 1, 1], [], []>} : vector<256x128xbf16>, vector<128x128xbf16>, vector<256x128xf32> -> vector<256x128xf32>
    %37 = arith.addf %31, %36 : vector<256x128xf32>
    %c1_39 = arith.constant 1 : index
    %c0_40 = arith.constant 0 : index
    %c0_41 = arith.constant 0 : index
    %38 = vector.load %arg8[%c1_39, %c0_40, %c0_41] : memref<18x18x128xbf16, #tpu.memory_space<vmem>>, vector<16x16x128xbf16>
    %39 = vector.shape_cast %38 : vector<16x16x128xbf16> to vector<256x128xbf16>
    %c3 = arith.constant 3 : index
    %c0_42 = arith.constant 0 : index
    %c0_43 = arith.constant 0 : index
    %40 = vector.load %arg5[%c3, %c0_42, %c0_43] : memref<9x128x128xbf16, #tpu.memory_space<vmem>>, vector<1x128x128xbf16>
    %41 = vector.shape_cast %40 : vector<1x128x128xbf16> to vector<128x128xbf16>
    %cst_44 = arith.constant dense<0.000000e+00> : vector<256x128xf32>
    %42 = tpu.matmul %39, %41, %cst_44 {dimension_numbers = #tpu.dot_dimension_numbers<[1], [0], [0], [1], [0, 0, 1, 1], [], []>} : vector<256x128xbf16>, vector<128x128xbf16>, vector<256x128xf32> -> vector<256x128xf32>
    %43 = arith.addf %37, %42 : vector<256x128xf32>
    %c1_45 = arith.constant 1 : index
    %c1_46 = arith.constant 1 : index
    %c0_47 = arith.constant 0 : index
    %44 = vector.load %arg8[%c1_45, %c1_46, %c0_47] : memref<18x18x128xbf16, #tpu.memory_space<vmem>>, vector<16x16x128xbf16>
    %45 = vector.shape_cast %44 : vector<16x16x128xbf16> to vector<256x128xbf16>
    %c4 = arith.constant 4 : index
    %c0_48 = arith.constant 0 : index
    %c0_49 = arith.constant 0 : index
    %46 = vector.load %arg5[%c4, %c0_48, %c0_49] : memref<9x128x128xbf16, #tpu.memory_space<vmem>>, vector<1x128x128xbf16>
    %47 = vector.shape_cast %46 : vector<1x128x128xbf16> to vector<128x128xbf16>
    %cst_50 = arith.constant dense<0.000000e+00> : vector<256x128xf32>
    %48 = tpu.matmul %45, %47, %cst_50 {dimension_numbers = #tpu.dot_dimension_numbers<[1], [0], [0], [1], [0, 0, 1, 1], [], []>} : vector<256x128xbf16>, vector<128x128xbf16>, vector<256x128xf32> -> vector<256x128xf32>
    %49 = arith.addf %43, %48 : vector<256x128xf32>
    %c1_51 = arith.constant 1 : index
    %c2_52 = arith.constant 2 : index
    %c0_53 = arith.constant 0 : index
    %50 = vector.load %arg8[%c1_51, %c2_52, %c0_53] : memref<18x18x128xbf16, #tpu.memory_space<vmem>>, vector<16x16x128xbf16>
    %51 = vector.shape_cast %50 : vector<16x16x128xbf16> to vector<256x128xbf16>
    %c5 = arith.constant 5 : index
    %c0_54 = arith.constant 0 : index
    %c0_55 = arith.constant 0 : index
    %52 = vector.load %arg5[%c5, %c0_54, %c0_55] : memref<9x128x128xbf16, #tpu.memory_space<vmem>>, vector<1x128x128xbf16>
    %53 = vector.shape_cast %52 : vector<1x128x128xbf16> to vector<128x128xbf16>
    %cst_56 = arith.constant dense<0.000000e+00> : vector<256x128xf32>
    %54 = tpu.matmul %51, %53, %cst_56 {dimension_numbers = #tpu.dot_dimension_numbers<[1], [0], [0], [1], [0, 0, 1, 1], [], []>} : vector<256x128xbf16>, vector<128x128xbf16>, vector<256x128xf32> -> vector<256x128xf32>
    %55 = arith.addf %49, %54 : vector<256x128xf32>
    %c2_57 = arith.constant 2 : index
    %c0_58 = arith.constant 0 : index
    %c0_59 = arith.constant 0 : index
    %56 = vector.load %arg8[%c2_57, %c0_58, %c0_59] : memref<18x18x128xbf16, #tpu.memory_space<vmem>>, vector<16x16x128xbf16>
    %57 = vector.shape_cast %56 : vector<16x16x128xbf16> to vector<256x128xbf16>
    %c6 = arith.constant 6 : index
    %c0_60 = arith.constant 0 : index
    %c0_61 = arith.constant 0 : index
    %58 = vector.load %arg5[%c6, %c0_60, %c0_61] : memref<9x128x128xbf16, #tpu.memory_space<vmem>>, vector<1x128x128xbf16>
    %59 = vector.shape_cast %58 : vector<1x128x128xbf16> to vector<128x128xbf16>
    %cst_62 = arith.constant dense<0.000000e+00> : vector<256x128xf32>
    %60 = tpu.matmul %57, %59, %cst_62 {dimension_numbers = #tpu.dot_dimension_numbers<[1], [0], [0], [1], [0, 0, 1, 1], [], []>} : vector<256x128xbf16>, vector<128x128xbf16>, vector<256x128xf32> -> vector<256x128xf32>
    %61 = arith.addf %55, %60 : vector<256x128xf32>
    %c2_63 = arith.constant 2 : index
    %c1_64 = arith.constant 1 : index
    %c0_65 = arith.constant 0 : index
    %62 = vector.load %arg8[%c2_63, %c1_64, %c0_65] : memref<18x18x128xbf16, #tpu.memory_space<vmem>>, vector<16x16x128xbf16>
    %63 = vector.shape_cast %62 : vector<16x16x128xbf16> to vector<256x128xbf16>
    %c7 = arith.constant 7 : index
    %c0_66 = arith.constant 0 : index
    %c0_67 = arith.constant 0 : index
    %64 = vector.load %arg5[%c7, %c0_66, %c0_67] : memref<9x128x128xbf16, #tpu.memory_space<vmem>>, vector<1x128x128xbf16>
    %65 = vector.shape_cast %64 : vector<1x128x128xbf16> to vector<128x128xbf16>
    %cst_68 = arith.constant dense<0.000000e+00> : vector<256x128xf32>
    %66 = tpu.matmul %63, %65, %cst_68 {dimension_numbers = #tpu.dot_dimension_numbers<[1], [0], [0], [1], [0, 0, 1, 1], [], []>} : vector<256x128xbf16>, vector<128x128xbf16>, vector<256x128xf32> -> vector<256x128xf32>
    %67 = arith.addf %61, %66 : vector<256x128xf32>
    %c2_69 = arith.constant 2 : index
    %c2_70 = arith.constant 2 : index
    %c0_71 = arith.constant 0 : index
    %68 = vector.load %arg8[%c2_69, %c2_70, %c0_71] : memref<18x18x128xbf16, #tpu.memory_space<vmem>>, vector<16x16x128xbf16>
    %69 = vector.shape_cast %68 : vector<16x16x128xbf16> to vector<256x128xbf16>
    %c8 = arith.constant 8 : index
    %c0_72 = arith.constant 0 : index
    %c0_73 = arith.constant 0 : index
    %70 = vector.load %arg5[%c8, %c0_72, %c0_73] : memref<9x128x128xbf16, #tpu.memory_space<vmem>>, vector<1x128x128xbf16>
    %71 = vector.shape_cast %70 : vector<1x128x128xbf16> to vector<128x128xbf16>
    %cst_74 = arith.constant dense<0.000000e+00> : vector<256x128xf32>
    %72 = tpu.matmul %69, %71, %cst_74 {dimension_numbers = #tpu.dot_dimension_numbers<[1], [0], [0], [1], [0, 0, 1, 1], [], []>} : vector<256x128xbf16>, vector<128x128xbf16>, vector<256x128xf32> -> vector<256x128xf32>
    %73 = arith.addf %67, %72 : vector<256x128xf32>
    %74 = vector.shape_cast %73 : vector<256x128xf32> to vector<16x16x128xf32>
    %75 = arith.truncf %74 : vector<16x16x128xf32> to vector<16x16x128xbf16>
    %c0_75 = arith.constant 0 : index
    %c0_76 = arith.constant 0 : index
    %c0_77 = arith.constant 0 : index
    %c0_78 = arith.constant 0 : index
    %76 = vector.load %arg6[%c0_75, %c0_76, %c0_77, %c0_78] : memref<1x16x16x128xbf16, #tpu.memory_space<vmem>>, vector<1x16x16x128xbf16>
    %77 = vector.shape_cast %76 : vector<1x16x16x128xbf16> to vector<16x16x128xbf16>
    %78 = vector.shape_cast %75 : vector<16x16x128xbf16> to vector<1x16x16x128xbf16>
    tpu.vector_store %arg6[%c0_75, %c0_76, %c0_77, %c0_78], %78 {strides = array<i32>} : memref<1x16x16x128xbf16, #tpu.memory_space<vmem>>, vector<1x16x16x128xbf16>,
    %cst_79 = arith.constant dense<0.000000e+00> : vector<128xf32>
    %79 = vector.multi_reduction <add>, %73, %cst_79 [0] : vector<256x128xf32> to vector<128xf32>
    %80 = vector.shape_cast %79 : vector<128xf32> to vector<1x128xf32>
    %81 = arith.mulf %73, %73 : vector<256x128xf32>
    %cst_80 = arith.constant dense<0.000000e+00> : vector<128xf32>
    %82 = vector.multi_reduction <add>, %81, %cst_80 [0] : vector<256x128xf32> to vector<128xf32>
    %83 = vector.shape_cast %82 : vector<128xf32> to vector<1x128xf32>
    %84 = tpu.concatenate %80, %83 in 0 : vector<1x128xf32>, vector<1x128xf32> -> vector<2x128xf32>
    %85 = vector.shape_cast %84 : vector<2x128xf32> to vector<1x1x2x128xf32>
    %c0_81 = arith.constant 0 : index
    %c0_82 = arith.constant 0 : index
    %c0_83 = arith.constant 0 : index
    %c0_84 = arith.constant 0 : index
    %86 = vector.load %arg7[%c0_81, %c0_82, %c0_83, %c0_84] : memref<1x1x2x128xf32, #tpu.memory_space<vmem>>, vector<1x1x2x128xf32>
    tpu.vector_store %arg7[%c0_81, %c0_82, %c0_83, %c0_84], %85 {strides = array<i32>} : memref<1x1x2x128xf32, #tpu.memory_space<vmem>>, vector<1x1x2x128xf32>,
    return
  }
  func.func @transform_0(%arg0: i32, %arg1: i32) -> (i32, i32, i32, i32) {
    %c16_i32 = arith.constant 16 : i32
    %0 = arith.muli %arg1, %c16_i32 : i32
    %c1_i32 = arith.constant 1 : i32
    %1 = arith.subi %0, %c1_i32 : i32
    %c0_i32 = arith.constant 0 : i32
    %2 = arith.maxsi %1, %c0_i32 : i32
    %c0_i32_0 = arith.constant 0 : i32
    %c0_i32_1 = arith.constant 0 : i32
    %c0_i32_2 = arith.constant 0 : i32
    return %arg0, %2, %c0_i32_0, %c0_i32_1 : i32, i32, i32, i32
  }
  func.func @transform_1(%arg0: i32, %arg1: i32) -> (i32, i32, i32, i32) {
    %c0_i32 = arith.constant 0 : i32
    %c0_i32_0 = arith.constant 0 : i32
    %c0_i32_1 = arith.constant 0 : i32
    return %arg0, %arg1, %c0_i32, %c0_i32_0 : i32, i32, i32, i32
  }
  func.func @transform_2(%arg0: i32, %arg1: i32) -> (i32, i32, i32, i32) {
    %c1_i32 = arith.constant 1 : i32
    %0 = arith.addi %arg1, %c1_i32 : i32
    %c16_i32 = arith.constant 16 : i32
    %1 = arith.muli %0, %c16_i32 : i32
    %c15_i32 = arith.constant 15 : i32
    %2 = arith.minsi %1, %c15_i32 : i32
    %c0_i32 = arith.constant 0 : i32
    %c0_i32_0 = arith.constant 0 : i32
    %c0_i32_1 = arith.constant 0 : i32
    return %arg0, %2, %c0_i32, %c0_i32_0 : i32, i32, i32, i32
  }
  func.func @transform_3(%arg0: i32, %arg1: i32) -> (i32, i32, i32) {
    %c0_i32 = arith.constant 0 : i32
    %c0_i32_0 = arith.constant 0 : i32
    %c0_i32_1 = arith.constant 0 : i32
    %c0_i32_2 = arith.constant 0 : i32
    return %c0_i32, %c0_i32_0, %c0_i32_1 : i32, i32, i32
  }
  func.func @transform_4(%arg0: i32, %arg1: i32) -> (i32, i32, i32, i32) {
    %c0_i32 = arith.constant 0 : i32
    %c0_i32_0 = arith.constant 0 : i32
    %c0_i32_1 = arith.constant 0 : i32
    return %arg0, %arg1, %c0_i32, %c0_i32_0 : i32, i32, i32, i32
  }
  func.func @transform_5(%arg0: i32, %arg1: i32) -> (i32, i32, i32, i32) {
    %c0_i32 = arith.constant 0 : i32
    %c0_i32_0 = arith.constant 0 : i32
    %c0_i32_1 = arith.constant 0 : i32
    return %arg0, %arg1, %c0_i32, %c0_i32_0 : i32, i32, i32, i32
  }
}

module attributes {stable_mosaic.version = 11 : i64} {
  func.func @_bn_add_relu_kernel(%arg0: i32, %arg1: i32, %arg2: memref<1x16x16x128xbf16, #tpu.memory_space<vmem>>, %arg3: memref<1x16x16x128xbf16, #tpu.memory_space<vmem>>, %arg4: memref<1x128xf32, #tpu.memory_space<vmem>>, %arg5: memref<1x128xf32, #tpu.memory_space<vmem>>, %arg6: memref<1x16x16x128xf32, #tpu.memory_space<vmem>>) attributes {dimension_semantics = [#tpu.dimension_semantics<parallel>, #tpu.dimension_semantics<parallel>], iteration_bounds = array<i64: 2, 1>, scalar_prefetch = 0 : i64, scratch_operands = 0 : i64, tpu.core_type = #tpu.core_type<tc>, window_params = [{transform_indices = @transform_0, window_bounds = array<i64: 1, 16, 16, 128>}, {transform_indices = @transform_1, window_bounds = array<i64: 1, 16, 16, 128>}, {pipeline_mode = #tpu.pipeline_mode<synchronous>, transform_indices = @transform_2, window_bounds = array<i64: 1, 128>}, {pipeline_mode = #tpu.pipeline_mode<synchronous>, transform_indices = @transform_3, window_bounds = array<i64: 1, 128>}, {transform_indices = @transform_4, window_bounds = array<i64: 1, 16, 16, 128>}]} {
    %c0 = arith.constant 0 : index
    %c0_0 = arith.constant 0 : index
    %c0_1 = arith.constant 0 : index
    %c0_2 = arith.constant 0 : index
    %0 = vector.load %arg3[%c0, %c0_0, %c0_1, %c0_2] : memref<1x16x16x128xbf16, #tpu.memory_space<vmem>>, vector<1x16x16x128xbf16>
    %1 = vector.shape_cast %0 : vector<1x16x16x128xbf16> to vector<16x16x128xbf16>
    %2 = arith.extf %1 : vector<16x16x128xbf16> to vector<16x16x128xf32>
    %c0_3 = arith.constant 0 : index
    %c0_4 = arith.constant 0 : index
    %3 = vector.load %arg4[%c0_3, %c0_4] : memref<1x128xf32, #tpu.memory_space<vmem>>, vector<1x128xf32>
    %4 = vector.shape_cast %3 : vector<1x128xf32> to vector<1x1x128xf32>
    %5 = vector.broadcast %4 : vector<1x1x128xf32> to vector<16x16x128xf32>
    %6 = arith.mulf %2, %5 : vector<16x16x128xf32>
    %c0_5 = arith.constant 0 : index
    %c0_6 = arith.constant 0 : index
    %7 = vector.load %arg5[%c0_5, %c0_6] : memref<1x128xf32, #tpu.memory_space<vmem>>, vector<1x128xf32>
    %8 = vector.shape_cast %7 : vector<1x128xf32> to vector<1x1x128xf32>
    %9 = vector.broadcast %8 : vector<1x1x128xf32> to vector<16x16x128xf32>
    %10 = arith.addf %6, %9 : vector<16x16x128xf32>
    %c0_7 = arith.constant 0 : index
    %c0_8 = arith.constant 0 : index
    %c0_9 = arith.constant 0 : index
    %c0_10 = arith.constant 0 : index
    %11 = vector.load %arg2[%c0_7, %c0_8, %c0_9, %c0_10] : memref<1x16x16x128xbf16, #tpu.memory_space<vmem>>, vector<1x16x16x128xbf16>
    %12 = vector.shape_cast %11 : vector<1x16x16x128xbf16> to vector<16x16x128xbf16>
    %13 = arith.extf %12 : vector<16x16x128xbf16> to vector<16x16x128xf32>
    %14 = arith.addf %13, %10 : vector<16x16x128xf32>
    %cst = arith.constant 0.000000e+00 : f32
    %15 = vector.broadcast %cst : f32 to vector<16x16x128xf32>
    %16 = arith.maximumf %14, %15 : vector<16x16x128xf32>
    %c0_11 = arith.constant 0 : index
    %c0_12 = arith.constant 0 : index
    %c0_13 = arith.constant 0 : index
    %c0_14 = arith.constant 0 : index
    %17 = vector.load %arg6[%c0_11, %c0_12, %c0_13, %c0_14] : memref<1x16x16x128xf32, #tpu.memory_space<vmem>>, vector<1x16x16x128xf32>
    %18 = vector.shape_cast %17 : vector<1x16x16x128xf32> to vector<16x16x128xf32>
    %19 = vector.shape_cast %16 : vector<16x16x128xf32> to vector<1x16x16x128xf32>
    tpu.vector_store %arg6[%c0_11, %c0_12, %c0_13, %c0_14], %19 {strides = array<i32>} : memref<1x16x16x128xf32, #tpu.memory_space<vmem>>, vector<1x16x16x128xf32>,
    return
  }
  func.func @transform_0(%arg0: i32, %arg1: i32) -> (i32, i32, i32, i32) {
    %c0_i32 = arith.constant 0 : i32
    %c0_i32_0 = arith.constant 0 : i32
    %c0_i32_1 = arith.constant 0 : i32
    return %arg0, %arg1, %c0_i32, %c0_i32_0 : i32, i32, i32, i32
  }
  func.func @transform_1(%arg0: i32, %arg1: i32) -> (i32, i32, i32, i32) {
    %c0_i32 = arith.constant 0 : i32
    %c0_i32_0 = arith.constant 0 : i32
    %c0_i32_1 = arith.constant 0 : i32
    return %arg0, %arg1, %c0_i32, %c0_i32_0 : i32, i32, i32, i32
  }
  func.func @transform_2(%arg0: i32, %arg1: i32) -> (i32, i32) {
    %c0_i32 = arith.constant 0 : i32
    %c0_i32_0 = arith.constant 0 : i32
    %c0_i32_1 = arith.constant 0 : i32
    return %c0_i32, %c0_i32_0 : i32, i32
  }
  func.func @transform_3(%arg0: i32, %arg1: i32) -> (i32, i32) {
    %c0_i32 = arith.constant 0 : i32
    %c0_i32_0 = arith.constant 0 : i32
    %c0_i32_1 = arith.constant 0 : i32
    return %c0_i32, %c0_i32_0 : i32, i32
  }
  func.func @transform_4(%arg0: i32, %arg1: i32) -> (i32, i32, i32, i32) {
    %c0_i32 = arith.constant 0 : i32
    %c0_i32_0 = arith.constant 0 : i32
    %c0_i32_1 = arith.constant 0 : i32
    return %arg0, %arg1, %c0_i32, %c0_i32_0 : i32, i32, i32, i32
  }
}

module attributes {stable_mosaic.version = 11 : i64} {
  func.func @_conv_stats_kernel(%arg0: i32, %arg1: i32, %arg2: memref<1x1x16x128xbf16, #tpu.memory_space<vmem>>, %arg3: memref<1x16x16x128xbf16, #tpu.memory_space<vmem>>, %arg4: memref<1x1x16x128xbf16, #tpu.memory_space<vmem>>, %arg5: memref<1x128xf32, #tpu.memory_space<vmem>>, %arg6: memref<1x128xf32, #tpu.memory_space<vmem>>, %arg7: memref<9x128x128xbf16, #tpu.memory_space<vmem>>, %arg8: memref<1x16x16x128xbf16, #tpu.memory_space<vmem>>, %arg9: memref<1x1x2x128xf32, #tpu.memory_space<vmem>>, %arg10: memref<18x18x128xbf16, #tpu.memory_space<vmem>>) attributes {dimension_semantics = [#tpu.dimension_semantics<parallel>, #tpu.dimension_semantics<parallel>], iteration_bounds = array<i64: 2, 1>, scalar_prefetch = 0 : i64, scratch_operands = 1 : i64, tpu.core_type = #tpu.core_type<tc>, window_params = [{transform_indices = @transform_0, window_bounds = array<i64: 1, 1, 16, 128>}, {transform_indices = @transform_1, window_bounds = array<i64: 1, 16, 16, 128>}, {transform_indices = @transform_2, window_bounds = array<i64: 1, 1, 16, 128>}, {pipeline_mode = #tpu.pipeline_mode<synchronous>, transform_indices = @transform_3, window_bounds = array<i64: 1, 128>}, {pipeline_mode = #tpu.pipeline_mode<synchronous>, transform_indices = @transform_4, window_bounds = array<i64: 1, 128>}, {pipeline_mode = #tpu.pipeline_mode<synchronous>, transform_indices = @transform_5, window_bounds = array<i64: 9, 128, 128>}, {transform_indices = @transform_6, window_bounds = array<i64: 1, 16, 16, 128>}, {transform_indices = @transform_7, window_bounds = array<i64: 1, 1, 2, 128>}]} {
    %c0 = arith.constant 0 : index
    %c0_0 = arith.constant 0 : index
    %0 = vector.load %arg5[%c0, %c0_0] : memref<1x128xf32, #tpu.memory_space<vmem>>, vector<1x128xf32>
    %c0_1 = arith.constant 0 : index
    %c0_2 = arith.constant 0 : index
    %1 = vector.load %arg6[%c0_1, %c0_2] : memref<1x128xf32, #tpu.memory_space<vmem>>, vector<1x128xf32>
    %cst = arith.constant 0.000000e+00 : bf16
    %2 = vector.broadcast %cst : bf16 to vector<18x1x128xbf16>
    %c0_3 = arith.constant 0 : index
    %c0_4 = arith.constant 0 : index
    %c0_5 = arith.constant 0 : index
    %3 = vector.load %arg10[%c0_3, %c0_4, %c0_5] : memref<18x18x128xbf16, #tpu.memory_space<vmem>>, vector<18x1x128xbf16>
    tpu.vector_store %arg10[%c0_3, %c0_4, %c0_5], %2 {strides = array<i32>} : memref<18x18x128xbf16, #tpu.memory_space<vmem>>, vector<18x1x128xbf16>,
    %c0_6 = arith.constant 0 : index
    %c17 = arith.constant 17 : index
    %c0_7 = arith.constant 0 : index
    %4 = vector.load %arg10[%c0_6, %c17, %c0_7] : memref<18x18x128xbf16, #tpu.memory_space<vmem>>, vector<18x1x128xbf16>
    tpu.vector_store %arg10[%c0_6, %c17, %c0_7], %2 {strides = array<i32>} : memref<18x18x128xbf16, #tpu.memory_space<vmem>>, vector<18x1x128xbf16>,
    %c0_8 = arith.constant 0 : index
    %c0_9 = arith.constant 0 : index
    %c0_10 = arith.constant 0 : index
    %c0_11 = arith.constant 0 : index
    %5 = vector.load %arg3[%c0_8, %c0_9, %c0_10, %c0_11] : memref<1x16x16x128xbf16, #tpu.memory_space<vmem>>, vector<1x16x16x128xbf16>
    %6 = vector.shape_cast %5 : vector<1x16x16x128xbf16> to vector<16x16x128xbf16>
    %7 = arith.extf %6 : vector<16x16x128xbf16> to vector<16x16x128xf32>
    %8 = vector.shape_cast %0 : vector<1x128xf32> to vector<1x1x128xf32>
    %9 = vector.broadcast %8 : vector<1x1x128xf32> to vector<16x16x128xf32>
    %10 = arith.mulf %7, %9 : vector<16x16x128xf32>
    %11 = vector.shape_cast %1 : vector<1x128xf32> to vector<1x1x128xf32>
    %12 = vector.broadcast %11 : vector<1x1x128xf32> to vector<16x16x128xf32>
    %13 = arith.addf %10, %12 : vector<16x16x128xf32>
    %cst_12 = arith.constant 0.000000e+00 : f32
    %14 = vector.broadcast %cst_12 : f32 to vector<16x16x128xf32>
    %15 = arith.maximumf %13, %14 : vector<16x16x128xf32>
    %16 = arith.truncf %15 : vector<16x16x128xf32> to vector<16x16x128xbf16>
    %c1 = arith.constant 1 : index
    %c1_13 = arith.constant 1 : index
    %c0_14 = arith.constant 0 : index
    %17 = vector.load %arg10[%c1, %c1_13, %c0_14] : memref<18x18x128xbf16, #tpu.memory_space<vmem>>, vector<16x16x128xbf16>
    tpu.vector_store %arg10[%c1, %c1_13, %c0_14], %16 {strides = array<i32>} : memref<18x18x128xbf16, #tpu.memory_space<vmem>>, vector<16x16x128xbf16>,
    %cst_15 = arith.constant 0.000000e+00 : bf16
    %18 = vector.broadcast %cst_15 : bf16 to vector<1x16x128xbf16>
    %c0_i32 = arith.constant 0 : i32
    %19 = arith.cmpi eq, %arg1, %c0_i32 : i32
    %20 = arith.extui %19 : i1 to i32
    %c0_i32_16 = arith.constant 0 : i32
    %21 = arith.cmpi ne, %20, %c0_i32_16 : i32
    scf.if %21 {
      %c0_90 = arith.constant 0 : index
      %c1_91 = arith.constant 1 : index
      %c0_92 = arith.constant 0 : index
      %99 = vector.load %arg10[%c0_90, %c1_91, %c0_92] : memref<18x18x128xbf16, #tpu.memory_space<vmem>>, vector<1x16x128xbf16>
      tpu.vector_store %arg10[%c0_90, %c1_91, %c0_92], %18 {strides = array<i32>} : memref<18x18x128xbf16, #tpu.memory_space<vmem>>, vector<1x16x128xbf16>,
    } else {
    }
    %c0_i32_17 = arith.constant 0 : i32
    %22 = arith.cmpi sgt, %arg1, %c0_i32_17 : i32
    %23 = arith.extui %22 : i1 to i32
    %c0_i32_18 = arith.constant 0 : i32
    %24 = arith.cmpi ne, %23, %c0_i32_18 : i32
    scf.if %24 {
      %c0_90 = arith.constant 0 : index
      %c0_91 = arith.constant 0 : index
      %c0_92 = arith.constant 0 : index
      %c0_93 = arith.constant 0 : index
      %99 = vector.load %arg2[%c0_90, %c0_91, %c0_92, %c0_93] : memref<1x1x16x128xbf16, #tpu.memory_space<vmem>>, vector<1x1x16x128xbf16>
      %100 = vector.shape_cast %99 : vector<1x1x16x128xbf16> to vector<1x16x128xbf16>
      %101 = arith.extf %100 : vector<1x16x128xbf16> to vector<1x16x128xf32>
      %102 = vector.shape_cast %0 : vector<1x128xf32> to vector<1x1x128xf32>
      %103 = vector.broadcast %102 : vector<1x1x128xf32> to vector<1x16x128xf32>
      %104 = arith.mulf %101, %103 : vector<1x16x128xf32>
      %105 = vector.shape_cast %1 : vector<1x128xf32> to vector<1x1x128xf32>
      %106 = vector.broadcast %105 : vector<1x1x128xf32> to vector<1x16x128xf32>
      %107 = arith.addf %104, %106 : vector<1x16x128xf32>
      %cst_94 = arith.constant 0.000000e+00 : f32
      %108 = vector.broadcast %cst_94 : f32 to vector<1x16x128xf32>
      %109 = arith.maximumf %107, %108 : vector<1x16x128xf32>
      %110 = arith.truncf %109 : vector<1x16x128xf32> to vector<1x16x128xbf16>
      %c0_95 = arith.constant 0 : index
      %c1_96 = arith.constant 1 : index
      %c0_97 = arith.constant 0 : index
      %111 = vector.load %arg10[%c0_95, %c1_96, %c0_97] : memref<18x18x128xbf16, #tpu.memory_space<vmem>>, vector<1x16x128xbf16>
      tpu.vector_store %arg10[%c0_95, %c1_96, %c0_97], %110 {strides = array<i32>} : memref<18x18x128xbf16, #tpu.memory_space<vmem>>, vector<1x16x128xbf16>,
    } else {
    }
    %c0_i32_19 = arith.constant 0 : i32
    %25 = arith.cmpi eq, %arg1, %c0_i32_19 : i32
    %26 = arith.extui %25 : i1 to i32
    %c0_i32_20 = arith.constant 0 : i32
    %27 = arith.cmpi ne, %26, %c0_i32_20 : i32
    scf.if %27 {
      %c17_90 = arith.constant 17 : index
      %c1_91 = arith.constant 1 : index
      %c0_92 = arith.constant 0 : index
      %99 = vector.load %arg10[%c17_90, %c1_91, %c0_92] : memref<18x18x128xbf16, #tpu.memory_space<vmem>>, vector<1x16x128xbf16>
      tpu.vector_store %arg10[%c17_90, %c1_91, %c0_92], %18 {strides = array<i32>} : memref<18x18x128xbf16, #tpu.memory_space<vmem>>, vector<1x16x128xbf16>,
    } else {
    }
    %c0_i32_21 = arith.constant 0 : i32
    %28 = arith.cmpi slt, %arg1, %c0_i32_21 : i32
    %29 = arith.extui %28 : i1 to i32
    %c0_i32_22 = arith.constant 0 : i32
    %30 = arith.cmpi ne, %29, %c0_i32_22 : i32
    scf.if %30 {
      %c0_90 = arith.constant 0 : index
      %c0_91 = arith.constant 0 : index
      %c0_92 = arith.constant 0 : index
      %c0_93 = arith.constant 0 : index
      %99 = vector.load %arg4[%c0_90, %c0_91, %c0_92, %c0_93] : memref<1x1x16x128xbf16, #tpu.memory_space<vmem>>, vector<1x1x16x128xbf16>
      %100 = vector.shape_cast %99 : vector<1x1x16x128xbf16> to vector<1x16x128xbf16>
      %101 = arith.extf %100 : vector<1x16x128xbf16> to vector<1x16x128xf32>
      %102 = vector.shape_cast %0 : vector<1x128xf32> to vector<1x1x128xf32>
      %103 = vector.broadcast %102 : vector<1x1x128xf32> to vector<1x16x128xf32>
      %104 = arith.mulf %101, %103 : vector<1x16x128xf32>
      %105 = vector.shape_cast %1 : vector<1x128xf32> to vector<1x1x128xf32>
      %106 = vector.broadcast %105 : vector<1x1x128xf32> to vector<1x16x128xf32>
      %107 = arith.addf %104, %106 : vector<1x16x128xf32>
      %cst_94 = arith.constant 0.000000e+00 : f32
      %108 = vector.broadcast %cst_94 : f32 to vector<1x16x128xf32>
      %109 = arith.maximumf %107, %108 : vector<1x16x128xf32>
      %110 = arith.truncf %109 : vector<1x16x128xf32> to vector<1x16x128xbf16>
      %c17_95 = arith.constant 17 : index
      %c1_96 = arith.constant 1 : index
      %c0_97 = arith.constant 0 : index
      %111 = vector.load %arg10[%c17_95, %c1_96, %c0_97] : memref<18x18x128xbf16, #tpu.memory_space<vmem>>, vector<1x16x128xbf16>
      tpu.vector_store %arg10[%c17_95, %c1_96, %c0_97], %110 {strides = array<i32>} : memref<18x18x128xbf16, #tpu.memory_space<vmem>>, vector<1x16x128xbf16>,
    } else {
    }
    %cst_23 = arith.constant 0.000000e+00 : f32
    %31 = vector.broadcast %cst_23 : f32 to vector<256x128xf32>
    %c0_24 = arith.constant 0 : index
    %c0_25 = arith.constant 0 : index
    %c0_26 = arith.constant 0 : index
    %32 = vector.load %arg10[%c0_24, %c0_25, %c0_26] : memref<18x18x128xbf16, #tpu.memory_space<vmem>>, vector<16x16x128xbf16>
    %33 = vector.shape_cast %32 : vector<16x16x128xbf16> to vector<256x128xbf16>
    %c0_27 = arith.constant 0 : index
    %c0_28 = arith.constant 0 : index
    %c0_29 = arith.constant 0 : index
    %34 = vector.load %arg7[%c0_27, %c0_28, %c0_29] : memref<9x128x128xbf16, #tpu.memory_space<vmem>>, vector<1x128x128xbf16>
    %35 = vector.shape_cast %34 : vector<1x128x128xbf16> to vector<128x128xbf16>
    %cst_30 = arith.constant dense<0.000000e+00> : vector<256x128xf32>
    %36 = tpu.matmul %33, %35, %cst_30 {dimension_numbers = #tpu.dot_dimension_numbers<[1], [0], [0], [1], [0, 0, 1, 1], [], []>} : vector<256x128xbf16>, vector<128x128xbf16>, vector<256x128xf32> -> vector<256x128xf32>
    %37 = arith.addf %31, %36 : vector<256x128xf32>
    %c0_31 = arith.constant 0 : index
    %c1_32 = arith.constant 1 : index
    %c0_33 = arith.constant 0 : index
    %38 = vector.load %arg10[%c0_31, %c1_32, %c0_33] : memref<18x18x128xbf16, #tpu.memory_space<vmem>>, vector<16x16x128xbf16>
    %39 = vector.shape_cast %38 : vector<16x16x128xbf16> to vector<256x128xbf16>
    %c1_34 = arith.constant 1 : index
    %c0_35 = arith.constant 0 : index
    %c0_36 = arith.constant 0 : index
    %40 = vector.load %arg7[%c1_34, %c0_35, %c0_36] : memref<9x128x128xbf16, #tpu.memory_space<vmem>>, vector<1x128x128xbf16>
    %41 = vector.shape_cast %40 : vector<1x128x128xbf16> to vector<128x128xbf16>
    %cst_37 = arith.constant dense<0.000000e+00> : vector<256x128xf32>
    %42 = tpu.matmul %39, %41, %cst_37 {dimension_numbers = #tpu.dot_dimension_numbers<[1], [0], [0], [1], [0, 0, 1, 1], [], []>} : vector<256x128xbf16>, vector<128x128xbf16>, vector<256x128xf32> -> vector<256x128xf32>
    %43 = arith.addf %37, %42 : vector<256x128xf32>
    %c0_38 = arith.constant 0 : index
    %c2 = arith.constant 2 : index
    %c0_39 = arith.constant 0 : index
    %44 = vector.load %arg10[%c0_38, %c2, %c0_39] : memref<18x18x128xbf16, #tpu.memory_space<vmem>>, vector<16x16x128xbf16>
    %45 = vector.shape_cast %44 : vector<16x16x128xbf16> to vector<256x128xbf16>
    %c2_40 = arith.constant 2 : index
    %c0_41 = arith.constant 0 : index
    %c0_42 = arith.constant 0 : index
    %46 = vector.load %arg7[%c2_40, %c0_41, %c0_42] : memref<9x128x128xbf16, #tpu.memory_space<vmem>>, vector<1x128x128xbf16>
    %47 = vector.shape_cast %46 : vector<1x128x128xbf16> to vector<128x128xbf16>
    %cst_43 = arith.constant dense<0.000000e+00> : vector<256x128xf32>
    %48 = tpu.matmul %45, %47, %cst_43 {dimension_numbers = #tpu.dot_dimension_numbers<[1], [0], [0], [1], [0, 0, 1, 1], [], []>} : vector<256x128xbf16>, vector<128x128xbf16>, vector<256x128xf32> -> vector<256x128xf32>
    %49 = arith.addf %43, %48 : vector<256x128xf32>
    %c1_44 = arith.constant 1 : index
    %c0_45 = arith.constant 0 : index
    %c0_46 = arith.constant 0 : index
    %50 = vector.load %arg10[%c1_44, %c0_45, %c0_46] : memref<18x18x128xbf16, #tpu.memory_space<vmem>>, vector<16x16x128xbf16>
    %51 = vector.shape_cast %50 : vector<16x16x128xbf16> to vector<256x128xbf16>
    %c3 = arith.constant 3 : index
    %c0_47 = arith.constant 0 : index
    %c0_48 = arith.constant 0 : index
    %52 = vector.load %arg7[%c3, %c0_47, %c0_48] : memref<9x128x128xbf16, #tpu.memory_space<vmem>>, vector<1x128x128xbf16>
    %53 = vector.shape_cast %52 : vector<1x128x128xbf16> to vector<128x128xbf16>
    %cst_49 = arith.constant dense<0.000000e+00> : vector<256x128xf32>
    %54 = tpu.matmul %51, %53, %cst_49 {dimension_numbers = #tpu.dot_dimension_numbers<[1], [0], [0], [1], [0, 0, 1, 1], [], []>} : vector<256x128xbf16>, vector<128x128xbf16>, vector<256x128xf32> -> vector<256x128xf32>
    %55 = arith.addf %49, %54 : vector<256x128xf32>
    %c1_50 = arith.constant 1 : index
    %c1_51 = arith.constant 1 : index
    %c0_52 = arith.constant 0 : index
    %56 = vector.load %arg10[%c1_50, %c1_51, %c0_52] : memref<18x18x128xbf16, #tpu.memory_space<vmem>>, vector<16x16x128xbf16>
    %57 = vector.shape_cast %56 : vector<16x16x128xbf16> to vector<256x128xbf16>
    %c4 = arith.constant 4 : index
    %c0_53 = arith.constant 0 : index
    %c0_54 = arith.constant 0 : index
    %58 = vector.load %arg7[%c4, %c0_53, %c0_54] : memref<9x128x128xbf16, #tpu.memory_space<vmem>>, vector<1x128x128xbf16>
    %59 = vector.shape_cast %58 : vector<1x128x128xbf16> to vector<128x128xbf16>
    %cst_55 = arith.constant dense<0.000000e+00> : vector<256x128xf32>
    %60 = tpu.matmul %57, %59, %cst_55 {dimension_numbers = #tpu.dot_dimension_numbers<[1], [0], [0], [1], [0, 0, 1, 1], [], []>} : vector<256x128xbf16>, vector<128x128xbf16>, vector<256x128xf32> -> vector<256x128xf32>
    %61 = arith.addf %55, %60 : vector<256x128xf32>
    %c1_56 = arith.constant 1 : index
    %c2_57 = arith.constant 2 : index
    %c0_58 = arith.constant 0 : index
    %62 = vector.load %arg10[%c1_56, %c2_57, %c0_58] : memref<18x18x128xbf16, #tpu.memory_space<vmem>>, vector<16x16x128xbf16>
    %63 = vector.shape_cast %62 : vector<16x16x128xbf16> to vector<256x128xbf16>
    %c5 = arith.constant 5 : index
    %c0_59 = arith.constant 0 : index
    %c0_60 = arith.constant 0 : index
    %64 = vector.load %arg7[%c5, %c0_59, %c0_60] : memref<9x128x128xbf16, #tpu.memory_space<vmem>>, vector<1x128x128xbf16>
    %65 = vector.shape_cast %64 : vector<1x128x128xbf16> to vector<128x128xbf16>
    %cst_61 = arith.constant dense<0.000000e+00> : vector<256x128xf32>
    %66 = tpu.matmul %63, %65, %cst_61 {dimension_numbers = #tpu.dot_dimension_numbers<[1], [0], [0], [1], [0, 0, 1, 1], [], []>} : vector<256x128xbf16>, vector<128x128xbf16>, vector<256x128xf32> -> vector<256x128xf32>
    %67 = arith.addf %61, %66 : vector<256x128xf32>
    %c2_62 = arith.constant 2 : index
    %c0_63 = arith.constant 0 : index
    %c0_64 = arith.constant 0 : index
    %68 = vector.load %arg10[%c2_62, %c0_63, %c0_64] : memref<18x18x128xbf16, #tpu.memory_space<vmem>>, vector<16x16x128xbf16>
    %69 = vector.shape_cast %68 : vector<16x16x128xbf16> to vector<256x128xbf16>
    %c6 = arith.constant 6 : index
    %c0_65 = arith.constant 0 : index
    %c0_66 = arith.constant 0 : index
    %70 = vector.load %arg7[%c6, %c0_65, %c0_66] : memref<9x128x128xbf16, #tpu.memory_space<vmem>>, vector<1x128x128xbf16>
    %71 = vector.shape_cast %70 : vector<1x128x128xbf16> to vector<128x128xbf16>
    %cst_67 = arith.constant dense<0.000000e+00> : vector<256x128xf32>
    %72 = tpu.matmul %69, %71, %cst_67 {dimension_numbers = #tpu.dot_dimension_numbers<[1], [0], [0], [1], [0, 0, 1, 1], [], []>} : vector<256x128xbf16>, vector<128x128xbf16>, vector<256x128xf32> -> vector<256x128xf32>
    %73 = arith.addf %67, %72 : vector<256x128xf32>
    %c2_68 = arith.constant 2 : index
    %c1_69 = arith.constant 1 : index
    %c0_70 = arith.constant 0 : index
    %74 = vector.load %arg10[%c2_68, %c1_69, %c0_70] : memref<18x18x128xbf16, #tpu.memory_space<vmem>>, vector<16x16x128xbf16>
    %75 = vector.shape_cast %74 : vector<16x16x128xbf16> to vector<256x128xbf16>
    %c7 = arith.constant 7 : index
    %c0_71 = arith.constant 0 : index
    %c0_72 = arith.constant 0 : index
    %76 = vector.load %arg7[%c7, %c0_71, %c0_72] : memref<9x128x128xbf16, #tpu.memory_space<vmem>>, vector<1x128x128xbf16>
    %77 = vector.shape_cast %76 : vector<1x128x128xbf16> to vector<128x128xbf16>
    %cst_73 = arith.constant dense<0.000000e+00> : vector<256x128xf32>
    %78 = tpu.matmul %75, %77, %cst_73 {dimension_numbers = #tpu.dot_dimension_numbers<[1], [0], [0], [1], [0, 0, 1, 1], [], []>} : vector<256x128xbf16>, vector<128x128xbf16>, vector<256x128xf32> -> vector<256x128xf32>
    %79 = arith.addf %73, %78 : vector<256x128xf32>
    %c2_74 = arith.constant 2 : index
    %c2_75 = arith.constant 2 : index
    %c0_76 = arith.constant 0 : index
    %80 = vector.load %arg10[%c2_74, %c2_75, %c0_76] : memref<18x18x128xbf16, #tpu.memory_space<vmem>>, vector<16x16x128xbf16>
    %81 = vector.shape_cast %80 : vector<16x16x128xbf16> to vector<256x128xbf16>
    %c8 = arith.constant 8 : index
    %c0_77 = arith.constant 0 : index
    %c0_78 = arith.constant 0 : index
    %82 = vector.load %arg7[%c8, %c0_77, %c0_78] : memref<9x128x128xbf16, #tpu.memory_space<vmem>>, vector<1x128x128xbf16>
    %83 = vector.shape_cast %82 : vector<1x128x128xbf16> to vector<128x128xbf16>
    %cst_79 = arith.constant dense<0.000000e+00> : vector<256x128xf32>
    %84 = tpu.matmul %81, %83, %cst_79 {dimension_numbers = #tpu.dot_dimension_numbers<[1], [0], [0], [1], [0, 0, 1, 1], [], []>} : vector<256x128xbf16>, vector<128x128xbf16>, vector<256x128xf32> -> vector<256x128xf32>
    %85 = arith.addf %79, %84 : vector<256x128xf32>
    %86 = vector.shape_cast %85 : vector<256x128xf32> to vector<16x16x128xf32>
    %87 = arith.truncf %86 : vector<16x16x128xf32> to vector<16x16x128xbf16>
    %c0_80 = arith.constant 0 : index
    %c0_81 = arith.constant 0 : index
    %c0_82 = arith.constant 0 : index
    %c0_83 = arith.constant 0 : index
    %88 = vector.load %arg8[%c0_80, %c0_81, %c0_82, %c0_83] : memref<1x16x16x128xbf16, #tpu.memory_space<vmem>>, vector<1x16x16x128xbf16>
    %89 = vector.shape_cast %88 : vector<1x16x16x128xbf16> to vector<16x16x128xbf16>
    %90 = vector.shape_cast %87 : vector<16x16x128xbf16> to vector<1x16x16x128xbf16>
    tpu.vector_store %arg8[%c0_80, %c0_81, %c0_82, %c0_83], %90 {strides = array<i32>} : memref<1x16x16x128xbf16, #tpu.memory_space<vmem>>, vector<1x16x16x128xbf16>,
    %cst_84 = arith.constant dense<0.000000e+00> : vector<128xf32>
    %91 = vector.multi_reduction <add>, %85, %cst_84 [0] : vector<256x128xf32> to vector<128xf32>
    %92 = vector.shape_cast %91 : vector<128xf32> to vector<1x128xf32>
    %93 = arith.mulf %85, %85 : vector<256x128xf32>
    %cst_85 = arith.constant dense<0.000000e+00> : vector<128xf32>
    %94 = vector.multi_reduction <add>, %93, %cst_85 [0] : vector<256x128xf32> to vector<128xf32>
    %95 = vector.shape_cast %94 : vector<128xf32> to vector<1x128xf32>
    %96 = tpu.concatenate %92, %95 in 0 : vector<1x128xf32>, vector<1x128xf32> -> vector<2x128xf32>
    %97 = vector.shape_cast %96 : vector<2x128xf32> to vector<1x1x2x128xf32>
    %c0_86 = arith.constant 0 : index
    %c0_87 = arith.constant 0 : index
    %c0_88 = arith.constant 0 : index
    %c0_89 = arith.constant 0 : index
    %98 = vector.load %arg9[%c0_86, %c0_87, %c0_88, %c0_89] : memref<1x1x2x128xf32, #tpu.memory_space<vmem>>, vector<1x1x2x128xf32>
    tpu.vector_store %arg9[%c0_86, %c0_87, %c0_88, %c0_89], %97 {strides = array<i32>} : memref<1x1x2x128xf32, #tpu.memory_space<vmem>>, vector<1x1x2x128xf32>,
    return
  }
  func.func @transform_0(%arg0: i32, %arg1: i32) -> (i32, i32, i32, i32) {
    %c16_i32 = arith.constant 16 : i32
    %0 = arith.muli %arg1, %c16_i32 : i32
    %c1_i32 = arith.constant 1 : i32
    %1 = arith.subi %0, %c1_i32 : i32
    %c0_i32 = arith.constant 0 : i32
    %2 = arith.maxsi %1, %c0_i32 : i32
    %c0_i32_0 = arith.constant 0 : i32
    %c0_i32_1 = arith.constant 0 : i32
    %c0_i32_2 = arith.constant 0 : i32
    return %arg0, %2, %c0_i32_0, %c0_i32_1 : i32, i32, i32, i32
  }
  func.func @transform_1(%arg0: i32, %arg1: i32) -> (i32, i32, i32, i32) {
    %c0_i32 = arith.constant 0 : i32
    %c0_i32_0 = arith.constant 0 : i32
    %c0_i32_1 = arith.constant 0 : i32
    return %arg0, %arg1, %c0_i32, %c0_i32_0 : i32, i32, i32, i32
  }
  func.func @transform_2(%arg0: i32, %arg1: i32) -> (i32, i32, i32, i32) {
    %c1_i32 = arith.constant 1 : i32
    %0 = arith.addi %arg1, %c1_i32 : i32
    %c16_i32 = arith.constant 16 : i32
    %1 = arith.muli %0, %c16_i32 : i32
    %c15_i32 = arith.constant 15 : i32
    %2 = arith.minsi %1, %c15_i32 : i32
    %c0_i32 = arith.constant 0 : i32
    %c0_i32_0 = arith.constant 0 : i32
    %c0_i32_1 = arith.constant 0 : i32
    return %arg0, %2, %c0_i32, %c0_i32_0 : i32, i32, i32, i32
  }
  func.func @transform_3(%arg0: i32, %arg1: i32) -> (i32, i32) {
    %c0_i32 = arith.constant 0 : i32
    %c0_i32_0 = arith.constant 0 : i32
    %c0_i32_1 = arith.constant 0 : i32
    return %c0_i32, %c0_i32_0 : i32, i32
  }
  func.func @transform_4(%arg0: i32, %arg1: i32) -> (i32, i32) {
    %c0_i32 = arith.constant 0 : i32
    %c0_i32_0 = arith.constant 0 : i32
    %c0_i32_1 = arith.constant 0 : i32
    return %c0_i32, %c0_i32_0 : i32, i32
  }
  func.func @transform_5(%arg0: i32, %arg1: i32) -> (i32, i32, i32) {
    %c0_i32 = arith.constant 0 : i32
    %c0_i32_0 = arith.constant 0 : i32
    %c0_i32_1 = arith.constant 0 : i32
    %c0_i32_2 = arith.constant 0 : i32
    return %c0_i32, %c0_i32_0, %c0_i32_1 : i32, i32, i32
  }
  func.func @transform_6(%arg0: i32, %arg1: i32) -> (i32, i32, i32, i32) {
    %c0_i32 = arith.constant 0 : i32
    %c0_i32_0 = arith.constant 0 : i32
    %c0_i32_1 = arith.constant 0 : i32
    return %arg0, %arg1, %c0_i32, %c0_i32_0 : i32, i32, i32, i32
  }
  func.func @transform_7(%arg0: i32, %arg1: i32) -> (i32, i32, i32, i32) {
    %c0_i32 = arith.constant 0 : i32
    %c0_i32_0 = arith.constant 0 : i32
    %c0_i32_1 = arith.constant 0 : i32
    return %arg0, %arg1, %c0_i32, %c0_i32_0 : i32, i32, i32, i32
  }
}

</mosaic_0001>

<bundles_post_ra>
// kernel: _lambda_.5
= control target key start
LH: loop header
LB: loop body
LE: loop exit
PB: predicated region body
PF: predicated region fallthrough
CT: control target
= control target key end

     0   :  { %s949_s15 = smov 0   ;;  %s951_s16 = smov 0   ;;  %s1133_s0 = inlined_call_operand.vmem [shape: bf16[2,16,16,128], index: 0, kind: input, shape index: {}]   ;;  %s1134_s1 = inlined_call_operand.vmem [shape: bf16[2,16,16,128], index: 1, kind: input, shape index: {}]   ;;  %s1135_s2 = inlined_call_operand.vmem [shape: f32[1,128], index: 2, kind: input, shape index: {}]   ;;  %s1136_s3 = inlined_call_operand.vmem [shape: f32[1,128], index: 3, kind: input, shape index: {}]   ;;  %s1137_s4 = inlined_call_operand.vmem [shape: f32[2,16,16,128], index: 4, kind: output, shape index: {}]  }
   0x1   :  { %s953_s17 = smov 0  }
   0x2 LB: > { %s26_s18 = sadd.s32 1, %s918_s16  ;;  %p704_p0 = scmp.ge.s32.totalorder %s922_s17, 1  ;;  %s922_s17 = sphi %s953_s17, %s14_s17   ;;  %s918_s16 = sphi %s951_s16, %s1139_s16   ;;  %s914_s15 = sphi %s949_s15, %s1138_s15  }
   0x3   : > { %p28_p1 = scmp.ge.s32.totalorder %s26_s18, 2  ;;  %p202_p2 = scmp.lt.s32.totalorder %s922_s17, 3 }
   0x5   : > { %s1141_s18 = smov (%p28_p1, %s26_s18), 0  ;;  %p203_p3 = pnand %p704_p0, %p202_p2 }
   0x6   : > { %p249_p4 = scmp.lt.s32.totalorder (!%p203_p3), %s914_s15, 1 }
   0x7   : > { %206 = sbr.rel (%p203_p3) target bundleno = 70 (0x46), region = 36 }
   0xc   : > { %s1143_s15 = smov (!%p249_p4, %s914_s15), 1  ;;  %v983_v0 = vld [vmem:[%s1135_s2] ss:$0 sm:$0xff] }
   0xd   : > { %s715_s19 = sshll.u32 %s1143_s15, 7  ;;  %v994_v11 = vld [vmem:[%s1136_s3] ss:$0 sm:$0xff]  ;;  %s717_s30 = sshll.u32 %s1143_s15, 8 }
   0xe   : > { %s973_s22 = scalar_lea.vmem %s1133_s0, %s715_s19  ;;  %s978_s25 = scalar_lea.vmem %s1134_s1, %s715_s19 }
   0xf   : > { %v719_v1 = vld [vmem:[%s978_s25] sm:$0xff]   ;;  %v846_v3 = vld [vmem:[%s978_s25 + $0x8] sm:$0xff]   ;;  %v847_v9 = vld [vmem:[%s978_s25 + $0x10] sm:$0xff]   ;;  %s1014_s7 = scalar_lea.vmem %s1137_s4, %s717_s30 }
  0x10   : > { %v783_v2 = vld [vmem:[%s973_s22] sm:$0xff]   ;;  %v720_v4 = vunpack.c.l.bf16 %v719_v1  ;;  %v721_v6 = vunpack.c.h.bf16 %v719_v1  ;;  %v861_v8 = vld [vmem:[%s973_s22 + $0x8] sm:$0xff]   ;;  %v862_v10 = vld [vmem:[%s973_s22 + $0x10] sm:$0xff]   ;;  %v724_v12 = vunpack.c.l.bf16 %v846_v3  ;;  %v725_v14 = vunpack.c.h.bf16 %v846_v3 }
  0x11   : > { %v784_v5 = vunpack.c.l.bf16 %v783_v2  ;;  %v785_v7 = vunpack.c.h.bf16 %v783_v2  ;;  %v788_v13 = vunpack.c.l.bf16 %v861_v8  ;;  %v789_v15 = vunpack.c.h.bf16 %v861_v8  ;;  %v848_v16 = vld [vmem:[%s978_s25 + $0x18] sm:$0xff]   ;;  %v849_v42 = vld [vmem:[%s978_s25 + $0x20] sm:$0xff]   ;;  %v850_v52 = vld [vmem:[%s978_s25 + $0x28] sm:$0xff]  }
  0x12   : > { %v352_v17 = vmul.f32 %v720_v4, %v983_v0  ;;  %v353_v18 = vmul.f32 %v721_v6, %v983_v0  ;;  %v728_v19 = vunpack.c.l.bf16 %v847_v9  ;;  %v792_v20 = vunpack.c.l.bf16 %v862_v10  ;;  %v863_v21 = vld [vmem:[%s973_s22 + $0x18] sm:$0xff]   ;;  %v864_v47 = vld [vmem:[%s973_s22 + $0x20] sm:$0xff]   ;;  %v865_v57 = vld [vmem:[%s973_s22 + $0x28] sm:$0xff]  }
  0x13   : > { %v354_v22 = vmul.f32 %v724_v12, %v983_v0  ;;  %v355_v23 = vmul.f32 %v725_v14, %v983_v0  ;;  %v729_v24 = vunpack.c.h.bf16 %v847_v9  ;;  %v793_v25 = vunpack.c.h.bf16 %v862_v10  ;;  %v851_v62 = vld [vmem:[%s978_s25 + $0x30] sm:$0xff]   ;;  %v852_v14 = vld [vmem:[%s978_s25 + $0x38] sm:$0xff]  }
  0x14   : > { %v391_v26 = vadd.f32 %v994_v11, %v352_v17  ;;  %v392_v27 = vadd.f32 %v994_v11, %v353_v18  ;;  %v356_v28 = vmul.f32 %v728_v19, %v983_v0  ;;  %v732_v29 = vunpack.c.l.bf16 %v848_v16  ;;  %v866_v4 = vld [vmem:[%s973_s22 + $0x30] sm:$0xff]  }
  0x15   : > { %v393_v30 = vadd.f32 %v994_v11, %v354_v22  ;;  %v394_v31 = vadd.f32 %v994_v11, %v355_v23  ;;  %v357_v32 = vmul.f32 %v729_v24, %v983_v0  ;;  %v796_v33 = vunpack.c.l.bf16 %v863_v21  ;;  %v867_v23 = vld [vmem:[%s973_s22 + $0x38] sm:$0xff]  }
  0x16   : > { %v487_v34 = vadd.f32 %v784_v5, %v391_v26  ;;  %v488_v35 = vadd.f32 %v785_v7, %v392_v27  ;;  %v395_v36 = vadd.f32 %v994_v11, %v356_v28  ;;  %v358_v37 = vmul.f32 %v732_v29, %v983_v0 }
  0x17   : > { %v489_v38 = vadd.f32 %v788_v13, %v393_v30  ;;  %v490_v39 = vadd.f32 %v789_v15, %v394_v31  ;;  %v396_v40 = vadd.f32 %v994_v11, %v357_v32  ;;  %v733_v41 = vunpack.c.h.bf16 %v848_v16  ;;  %v853_v32 = vld [vmem:[%s978_s25 + $0x40] sm:$0xff]  }
  0x18   : > { %v519_v43 = vmax.f32 %v487_v34, 0.0  ;;  %v520_v44 = vmax.f32 %v488_v35, 0.0  ;;  %v491_v45 = vadd.f32 %v792_v20, %v395_v36  ;;  %v397_v46 = vadd.f32 %v994_v11, %v358_v37  ;;  %v868_v37 = vld [vmem:[%s973_s22 + $0x40] sm:$0xff]  }
  0x19   : > { %v521_v48 = vmax.f32 %v489_v38, 0.0  ;;  %v522_v49 = vmax.f32 %v490_v39, 0.0  ;;  %v492_v50 = vadd.f32 %v793_v25, %v396_v40  ;;  %v359_v51 = vmul.f32 %v733_v41, %v983_v0 }
  0x1a   : > { %551 = vst [vmem:[%s1014_s7] sm:$0xff] %v519_v43  ;;  %552 = vst [vmem:[%s1014_s7 + $0x8] sm:$0xff] %v520_v44  ;;  %v523_v53 = vmax.f32 %v491_v45, 0.0  ;;  %v493_v54 = vadd.f32 %v796_v33, %v397_v46  ;;  %v797_v55 = vunpack.c.h.bf16 %v863_v21  ;;  %v736_v56 = vunpack.c.l.bf16 %v849_v42  ;;  %v854_v46 = vld [vmem:[%s978_s25 + $0x48] sm:$0xff]  }
  0x1b   : > { %553 = vst [vmem:[%s1014_s7 + $0x10] sm:$0xff] %v521_v48  ;;  %554 = vst [vmem:[%s1014_s7 + $0x18] sm:$0xff] %v522_v49  ;;  %v524_v58 = vmax.f32 %v492_v50, 0.0  ;;  %v398_v59 = vadd.f32 %v994_v11, %v359_v51  ;;  %v800_v60 = vunpack.c.l.bf16 %v864_v47  ;;  %v737_v61 = vunpack.c.h.bf16 %v849_v42 }
  0x1c   : > { %555 = vst [vmem:[%s1014_s7 + $0x20] sm:$0xff] %v523_v53  ;;  %v525_v63 = vmax.f32 %v493_v54, 0.0  ;;  %v360_v1 = vmul.f32 %v736_v56, %v983_v0  ;;  %v801_v2 = vunpack.c.h.bf16 %v864_v47  ;;  %v740_v3 = vunpack.c.l.bf16 %v850_v52  ;;  %v869_v47 = vld [vmem:[%s973_s22 + $0x48] sm:$0xff]   ;;  %v855_v56 = vld [vmem:[%s978_s25 + $0x50] sm:$0xff]  }
  0x1d   : > { %556 = vst [vmem:[%s1014_s7 + $0x28] sm:$0xff] %v524_v58  ;;  %v494_v5 = vadd.f32 %v797_v55, %v398_v59  ;;  %v361_v6 = vmul.f32 %v737_v61, %v983_v0  ;;  %v804_v7 = vunpack.c.l.bf16 %v865_v57  ;;  %v741_v8 = vunpack.c.h.bf16 %v850_v52  ;;  %v870_v61 = vld [vmem:[%s973_s22 + $0x50] sm:$0xff]  }
  0x1e   : > { %557 = vst [vmem:[%s1014_s7 + $0x30] sm:$0xff] %v525_v63  ;;  %v399_v9 = vadd.f32 %v994_v11, %v360_v1  ;;  %v362_v10 = vmul.f32 %v740_v3, %v983_v0  ;;  %v805_v12 = vunpack.c.h.bf16 %v865_v57  ;;  %v744_v13 = vunpack.c.l.bf16 %v851_v62 }
  0x1f   : > { %v526_v15 = vmax.f32 %v494_v5, 0.0  ;;  %v400_v16 = vadd.f32 %v994_v11, %v361_v6  ;;  %v363_v17 = vmul.f32 %v741_v8, %v983_v0  ;;  %v808_v18 = vunpack.c.l.bf16 %v866_v4 }
  0x20   : > { %v495_v19 = vadd.f32 %v800_v60, %v399_v9  ;;  %v401_v20 = vadd.f32 %v994_v11, %v362_v10  ;;  %v364_v21 = vmul.f32 %v744_v13, %v983_v0  ;;  %v745_v22 = vunpack.c.h.bf16 %v851_v62 }
  0x21   : > { %558 = vst [vmem:[%s1014_s7 + $0x38] sm:$0xff] %v526_v15  ;;  %v496_v24 = vadd.f32 %v801_v2, %v400_v16  ;;  %v402_v25 = vadd.f32 %v994_v11, %v363_v17  ;;  %v809_v26 = vunpack.c.h.bf16 %v866_v4  ;;  %v748_v27 = vunpack.c.l.bf16 %v852_v14  ;;  %v871_v17 = vld [vmem:[%s973_s22 + $0x58] sm:$0xff]  }
  0x22   : > { %v527_v28 = vmax.f32 %v495_v19, 0.0  ;;  %v497_v29 = vadd.f32 %v804_v7, %v401_v20  ;;  %v403_v30 = vadd.f32 %v994_v11, %v364_v21  ;;  %v365_v31 = vmul.f32 %v745_v22, %v983_v0 }
  0x23   : > { %v528_v33 = vmax.f32 %v496_v24, 0.0  ;;  %v498_v34 = vadd.f32 %v805_v12, %v402_v25  ;;  %v366_v35 = vmul.f32 %v748_v27, %v983_v0  ;;  %v812_v36 = vunpack.c.l.bf16 %v867_v23  ;;  %v856_v12 = vld [vmem:[%s978_s25 + $0x58] sm:$0xff]  }
  0x24   : > { %559 = vst [vmem:[%s1014_s7 + $0x40] sm:$0xff] %v527_v28  ;;  %v529_v38 = vmax.f32 %v497_v29, 0.0  ;;  %v499_v39 = vadd.f32 %v808_v18, %v403_v30  ;;  %v404_v40 = vadd.f32 %v994_v11, %v365_v31  ;;  %v749_v41 = vunpack.c.h.bf16 %v852_v14  ;;  %v872_v31 = vld [vmem:[%s973_s22 + $0x60] sm:$0xff]  }
  0x25   : > { %560 = vst [vmem:[%s1014_s7 + $0x48] sm:$0xff] %v528_v33  ;;  %v530_v42 = vmax.f32 %v498_v34, 0.0  ;;  %v405_v43 = vadd.f32 %v994_v11, %v366_v35  ;;  %v813_v44 = vunpack.c.h.bf16 %v867_v23  ;;  %v752_v45 = vunpack.c.l.bf16 %v853_v32 }
  0x26   : > { %561 = vst [vmem:[%s1014_s7 + $0x50] sm:$0xff] %v529_v38  ;;  %v531_v48 = vmax.f32 %v499_v39, 0.0  ;;  %v500_v49 = vadd.f32 %v809_v26, %v404_v40  ;;  %v367_v50 = vmul.f32 %v749_v41, %v983_v0  ;;  %v816_v51 = vunpack.c.l.bf16 %v868_v37  ;;  %v857_v26 = vld [vmem:[%s978_s25 + $0x60] sm:$0xff]   ;;  %v858_v40 = vld [vmem:[%s978_s25 + $0x68] sm:$0xff]  }
  0x27   : > { %562 = vst [vmem:[%s1014_s7 + $0x58] sm:$0xff] %v530_v42  ;;  %v501_v52 = vadd.f32 %v812_v36, %v405_v43  ;;  %v368_v53 = vmul.f32 %v752_v45, %v983_v0  ;;  %v753_v54 = vunpack.c.h.bf16 %v853_v32  ;;  %v817_v55 = vunpack.c.h.bf16 %v868_v37  ;;  %v873_v41 = vld [vmem:[%s973_s22 + $0x68] sm:$0xff]  }
  0x28   : > { %563 = vst [vmem:[%s1014_s7 + $0x60] sm:$0xff] %v531_v48  ;;  %v532_v57 = vmax.f32 %v500_v49, 0.0  ;;  %v406_v58 = vadd.f32 %v994_v11, %v367_v50  ;;  %v756_v59 = vunpack.c.l.bf16 %v854_v46  ;;  %v820_v60 = vunpack.c.l.bf16 %v869_v47  ;;  %v859_v50 = vld [vmem:[%s978_s25 + $0x70] sm:$0xff]  }
  0x29   : > { %v533_v62 = vmax.f32 %v501_v52, 0.0  ;;  %v407_v63 = vadd.f32 %v994_v11, %v368_v53  ;;  %v369_v1 = vmul.f32 %v753_v54, %v983_v0  ;;  %v757_v2 = vunpack.c.h.bf16 %v854_v46 }
  0x2a   : > { %564 = vst [vmem:[%s1014_s7 + $0x68] sm:$0xff] %v532_v57  ;;  %v502_v3 = vadd.f32 %v813_v44, %v406_v58  ;;  %v370_v4 = vmul.f32 %v756_v59, %v983_v0  ;;  %v821_v5 = vunpack.c.h.bf16 %v869_v47  ;;  %v760_v6 = vunpack.c.l.bf16 %v855_v56  ;;  %v874_v59 = vld [vmem:[%s973_s22 + $0x70] sm:$0xff]  }
  0x2b   : > { %565 = vst [vmem:[%s1014_s7 + $0x70] sm:$0xff] %v533_v62  ;;  %v503_v7 = vadd.f32 %v816_v51, %v407_v63  ;;  %v408_v8 = vadd.f32 %v994_v11, %v369_v1  ;;  %v371_v9 = vmul.f32 %v757_v2, %v983_v0  ;;  %v824_v10 = vunpack.c.l.bf16 %v870_v61 }
  0x2c   : > { %v534_v13 = vmax.f32 %v502_v3, 0.0  ;;  %v409_v14 = vadd.f32 %v994_v11, %v370_v4  ;;  %v372_v15 = vmul.f32 %v760_v6, %v983_v0  ;;  %v761_v16 = vunpack.c.h.bf16 %v855_v56 }
  0x2d   : > { %v535_v18 = vmax.f32 %v503_v7, 0.0  ;;  %v504_v19 = vadd.f32 %v817_v55, %v408_v8  ;;  %v410_v20 = vadd.f32 %v994_v11, %v371_v9  ;;  %v825_v21 = vunpack.c.h.bf16 %v870_v61 }
  0x2e   : > { %566 = vst [vmem:[%s1014_s7 + $0x78] sm:$0xff] %v534_v13  ;;  %v505_v22 = vadd.f32 %v820_v60, %v409_v14  ;;  %v411_v23 = vadd.f32 %v994_v11, %v372_v15  ;;  %v373_v24 = vmul.f32 %v761_v16, %v983_v0  ;;  %v764_v25 = vunpack.c.l.bf16 %v856_v12 }
  0x2f   : > { %567 = vst [vmem:[%s1014_s7 + $0x80] sm:$0xff] %v535_v18  ;;  %v536_v27 = vmax.f32 %v504_v19, 0.0  ;;  %v506_v28 = vadd.f32 %v821_v5, %v410_v20  ;;  %v828_v29 = vunpack.c.l.bf16 %v871_v17  ;;  %v765_v30 = vunpack.c.h.bf16 %v856_v12  ;;  %v860_v5 = vld [vmem:[%s978_s25 + $0x78] sm:$0xff]  }
  0x30   : > { %v537_v32 = vmax.f32 %v505_v22, 0.0  ;;  %v507_v33 = vadd.f32 %v824_v10, %v411_v23  ;;  %v412_v34 = vadd.f32 %v994_v11, %v373_v24  ;;  %v374_v35 = vmul.f32 %v764_v25, %v983_v0  ;;  %v875_v10 = vld [vmem:[%s973_s22 + $0x78] sm:$0xff]  }
  0x31   : > { %568 = vst [vmem:[%s1014_s7 + $0x88] sm:$0xff] %v536_v27  ;;  %v538_v36 = vmax.f32 %v506_v28, 0.0  ;;  %v375_v37 = vmul.f32 %v765_v30, %v983_v0  ;;  %v829_v38 = vunpack.c.h.bf16 %v871_v17  ;;  %v768_v39 = vunpack.c.l.bf16 %v857_v26 }
  0x32   : > { %569 = vst [vmem:[%s1014_s7 + $0x90] sm:$0xff] %v537_v32  ;;  %v539_v42 = vmax.f32 %v507_v33, 0.0  ;;  %v508_v43 = vadd.f32 %v825_v21, %v412_v34  ;;  %v413_v44 = vadd.f32 %v994_v11, %v374_v35  ;;  %v832_v45 = vunpack.c.l.bf16 %v872_v31 }
  0x33   : > { %570 = vst [vmem:[%s1014_s7 + $0x98] sm:$0xff] %v538_v36  ;;  %v414_v46 = vadd.f32 %v994_v11, %v375_v37  ;;  %v376_v47 = vmul.f32 %v768_v39, %v983_v0  ;;  %v769_v48 = vunpack.c.h.bf16 %v857_v26  ;;  %v833_v49 = vunpack.c.h.bf16 %v872_v31 }
  0x34   : > { %571 = vst [vmem:[%s1014_s7 + $0xa0] sm:$0xff] %v539_v42  ;;  %v540_v51 = vmax.f32 %v508_v43, 0.0  ;;  %v509_v52 = vadd.f32 %v828_v29, %v413_v44  ;;  %v772_v53 = vunpack.c.l.bf16 %v858_v40  ;;  %v836_v54 = vunpack.c.l.bf16 %v873_v41 }
  0x35   : > { %v510_v55 = vadd.f32 %v829_v38, %v414_v46  ;;  %v415_v56 = vadd.f32 %v994_v11, %v376_v47  ;;  %v377_v57 = vmul.f32 %v769_v48, %v983_v0  ;;  %v773_v58 = vunpack.c.h.bf16 %v858_v40 }
  0x36   : > { %572 = vst [vmem:[%s1014_s7 + $0xa8] sm:$0xff] %v540_v51  ;;  %v541_v60 = vmax.f32 %v509_v52, 0.0  ;;  %v378_v61 = vmul.f32 %v772_v53, %v983_v0  ;;  %v837_v62 = vunpack.c.h.bf16 %v873_v41  ;;  %v776_v63 = vunpack.c.l.bf16 %v859_v50 }
  0x37   : > { %v542_v1 = vmax.f32 %v510_v55, 0.0  ;;  %v511_v2 = vadd.f32 %v832_v45, %v415_v56  ;;  %v416_v3 = vadd.f32 %v994_v11, %v377_v57  ;;  %v379_v4 = vmul.f32 %v773_v58, %v983_v0 }
  0x38   : > { %573 = vst [vmem:[%s1014_s7 + $0xb0] sm:$0xff] %v541_v60  ;;  %v417_v6 = vadd.f32 %v994_v11, %v378_v61  ;;  %v380_v7 = vmul.f32 %v776_v63, %v983_v0  ;;  %v840_v8 = vunpack.c.l.bf16 %v874_v59  ;;  %v777_v9 = vunpack.c.h.bf16 %v859_v50 }
  0x39   : > { %574 = vst [vmem:[%s1014_s7 + $0xb8] sm:$0xff] %v542_v1  ;;  %v543_v12 = vmax.f32 %v511_v2, 0.0  ;;  %v512_v13 = vadd.f32 %v833_v49, %v416_v3  ;;  %v418_v14 = vadd.f32 %v994_v11, %v379_v4  ;;  %v841_v15 = vunpack.c.h.bf16 %v874_v59 }
  0x3a   : > { %v513_v16 = vadd.f32 %v836_v54, %v417_v6  ;;  %v419_v17 = vadd.f32 %v994_v11, %v380_v7  ;;  %v381_v18 = vmul.f32 %v777_v9, %v983_v0  ;;  %v780_v19 = vunpack.c.l.bf16 %v860_v5 }
  0x3b   : > { %575 = vst [vmem:[%s1014_s7 + $0xc0] sm:$0xff] %v543_v12  ;;  %v544_v20 = vmax.f32 %v512_v13, 0.0  ;;  %v514_v21 = vadd.f32 %v837_v62, %v418_v14  ;;  %v844_v22 = vunpack.c.l.bf16 %v875_v10  ;;  %v781_v23 = vunpack.c.h.bf16 %v860_v5 }
  0x3c   : > { %v545_v24 = vmax.f32 %v513_v16, 0.0  ;;  %v515_v25 = vadd.f32 %v840_v8, %v419_v17  ;;  %v420_v26 = vadd.f32 %v994_v11, %v381_v18  ;;  %v382_v27 = vmul.f32 %v780_v19, %v983_v0 }
  0x3d   : > { %576 = vst [vmem:[%s1014_s7 + $0xc8] sm:$0xff] %v544_v20  ;;  %v546_v28 = vmax.f32 %v514_v21, 0.0  ;;  %v383_v29 = vmul.f32 %v781_v23, %v983_v0  ;;  %v845_v30 = vunpack.c.h.bf16 %v875_v10 }
  0x3e   : > { %577 = vst [vmem:[%s1014_s7 + $0xd0] sm:$0xff] %v545_v24  ;;  %v547_v31 = vmax.f32 %v515_v25, 0.0  ;;  %v516_v32 = vadd.f32 %v841_v15, %v420_v26  ;;  %v421_v33 = vadd.f32 %v994_v11, %v382_v27 }
  0x3f   : > { %578 = vst [vmem:[%s1014_s7 + $0xd8] sm:$0xff] %v546_v28  ;;  %v422_v34 = vadd.f32 %v994_v11, %v383_v29 }
  0x40   : > { %579 = vst [vmem:[%s1014_s7 + $0xe0] sm:$0xff] %v547_v31  ;;  %v548_v35 = vmax.f32 %v516_v32, 0.0  ;;  %v517_v36 = vadd.f32 %v844_v22, %v421_v33 }
  0x41   : > { %v518_v37 = vadd.f32 %v845_v30, %v422_v34 }
  0x42   : > { %580 = vst [vmem:[%s1014_s7 + $0xe8] sm:$0xff] %v548_v35  ;;  %v549_v38 = vmax.f32 %v517_v36, 0.0 }
  0x43   : > { %v550_v39 = vmax.f32 %v518_v37, 0.0 }
  0x44   : > { %581 = vst [vmem:[%s1014_s7 + $0xf0] sm:$0xff] %v549_v38 }
  0x45   : > { %582 = vst [vmem:[%s1014_s7 + $0xf8] sm:$0xff] %v550_v39 }
  0x46 PF: > { %s14_s17 = sadd.s32 1, %s922_s17   ;;  %s1138_s15 = smov %s918_s16 }
  0x47   : > { %p11_p5 = scmp.ge.s32.totalorder %s14_s17, 4   ;;  %s1139_s16 = smov %s1141_s18 }
  0x49   :  { %13 = sbr.rel (!%p11_p5) target bundleno = 2 (0x2), region = 69 }

// kernel: _lambda_.3
= control target key start
LH: loop header
LB: loop body
LE: loop exit
PB: predicated region body
PF: predicated region fallthrough
CT: control target
= control target key end

     0   :  { %s7805_s18 = smov 0   ;;  %s7807_s19 = smov 0   ;;  %s10596_s0 = inlined_call_operand.vmem [shape: bf16[2,16,16,128], index: 0, kind: input, shape index: {}, may-alias: {0,1,2}]   ;;  %s10597_s1 = inlined_call_operand.vmem [shape: bf16[2,16,16,128], index: 1, kind: input, shape index: {}, may-alias: {0,1,2}]   ;;  %s10598_s2 = inlined_call_operand.vmem [shape: bf16[2,16,16,128], index: 2, kind: input, shape index: {}, may-alias: {0,1,2}]   ;;  %s10599_s3 = inlined_call_operand.vmem [shape: bf16[9,128,128], index: 3, kind: input, shape index: {}]   ;;  %s10600_s4 = inlined_call_operand.vmem [shape: bf16[2,16,16,128], index: 4, kind: output, shape index: {0}]   ;;  %s10601_s5 = inlined_call_operand.vmem [shape: f32[2,1,2,128], index: 5, kind: output, shape index: {1}]  }
   0x1   :  { %s7809_s0 = smov 0  }
   0x2 LB: > { %s28_s2 = sadd.s32 1, %s7768_s19  ;;  %p6344_p0 = scmp.ge.s32.totalorder %s7772_s0, 1  ;;  %s7772_s0 = sphi %s7809_s0, %s16_s0   ;;  %s7768_s19 = sphi %s7807_s19, %s10848_s19   ;;  %s7764_s18 = sphi %s7805_s18, %s10847_s18  }
   0x3   : > { %p30_p1 = scmp.ge.s32.totalorder %s28_s2, 2  ;;  %p278_p2 = scmp.lt.s32.totalorder %s7772_s0, 3 }
   0x5   : > { %s10850_s2 = smov (%p30_p1, %s28_s2), 0  ;;  %p279_p3 = pnand %p6344_p0, %p278_p2 }
   0x7   : > { %282 = sbr.rel (%p279_p3) target bundleno = 658 (0x292), region = 36 }
   0xc   : > { %v7601_v0 = vld [vmem:[%s10599_s3 + $0x78] sm:$0xff]   ;;  %v7602_v1 = vld [vmem:[%s10599_s3 + $0x70] sm:$0xff]   ;;  %v7774_v2 = vmov 0   ;;  %p367_p4 = scmp.lt.s32.totalorder %s7764_s18, 1  ;;  %v7603_v3 = vld [vmem:[%s10599_s3 + $0x68] sm:$0xff]   ;;  %vm413_vm0 = vcmask 1040384  }
   0xd   : > { %7128 = vmatprep.subr.bf16.mxu0 %v7601_v0  ;;  %7560 = vmatprep.subr.bf16.mxu1 %v7601_v0  ;;  %1002 = vst [vmem:[#allocation2 + $0x4] sm:$0xf] %v7774_v2  ;;  %1046 = vst [vmem:[#allocation2 + $0xd0] sm:$0xf] %v7774_v2  ;;  %v7604_v4 = vld [vmem:[%s10599_s3 + $0x60] sm:$0xff]   ;;  %v10626_v6 = vmov 0 }
   0xe   : > { %7129 = vmatpush3.bf16.msra.mxu0 %v7601_v0  ;;  %7568 = vmatpush3.bf16.msra.mxu1 %v7601_v0  ;;  %s10852_s18 = smov (!%p367_p4, %s7764_s18), 1  ;;  %vm414_vm1 = vsmask.f32 256  ;;  %v416_v5 = vld [vmem:[#allocation2] sm:$0x1]  ;;  %v10629_v9 = vmov 0 }
   0xf   : > { %7130 = vmatprep.subr.bf16.mxu0 %v7602_v1  ;;  %7561 = vmatprep.subr.bf16.mxu1 %v7602_v1  ;;  %s6781_s28 = sshll.u32 %s10852_s18, 7  ;;  %vm470_vm2 = vsmask.f32 7938  ;;  %vm7840_vm3 = vmand %vm413_vm0, %vm414_vm1  ;;  %v472_v7 = vld [vmem:[#allocation2 + $0x8] sm:$0x1]  ;;  %v7605_v16 = vld [vmem:[%s10599_s3 + $0x58] sm:$0xff]  }
  0x10   : > { %v10627_v6 = vsel %vm7840_vm3, 4294967295, %v10626_v6  ;;  %s7849_s6 = scalar_lea.vmem %s10597_s1, %s6781_s28  ;;  %v417_v8 = vsel %vm7840_vm3, 0, %v416_v5  ;;  %vm7855_vm4 = vmand %vm413_vm0, %vm470_vm2  ;;  %v440_v11 = vld [vmem:[#allocation2 + $0x60] sm:$0x1]  ;;  %v496_v15 = vld [vmem:[#allocation2 + $0x68] sm:$0x1]  ;;  %s10450_s20 = scalar_lea.vmem %s10600_s4, %s6781_s28 }
  0x11   : > { %10628 = vst [vmem:[#allocation3_spill] sm:$0xff] %v10627_v6  ;;  %v10630_v9 = vsel %vm7855_vm4, 4294967295, %v10629_v9  ;;  %418 = vst [vmem:[#allocation2] sm:$0x1] %v417_v8  ;;  %v473_v12 = vsel %vm7855_vm4, 0, %v472_v7  ;;  %v441_v14 = vsel %vm7840_vm3, 0, %v440_v11 }
  0x12   : > { %7131 = vmatpush3.bf16.msra.mxu0 %v7602_v1  ;;  %7569 = vmatpush3.bf16.msra.mxu1 %v7602_v1  ;;  %10631 = vst [vmem:[#allocation4_spill] sm:$0xff] %v10630_v9  ;;  %474 = vst [vmem:[#allocation2 + $0x8] sm:$0x1] %v473_v12  ;;  %v497_v17 = vsel %vm7855_vm4, 0, %v496_v15  ;;  %v540_v18 = vld [vmem:[%s7849_s6 + $0x38] sm:$0xf] }
  0x13   : > { %7132 = vmatprep.subr.bf16.mxu0 %v7603_v3  ;;  %7562 = vmatprep.subr.bf16.mxu1 %v7603_v3  ;;  %442 = vst [vmem:[#allocation2 + $0x60] sm:$0x1] %v441_v14  ;;  %v541_v19 = vld [vmem:[%s7849_s6 + $0x3c] sm:$0xf]  ;;  %vm881_vm5 = vcmask 1043456   ;;  %v680_v21 = vshrl.u32 %v540_v18, 16 }
  0x14   : > { %v1085_v10 = vld [vmem:[#allocation2 + $0x4] sm:$0xf]  ;;  %498 = vst [vmem:[#allocation2 + $0x68] sm:$0x1] %v497_v17  ;;  %vm558_vm6 = vsmask.f32 4368  ;;  %vm7882_vm7 = vmand %vm881_vm5, %vm470_vm2 }
  0x15   : > { %v1161_v13 = vshll.u32 %v1085_v10, 16  ;;  %v1165_v20 = vshrl.u32 %v1085_v10, 16  ;;  %v7873_v22 = vld [vmem:[%s10599_s3 + $0x50] sm:$0xff]   ;;  %v683_v24 = vshll.u32 %v540_v18, 16  ;;  %v688_v25 = vshrl.u32 %v541_v19, 16  ;;  %vm7893_vm8 = vmor %vm414_vm1, %vm558_vm6  ;;  %v7607_v53 = vld [vmem:[%s10599_s3 + $0x48] sm:$0xff]  }
  0x16   : > { %7133 = vmatpush3.bf16.msra.mxu0 %v7603_v3  ;;  %7570 = vmatpush3.bf16.msra.mxu1 %v7603_v3  ;;  %v691_v26 = vshll.u32 %v541_v19, 16  ;;  %v419_v27 = vld [vmem:[#allocation2 + $0xc] sm:$0x1]  ;;  %v682_v28 = vrot.slane %v680_v21, 7  ;;  %v475_v30 = vld [vmem:[#allocation2 + $0x14] sm:$0x1] }
  0x17   : > { %7134 = vmatprep.subr.bf16.mxu0 %v7604_v4  ;;  %7563 = vmatprep.subr.bf16.mxu1 %v7604_v4  ;;  %v7875_v23 = vrot.slane %v1161_v13, 5  ;;  %v420_v29 = vsel %vm7840_vm3, 0, %v419_v27  ;;  %v526_v31 = vld [vmem:[%s7849_s6] sm:$0xf]  ;;  %v10632_v32 = vmov 0  ;;  %v690_v33 = vrot.slane %v688_v25, 7 }
  0x18   : > { %v10633_v32 = vsel %vm7882_vm7, 4294967295, %v10632_v32  ;;  %421 = vst [vmem:[#allocation2 + $0xc] sm:$0x1] %v420_v29  ;;  %v476_v34 = vsel %vm7855_vm4, 0, %v475_v30  ;;  %v527_v35 = vld [vmem:[%s7849_s6 + $0x4] sm:$0xf]  ;;  %v685_v40 = vor.u32 %v683_v24, %v682_v28 }
  0x19   : > { %10634 = vst [vmem:[#allocation5_spill] sm:$0xff] %v10633_v32  ;;  %v561_v36 = vshrl.u32 %v526_v31, 16  ;;  %v564_v37 = vshll.u32 %v526_v31, 16  ;;  %v7889_v38 = vrot.slane %v1165_v20, 4  ;;  %v10635_v39 = vmov 0  ;;  %v7608_v12 = vld [vmem:[%s10599_s3 + $0x40] sm:$0xff]  }
  0x1a   : > { %7135 = vmatpush3.bf16.msra.mxu0 %v7604_v4  ;;  %7571 = vmatpush3.bf16.msra.mxu1 %v7604_v4  ;;  %v10636_v39 = vsel %vm7893_vm8, 4294967295, %v10635_v39  ;;  %v686_v41 = vrot.slane %v682_v28, 4  ;;  %477 = vst [vmem:[#allocation2 + $0x14] sm:$0x1] %v476_v34  ;;  %v569_v42 = vshrl.u32 %v527_v35, 16  ;;  %v693_v45 = vor.u32 %v691_v26, %v690_v33  ;;  %v7939_v19 = vld [vmem:[%s10599_s3 + $0x38] sm:$0xff]  }
  0x1b   : > { %7136 = vmatprep.subr.bf16.mxu0 %v7605_v16  ;;  %7564 = vmatprep.subr.bf16.mxu1 %v7605_v16  ;;  %10637 = vst [vmem:[#allocation6_spill] sm:$0xff] %v10636_v39  ;;  %v443_v43 = vld [vmem:[#allocation2 + $0x6c] sm:$0x1]  ;;  %v999_v44 = vld [vmem:[#allocation2] sm:$0xf]  ;;  %v695_v46 = vrot.slane %v690_v33, 4  ;;  %v1168_v5 = vor.u32 %v7889_v38, %v7875_v23 }
  0x1c   : > { %v563_v47 = vrot.slane %v561_v36, 7  ;;  %v572_v48 = vshll.u32 %v527_v35, 16  ;;  %v1000_v49 = vsel %vm7882_vm7, 0, %v999_v44  ;;  %v1003_v50 = vld [vmem:[#allocation2 + $0x8] sm:$0x1]  ;;  %v571_v52 = vrot.slane %v569_v42, 7 }
  0x1d   : > { %vm1148_vm9 = vsmask.f32 3328  ;;  %vm1149_vm10 = vsmask.f32 7440  ;;  %v932_v51 = vld [vmem:[#allocation2 + $0x60] sm:$0xf]  ;;  %v694_v55 = vsel %vm7893_vm8, %v686_v41, %v693_v45 }
  0x1e   : > { %7137 = vmatpush3.bf16.msra.mxu0 %v7605_v16  ;;  %7572 = vmatpush3.bf16.msra.mxu1 %v7605_v16  ;;  %1001 = vst [vmem:[#allocation2] sm:$0xf] %v1000_v49  ;;  %v1004_v54 = vsel %vm7840_vm3, 0, %v1003_v50  ;;  %v933_v56 = vsel %vm7882_vm7, %v685_v40, %v932_v51  ;;  %v936_v57 = vld [vmem:[#allocation2 + $0x68] sm:$0x1]  ;;  %v566_v58 = vor.u32 %v564_v37, %v563_v47  ;;  %v567_v61 = vrot.slane %v563_v47, 4  ;;  %vm7956_vm11 = vmor %vm1148_vm9, %vm1149_vm10 }
  0x1f   : > { %7138 = vmatprep.subr.bf16.mxu0 %v7873_v22  ;;  %7565 = vmatprep.subr.bf16.mxu1 %v7873_v22  ;;  %v499_v59 = vld [vmem:[#allocation2 + $0x74] sm:$0x1]  ;;  %1005 = vst [vmem:[#allocation2 + $0x8] sm:$0x1] %v1004_v54  ;;  %934 = vst [vmem:[#allocation2 + $0x60] sm:$0xf] %v933_v56  ;;  %v937_v60 = vsel %vm7840_vm3, %v695_v46, %v936_v57  ;;  %v574_v62 = vor.u32 %v572_v48, %v571_v52 }
  0x20   : > { %935 = vst [vmem:[#allocation2 + $0x64] sm:$0xf] %v694_v55  ;;  %v576_v63 = vrot.slane %v571_v52, 4  ;;  %v7913_v0 = vld [vmem:[%s7849_s6 + $0x40] sm:$0xf]  ;;  %v444_v2 = vsel %vm7840_vm3, 0, %v443_v43 }
  0x21   : > { %v543_v1 = vld [vmem:[%s7849_s6 + $0x44] sm:$0xf]  ;;  %938 = vst [vmem:[#allocation2 + $0x68] sm:$0x1] %v937_v60  ;;  %v500_v3 = vsel %vm7855_vm4, 0, %v499_v59  ;;  %v697_v4 = vshrl.u32 %v7913_v0, 16  ;;  %v575_v7 = vsel %vm7893_vm8, %v567_v61, %v574_v62 }
  0x22   : > { %7139 = vmatpush3.bf16.msra.mxu0 %v7873_v22  ;;  %7573 = vmatpush3.bf16.msra.mxu1 %v7873_v22  ;;  %v883_v8 = vld [vmem:[#allocation2 + $0xc] sm:$0xf]  ;;  %445 = vst [vmem:[#allocation2 + $0x6c] sm:$0x1] %v444_v2  ;;  %501 = vst [vmem:[#allocation2 + $0x74] sm:$0x1] %v500_v3 }
  0x23   : > { %v705_v10 = vshrl.u32 %v543_v1, 16  ;;  %v708_v11 = vshll.u32 %v543_v1, 16  ;;  %7140 = vmatprep.subr.bf16.mxu0 %v7607_v53  ;;  %7566 = vmatprep.subr.bf16.mxu1 %v7607_v53  ;;  %v884_v13 = vsel %vm7882_vm7, %v566_v58, %v883_v8  ;;  %886 = vst [vmem:[#allocation2 + $0x10] sm:$0xf] %v575_v7  ;;  %v887_v14 = vld [vmem:[#allocation2 + $0x14] sm:$0x1] }
  0x24   : > { %v699_v15 = vrot.slane %v697_v4, 7  ;;  %885 = vst [vmem:[#allocation2 + $0xc] sm:$0xf] %v884_v13  ;;  %v888_v16 = vsel %vm7840_vm3, %v576_v63, %v887_v14  ;;  %v7944_v20 = vld [vmem:[%s10599_s3 + $0xb8] sm:$0xff]   ;;  %v1169_v22 = vrot.slane %v1168_v5, 4  ;;  %v700_v24 = vshll.u32 %v7913_v0, 16 }
  0x25   : > { %v7934_v17 = vrot.slane %v705_v10, 7  ;;  %889 = vst [vmem:[#allocation2 + $0x14] sm:$0x1] %v888_v16  ;;  %v1084_v21 = vld [vmem:[#allocation2] sm:$0xf]  ;;  %vm2178_vm12 = vcmask 1042432  }
  0x26   : > { %v703_v18 = vrot.slane %v699_v15, 4  ;;  %7141 = vmatpush3.bf16.msra.mxu0 %v7607_v53  ;;  %7574 = vmatpush3.bf16.msra.mxu1 %v7607_v53  ;;  %v7948_v26 = vld [vmem:[#allocation2 + $0x8] sm:$0x1]  ;;  %v1152_v27 = vshrl.u32 %v1084_v21, 16  ;;  %v1155_v28 = vshll.u32 %v1084_v21, 16  ;;  %v702_v51 = vor.u32 %v700_v24, %v699_v15  ;;  %s6353_s28 = sshll.u32 %s10852_s18, 1 }
  0x27   : > { %v710_v25 = vor.u32 %v708_v11, %v7934_v17  ;;  %7142 = vmatprep.subr.bf16.mxu0 %v7608_v12  ;;  %7567 = vmatprep.subr.bf16.mxu1 %v7608_v12  ;;  %v1100_v29 = vld [vmem:[#allocation2 + $0x60] sm:$0xf]  ;;  %v1171_v30 = vshll.u32 %v7948_v26, 16  ;;  %v1101_v31 = vld [vmem:[#allocation2 + $0x64] sm:$0xf]  ;;  %v712_v35 = vrot.slane %v7934_v17, 4  ;;  %s411_s23 = scalar_lea.vmem %s10601_s5, %s6353_s28 }
  0x28   : > { %v1140_v33 = vld [vmem:[#allocation2 + $0x68] sm:$0x1]  ;;  %v1154_v37 = vrot.slane %v1152_v27, 4  ;;  %v1157_v38 = vrot.slane %v1155_v28, 5  ;;  %v1344_v40 = vshrl.u32 %v1100_v29, 16  ;;  %v1347_v41 = vshll.u32 %v1100_v29, 16 }
  0x29   : > { %v711_v34 = vsel %vm7893_vm8, %v703_v18, %v710_v25  ;;  %v1173_v42 = vrot.slane %v1171_v30, 5  ;;  %v1353_v43 = vshll.u32 %v1101_v31, 16  ;;  %v1357_v44 = vshrl.u32 %v1101_v31, 16  ;;  %v939_v61 = vld [vmem:[#allocation2 + $0x6c] sm:$0xf] }
  0x2a   : > { %942 = vst [vmem:[#allocation2 + $0x70] sm:$0xf] %v711_v34  ;;  %7143 = vmatpush3.bf16.msra.mxu0 %v7608_v12  ;;  %7575 = vmatpush3.bf16.msra.mxu1 %v7608_v12  ;;  %v1363_v45 = vshll.u32 %v1140_v33, 16  ;;  %v1158_v46 = vor.u32 %v1157_v38, %v1154_v37  ;;  %v1346_v47 = vrot.slane %v1344_v40, 4  ;;  %v1349_v48 = vrot.slane %v1347_v41, 5 }
  0x2b   : > { %v1086_v49 = vld [vmem:[#allocation2 + $0xc] sm:$0xf]  ;;  %v1087_v50 = vld [vmem:[#allocation2 + $0x10] sm:$0xf]  ;;  %7176 = vmatprep.subr.bf16.mxu1 %v7939_v19  ;;  %7224 = vmatprep.subr.bf16.mxu0 %v7944_v20  ;;  %v1174_v52 = vsel %vm7956_vm11, %v1169_v22, %v1173_v42  ;;  %v1355_v53 = vrot.slane %v1353_v43, 5  ;;  %v1359_v54 = vrot.slane %v1357_v44, 4  ;;  %v940_v24 = vsel %vm7882_vm7, %v702_v51, %v939_v61 }
  0x2c   : > { %v1365_v55 = vrot.slane %v1363_v45, 5  ;;  %v1133_v56 = vld [vmem:[#allocation2 + $0x14] sm:$0x1]  ;;  %v1159_v57 = vrot.slane %v1158_v46, 4  ;;  %v1350_v58 = vor.u32 %v1349_v48, %v1346_v47  ;;  %v1176_v59 = vshrl.u32 %v1086_v49, 16 }
  0x2d   : > { %v1179_v60 = vshll.u32 %v1086_v49, 16  ;;  %v1360_v62 = vor.u32 %v1359_v54, %v1355_v53  ;;  %v1185_v63 = vshll.u32 %v1087_v50, 16  ;;  %v1189_v0 = vshrl.u32 %v1087_v50, 16  ;;  %v943_v2 = vld [vmem:[#allocation2 + $0x74] sm:$0x1] }
  0x2e   : > { %v1195_v1 = vshll.u32 %v1133_v56, 16  ;;  %v1164_v3 = vsel %vm7956_vm11, %v1159_v57, %v7875_v23  ;;  %v1351_v4 = vrot.slane %v1350_v58, 4  ;;  %v1178_v5 = vrot.slane %v1176_v59, 4  ;;  %v422_v8 = vld [vmem:[#allocation2 + $0x18] sm:$0x1] }
  0x2f   : > { %v1181_v7 = vrot.slane %v1179_v60, 5  ;;  %v6370_v10 = vcombine.low %v1164_v3, %v1174_v52  ;;  %v1361_v11 = vrot.slane %v1360_v62, 4  ;;  %v1187_v12 = vrot.slane %v1185_v63, 5  ;;  %v478_v18 = vld [vmem:[#allocation2 + $0x20] sm:$0x1] }
  0x30   : > { %v1191_v13 = vrot.slane %v1189_v0, 4  ;;  %v1356_v15 = vsel %vm7956_vm11, %v1351_v4, %v1355_v53  ;;  %v1197_v17 = vrot.slane %v1195_v1, 5  ;;  %v528_v21 = vld [vmem:[%s7849_s6 + $0x8] sm:$0xf]  ;;  %v944_v25 = vsel %vm7840_vm3, %v712_v35, %v943_v2  ;;  %v529_v27 = vld [vmem:[%s7849_s6 + $0xc] sm:$0xf] }
  0x31   : > { %v1103_v14 = vld [vmem:[#allocation2 + $0x70] sm:$0xf]  ;;  %v1182_v16 = vor.u32 %v1181_v7, %v1178_v5  ;;  %7144 = vmatprep.mubr.bf16.mxu0 %v6370_v10  ;;  %v1366_v23 = vsel %vm7956_vm11, %v1361_v11, %v1365_v55  ;;  %941 = vst [vmem:[#allocation2 + $0x6c] sm:$0xf] %v940_v24  ;;  %945 = vst [vmem:[#allocation2 + $0x74] sm:$0x1] %v944_v25 }
  0x32   : > { %v1192_v22 = vor.u32 %v1191_v13, %v1187_v12  ;;  %v6378_v28 = vcombine.low %v1356_v15, %v1366_v23  ;;  %v1377_v30 = vshll.u32 %v1103_v14, 16  ;;  %v1381_v31 = vshrl.u32 %v1103_v14, 16  ;;  %v446_v33 = vld [vmem:[#allocation2 + $0x78] sm:$0x1]  ;;  %v502_v41 = vld [vmem:[#allocation2 + $0x80] sm:$0x1] }
  0x33   : > { %v1183_v29 = vrot.slane %v1182_v16, 4  ;;  %v423_v37 = vsel %vm7840_vm3, 0, %v422_v8  ;;  %v479_v38 = vsel %vm7855_vm4, 0, %v478_v18  ;;  %v578_v40 = vshrl.u32 %v528_v21, 16  ;;  %v544_v45 = vld [vmem:[%s7849_s6 + $0x48] sm:$0xf] }
  0x34   : > { %v1193_v34 = vrot.slane %v1192_v22, 4  ;;  %7160 = vmatprep.mubr.bf16.mxu1 %v6378_v28  ;;  %v7983_v42 = vrot.slane %v1377_v30, 5  ;;  %v1383_v43 = vrot.slane %v1381_v31, 4  ;;  %424 = vst [vmem:[#allocation2 + $0x18] sm:$0x1] %v423_v37  ;;  %v581_v44 = vshll.u32 %v528_v21, 16 }
  0x35   : > { %v1188_v35 = vsel %vm7956_vm11, %v1183_v29, %v1187_v12  ;;  %480 = vst [vmem:[#allocation2 + $0x20] sm:$0x1] %v479_v38  ;;  %v580_v47 = vrot.slane %v578_v40, 7  ;;  %v586_v48 = vshrl.u32 %v529_v27, 16  ;;  %v589_v49 = vshll.u32 %v529_v27, 16  ;;  %v7612_v53 = vld [vmem:[%s10599_s3 + $0xb0] sm:$0xff]  }
  0x36   : > { %v1198_v46 = vsel %vm7956_vm11, %v1193_v34, %v1197_v17  ;;  %v545_v50 = vld [vmem:[%s7849_s6 + $0x4c] sm:$0xf]  ;;  %v1384_v52 = vor.u32 %v1383_v43, %v7983_v42  ;;  %v447_v54 = vsel %vm7840_vm3, 0, %v446_v33  ;;  %v503_v55 = vsel %vm7855_vm4, 0, %v502_v41  ;;  %v425_v60 = vld [vmem:[#allocation2 + $0x24] sm:$0x1] }
  0x37   : > { %v6371_v51 = vcombine.low %v1188_v35, %v1198_v46  ;;  %v583_v56 = vor.u32 %v581_v44, %v580_v47  ;;  %v584_v57 = vrot.slane %v580_v47, 4  ;;  %v588_v58 = vrot.slane %v586_v48, 7  ;;  %448 = vst [vmem:[#allocation2 + $0x78] sm:$0x1] %v447_v54  ;;  %504 = vst [vmem:[#allocation2 + $0x80] sm:$0x1] %v503_v55 }
  0x38   : > { %v714_v59 = vshrl.u32 %v544_v45, 16  ;;  %v7997_v61 = vrot.slane %v1384_v52, 4  ;;  %v717_v62 = vshll.u32 %v544_v45, 16  ;;  %v722_v63 = vshrl.u32 %v545_v50, 16  ;;  %v481_v1 = vld [vmem:[#allocation2 + $0x2c] sm:$0x1] }
  0x39   : > { %7145 = vmatmul.mubr.bf16.vlgmr.msra.gmra.mxu0 %v6371_v51  ;;  %v725_v0 = vshll.u32 %v545_v50, 16  ;;  %v7614_v2 = vld [vmem:[%s10599_s3 + $0xa8] sm:$0xff]   ;;  %v1141_v4 = vld [vmem:[#allocation2 + $0x74] sm:$0x1]  ;;  %v591_v5 = vor.u32 %v589_v49, %v588_v58  ;;  %v593_v7 = vrot.slane %v588_v58, 4  ;;  %v7616_v31 = vld [vmem:[%s10599_s3 + $0xa0] sm:$0xff]  }
  0x3a   : > { %v1102_v3 = vld [vmem:[#allocation2 + $0x6c] sm:$0xf]  ;;  %7225 = vmatpush3.bf16.msra.mxu0 %v7944_v20  ;;  %v716_v8 = vrot.slane %v714_v59, 7  ;;  %v530_v10 = vld [vmem:[%s7849_s6 + $0x10] sm:$0xf]  ;;  %v1387_v13 = vshll.u32 %v1141_v4, 16 }
  0x3b   : > { %v1368_v11 = vshrl.u32 %v1102_v3, 16  ;;  %v1371_v12 = vshll.u32 %v1102_v3, 16  ;;  %7226 = vmatprep.subr.bf16.mxu0 %v7612_v53  ;;  %v724_v14 = vrot.slane %v722_v63, 7  ;;  %v531_v15 = vld [vmem:[%s7849_s6 + $0x14] sm:$0xf]  ;;  %v592_v16 = vsel %vm7893_vm8, %v584_v57, %v591_v5 }
  0x3c   : > { %v890_v17 = vld [vmem:[#allocation2 + $0x18] sm:$0xf]  ;;  %v894_v18 = vld [vmem:[#allocation2 + $0x20] sm:$0x1]  ;;  %v719_v21 = vor.u32 %v717_v62, %v716_v8  ;;  %v720_v23 = vrot.slane %v716_v8, 4  ;;  %v426_v20 = vsel %vm7840_vm3, 0, %v425_v60 }
  0x3d   : > { %v449_v22 = vld [vmem:[#allocation2 + $0x84] sm:$0x1]  ;;  %v1370_v24 = vrot.slane %v1368_v11, 4  ;;  %v1373_v25 = vrot.slane %v1371_v12, 5  ;;  %v1389_v27 = vrot.slane %v1387_v13, 5  ;;  %v891_v28 = vsel %vm7882_vm7, %v583_v56, %v890_v17  ;;  %v7611_v60 = vld [vmem:[%s10599_s3 + $0x30] sm:$0xff]  }
  0x3e   : > { %893 = vst [vmem:[#allocation2 + $0x1c] sm:$0xf] %v592_v16  ;;  %427 = vst [vmem:[#allocation2 + $0x24] sm:$0x1] %v426_v20  ;;  %v505_v29 = vld [vmem:[#allocation2 + $0x8c] sm:$0x1]  ;;  %7227 = vmatpush3.bf16.msra.mxu0 %v7612_v53  ;;  %v895_v33 = vsel %vm7840_vm3, %v593_v7, %v894_v18  ;;  %v727_v34 = vor.u32 %v725_v0, %v724_v14 }
  0x3f   : > { %v8012_v30 = vld [vmem:[%s7849_s6 + $0x50] sm:$0xf]  ;;  %892 = vst [vmem:[#allocation2 + $0x18] sm:$0xf] %v891_v28  ;;  %v729_v37 = vrot.slane %v724_v14, 4  ;;  %v482_v38 = vsel %vm7855_vm4, 0, %v481_v1  ;;  %v1374_v41 = vor.u32 %v1373_v25, %v1370_v24  ;;  %v1390_v35 = vsel %vm7956_vm11, %v7997_v61, %v1389_v27  ;;  %7228 = vmatprep.subr.bf16.mxu0 %v7614_v2 }
  0x40   : > { %v8022_v40 = vld [vmem:[%s7849_s6 + $0x54] sm:$0xf]  ;;  %896 = vst [vmem:[#allocation2 + $0x20] sm:$0x1] %v895_v33  ;;  %v946_v43 = vld [vmem:[#allocation2 + $0x78] sm:$0xf]  ;;  %v728_v47 = vsel %vm7893_vm8, %v720_v23, %v727_v34 }
  0x41   : > { %v950_v44 = vld [vmem:[#allocation2 + $0x80] sm:$0x1]  ;;  %483 = vst [vmem:[#allocation2 + $0x2c] sm:$0x1] %v482_v38  ;;  %v595_v45 = vshrl.u32 %v530_v10, 16  ;;  %v598_v46 = vshll.u32 %v530_v10, 16  ;;  %v947_v48 = vsel %vm7882_vm7, %v719_v21, %v946_v43 }
  0x42   : > { %v951_v49 = vsel %vm7840_vm3, %v729_v37, %v950_v44  ;;  %v603_v50 = vshrl.u32 %v531_v15, 16  ;;  %v1375_v51 = vrot.slane %v1374_v41, 4  ;;  %948 = vst [vmem:[#allocation2 + $0x78] sm:$0xf] %v947_v48  ;;  %949 = vst [vmem:[#allocation2 + $0x7c] sm:$0xf] %v728_v47  ;;  %7229 = vmatpush3.bf16.msra.mxu0 %v7614_v2 }
  0x43   : > { %952 = vst [vmem:[#allocation2 + $0x80] sm:$0x1] %v951_v49  ;;  %v597_v52 = vrot.slane %v595_v45, 7  ;;  %v606_v53 = vshll.u32 %v531_v15, 16  ;;  %v450_v54 = vsel %vm7840_vm3, 0, %v449_v22  ;;  %v506_v56 = vsel %vm7855_vm4, 0, %v505_v29  ;;  %7230 = vmatprep.subr.bf16.mxu0 %v7616_v31 }
  0x44   : > { %v605_v55 = vrot.slane %v603_v50, 7  ;;  %451 = vst [vmem:[#allocation2 + $0x84] sm:$0x1] %v450_v54  ;;  %v731_v57 = vshrl.u32 %v8012_v30, 16  ;;  %v734_v58 = vshll.u32 %v8012_v30, 16  ;;  %v1380_v59 = vsel %vm7956_vm11, %v1375_v51, %v7983_v42  ;;  %v7618_v0 = vld [vmem:[%s10599_s3 + $0x98] sm:$0xff]  }
  0x45   : > { %v600_v61 = vor.u32 %v598_v46, %v597_v52  ;;  %v601_v62 = vrot.slane %v597_v52, 4  ;;  %507 = vst [vmem:[#allocation2 + $0x8c] sm:$0x1] %v506_v56  ;;  %v739_v63 = vshrl.u32 %v8022_v40, 16  ;;  %v6379_v1 = vcombine.low %v1380_v59, %v1390_v35  ;;  %v1089_v2 = vld [vmem:[#allocation2 + $0x1c] sm:$0xf] }
  0x46   : > { %v608_v3 = vor.u32 %v606_v53, %v605_v55  ;;  %v610_v4 = vrot.slane %v605_v55, 4  ;;  %v897_v5 = vld [vmem:[#allocation2 + $0x24] sm:$0xf]  ;;  %v8049_v42 = vrot.slane %v731_v57, 7  ;;  %v1088_v7 = vld [vmem:[#allocation2 + $0x18] sm:$0xf]  ;;  %7231 = vmatpush3.bf16.msra.mxu0 %v7616_v31 }
  0x47   : > { %v1209_v8 = vshll.u32 %v1089_v2, 16  ;;  %v1213_v10 = vshrl.u32 %v1089_v2, 16  ;;  %v898_v11 = vsel %vm7882_vm7, %v600_v61, %v897_v5  ;;  %v8053_v12 = vrot.slane %v739_v63, 7  ;;  %7161 = vmatmul.mubr.bf16.vlgmr.msra.gmra.mxu1 %v6379_v1  ;;  %v1134_v13 = vld [vmem:[#allocation2 + $0x20] sm:$0x1]  ;;  %v7613_v22 = vld [vmem:[%s10599_s3 + $0x28] sm:$0xff]   ;;  %7232 = vmatprep.subr.bf16.mxu0 %v7618_v0 }
  0x48   : > { %v1200_v14 = vshrl.u32 %v1088_v7, 16  ;;  %v1203_v15 = vshll.u32 %v1088_v7, 16  ;;  %v609_v16 = vsel %vm7893_vm8, %v601_v62, %v608_v3  ;;  %899 = vst [vmem:[#allocation2 + $0x24] sm:$0xf] %v898_v11  ;;  %v901_v17 = vld [vmem:[#allocation2 + $0x2c] sm:$0x1]  ;;  %7177 = vmatpush3.bf16.msra.mxu1 %v7939_v19  ;;  %v8067_v29 = vor.u32 %v734_v58, %v8049_v42 }
  0x49   : > { %v1211_v18 = vrot.slane %v1209_v8, 5  ;;  %v1215_v21 = vrot.slane %v1213_v10, 4  ;;  %v1219_v23 = vshll.u32 %v1134_v13, 16  ;;  %900 = vst [vmem:[#allocation2 + $0x28] sm:$0xf] %v609_v16  ;;  %v902_v20 = vsel %vm7840_vm3, %v610_v4, %v901_v17  ;;  %v7620_v24 = vld [vmem:[%s10599_s3 + $0x90] sm:$0xff]   ;;  %7178 = vmatprep.subr.bf16.mxu1 %v7611_v60 }
  0x4a   : > { %v1202_v25 = vrot.slane %v1200_v14, 4  ;;  %v1205_v27 = vrot.slane %v1203_v15, 5  ;;  %v1104_v19 = vld [vmem:[#allocation2 + $0x78] sm:$0xf]  ;;  %v1105_v28 = vld [vmem:[#allocation2 + $0x7c] sm:$0xf]  ;;  %7233 = vmatpush3.bf16.msra.mxu0 %v7618_v0 }
  0x4b   : > { %903 = vst [vmem:[#allocation2 + $0x2c] sm:$0x1] %v902_v20  ;;  %v1216_v30 = vor.u32 %v1215_v21, %v1211_v18  ;;  %v1221_v31 = vrot.slane %v1219_v23, 5  ;;  %v1142_v33 = vld [vmem:[#allocation2 + $0x80] sm:$0x1]  ;;  %v1392_v34 = vshrl.u32 %v1104_v19, 16  ;;  %7234 = vmatprep.subr.bf16.mxu0 %v7620_v24 }
  0x4c   : > { %v1395_v37 = vshll.u32 %v1104_v19, 16  ;;  %v1206_v38 = vor.u32 %v1205_v27, %v1202_v25  ;;  %v1401_v41 = vshll.u32 %v1105_v28, 16  ;;  %v1405_v35 = vshrl.u32 %v1105_v28, 16  ;;  %7179 = vmatpush3.bf16.msra.mxu1 %v7611_v60  ;;  %v7622_v48 = vld [vmem:[%s10599_s3 + $0x88] sm:$0xff]   ;;  %v7615_v53 = vld [vmem:[%s10599_s3 + $0x20] sm:$0xff]   ;;  %v8087_v1 = vld [vmem:[%s10599_s3 + $0x18] sm:$0xff]  }
  0x4d   : > { %v1411_v43 = vshll.u32 %v1142_v33, 16  ;;  %v1217_v44 = vrot.slane %v1216_v30, 4  ;;  %v1394_v45 = vrot.slane %v1392_v34, 4  ;;  %v737_v47 = vrot.slane %v8049_v42, 4  ;;  %7180 = vmatprep.subr.bf16.mxu1 %v7613_v22  ;;  %v953_v0 = vld [vmem:[#allocation2 + $0x84] sm:$0xf] }
  0x4e   : > { %v1397_v46 = vrot.slane %v1395_v37, 5  ;;  %v1207_v49 = vrot.slane %v1206_v38, 4  ;;  %v1403_v50 = vrot.slane %v1401_v41, 5  ;;  %v1407_v51 = vrot.slane %v1405_v35, 4  ;;  %7235 = vmatpush3.bf16.msra.mxu0 %v7620_v24  ;;  %v428_v42 = vld [vmem:[#allocation2 + $0x30] sm:$0x1] }
  0x4f   : > { %v1413_v52 = vrot.slane %v1411_v43, 5  ;;  %v1222_v54 = vsel %vm7956_vm11, %v1217_v44, %v1221_v31  ;;  %v1090_v56 = vld [vmem:[#allocation2 + $0x24] sm:$0xf]  ;;  %v742_v57 = vshll.u32 %v8022_v40, 16  ;;  %v746_v58 = vrot.slane %v8053_v12, 4  ;;  %7236 = vmatprep.subr.bf16.mxu0 %v7622_v48  ;;  %v8107_v19 = vld [vmem:[%s10599_s3 + $0x10] sm:$0xff]  }
  0x50   : > { %v1398_v55 = vor.u32 %v1397_v46, %v1394_v45  ;;  %v1212_v59 = vsel %vm7956_vm11, %v1207_v49, %v1211_v18  ;;  %v1408_v60 = vor.u32 %v1407_v51, %v1403_v50  ;;  %v8082_v61 = vld [vmem:[#allocation2 + $0x28] sm:$0xf]  ;;  %v1224_v62 = vshrl.u32 %v1090_v56, 16  ;;  %7181 = vmatpush3.bf16.msra.mxu1 %v7613_v22  ;;  %v7624_v7 = vld [vmem:[%s10599_s3 + $0x80] sm:$0xff]   ;;  %v957_v14 = vld [vmem:[#allocation2 + $0x8c] sm:$0x1] }
  0x51   : > { %v1227_v63 = vshll.u32 %v1090_v56, 16  ;;  %v6372_v2 = vcombine.low %v1212_v59, %v1222_v54  ;;  %v1233_v4 = vshll.u32 %v8082_v61, 16  ;;  %v1237_v5 = vshrl.u32 %v8082_v61, 16  ;;  %7182 = vmatprep.subr.bf16.mxu1 %v7615_v53  ;;  %v484_v21 = vld [vmem:[#allocation2 + $0x38] sm:$0x1] }
  0x52   : > { %v1399_v3 = vrot.slane %v1398_v55, 4  ;;  %v1135_v40 = vld [vmem:[#allocation2 + $0x2c] sm:$0x1]  ;;  %v1409_v8 = vrot.slane %v1408_v60, 4  ;;  %v1226_v10 = vrot.slane %v1224_v62, 4  ;;  %v744_v18 = vor.u32 %v742_v57, %v8053_v12  ;;  %7237 = vmatpush3.bf16.msra.mxu0 %v7622_v48  ;;  %v7628_v12 = vld [vmem:[%s10599_s3 + $0x138] sm:$0xff]  }
  0x53   : > { %v1229_v11 = vrot.slane %v1227_v63, 5  ;;  %v1243_v13 = vshll.u32 %v1135_v40, 16  ;;  %7148 = vmatprep.mubr.bf16.mxu0 %v6372_v2  ;;  %v1235_v16 = vrot.slane %v1233_v4, 5  ;;  %v1239_v17 = vrot.slane %v1237_v5, 4  ;;  %v532_v23 = vld [vmem:[%s7849_s6 + $0x18] sm:$0xf]  ;;  %7238 = vmatprep.subr.bf16.mxu0 %v7624_v7 }
  0x54   : > { %v1404_v15 = vsel %vm7956_vm11, %v1399_v3, %v1403_v50  ;;  %v1414_v20 = vsel %vm7956_vm11, %v1409_v8, %v1413_v52  ;;  %v954_v25 = vsel %vm7882_vm7, %v8067_v29, %v953_v0  ;;  %v533_v27 = vld [vmem:[%s7849_s6 + $0x1c] sm:$0xf]  ;;  %v745_v31 = vsel %vm7893_vm8, %v737_v47, %v744_v18  ;;  %7183 = vmatpush3.bf16.msra.mxu1 %v7615_v53  ;;  %v452_v33 = vld [vmem:[#allocation2 + $0x90] sm:$0x1]  ;;  %v508_v34 = vld [vmem:[#allocation2 + $0x98] sm:$0x1] }
  0x55   : > { %v1230_v22 = vor.u32 %v1229_v11, %v1226_v10  ;;  %v1245_v24 = vrot.slane %v1243_v13, 5  ;;  %v6380_v28 = vcombine.low %v1404_v15, %v1414_v20  ;;  %v1240_v30 = vor.u32 %v1239_v17, %v1235_v16  ;;  %955 = vst [vmem:[#allocation2 + $0x84] sm:$0xf] %v954_v25  ;;  %v548_v37 = vld [vmem:[%s7849_s6 + $0x58] sm:$0xf]  ;;  %7184 = vmatprep.subr.bf16.mxu1 %v8087_v1  ;;  %v7621_v60 = vld [vmem:[%s10599_s3 + $0x8] sm:$0xff]  }
  0x56   : > { %v958_v29 = vsel %vm7840_vm3, %v746_v58, %v957_v14  ;;  %956 = vst [vmem:[#allocation2 + $0x88] sm:$0xf] %v745_v31  ;;  %v429_v41 = vsel %vm7840_vm3, 0, %v428_v42  ;;  %v485_v35 = vsel %vm7855_vm4, 0, %v484_v21  ;;  %v612_v43 = vshrl.u32 %v532_v23, 16  ;;  %7239 = vmatpush3.bf16.msra.mxu0 %v7624_v7  ;;  %v7623_v11 = vld [vmem:[%s10599_s3] sm:$0xff]  }
  0x57   : > { %v1231_v38 = vrot.slane %v1230_v22, 4  ;;  %959 = vst [vmem:[#allocation2 + $0x8c] sm:$0x1] %v958_v29  ;;  %v8122_v44 = vld [vmem:[%s7849_s6 + $0x5c] sm:$0xf]  ;;  %7164 = vmatprep.mubr.bf16.mxu1 %v6380_v28  ;;  %v1241_v45 = vrot.slane %v1240_v30, 4  ;;  %7320 = vmatprep.subr.bf16.mxu0 %v7628_v12 }
  0x58   : > { %430 = vst [vmem:[#allocation2 + $0x30] sm:$0x1] %v429_v41  ;;  %486 = vst [vmem:[#allocation2 + $0x38] sm:$0x1] %v485_v35  ;;  %v615_v46 = vshll.u32 %v532_v23, 16  ;;  %v620_v47 = vshrl.u32 %v533_v27, 16  ;;  %7185 = vmatpush3.bf16.msra.mxu1 %v8087_v1 }
  0x59   : > { %v623_v48 = vshll.u32 %v533_v27, 16  ;;  %v431_v49 = vld [vmem:[#allocation2 + $0x3c] sm:$0x1]  ;;  %v487_v50 = vld [vmem:[#allocation2 + $0x44] sm:$0x1]  ;;  %v1236_v51 = vsel %vm7956_vm11, %v1231_v38, %v1235_v16  ;;  %v614_v52 = vrot.slane %v612_v43, 7  ;;  %v1246_v56 = vsel %vm7956_vm11, %v1241_v45, %v1245_v24  ;;  %7186 = vmatprep.subr.bf16.mxu1 %v8107_v19 }
  0x5a   : > { %v453_v53 = vsel %vm7840_vm3, 0, %v452_v33  ;;  %v509_v54 = vsel %vm7855_vm4, 0, %v508_v34  ;;  %v8132_v55 = vld [vmem:[%s7849_s6 + $0x20] sm:$0xf]  ;;  %v622_v57 = vrot.slane %v620_v47, 7  ;;  %v748_v58 = vshrl.u32 %v548_v37, 16 }
  0x5b   : > { %454 = vst [vmem:[#allocation2 + $0x90] sm:$0x1] %v453_v53  ;;  %510 = vst [vmem:[#allocation2 + $0x98] sm:$0x1] %v509_v54  ;;  %v751_v59 = vshll.u32 %v548_v37, 16  ;;  %v6373_v62 = vcombine.low %v1236_v51, %v1246_v56  ;;  %v617_v63 = vor.u32 %v615_v46, %v614_v52  ;;  %v618_v0 = vrot.slane %v614_v52, 4 }
  0x5c   : > { %v756_v2 = vshrl.u32 %v8122_v44, 16  ;;  %v625_v3 = vor.u32 %v623_v48, %v622_v57  ;;  %v627_v40 = vrot.slane %v622_v57, 4  ;;  %v750_v4 = vrot.slane %v748_v58, 7  ;;  %v1106_v1 = vld [vmem:[#allocation2 + $0x84] sm:$0xf]  ;;  %7187 = vmatpush3.bf16.msra.mxu1 %v8107_v19  ;;  %v8170_v52 = vld [vmem:[%s10599_s3 + $0xf8] sm:$0xff]  }
  0x5d   : > { %v759_v5 = vshll.u32 %v8122_v44, 16  ;;  %7149 = vmatmul.mubr.bf16.gmra.mxu0 %v6373_v62  ;;  %v432_v7 = vsel %vm7840_vm3, 0, %v431_v49  ;;  %v488_v8 = vsel %vm7855_vm4, 0, %v487_v50  ;;  %v629_v10 = vshrl.u32 %v8132_v55, 16  ;;  %v1107_v13 = vld [vmem:[#allocation2 + $0x88] sm:$0xf]  ;;  %7188 = vmatprep.subr.bf16.mxu1 %v7621_v60 }
  0x5e   : > { %v758_v42 = vrot.slane %v756_v2, 7  ;;  %v1143_v14 = vld [vmem:[#allocation2 + $0x8c] sm:$0x1]  ;;  %v1416_v15 = vshrl.u32 %v1106_v1, 16  ;;  %v1419_v16 = vshll.u32 %v1106_v1, 16  ;;  %v626_v17 = vsel %vm7893_vm8, %v618_v0, %v625_v3 }
  0x5f   : > { %v753_v18 = vor.u32 %v751_v59, %v750_v4  ;;  %433 = vst [vmem:[#allocation2 + $0x3c] sm:$0x1] %v432_v7  ;;  %489 = vst [vmem:[#allocation2 + $0x44] sm:$0x1] %v488_v8  ;;  %v535_v21 = vld [vmem:[%s7849_s6 + $0x24] sm:$0xf] }
  0x60   : > { %v1425_v23 = vshll.u32 %v1107_v13, 16  ;;  %v1429_v20 = vshrl.u32 %v1107_v13, 16  ;;  %v1435_v22 = vshll.u32 %v1143_v14, 16  ;;  %v904_v24 = vld [vmem:[#allocation2 + $0x30] sm:$0xf]  ;;  %v754_v25 = vrot.slane %v750_v4, 4  ;;  %7189 = vmatpush3.bf16.msra.mxu1 %v7621_v60 }
  0x61   : > { %907 = vst [vmem:[#allocation2 + $0x34] sm:$0xf] %v626_v17  ;;  %v455_v27 = vld [vmem:[#allocation2 + $0x9c] sm:$0x1]  ;;  %v1418_v12 = vrot.slane %v1416_v15, 4  ;;  %v1421_v28 = vrot.slane %v1419_v16, 5  ;;  %v905_v30 = vsel %vm7882_vm7, %v617_v63, %v904_v24  ;;  %v761_v29 = vor.u32 %v759_v5, %v758_v42  ;;  %7190 = vmatprep.subr.bf16.mxu1 %v7623_v11 }
  0x62   : > { %v908_v31 = vld [vmem:[#allocation2 + $0x38] sm:$0x1]  ;;  %v1427_v33 = vrot.slane %v1425_v23, 5  ;;  %v1431_v34 = vrot.slane %v1429_v20, 4  ;;  %v1437_v37 = vrot.slane %v1435_v22, 5  ;;  %v763_v45 = vrot.slane %v758_v42, 4 }
  0x63   : > { %906 = vst [vmem:[#allocation2 + $0x30] sm:$0xf] %v905_v30  ;;  %v909_v19 = vsel %vm7840_vm3, %v627_v40, %v908_v31  ;;  %v960_v38 = vld [vmem:[#allocation2 + $0x90] sm:$0xf]  ;;  %v511_v41 = vld [vmem:[#allocation2 + $0xa4] sm:$0x1]  ;;  %v1422_v43 = vor.u32 %v1421_v28, %v1418_v12  ;;  %v762_v44 = vsel %vm7893_vm8, %v754_v25, %v761_v29 }
  0x64   : > { %v8160_v35 = vld [vmem:[%s7849_s6 + $0x60] sm:$0xf]  ;;  %910 = vst [vmem:[#allocation2 + $0x38] sm:$0x1] %v909_v19  ;;  %v961_v46 = vsel %vm7882_vm7, %v753_v18, %v960_v38  ;;  %v964_v47 = vld [vmem:[#allocation2 + $0x98] sm:$0x1]  ;;  %v1432_v48 = vor.u32 %v1431_v34, %v1427_v33  ;;  %7191 = vmatpush3.bf16.msra.mxu1 %v7623_v11 }
  0x65   : > { %962 = vst [vmem:[#allocation2 + $0x90] sm:$0xf] %v961_v46  ;;  %963 = vst [vmem:[#allocation2 + $0x94] sm:$0xf] %v762_v44  ;;  %v631_v49 = vrot.slane %v629_v10, 7  ;;  %v632_v50 = vshll.u32 %v8132_v55, 16  ;;  %v965_v54 = vsel %vm7840_vm3, %v763_v45, %v964_v47  ;;  %7272 = vmatprep.subr.bf16.mxu1 %v8170_v52 }
  0x66   : > { %v637_v51 = vshrl.u32 %v535_v21, 16  ;;  %v1423_v53 = vrot.slane %v1422_v43, 4  ;;  %v640_v56 = vshll.u32 %v535_v21, 16  ;;  %v456_v57 = vsel %vm7840_vm3, 0, %v455_v27  ;;  %966 = vst [vmem:[#allocation2 + $0x98] sm:$0x1] %v965_v54 }
  0x67   : > { %v2186_v58 = vrot.slane %v7948_v26, 5  ;;  %v1433_v59 = vrot.slane %v1432_v48, 4  ;;  %v634_v55 = vor.u32 %v632_v50, %v631_v49  ;;  %v911_v62 = vld [vmem:[#allocation2 + $0x3c] sm:$0xf]  ;;  %457 = vst [vmem:[#allocation2 + $0x9c] sm:$0x1] %v456_v57 }
  0x68   : > { %v639_v60 = vrot.slane %v637_v51, 7  ;;  %v1428_v63 = vsel %vm7956_vm11, %v1423_v53, %v1427_v33  ;;  %v8179_v0 = vld [vmem:[#allocation2 + $0x34] sm:$0xf]  ;;  %v635_v2 = vrot.slane %v631_v49, 4  ;;  %v512_v3 = vsel %vm7855_vm4, 0, %v511_v41 }
  0x69   : > { %v765_v40 = vshrl.u32 %v8160_v35, 16  ;;  %v1438_v4 = vsel %vm7956_vm11, %v1433_v59, %v1437_v37  ;;  %v1257_v5 = vshll.u32 %v8179_v0, 16  ;;  %v1261_v1 = vshrl.u32 %v8179_v0, 16  ;;  %v915_v7 = vld [vmem:[#allocation2 + $0x44] sm:$0x1] }
  0x6a   : > { %v642_v42 = vor.u32 %v640_v56, %v639_v60  ;;  %513 = vst [vmem:[#allocation2 + $0xa4] sm:$0x1] %v512_v3  ;;  %v6381_v8 = vcombine.low %v1428_v63, %v1438_v4  ;;  %v8189_v10 = vld [vmem:[#allocation2 + $0x30] sm:$0xf]  ;;  %v644_v13 = vrot.slane %v639_v60, 4  ;;  %v912_v14 = vsel %vm7882_vm7, %v634_v55, %v911_v62 }
  0x6b   : > { %v8193_v11 = vrot.slane %v765_v40, 7  ;;  %v8195_v15 = vld [vmem:[#allocation2 + $0x38] sm:$0x1]  ;;  %v1248_v16 = vshrl.u32 %v8189_v10, 16  ;;  %v1251_v17 = vshll.u32 %v8189_v10, 16  ;;  %v1259_v18 = vrot.slane %v1257_v5, 5 }
  0x6c   : > { %v1263_v21 = vrot.slane %v1261_v1, 4  ;;  %913 = vst [vmem:[#allocation2 + $0x3c] sm:$0xf] %v912_v14  ;;  %7165 = vmatmul.mubr.bf16.gmra.mxu1 %v6381_v8  ;;  %v1267_v23 = vshll.u32 %v8195_v15, 16  ;;  %v1108_v20 = vld [vmem:[#allocation2 + $0x90] sm:$0xf]  ;;  %v643_v24 = vsel %vm7893_vm8, %v635_v2, %v642_v42  ;;  %v916_v25 = vsel %vm7840_vm3, %v644_v13, %v915_v7 }
  0x6d   : > { %v8200_v22 = vld [vmem:[#allocation2 + $0x94] sm:$0xf]  ;;  %v768_v27 = vshll.u32 %v8160_v35, 16  ;;  %v1250_v12 = vrot.slane %v1248_v16, 4  ;;  %v1253_v28 = vrot.slane %v1251_v17, 5  ;;  %v1440_v31 = vshrl.u32 %v1108_v20, 16 }
  0x6e   : > { %v1264_v30 = vor.u32 %v1263_v21, %v1259_v18  ;;  %914 = vst [vmem:[#allocation2 + $0x40] sm:$0xf] %v643_v24  ;;  %917 = vst [vmem:[#allocation2 + $0x44] sm:$0x1] %v916_v25  ;;  %v1269_v29 = vrot.slane %v1267_v23, 5  ;;  %v1443_v34 = vshll.u32 %v1108_v20, 16 }
  0x6f   : > { %v8207_v33 = vld [vmem:[#allocation2 + $0x98] sm:$0x1]  ;;  %v1449_v37 = vshll.u32 %v8200_v22, 16  ;;  %v1453_v19 = vshrl.u32 %v8200_v22, 16  ;;  %v1254_v38 = vor.u32 %v1253_v28, %v1250_v12  ;;  %v1442_v43 = vrot.slane %v1440_v31, 4 }
  0x70   : > { %v1265_v41 = vrot.slane %v1264_v30, 4  ;;  %v1459_v35 = vshll.u32 %v8207_v33, 16  ;;  %v551_v44 = vld [vmem:[%s7849_s6 + $0x64] sm:$0xf]  ;;  %v1445_v45 = vrot.slane %v1443_v34, 5  ;;  %v770_v48 = vor.u32 %v768_v27, %v8193_v11 }
  0x71   : > { %v1451_v46 = vrot.slane %v1449_v37, 5  ;;  %v1455_v47 = vrot.slane %v1453_v19, 4  ;;  %v967_v49 = vld [vmem:[#allocation2 + $0x9c] sm:$0xf]  ;;  %v1255_v50 = vrot.slane %v1254_v38, 4  ;;  %v771_v54 = vrot.slane %v8193_v11, 4 }
  0x72   : > { %v1270_v51 = vsel %vm7956_vm11, %v1265_v41, %v1269_v29  ;;  %v1461_v53 = vrot.slane %v1459_v35, 5  ;;  %v1446_v56 = vor.u32 %v1445_v45, %v1442_v43  ;;  %v773_v55 = vshrl.u32 %v551_v44, 16  ;;  %v434_v16 = vld [vmem:[#allocation2 + $0x48] sm:$0x1]  ;;  %v490_v20 = vld [vmem:[#allocation2 + $0x50] sm:$0x1] }
  0x73   : > { %v1456_v57 = vor.u32 %v1455_v47, %v1451_v46  ;;  %v8217_v59 = vld [vmem:[#allocation2 + $0x3c] sm:$0xf]  ;;  %v776_v60 = vshll.u32 %v551_v44, 16  ;;  %v1260_v62 = vsel %vm7956_vm11, %v1255_v50, %v1259_v18  ;;  %v968_v3 = vsel %vm7882_vm7, %v770_v48, %v967_v49  ;;  %v536_v24 = vld [vmem:[%s7849_s6 + $0x28] sm:$0xf] }
  0x74   : > { %v1272_v63 = vshrl.u32 %v8217_v59, 16  ;;  %v1275_v2 = vshll.u32 %v8217_v59, 16  ;;  %v6374_v40 = vcombine.low %v1260_v62, %v1270_v51  ;;  %v1447_v4 = vrot.slane %v1446_v56, 4  ;;  %969 = vst [vmem:[#allocation2 + $0x9c] sm:$0xf] %v968_v3 }
  0x75   : > { %v1457_v5 = vrot.slane %v1456_v57, 4  ;;  %v8225_v1 = vld [vmem:[#allocation2 + $0x40] sm:$0xf]  ;;  %v8227_v42 = vld [vmem:[#allocation2 + $0x44] sm:$0x1]  ;;  %v775_v23 = vrot.slane %v773_v55, 7 }
  0x76   : > { %v1274_v8 = vrot.slane %v1272_v63, 4  ;;  %v1277_v13 = vrot.slane %v1275_v2, 5  ;;  %v1281_v14 = vshll.u32 %v8225_v1, 16  ;;  %v1285_v11 = vshrl.u32 %v8225_v1, 16  ;;  %7152 = vmatprep.mubr.bf16.mxu0 %v6374_v40  ;;  %v971_v30 = vld [vmem:[#allocation2 + $0xa4] sm:$0x1] }
  0x77   : > { %v1452_v17 = vsel %vm7956_vm11, %v1447_v4, %v1451_v46  ;;  %v1462_v18 = vsel %vm7956_vm11, %v1457_v5, %v1461_v53  ;;  %v1291_v21 = vshll.u32 %v8227_v42, 16  ;;  %v537_v31 = vld [vmem:[%s7849_s6 + $0x2c] sm:$0xf]  ;;  %v778_v34 = vor.u32 %v776_v60, %v775_v23  ;;  %v458_v38 = vld [vmem:[#allocation2 + $0xa8] sm:$0x1] }
  0x78   : > { %v6382_v25 = vcombine.low %v1452_v17, %v1462_v18  ;;  %v1278_v27 = vor.u32 %v1277_v13, %v1274_v8  ;;  %v1283_v12 = vrot.slane %v1281_v14, 5  ;;  %v1287_v28 = vrot.slane %v1285_v11, 4  ;;  %v514_v45 = vld [vmem:[#allocation2 + $0xb0] sm:$0x1]  ;;  %v552_v50 = vld [vmem:[%s7849_s6 + $0x68] sm:$0xf] }
  0x79   : > { %v1293_v29 = vrot.slane %v1291_v21, 5  ;;  %v780_v37 = vrot.slane %v775_v23, 4  ;;  %v435_v19 = vsel %vm7840_vm3, 0, %v434_v16  ;;  %v491_v35 = vsel %vm7855_vm4, 0, %v490_v20  ;;  %v553_v51 = vld [vmem:[%s7849_s6 + $0x6c] sm:$0xf] }
  0x7a   : > { %7168 = vmatprep.mubr.bf16.mxu1 %v6382_v25  ;;  %v1279_v41 = vrot.slane %v1278_v27, 4  ;;  %v1288_v43 = vor.u32 %v1287_v28, %v1283_v12  ;;  %436 = vst [vmem:[#allocation2 + $0x48] sm:$0x1] %v435_v19  ;;  %v646_v44 = vshrl.u32 %v536_v24, 16  ;;  %v779_v46 = vsel %vm7893_vm8, %v771_v54, %v778_v34  ;;  %492 = vst [vmem:[#allocation2 + $0x50] sm:$0x1] %v491_v35 }
  0x7b   : > { %v972_v47 = vsel %vm7840_vm3, %v780_v37, %v971_v30  ;;  %v649_v48 = vshll.u32 %v536_v24, 16  ;;  %v654_v49 = vshrl.u32 %v537_v31, 16  ;;  %970 = vst [vmem:[#allocation2 + $0xa0] sm:$0xf] %v779_v46  ;;  %v8252_v57 = vld [vmem:[#allocation2 + $0x9c] sm:$0xf] }
  0x7c   : > { %v1284_v53 = vsel %vm7956_vm11, %v1279_v41, %v1283_v12  ;;  %v1289_v56 = vrot.slane %v1288_v43, 4  ;;  %973 = vst [vmem:[#allocation2 + $0xa4] sm:$0x1] %v972_v47  ;;  %v648_v55 = vrot.slane %v646_v44, 7  ;;  %v657_v60 = vshll.u32 %v537_v31, 16 }
  0x7d   : > { %v437_v54 = vld [vmem:[#allocation2 + $0x54] sm:$0x1]  ;;  %v1464_v62 = vshrl.u32 %v8252_v57, 16  ;;  %v1467_v63 = vshll.u32 %v8252_v57, 16  ;;  %v656_v2 = vrot.slane %v654_v49, 7  ;;  %v459_v3 = vsel %vm7840_vm3, 0, %v458_v38 }
  0x7e   : > { %v493_v40 = vld [vmem:[#allocation2 + $0x5c] sm:$0x1]  ;;  %v1294_v4 = vsel %vm7956_vm11, %v1289_v56, %v1293_v29  ;;  %v651_v5 = vor.u32 %v649_v48, %v648_v55  ;;  %v652_v8 = vrot.slane %v648_v55, 4  ;;  %460 = vst [vmem:[#allocation2 + $0xa8] sm:$0x1] %v459_v3  ;;  %v515_v13 = vsel %vm7855_vm4, 0, %v514_v45 }
  0x7f   : > { %v538_v14 = vld [vmem:[%s7849_s6 + $0x30] sm:$0xf]  ;;  %v6375_v11 = vcombine.low %v1284_v53, %v1294_v4  ;;  %v1466_v16 = vrot.slane %v1464_v62, 4  ;;  %v1469_v17 = vrot.slane %v1467_v63, 5  ;;  %v659_v18 = vor.u32 %v657_v60, %v656_v2  ;;  %516 = vst [vmem:[#allocation2 + $0xb0] sm:$0x1] %v515_v13 }
  0x80   : > { %v661_v21 = vrot.slane %v656_v2, 4  ;;  %v782_v23 = vshrl.u32 %v552_v50, 16  ;;  %v785_v20 = vshll.u32 %v552_v50, 16  ;;  %v790_v24 = vshrl.u32 %v553_v51, 16  ;;  %v539_v44 = vld [vmem:[%s7849_s6 + $0x34] sm:$0xf] }
  0x81   : > { %7153 = vmatmul.mubr.bf16.gmra.mxu0 %v6375_v11  ;;  %v1470_v25 = vor.u32 %v1469_v17, %v1466_v16  ;;  %v660_v27 = vsel %vm7893_vm8, %v652_v8, %v659_v18  ;;  %v918_v12 = vld [vmem:[#allocation2 + $0x48] sm:$0xf]  ;;  %v793_v28 = vshll.u32 %v553_v51, 16  ;;  %v438_v30 = vsel %vm7840_vm3, 0, %v437_v54  ;;  %v922_v29 = vld [vmem:[#allocation2 + $0x50] sm:$0x1] }
  0x82   : > { %v919_v31 = vsel %vm7882_vm7, %v651_v5, %v918_v12  ;;  %921 = vst [vmem:[#allocation2 + $0x4c] sm:$0xf] %v660_v27  ;;  %v784_v34 = vrot.slane %v782_v23, 7  ;;  %v792_v37 = vrot.slane %v790_v24, 7  ;;  %439 = vst [vmem:[#allocation2 + $0x54] sm:$0x1] %v438_v30  ;;  %v923_v35 = vsel %vm7840_vm3, %v661_v21, %v922_v29 }
  0x83   : > { %v494_v19 = vsel %vm7855_vm4, 0, %v493_v40  ;;  %v8271_v38 = vld [vmem:[#allocation2 + $0xa0] sm:$0xf]  ;;  %v8273_v41 = vld [vmem:[#allocation2 + $0xa4] sm:$0x1]  ;;  %v1471_v43 = vrot.slane %v1470_v25, 4 }
  0x84   : > { %920 = vst [vmem:[#allocation2 + $0x48] sm:$0xf] %v919_v31  ;;  %495 = vst [vmem:[#allocation2 + $0x5c] sm:$0x1] %v494_v19  ;;  %v663_v45 = vshrl.u32 %v538_v14, 16  ;;  %v1473_v47 = vshll.u32 %v8271_v38, 16  ;;  %v787_v50 = vor.u32 %v785_v20, %v784_v34  ;;  %v795_v56 = vor.u32 %v793_v28, %v792_v37 }
  0x85   : > { %v1477_v48 = vshrl.u32 %v8271_v38, 16  ;;  %v1483_v49 = vshll.u32 %v8273_v41, 16  ;;  %924 = vst [vmem:[#allocation2 + $0x50] sm:$0x1] %v923_v35  ;;  %v461_v51 = vld [vmem:[#allocation2 + $0xb4] sm:$0x1] }
  0x86   : > { %v788_v53 = vrot.slane %v784_v34, 4  ;;  %v797_v55 = vrot.slane %v792_v37, 4  ;;  %v974_v60 = vld [vmem:[#allocation2 + $0xa8] sm:$0xf]  ;;  %v665_v54 = vrot.slane %v663_v45, 7  ;;  %v1475_v62 = vrot.slane %v1473_v47, 5 }
  0x87   : > { %v1479_v63 = vrot.slane %v1477_v48, 4  ;;  %v975_v2 = vsel %vm7882_vm7, %v787_v50, %v974_v60  ;;  %v978_v3 = vld [vmem:[#allocation2 + $0xb0] sm:$0x1]  ;;  %v517_v40 = vld [vmem:[#allocation2 + $0xbc] sm:$0x1]  ;;  %v1485_v4 = vrot.slane %v1483_v49, 5 }
  0x88   : > { %v796_v5 = vsel %vm7893_vm8, %v788_v53, %v795_v56  ;;  %976 = vst [vmem:[#allocation2 + $0xa8] sm:$0xf] %v975_v2  ;;  %v979_v8 = vsel %vm7840_vm3, %v797_v55, %v978_v3  ;;  %v666_v13 = vshll.u32 %v538_v14, 16  ;;  %v671_v16 = vshrl.u32 %v539_v44, 16  ;;  %v554_v27 = vld [vmem:[%s7849_s6 + $0x70] sm:$0xf] }
  0x89   : > { %v1480_v11 = vor.u32 %v1479_v63, %v1475_v62  ;;  %977 = vst [vmem:[#allocation2 + $0xac] sm:$0xf] %v796_v5  ;;  %980 = vst [vmem:[#allocation2 + $0xb0] sm:$0x1] %v979_v8  ;;  %v674_v17 = vshll.u32 %v539_v44, 16  ;;  %v1476_v18 = vsel %vm7956_vm11, %v1471_v43, %v1475_v62  ;;  %v462_v24 = vsel %vm7840_vm3, 0, %v461_v51 }
  0x8a   : > { %v8291_v21 = vld [vmem:[#allocation2 + $0x4c] sm:$0xf]  ;;  %v668_v23 = vor.u32 %v666_v13, %v665_v54  ;;  %v925_v20 = vld [vmem:[#allocation2 + $0x54] sm:$0xf]  ;;  %v518_v25 = vsel %vm7855_vm4, 0, %v517_v40  ;;  %v673_v31 = vrot.slane %v671_v16, 7 }
  0x8b   : > { %v1481_v14 = vrot.slane %v1480_v11, 4  ;;  %v8298_v12 = vld [vmem:[#allocation2 + $0x48] sm:$0xf]  ;;  %v1305_v28 = vshll.u32 %v8291_v21, 16  ;;  %v1309_v30 = vshrl.u32 %v8291_v21, 16  ;;  %v669_v19 = vrot.slane %v665_v54, 4 }
  0x8c   : > { %463 = vst [vmem:[#allocation2 + $0xb4] sm:$0x1] %v462_v24  ;;  %519 = vst [vmem:[#allocation2 + $0xbc] sm:$0x1] %v518_v25  ;;  %v8302_v29 = vld [vmem:[#allocation2 + $0x50] sm:$0x1]  ;;  %v926_v43 = vsel %vm7882_vm7, %v668_v23, %v925_v20  ;;  %v676_v51 = vor.u32 %v674_v17, %v673_v31 }
  0x8d   : > { %v1296_v34 = vshrl.u32 %v8298_v12, 16  ;;  %v1299_v37 = vshll.u32 %v8298_v12, 16  ;;  %v1486_v35 = vsel %vm7956_vm11, %v1481_v14, %v1485_v4  ;;  %v1307_v44 = vrot.slane %v1305_v28, 5  ;;  %927 = vst [vmem:[#allocation2 + $0x54] sm:$0xf] %v926_v43 }
  0x8e   : > { %v1311_v45 = vrot.slane %v1309_v30, 4  ;;  %v1315_v47 = vshll.u32 %v8302_v29, 16  ;;  %v6383_v48 = vcombine.low %v1476_v18, %v1486_v35  ;;  %v929_v53 = vld [vmem:[#allocation2 + $0x5c] sm:$0x1]  ;;  %v678_v54 = vrot.slane %v673_v31, 4 }
  0x8f   : > { %v1298_v49 = vrot.slane %v1296_v34, 4  ;;  %v1301_v50 = vrot.slane %v1299_v37, 5  ;;  %v8311_v60 = vld [vmem:[#allocation2 + $0xa8] sm:$0xf]  ;;  %v799_v62 = vshrl.u32 %v554_v27, 16  ;;  %v677_v5 = vsel %vm7893_vm8, %v669_v19, %v676_v51 }
  0x90   : > { %v1312_v56 = vor.u32 %v1311_v45, %v1307_v44  ;;  %v1317_v55 = vrot.slane %v1315_v47, 5  ;;  %7169 = vmatmul.mubr.bf16.gmra.mxu1 %v6383_v48  ;;  %v8313_v2 = vld [vmem:[#allocation2 + $0xac] sm:$0xf]  ;;  %v8315_v3 = vld [vmem:[#allocation2 + $0xb0] sm:$0x1]  ;;  %v1488_v40 = vshrl.u32 %v8311_v60, 16  ;;  %v930_v20 = vsel %vm7840_vm3, %v678_v54, %v929_v53 }
  0x91   : > { %v1302_v63 = vor.u32 %v1301_v50, %v1298_v49  ;;  %v1491_v4 = vshll.u32 %v8311_v60, 16  ;;  %v1497_v13 = vshll.u32 %v8313_v2, 16  ;;  %v1501_v11 = vshrl.u32 %v8313_v2, 16  ;;  %928 = vst [vmem:[#allocation2 + $0x58] sm:$0xf] %v677_v5 }
  0x92   : > { %v1313_v8 = vrot.slane %v1312_v56, 4  ;;  %v1507_v16 = vshll.u32 %v8315_v3, 16  ;;  %v1490_v18 = vrot.slane %v1488_v40, 4  ;;  %v555_v24 = vld [vmem:[%s7849_s6 + $0x74] sm:$0xf]  ;;  %v801_v43 = vrot.slane %v799_v62, 7 }
  0x93   : > { %v1303_v17 = vrot.slane %v1302_v63, 4  ;;  %v1493_v23 = vrot.slane %v1491_v4, 5  ;;  %v1499_v14 = vrot.slane %v1497_v13, 5  ;;  %v1503_v28 = vrot.slane %v1501_v11, 4  ;;  %931 = vst [vmem:[#allocation2 + $0x5c] sm:$0x1] %v930_v20 }
  0x94   : > { %v1318_v25 = vsel %vm7956_vm11, %v1313_v8, %v1317_v55  ;;  %v1509_v30 = vrot.slane %v1507_v16, 5  ;;  %v981_v31 = vld [vmem:[#allocation2 + $0xb4] sm:$0xf]  ;;  %v802_v35 = vshll.u32 %v554_v27, 16  ;;  %v805_v53 = vrot.slane %v801_v43, 4 }
  0x95   : > { %v1308_v34 = vsel %vm7956_vm11, %v1303_v17, %v1307_v44  ;;  %v1494_v37 = vor.u32 %v1493_v23, %v1490_v18  ;;  %v8331_v19 = vld [vmem:[#allocation2 + $0x54] sm:$0xf]  ;;  %v1504_v47 = vor.u32 %v1503_v28, %v1499_v14  ;;  %v807_v56 = vshrl.u32 %v555_v24, 16  ;;  %v985_v40 = vld [vmem:[#allocation2 + $0xbc] sm:$0x1] }
  0x96   : > { %v6376_v45 = vcombine.low %v1308_v34, %v1318_v25  ;;  %v1320_v48 = vshrl.u32 %v8331_v19, 16  ;;  %v1323_v49 = vshll.u32 %v8331_v19, 16  ;;  %v804_v51 = vor.u32 %v802_v35, %v801_v43  ;;  %v2130_v4 = vld [vmem:[#allocation2] sm:$0xe]  ;;  %v2131_v34 = vld [vmem:[#allocation2 + $0xc] sm:$0xe] }
  0x97   : > { %v1495_v50 = vrot.slane %v1494_v37, 4  ;;  %v1505_v55 = vrot.slane %v1504_v47, 4  ;;  %v810_v44 = vshll.u32 %v555_v24, 16  ;;  %v809_v5 = vrot.slane %v807_v56, 7 }
  0x98   : > { %7156 = vmatprep.mubr.bf16.mxu0 %v6376_v45  ;;  %v1322_v54 = vrot.slane %v1320_v48, 4  ;;  %v1325_v63 = vrot.slane %v1323_v49, 5  ;;  %v8337_v62 = vld [vmem:[#allocation2 + $0x58] sm:$0xf]  ;;  %v982_v8 = vsel %vm7882_vm7, %v804_v51, %v981_v31  ;;  %vm2179_vm13 = vcmask 1046532  }
  0x99   : > { %v1500_v27 = vsel %vm7956_vm11, %v1495_v50, %v1499_v14  ;;  %v1510_v13 = vsel %vm7956_vm11, %v1505_v55, %v1509_v30  ;;  %v1329_v16 = vshll.u32 %v8337_v62, 16  ;;  %v1333_v17 = vshrl.u32 %v8337_v62, 16  ;;  %983 = vst [vmem:[#allocation2 + $0xb4] sm:$0xf] %v982_v8  ;;  %vm8349_vm14 = vmor %vm2178_vm12, %vm2179_vm13  ;;  %v8357_v45 = vld [vmem:[#allocation2 + $0x4] sm:$0xf] }
  0x9a   : > { %v1326_v11 = vor.u32 %v1325_v63, %v1322_v54  ;;  %v6384_v18 = vcombine.low %v1500_v27, %v1510_v13  ;;  %v8345_v23 = vld [vmem:[#allocation2 + $0x5c] sm:$0x1]  ;;  %v812_v20 = vor.u32 %v810_v44, %v809_v5  ;;  %v814_v24 = vrot.slane %v809_v5, 4  ;;  %v2132_v48 = vld [vmem:[#allocation2 + $0x18] sm:$0xe] }
  0x9b   : > { %v1331_v14 = vrot.slane %v1329_v16, 5  ;;  %v1335_v28 = vrot.slane %v1333_v17, 4  ;;  %v1339_v31 = vshll.u32 %v8345_v23, 16  ;;  %v6418_v35 = vrot.slane %v2130_v4, 9  ;;  %v7722_v51 = vld [vmem:[#allocation2 + $0x14] sm:$0x1] }
  0x9c   : > { %v1327_v25 = vrot.slane %v1326_v11, 4  ;;  %7172 = vmatprep.mubr.bf16.mxu1 %v6384_v18  ;;  %v813_v37 = vsel %vm7893_vm8, %v805_v53, %v812_v20  ;;  %v986_v43 = vsel %vm7840_vm3, %v814_v24, %v985_v40  ;;  %v2183_v47 = vrot.slane %v8357_v45, 5  ;;  %v8362_v53 = vld [vmem:[#allocation2 + $0x10] sm:$0xf]  ;;  %v8367_v27 = vld [vmem:[#allocation2 + $0x1c] sm:$0xf] }
  0x9d   : > { %v1336_v49 = vor.u32 %v1335_v28, %v1331_v14  ;;  %v1341_v50 = vrot.slane %v1339_v31, 5  ;;  %984 = vst [vmem:[#allocation2 + $0xb8] sm:$0xf] %v813_v37  ;;  %987 = vst [vmem:[#allocation2 + $0xbc] sm:$0x1] %v986_v43  ;;  %v2193_v56 = vrot.slane %v7722_v51, 5 }
  0x9e   : > { %v2184_v55 = vsel %vm8349_vm14, %v6418_v35, %v2183_v47  ;;  %v2185_v54 = vrot.slane %v2183_v47, 4  ;;  %v2190_v63 = vrot.slane %v8362_v53, 5  ;;  %v1332_v44 = vsel %vm7956_vm11, %v1327_v25, %v1331_v14  ;;  %v2133_v8 = vld [vmem:[#allocation2 + $0x24] sm:$0xe]  ;;  %v7725_v18 = vld [vmem:[#allocation2 + $0x20] sm:$0x1] }
  0x9f   : > { %v1337_v40 = vrot.slane %v1336_v49, 4  ;;  %v6419_v4 = vrot.slane %v2131_v34, 9  ;;  %v2197_v5 = vrot.slane %v8367_v27, 5  ;;  %v6420_v17 = vrot.slane %v2132_v48, 9  ;;  %v2134_v35 = vld [vmem:[#allocation2 + $0x30] sm:$0xe] }
  0xa0   : > { %v8370_v13 = vld [vmem:[#allocation2 + $0xb4] sm:$0xf]  ;;  %v2187_v11 = vsel %vm8349_vm14, %v2185_v54, %v2186_v58  ;;  %v2192_v16 = vrot.slane %v2190_v63, 4  ;;  %v2200_v20 = vrot.slane %v7725_v18, 5  ;;  %v2204_v37 = vrot.slane %v8082_v61, 5 }
  0xa1   : > { %10642 = vst [vmem:[#allocation7_spill] sm:$0xff] %v8370_v13  ;;  %v1342_v24 = vsel %vm7956_vm11, %v1337_v40, %v1341_v50  ;;  %v1512_v25 = vshrl.u32 %v8370_v13, 16  ;;  %v1515_v14 = vshll.u32 %v8370_v13, 16  ;;  %v6450_v28 = vcombine.low %v2184_v55, %v2187_v11 }
  0xa2   : > { %v6377_v31 = vcombine.low %v1332_v44, %v1342_v24  ;;  %v2199_v34 = vrot.slane %v2197_v5, 4  ;;  %v2191_v48 = vsel %vm8349_vm14, %v6419_v4, %v2190_v63  ;;  %v2194_v49 = vsel %vm8349_vm14, %v2192_v16, %v2193_v56  ;;  %v7726_v16 = vld [vmem:[#allocation2 + $0x2c] sm:$0x1] }
  0xa3   : > { %v1514_v26 = vrot.slane %v1512_v25, 4  ;;  %v1517_v43 = vrot.slane %v1515_v14, 5  ;;  %v6421_v50 = vrot.slane %v2133_v8, 9  ;;  %v2198_v44 = vsel %vm8349_vm14, %v6420_v17, %v2197_v5  ;;  %v2135_v14 = vld [vmem:[#allocation2 + $0x3c] sm:$0xe] }
  0xa4   : > { %7157 = vmatmul.mubr.bf16.gmra.mxu0 %v6377_v31  ;;  %v8381_v58 = vld [vmem:[#allocation2 + $0xb8] sm:$0xf]  ;;  %v8383_v47 = vld [vmem:[#allocation2 + $0xbc] sm:$0x1]  ;;  %v2201_v40 = vsel %vm8349_vm14, %v2199_v34, %v2200_v20  ;;  %v2206_v11 = vrot.slane %v2204_v37, 4  ;;  %v2211_v63 = vrot.slane %v8179_v0, 5  ;;  %v6451_v24 = vcombine.low %v2191_v48, %v2194_v49 }
  0xa5   : > { %v1518_v51 = vor.u32 %v1517_v43, %v1514_v26  ;;  %v1521_v55 = vshll.u32 %v8381_v58, 16  ;;  %v1525_v61 = vshrl.u32 %v8381_v58, 16  ;;  %v1531_v54 = vshll.u32 %v8383_v47, 16  ;;  %7240 = vmatprep.mubr.bf16.mxu0 %v6450_v28  ;;  %v2136_v31 = vld [vmem:[#allocation2 + $0x48] sm:$0xe]  ;;  %v7632_v34 = vld [vmem:[%s10599_s3 + $0x130] sm:$0xff]  }
  0xa6   : > { %v2207_v18 = vrot.slane %v7726_v16, 5  ;;  %v6422_v25 = vrot.slane %v2134_v35, 9  ;;  %v6452_v43 = vcombine.low %v2198_v44, %v2201_v40  ;;  %v2218_v5 = vrot.slane %v8225_v1, 5  ;;  %v7727_v17 = vld [vmem:[#allocation2] sm:$0xf] }
  0xa7   : > { %v1519_v4 = vrot.slane %v1518_v51, 4  ;;  %v1523_v56 = vrot.slane %v1521_v55, 5  ;;  %v1527_v8 = vrot.slane %v1525_v61, 4  ;;  %v1533_v28 = vrot.slane %v1531_v54, 5 }
  0xa8   : > { %v6394_v20 = vcombine.low %v7727_v17, %v8357_v45  ;;  %v2213_v51 = vrot.slane %v2211_v63, 4  ;;  %v2214_v55 = vrot.slane %v8195_v15, 5  ;;  %v2225_v48 = vrot.slane %v8291_v21, 5  ;;  %v2137_v45 = vld [vmem:[#allocation2 + $0x54] sm:$0xe]  ;;  %v7636_v15 = vld [vmem:[%s10599_s3 + $0x128] sm:$0xff]  }
  0xa9   : > { %v1528_v26 = vor.u32 %v1527_v8, %v1523_v56  ;;  %v1524_v35 = vsel %vm7956_vm11, %v1519_v4, %v1523_v56  ;;  %v2205_v61 = vsel %vm8349_vm14, %v6421_v50, %v2204_v37  ;;  %v2208_v54 = vsel %vm8349_vm14, %v2206_v11, %v2207_v18  ;;  %v7728_v37 = vld [vmem:[%s10599_s3 + $0x138] sm:$0xff]   ;;  %v2138_v56 = vld [vmem:[#allocation2 + $0x60] sm:$0xe]  ;;  %v8426_v17 = vld [vmem:[#allocation2 + $0x68] sm:$0x1] }
  0xaa   : > { %v6423_v44 = vrot.slane %v2135_v14, 9  ;;  %v2220_v40 = vrot.slane %v2218_v5, 4  ;;  %v2221_v8 = vrot.slane %v8227_v42, 5  ;;  %v6424_v16 = vrot.slane %v2136_v31, 9 }
  0xab   : > { %v1529_v49 = vrot.slane %v1528_v26, 4  ;;  %v2212_v50 = vsel %vm8349_vm14, %v6422_v25, %v2211_v63  ;;  %v2227_v11 = vrot.slane %v2225_v48, 4  ;;  %v2232_v42 = vrot.slane %v8337_v62, 5  ;;  %v7730_v63 = vld [vmem:[#allocation2 + $0xc] sm:$0xf] }
  0xac   : > { %7241 = vmatmul.mubr.bf16.vlgmr.msra.gmra.mxu0 %v6451_v24  ;;  %v2215_v24 = vsel %vm8349_vm14, %v2213_v51, %v2214_v55  ;;  %v2228_v14 = vrot.slane %v8302_v29, 5  ;;  %v6425_v31 = vrot.slane %v2137_v45, 9  ;;  %v6395_v25 = vcombine.low %v7730_v63, %v8362_v53  ;;  %v8441_v55 = vld [vmem:[#allocation2 + $0x64] sm:$0xf]  ;;  %v8491_v63 = vld [vmem:[#allocation2 + $0x6c] sm:$0xf] }
  0xad   : > { %v1534_v4 = vsel %vm7956_vm11, %v1529_v49, %v1533_v28  ;;  %7321 = vmatpush3.bf16.msra.mxu0 %v7728_v37  ;;  %7244 = vmatprep.mubr.bf16.mxu0 %v6452_v43  ;;  %v2234_v26 = vrot.slane %v2232_v42, 4  ;;  %v2235_v28 = vrot.slane %v8345_v23, 5  ;;  %v2242_v43 = vrot.slane %v8426_v17, 5  ;;  %v7640_v23 = vld [vmem:[%s10599_s3 + $0x120] sm:$0xff]  }
  0xae   : > { %v6385_v18 = vcombine.low %v1524_v35, %v1534_v4  ;;  %7322 = vmatprep.subr.bf16.mxu0 %v7632_v34  ;;  %v6453_v49 = vcombine.low %v2205_v61, %v2208_v54  ;;  %v6454_v35 = vcombine.low %v2212_v50, %v2215_v24  ;;  %v8432_v51 = vsel %vm8349_vm14, %v6423_v44, %v2218_v5  ;;  %v2139_v61 = vld [vmem:[#allocation2 + $0x6c] sm:$0xe]  ;;  %v8452_v54 = vld [vmem:[#allocation2 + $0x70] sm:$0xf]  ;;  %v7733_v44 = vld [vmem:[#allocation2 + $0x18] sm:$0xf] }
  0xaf   : > { %v8436_v29 = vsel %vm8349_vm14, %v2220_v40, %v2221_v8  ;;  %v2239_v53 = vrot.slane %v8441_v55, 5  ;;  %v8450_v5 = vsel %vm8349_vm14, %v2227_v11, %v2228_v14  ;;  %v2246_v45 = vrot.slane %v8452_v54, 5  ;;  %v8456_v8 = vld [vmem:[#allocation2 + $0x24] sm:$0xf]  ;;  %v8458_v4 = vld [vmem:[#allocation2 + $0x28] sm:$0xf] }
  0xb0   : > { %7173 = vmatmul.mubr.bf16.gmra.mxu1 %v6385_v18  ;;  %v6396_v40 = vcombine.low %v7733_v44, %v8367_v27  ;;  %v8468_v37 = vsel %vm8349_vm14, %v2234_v26, %v2235_v28  ;;  %v8470_v50 = vld [vmem:[#allocation2 + $0x78] sm:$0xe]  ;;  %v8475_v27 = vld [vmem:[%s10599_s3 + $0xf0] sm:$0xff]   ;;  %v6455_v11 = vcombine.low %v8432_v51, %v8436_v29  ;;  %v8483_v18 = vld [vmem:[#allocation2 + $0x60] sm:$0xf]  ;;  %v6427_v51 = vrot.slane %v2139_v61, 9 }
  0xb1   : > { %7192 = vmatprep.mubr.bf16.mxu1 %v6394_v20  ;;  %7323 = vmatpush3.bf16.msra.mxu0 %v7632_v34  ;;  %v8446_v20 = vsel %vm8349_vm14, %v6424_v16, %v2225_v48  ;;  %v6426_v34 = vrot.slane %v2138_v56, 9  ;;  %v8464_v16 = vsel %vm8349_vm14, %v6425_v31, %v2232_v42  ;;  %v8487_v14 = vld [vmem:[#allocation2 + $0x84] sm:$0xe]  ;;  %v2143_v31 = vld [vmem:[#allocation2 + $0x9c] sm:$0xe]  ;;  %v2241_v28 = vrot.slane %v2239_v53, 4 }
  0xb2   : > { %7324 = vmatprep.subr.bf16.mxu0 %v7636_v15  ;;  %v6456_v26 = vcombine.low %v8446_v20, %v8450_v5  ;;  %v2144_v29 = vld [vmem:[#allocation2 + $0xa8] sm:$0xe]  ;;  %v7644_v20 = vld [vmem:[%s10599_s3 + $0x118] sm:$0xff]   ;;  %v6428_v5 = vrot.slane %v8470_v50, 9  ;;  %v8508_v56 = vld [vmem:[#allocation2 + $0x80] sm:$0x1] }
  0xb3   : > { %v8499_v24 = vsel %vm8349_vm14, %v6426_v34, %v2239_v53  ;;  %v7635_v34 = vld [vmem:[%s10599_s3 + $0xe8] sm:$0xff]   ;;  %v6431_v7 = vrot.slane %v2143_v31, 9  ;;  %v2274_v48 = vrot.slane %v8271_v38, 5  ;;  %v8530_v53 = vsel %vm8349_vm14, %v6427_v51, %v2246_v45  ;;  %v2142_v31 = vld [vmem:[#allocation2 + $0x90] sm:$0xe] }
  0xb4   : > { %7245 = vmatmul.mubr.bf16.gmra.mxu0 %v6453_v49  ;;  %v8505_v49 = vld [vmem:[#allocation2 + $0x7c] sm:$0xf]  ;;  %v8517_v44 = vld [vmem:[#allocation2 + $0x88] sm:$0xf]  ;;  %v2277_v46 = vrot.slane %v8273_v41, 5  ;;  %v2281_v41 = vrot.slane %v8313_v2, 5 }
  0xb5   : > { %7248 = vmatprep.mubr.bf16.mxu0 %v6454_v35  ;;  %7325 = vmatpush3.bf16.msra.mxu0 %v7636_v15  ;;  %v2248_v15 = vrot.slane %v2246_v45, 4  ;;  %v7738_v35 = vld [vmem:[#allocation2 + $0x74] sm:$0x1]  ;;  %v2253_v61 = vrot.slane %v8505_v49, 5  ;;  %v2260_v50 = vrot.slane %v8517_v44, 5  ;;  %v2276_v17 = vrot.slane %v2274_v48, 4 }
  0xb6   : > { %7326 = vmatprep.subr.bf16.mxu0 %v7640_v23  ;;  %v2249_v42 = vrot.slane %v7738_v35, 5  ;;  %v6429_v35 = vrot.slane %v8487_v14, 9  ;;  %v2267_v14 = vrot.slane %v8200_v22, 5  ;;  %v7648_v22 = vld [vmem:[%s10599_s3 + $0x110] sm:$0xff]   ;;  %v6430_v9 = vrot.slane %v2142_v31, 9  ;;  %v7652_v31 = vld [vmem:[%s10599_s3 + $0x108] sm:$0xff]  }
  0xb7   : > { %v2255_v45 = vrot.slane %v2253_v61, 4  ;;  %v8554_v39 = vsel %vm8349_vm14, %v2276_v17, %v2277_v46 }
  0xb8   : > { %7193 = vmatmul.mubr.bf16.vlgmr.msra.gmra.mxu1 %v6395_v25  ;;  %v8526_v25 = vsel %vm8349_vm14, %v2241_v28, %v2242_v43  ;;  %v8541_v28 = vld [vmem:[#allocation2 + $0xc] sm:$0xf]  ;;  %v8568_v46 = vsel %vm8349_vm14, %v2248_v15, %v2249_v42  ;;  %v8580_v17 = vsel %vm8349_vm14, %v6429_v35, %v2260_v50  ;;  %v10607_v15 = vrot.slane %v8381_v58, 5  ;;  %v8593_v35 = vld [vmem:[#allocation2 + $0xb4] sm:$0xe] }
  0xb9   : > { %7273 = vmatpush3.bf16.msra.mxu1 %v8170_v52  ;;  %7196 = vmatprep.mubr.bf16.mxu1 %v6396_v40  ;;  %v8537_v52 = vsel %vm8349_vm14, %v6431_v7, %v2274_v48  ;;  %v6432_v40 = vrot.slane %v2144_v29, 9  ;;  %v3002_v48 = vld [vmem:[#allocation2 + $0x10] sm:$0xf]  ;;  %v6458_v51 = vcombine.low %v8499_v24, %v8526_v25  ;;  %v2262_v29 = vrot.slane %v2260_v50, 4  ;;  %v7742_v43 = vld [vmem:[#allocation2 + $0x8c] sm:$0x1] }
  0xba   : > { %7274 = vmatprep.subr.bf16.mxu1 %v8475_v27  ;;  %7327 = vmatpush3.bf16.msra.mxu0 %v7640_v23  ;;  %v2284_v23 = vrot.slane %v8315_v3, 5  ;;  %v2263_v32 = vrot.slane %v7742_v43, 5  ;;  %v2283_v7 = vrot.slane %v2281_v41, 4  ;;  %v7639_v24 = vld [vmem:[%s10599_s3 + $0xe0] sm:$0xff]   ;;  %v2270_v25 = vrot.slane %v8207_v33, 5 }
  0xbb   : > { %7328 = vmatprep.subr.bf16.mxu0 %v7644_v20  ;;  %v10643_v33 = vcombine.low %v8456_v8, %v8458_v4  ;;  %v3053_v50 = vshll.u32 %v8541_v28, 16  ;;  %v10645_v8 = vrot.slane %v8508_v56, 5  ;;  %v7656_v56 = vld [vmem:[%s10599_s3 + $0x100] sm:$0xff]   ;;  %v8641_v43 = vld [vmem:[#allocation2 + $0x28] sm:$0xf] }
  0xbc   : > { %7249 = vmatmul.mubr.bf16.gmra.mxu0 %v6455_v11  ;;  %v8561_v11 = vsel %vm8349_vm14, %v6432_v40, %v2281_v41  ;;  %v8584_v42 = vsel %vm8349_vm14, %v2283_v7, %v2284_v23  ;;  %v3059_v40 = vshll.u32 %v3002_v48, 16  ;;  %v3063_v41 = vshrl.u32 %v3002_v48, 16  ;;  %v7643_v7 = vld [vmem:[%s10599_s3 + $0xd8] sm:$0xff]   ;;  %10648 = vst [vmem:[#allocation9_spill] sm:$0xff] %v8641_v43  ;;  %v8664_v3 = vld [vmem:[#allocation2 + $0x90] sm:$0xf] }
  0xbd   : > { %7275 = vmatpush3.bf16.msra.mxu1 %v8475_v27  ;;  %7252 = vmatprep.mubr.bf16.mxu0 %v6456_v26  ;;  %v8572_v27 = vsel %vm8349_vm14, %v6428_v5, %v2253_v61  ;;  %v2269_v26 = vrot.slane %v2267_v14, 4  ;;  %v3004_v5 = vld [vmem:[#allocation2 + $0x18] sm:$0xf]  ;;  %v3005_v61 = vld [vmem:[#allocation2 + $0x1c] sm:$0xf]  ;;  %v10644_v23 = vcombine.low %v8189_v10, %v8179_v0  ;;  %v8606_v4 = vsel %vm8349_vm14, %v2255_v45, %v10645_v8 }
  0xbe   : > { %7276 = vmatprep.subr.bf16.mxu1 %v7635_v34  ;;  %7329 = vmatpush3.bf16.msra.mxu0 %v7644_v20  ;;  %v3050_v20 = vshrl.u32 %v8541_v28, 16  ;;  %v8610_v28 = vsel %vm8349_vm14, %v2262_v29, %v2263_v32  ;;  %v8614_v48 = vsel %vm8349_vm14, %v6430_v9, %v2267_v14  ;;  %v3007_v0 = vld [vmem:[#allocation2 + $0x24] sm:$0xf]  ;;  %v3077_v45 = vshll.u32 %v3004_v5, 16 }
  0xbf   : > { %7330 = vmatprep.subr.bf16.mxu0 %v7648_v22  ;;  %v8618_v10 = vsel %vm8349_vm14, %v2269_v26, %v2270_v25  ;;  %v6433_v32 = vrot.slane %v8593_v35, 9  ;;  %v2290_v9 = vrot.slane %v10607_v15, 4  ;;  %v2291_v14 = vrot.slane %v8383_v47, 5  ;;  %v7647_v25 = vld [vmem:[%s10599_s3 + $0xd0] sm:$0xff]   ;;  %v8643_v47 = vld [vmem:[#allocation2 + $0x20] sm:$0x1] }
  0xc0   : > { %7197 = vmatmul.mubr.bf16.gmra.mxu1 %v10643_v33  ;;  %v3083_v33 = vshll.u32 %v3005_v61, 16  ;;  %v3087_v29 = vshrl.u32 %v3005_v61, 16  ;;  %v10647_v26 = vcombine.low %v8464_v16, %v8468_v37  ;;  %v8639_v35 = vrot.slane %v3059_v40, 5  ;;  %v8654_v40 = vld [vmem:[#allocation2 + $0x78] sm:$0xf] }
  0xc1   : > { %7200 = vmatprep.mubr.bf16.mxu1 %v10644_v23  ;;  %7277 = vmatpush3.bf16.msra.mxu1 %v7635_v34  ;;  %v3074_v34 = vshrl.u32 %v3004_v5, 16  ;;  %v8635_v5 = vrot.slane %v3050_v20, 4  ;;  %v8637_v23 = vrot.slane %v3053_v50, 5  ;;  %v3065_v8 = vrot.slane %v3063_v41, 4  ;;  %v8650_v20 = vld [vmem:[%s10599_s3 + $0x1b8] sm:$0xff]  }
  0xc2   : > { %7278 = vmatprep.subr.bf16.mxu1 %v7639_v24  ;;  %7331 = vmatpush3.bf16.msra.mxu0 %v7648_v22  ;;  %v8627_v22 = vld [vmem:[#allocation2 + $0x14] sm:$0x1]  ;;  %v3079_v16 = vrot.slane %v3077_v45, 5  ;;  %v8645_v37 = vrot.slane %v3083_v33, 5  ;;  %v3098_v50 = vshrl.u32 %v3007_v0, 16  ;;  %v3101_v45 = vshll.u32 %v3007_v0, 16 }
  0xc3   : > { %7332 = vmatprep.subr.bf16.mxu0 %v7652_v31  ;;  %10646 = vst [vmem:[#allocation8_spill] sm:$0xff] %v8627_v22  ;;  %v3076_v61 = vrot.slane %v3074_v34, 4  ;;  %v3089_v34 = vrot.slane %v3087_v29, 4  ;;  %v6459_v33 = vcombine.low %v8530_v53, %v8568_v46  ;;  %v8666_v15 = vld [vmem:[#allocation2 + $0x94] sm:$0xf]  ;;  %v3111_v13 = vshrl.u32 %v8641_v43, 16 }
  0xc4   : > { %7253 = vmatmul.mubr.bf16.gmra.mxu0 %v10647_v26  ;;  %v8652_v26 = vld [vmem:[#allocation2 + $0x30] sm:$0xf]  ;;  %v6460_v0 = vcombine.low %v8572_v27, %v8606_v4  ;;  %v7651_v29 = vld [vmem:[%s10599_s3 + $0xc8] sm:$0xff]   ;;  %v3069_v6 = vshll.u32 %v8627_v22, 16  ;;  %v10650_v41 = vcombine.low %v8298_v12, %v8291_v21  ;;  %v3100_v27 = vrot.slane %v3098_v50, 4 }
  0xc5   : > { %7279 = vmatpush3.bf16.msra.mxu1 %v7639_v24  ;;  %7256 = vmatprep.mubr.bf16.mxu0 %v6458_v51  ;;  %v8658_v24 = vld [vmem:[#allocation2 + $0x84] sm:$0xf]  ;;  %v3107_v51 = vshll.u32 %v8641_v43, 16  ;;  %v3103_v4 = vrot.slane %v3101_v45, 5  ;;  %v3080_v46 = vor.u32 %v3079_v16, %v3076_v61  ;;  %v3090_v53 = vor.u32 %v3089_v34, %v8645_v37  ;;  %v8695_v43 = vld [vmem:[#allocation2 + $0x2c] sm:$0x1] }
  0xc6   : > { %7280 = vmatprep.subr.bf16.mxu1 %v7643_v7  ;;  %7333 = vmatpush3.bf16.msra.mxu0 %v7652_v31  ;;  %v10649_v31 = vcombine.low %v8217_v59, %v8225_v1  ;;  %v3056_v59 = vor.u32 %v8637_v23, %v8635_v5  ;;  %v3066_v1 = vor.u32 %v3065_v8, %v8639_v35  ;;  %v3093_v22 = vshll.u32 %v8643_v47, 16  ;;  %v3013_v12 = vld [vmem:[#allocation2 + $0x3c] sm:$0xf]  ;;  %v8711_v47 = vld [vmem:[#allocation2 + $0x40] sm:$0xf] }
  0xc7   : > { %7334 = vmatprep.subr.bf16.mxu0 %v7656_v56  ;;  %v3122_v21 = vshrl.u32 %v8652_v26, 16  ;;  %v8706_v23 = vsel %vm8349_vm14, %v2290_v9, %v2291_v14  ;;  %v3113_v8 = vrot.slane %v3111_v13, 4  ;;  %10653 = vst [vmem:[#allocation11_spill] sm:$0xff] %v8711_v47  ;;  %v3071_v61 = vrot.slane %v3069_v6, 5  ;;  %v7655_v9 = vld [vmem:[%s10599_s3 + $0xc0] sm:$0xff]  }
  0xc8   : > { %7201 = vmatmul.mubr.bf16.gmra.mxu1 %v10649_v31  ;;  %v8691_v31 = vld [vmem:[#allocation2 + $0x34] sm:$0xf]  ;;  %v3125_v16 = vshll.u32 %v8652_v26, 16  ;;  %v3057_v14 = vrot.slane %v3056_v59, 4  ;;  %v3117_v13 = vshll.u32 %v8695_v43, 16  ;;  %v8720_v6 = vrot.slane %v3080_v46, 4 }
  0xc9   : > { %7204 = vmatprep.mubr.bf16.mxu1 %v10650_v41  ;;  %7281 = vmatpush3.bf16.msra.mxu1 %v7643_v7  ;;  %10651 = vst [vmem:[#allocation10_spill] sm:$0xff] %v8691_v31  ;;  %v10652_v7 = vrot.slane %v8381_v58, 5  ;;  %v3131_v50 = vshll.u32 %v8691_v31, 16  ;;  %v3104_v41 = vor.u32 %v3103_v4, %v3100_v27  ;;  %v3016_v34 = vld [vmem:[#allocation2 + $0x48] sm:$0xf]  ;;  %v8722_v26 = vrot.slane %v3090_v53, 4 }
  0xca   : > { %7282 = vmatprep.subr.bf16.mxu1 %v7647_v25  ;;  %7335 = vmatpush3.bf16.msra.mxu0 %v7656_v56  ;;  %v8709_v56 = vrot.slane %v3107_v51, 5  ;;  %v3067_v51 = vrot.slane %v3066_v1, 4  ;;  %v8724_v45 = vrot.slane %v3093_v22, 5  ;;  %v3146_v27 = vshrl.u32 %v3013_v12, 16  ;;  %v8739_v22 = vld [vmem:[%s10599_s3 + $0x178] sm:$0xff]  }
  0xcb   : > { %v8702_v5 = vsel %vm8349_vm14, %v6433_v32, %v10652_v7  ;;  %7416 = vmatprep.subr.bf16.mxu0 %v8650_v20  ;;  %v3135_v32 = vshrl.u32 %v8691_v31, 16  ;;  %v3149_v4 = vshll.u32 %v3013_v12, 16  ;;  %v10654_v46 = vcombine.low %v8331_v19, %v8337_v62 }
  0xcc   : > { %7257 = vmatmul.mubr.bf16.gmra.mxu0 %v6459_v33  ;;  %v8726_v33 = vld [vmem:[#allocation2 + $0x38] sm:$0x1]  ;;  %v3114_v1 = vor.u32 %v3113_v8, %v8709_v56  ;;  %v3127_v53 = vrot.slane %v3125_v16, 5  ;;  %v3155_v31 = vshll.u32 %v8711_v47, 16  ;;  %v10655_v8 = vcombine.low %v8483_v18, %v8441_v55 }
  0xcd   : > { %7260 = vmatprep.mubr.bf16.mxu0 %v6460_v0  ;;  %7283 = vmatpush3.bf16.msra.mxu1 %v7647_v25  ;;  %v3124_v25 = vrot.slane %v3122_v21, 4  ;;  %v8728_v0 = vld [vmem:[#allocation2 + $0x4c] sm:$0xf]  ;;  %v8741_v21 = vrot.slane %v3131_v50, 5  ;;  %v3137_v7 = vrot.slane %v3135_v32, 4  ;;  %v8747_v12 = vrot.slane %v3104_v41, 4 }
  0xce   : > { %7284 = vmatprep.subr.bf16.mxu1 %v7651_v29  ;;  %v8749_v19 = vrot.slane %v3117_v13, 5  ;;  %v3159_v62 = vshrl.u32 %v8711_v47, 16  ;;  %v3062_v16 = vsel %vm7956_vm11, %v3057_v14, %v8639_v35  ;;  %v3072_v50 = vsel %vm7956_vm11, %v3067_v51, %v3071_v61  ;;  %v8765_v14 = vld [vmem:[#allocation2 + $0x44] sm:$0x1] }
  0xcf   : > { %v3173_v32 = vshll.u32 %v3016_v34, 16  ;;  %v3179_v55 = vshll.u32 %v8728_v0, 16  ;;  %v8758_v18 = vrot.slane %v3114_v1, 4  ;;  %v3148_v41 = vrot.slane %v3146_v27, 4  ;;  %v8774_v27 = vld [vmem:[#allocation2 + $0x50] sm:$0x1] }
  0xd0   : > { %7205 = vmatmul.mubr.bf16.gmra.mxu1 %v10654_v46  ;;  %v3170_v46 = vshrl.u32 %v3016_v34, 16  ;;  %v3151_v13 = vrot.slane %v3149_v4, 5  ;;  %v10656_v59 = vcombine.low %v8580_v17, %v8610_v28  ;;  %v3128_v47 = vor.u32 %v3127_v53, %v3124_v25  ;;  %v8769_v34 = vld [vmem:[#allocation2 + $0x58] sm:$0xf]  ;;  %10659 = vst [vmem:[#allocation13_spill] sm:$0xff] %v8774_v27 }
  0xd1   : > { %7208 = vmatprep.mubr.bf16.mxu1 %v10655_v8  ;;  %7285 = vmatpush3.bf16.msra.mxu1 %v7651_v29  ;;  %v3141_v29 = vshll.u32 %v8726_v33, 16  ;;  %v3019_v8 = vld [vmem:[#allocation2 + $0x54] sm:$0xf]  ;;  %v3138_v35 = vor.u32 %v3137_v7, %v8741_v21  ;;  %v8767_v61 = vrot.slane %v3155_v31, 5  ;;  %v3161_v51 = vrot.slane %v3159_v62, 4  ;;  %10657 = vst [vmem:[#allocation12_spill] sm:$0xff] %v8769_v34 }
  0xd2   : > { %7286 = vmatprep.subr.bf16.mxu1 %v7655_v9  ;;  %v10658_v1 = vcombine.low %v8614_v48, %v8618_v10  ;;  %v3172_v4 = vrot.slane %v3170_v46, 4  ;;  %v3175_v17 = vrot.slane %v3173_v32, 5  ;;  %v8776_v28 = vrot.slane %v3179_v55, 5  ;;  %v8795_v55 = vld [vmem:[#allocation2 + $0x5c] sm:$0x1] }
  0xd3   : > { %v3183_v25 = vshrl.u32 %v8728_v0, 16  ;;  %v3194_v48 = vshrl.u32 %v3019_v8, 16  ;;  %v3197_v10 = vshll.u32 %v3019_v8, 16  ;;  %v3165_v53 = vshll.u32 %v8765_v14, 16 }
  0xd4   : > { %7261 = vmatmul.mubr.bf16.gmra.mxu0 %v10656_v59  ;;  %v8779_v59 = vcombine.low %v3062_v16, %v3072_v50  ;;  %v3203_v62 = vshll.u32 %v8769_v34, 16  ;;  %v10660_v46 = vcombine.low %v8491_v63, %v8452_v54  ;;  %v8791_v16 = vrot.slane %v3128_v47, 4 }
  0xd5   : > { %7264 = vmatprep.mubr.bf16.mxu0 %v10658_v1  ;;  %7287 = vmatpush3.bf16.msra.mxu1 %v7655_v9  ;;  %v3152_v9 = vor.u32 %v3151_v13, %v3148_v41  ;;  %v3185_v7 = vrot.slane %v3183_v25, 4  ;;  %v3162_v50 = vor.u32 %v3161_v51, %v8767_v61  ;;  %v3189_v32 = vshll.u32 %v8774_v27, 16  ;;  %v3022_v41 = vld [vmem:[#allocation2 + $0x60] sm:$0xf]  ;;  %v8805_v51 = vld [vmem:[#allocation2 + $0x64] sm:$0xf] }
  0xd6   : > { %7368 = vmatprep.subr.bf16.mxu1 %v8739_v22  ;;  %v3207_v8 = vshrl.u32 %v8769_v34, 16  ;;  %v10661_v13 = vcombine.low %v8654_v40, %v8505_v49  ;;  %v3096_v54 = vsel %vm7956_vm11, %v8722_v26, %v8724_v45  ;;  %v3139_v63 = vrot.slane %v3138_v35, 4  ;;  %v3025_v40 = vld [vmem:[#allocation2 + $0x6c] sm:$0xf] }
  0xd7   : > { %v3143_v47 = vrot.slane %v3141_v29, 5  ;;  %v3176_v1 = vor.u32 %v3175_v17, %v3172_v4  ;;  %v3110_v25 = vsel %vm7956_vm11, %v8747_v12, %v8709_v56  ;;  %v3196_v31 = vrot.slane %v3194_v48, 4  ;;  %v8825_v4 = vld [vmem:[#allocation2 + $0x70] sm:$0xf] }
  0xd8   : > { %7209 = vmatmul.mubr.bf16.gmra.mxu1 %v10660_v46  ;;  %v3186_v46 = vor.u32 %v3185_v7, %v8776_v28  ;;  %v3199_v49 = vrot.slane %v3197_v10, 5  ;;  %v3167_v34 = vrot.slane %v3165_v53, 5  ;;  %v8812_v27 = vrot.slane %v3203_v62, 5 }
  0xd9   : > { %7212 = vmatprep.mubr.bf16.mxu1 %v10661_v13  ;;  %v3153_v13 = vrot.slane %v3152_v9, 4  ;;  %v3209_v26 = vrot.slane %v3207_v8, 4  ;;  %v10662_v45 = vcombine.low %v8537_v52, %v8554_v39  ;;  %v3120_v29 = vsel %vm7956_vm11, %v8758_v18, %v8749_v19 }
  0xda   : > { %v3134_v56 = vsel %vm7956_vm11, %v8791_v16, %v8741_v21  ;;  %v3163_v12 = vrot.slane %v3162_v50, 4  ;;  %v3191_v35 = vrot.slane %v3189_v32, 5  ;;  %v10663_v17 = vcombine.low %v8561_v11, %v8584_v42  ;;  %v8839_v42 = vld [vmem:[#allocation2 + $0x68] sm:$0x1] }
  0xdb   : > { %v3177_v39 = vrot.slane %v3176_v1, 4  ;;  %v3213_v52 = vshll.u32 %v8795_v55, 16  ;;  %v3218_v48 = vshrl.u32 %v3022_v41, 16  ;;  %v3221_v10 = vshll.u32 %v3022_v41, 16 }
  0xdc   : > { %7265 = vmatmul.mubr.bf16.gmra.mxu0 %v10662_v45  ;;  %v3187_v9 = vrot.slane %v3186_v46, 4  ;;  %v3200_v19 = vor.u32 %v3199_v49, %v3196_v31  ;;  %v3227_v18 = vshll.u32 %v8805_v51, 16  ;;  %v3231_v53 = vshrl.u32 %v8805_v51, 16  ;;  %v8862_v49 = vld [vmem:[#allocation2 + $0x74] sm:$0x1] }
  0xdd   : > { %7268 = vmatprep.mubr.bf16.mxu0 %v10663_v17  ;;  %v3144_v21 = vsel %vm7956_vm11, %v3139_v63, %v3143_v47  ;;  %v3158_v7 = vsel %vm7956_vm11, %v3153_v13, %v8767_v61  ;;  %v3210_v11 = vor.u32 %v3209_v26, %v8812_v27  ;;  %v3242_v62 = vshrl.u32 %v3025_v40, 16  ;;  %v3028_v13 = vld [vmem:[#allocation2 + $0x78] sm:$0xf] }
  0xde   : > { %v10664_v16 = vcombine.low %v8658_v24, %v8517_v44  ;;  %v3168_v31 = vsel %vm7956_vm11, %v3163_v12, %v3167_v34  ;;  %v3245_v50 = vshll.u32 %v3025_v40, 16  ;;  %v3251_v32 = vshll.u32 %v8825_v4, 16 }
  0xdf   : > { %v3255_v8 = vshrl.u32 %v8825_v4, 16  ;;  %v10665_v61 = vcombine.low %v8664_v3, %v8666_v15  ;;  %v3182_v41 = vsel %vm7956_vm11, %v3177_v39, %v8776_v28  ;;  %v8854_v63 = vrot.slane %v3213_v52, 5 }
  0xe0   : > { %7213 = vmatmul.mubr.bf16.gmra.mxu1 %v10664_v16  ;;  %v3220_v44 = vrot.slane %v3218_v48, 4  ;;  %v3223_v24 = vrot.slane %v3221_v10, 5  ;;  %v3192_v34 = vsel %vm7956_vm11, %v3187_v9, %v3191_v35  ;;  %v8858_v47 = vrot.slane %v3200_v19, 4  ;;  %v8882_v9 = vld [vmem:[#allocation2 + $0x7c] sm:$0xf] }
  0xe1   : > { %7216 = vmatprep.mubr.bf16.mxu1 %v10665_v61  ;;  %v8860_v1 = vrot.slane %v3227_v18, 5  ;;  %v3233_v46 = vrot.slane %v3231_v53, 4  ;;  %v8864_v3 = vrot.slane %v3210_v11, 4  ;;  %v3237_v15 = vshll.u32 %v8839_v42, 16  ;;  %v3034_v16 = vld [vmem:[#allocation2 + $0x90] sm:$0xf] }
  0xe2   : > { %v3244_v40 = vrot.slane %v3242_v62, 4  ;;  %v3247_v28 = vrot.slane %v3245_v50, 5  ;;  %v10666_v26 = vcombine.low %v8702_v5, %v8706_v23  ;;  %v10667_v45 = vsel %vm7956_vm11, %v8720_v6, %v8645_v37  ;;  %v3031_v5 = vld [vmem:[#allocation2 + $0x84] sm:$0xf] }
  0xe3   : > { %v6531_v12 = vcombine.low %v10667_v45, %v3096_v54  ;;  %v8875_v35 = vrot.slane %v3251_v32, 5  ;;  %v3257_v17 = vrot.slane %v3255_v8, 4  ;;  %v6532_v39 = vcombine.low %v3110_v25, %v3120_v29  ;;  %v8888_v54 = vld [vmem:[#allocation2 + $0x88] sm:$0xf]  ;;  %v8917_v8 = vld [vmem:[#allocation2 + $0x94] sm:$0xf] }
  0xe4   : > { %7269 = vmatmul.mubr.bf16.gmra.mxu0 %v10666_v26  ;;  %v8878_v52 = vcombine.low %v3134_v56, %v3144_v21  ;;  %v8880_v48 = vcombine.low %v3158_v7, %v3168_v31  ;;  %v3224_v10 = vor.u32 %v3223_v24, %v3220_v44  ;;  %v8884_v23 = vcombine.low %v3182_v41, %v3192_v34  ;;  %v8900_v56 = vld [vmem:[#allocation2 + $0x80] sm:$0x1]  ;;  %v7664_v21 = vld [vmem:[%s10599_s3 + $0x1b0] sm:$0xff]  }
  0xe5   : > { %7336 = vmatprep.mubr.bf16.mxu0 %v8779_v59  ;;  %v3234_v19 = vor.u32 %v3233_v46, %v8860_v1  ;;  %v3261_v37 = vshll.u32 %v8862_v49, 16  ;;  %v3266_v6 = vshrl.u32 %v3028_v13, 16  ;;  %10668 = vst [vmem:[#allocation14_spill] sm:$0xff] %v8888_v54  ;;  %v3206_v59 = vsel %vm7956_vm11, %v8858_v47, %v8812_v27  ;;  %10671 = vst [vmem:[#allocation15_spill] sm:$0xff] %v8917_v8  ;;  %v7657_v24 = vld [vmem:[#allocation2 + $0xc] sm:$0xff]  }
  0xe6   : > { %v3216_v25 = vsel %vm7956_vm11, %v8864_v3, %v8854_v63  ;;  %v8898_v29 = vrot.slane %v3237_v15, 5  ;;  %v3269_v18 = vshll.u32 %v3028_v13, 16  ;;  %v10669_v53 = vcombine.low %v8252_v57, %v8271_v38  ;;  %v7668_v46 = vld [vmem:[%s10599_s3 + $0x1a8] sm:$0xff]  }
  0xe7   : > { %v3248_v7 = vor.u32 %v3247_v28, %v3244_v40  ;;  %v3258_v27 = vor.u32 %v3257_v17, %v8875_v35  ;;  %v3275_v11 = vshll.u32 %v8882_v9, 16  ;;  %v3279_v62 = vshrl.u32 %v8882_v9, 16  ;;  %v8934_v13 = vld [vmem:[#allocation2 + $0x8c] sm:$0x1] }
  0xe8   : > { %7217 = vmatmul.mubr.bf16.gmra.mxu1 %v10669_v53  ;;  %v10670_v31 = vcombine.low %v8311_v60, %v8313_v2  ;;  %v8914_v50 = vrot.slane %v3224_v10, 4  ;;  %v3290_v57 = vshrl.u32 %v3031_v5, 16  ;;  %v3293_v38 = vshll.u32 %v3031_v5, 16  ;;  %10672 = vst [vmem:[#allocation16_spill] sm:$0xff] %v8934_v13  ;;  %v3037_v10 = vld [vmem:[#allocation2 + $0x9c] sm:$0xf] }
  0xe9   : > { %v3299_v32 = vshll.u32 %v8888_v54, 16  ;;  %v8919_v61 = vrot.slane %v3234_v19, 4  ;;  %v8921_v41 = vrot.slane %v3261_v37, 5  ;;  %v3268_v63 = vrot.slane %v3266_v6, 4 }
  0xea   : > { %7220 = vmatprep.mubr.bf16.mxu1 %v10670_v31  ;;  %v3303_v44 = vshrl.u32 %v8888_v54, 16  ;;  %v3271_v34 = vrot.slane %v3269_v18, 5  ;;  %v3285_v60 = vshll.u32 %v8900_v56, 16  ;;  %v3314_v2 = vshrl.u32 %v3034_v16, 16 }
  0xeb   : > { %v3317_v47 = vshll.u32 %v3034_v16, 16  ;;  %v8928_v3 = vrot.slane %v3248_v7, 4  ;;  %v8930_v15 = vrot.slane %v3258_v27, 4  ;;  %v8932_v40 = vrot.slane %v3275_v11, 5  ;;  %v8951_v7 = vld [vmem:[#allocation2 + $0x98] sm:$0x1] }
  0xec   : > { %7337 = vmatmul.mubr.bf16.vlgmr.msra.gmra.mxu0 %v6531_v12  ;;  %v3281_v28 = vrot.slane %v3279_v62, 4  ;;  %v3292_v26 = vrot.slane %v3290_v57, 4  ;;  %v3295_v45 = vrot.slane %v3293_v38, 5  ;;  %v8937_v17 = vrot.slane %v3299_v32, 5  ;;  %10673 = vst [vmem:[#allocation17_spill] sm:$0xff] %v8951_v7  ;;  %v10674_v27 = vld [vmem:[#allocation7_spill] sm:$0xff] }
  0xed   : > { %7417 = vmatpush3.bf16.msra.mxu0 %v8650_v20  ;;  %7340 = vmatprep.mubr.bf16.mxu0 %v6532_v39  ;;  %v3305_v12 = vrot.slane %v3303_v44, 4  ;;  %v3316_v5 = vrot.slane %v3314_v2, 4  ;;  %v3319_v19 = vrot.slane %v3317_v47, 5  ;;  %v3323_v37 = vshll.u32 %v8917_v8, 16  ;;  %v8969_v57 = vld [vmem:[#allocation2 + $0xa0] sm:$0xf] }
  0xee   : > { %7418 = vmatprep.subr.bf16.mxu0 %v7664_v21  ;;  %v3327_v6 = vshrl.u32 %v8917_v8, 16  ;;  %v8941_v18 = vcombine.low %v3206_v59, %v3216_v25  ;;  %v3272_v53 = vor.u32 %v3271_v34, %v3268_v63  ;;  %v10675_v11 = vcombine.low %v10674_v27, %v8381_v58  ;;  %v8959_v59 = vld [vmem:[%s10599_s3 + $0x1a0] sm:$0xff]   ;;  %10676 = vst [vmem:[#allocation7_spill] sm:$0xff] %v8969_v57  ;;  %v3040_v44 = vld [vmem:[#allocation2 + $0xa8] sm:$0xf]  ;;  %v7658_v34 = vld [vmem:[#allocation2 + $0x18] sm:$0xff]  }
  0xef   : > { %v3282_v62 = vor.u32 %v3281_v28, %v8932_v40  ;;  %v8966_v16 = vrot.slane %v3285_v60, 5  ;;  %v3309_v31 = vshll.u32 %v8934_v13, 16  ;;  %v3296_v38 = vor.u32 %v3295_v45, %v3292_v26  ;;  %v8978_v27 = vld [vmem:[#allocation2 + $0xac] sm:$0xf]  ;;  %v3043_v20 = vld [vmem:[#allocation2 + $0xb4] sm:$0xf] }
  0xf0   : > { %7221 = vmatmul.mubr.bf16.gmra.mxu1 %v10675_v11  ;;  %v3338_v32 = vshrl.u32 %v3037_v10, 16  ;;  %v3341_v63 = vshll.u32 %v3037_v10, 16  ;;  %v3306_v60 = vor.u32 %v3305_v12, %v8937_v17  ;;  %v3320_v2 = vor.u32 %v3319_v19, %v3316_v5  ;;  %10677 = vst [vmem:[#allocation18_spill] sm:$0xff] %v8978_v27  ;;  %v7663_v12 = vld [vmem:[%s10599_s3 + $0x170] sm:$0xff]   ;;  %v8993_v19 = vld [vmem:[#allocation2 + $0xa4] sm:$0x1] }
  0xf1   : > { %7288 = vmatprep.mubr.bf16.mxu1 %v7657_v24  ;;  %7419 = vmatpush3.bf16.msra.mxu0 %v7664_v21  ;;  %v8976_v47 = vrot.slane %v3323_v37, 5  ;;  %v3329_v28 = vrot.slane %v3327_v6, 4  ;;  %v7661_v21 = vld [vmem:[#allocation2 + $0x24] sm:$0xff]   ;;  %v8980_v24 = vrot.slane %v3272_v53, 4  ;;  %v3333_v11 = vshll.u32 %v8951_v7, 16 }
  0xf2   : > { %7420 = vmatprep.subr.bf16.mxu0 %v7668_v46  ;;  %v3347_v26 = vshll.u32 %v8969_v57, 16  ;;  %v3351_v45 = vshrl.u32 %v8969_v57, 16  ;;  %v8989_v10 = vrot.slane %v3282_v62, 4  ;;  %v8991_v5 = vrot.slane %v3309_v31, 5  ;;  %v7676_v62 = vld [vmem:[%s10599_s3 + $0x198] sm:$0xff]  }
  0xf3   : > { %v3362_v37 = vshrl.u32 %v3040_v44, 16  ;;  %v3365_v6 = vshll.u32 %v3040_v44, 16  ;;  %v8996_v53 = vrot.slane %v3296_v38, 4  ;;  %v3340_v25 = vrot.slane %v3338_v32, 4  ;;  %v9011_v32 = vld [vmem:[#allocation2 + $0xb8] sm:$0xf] }
  0xf4   : > { %7341 = vmatmul.mubr.bf16.gmra.mxu0 %v8878_v52  ;;  %v3343_v58 = vrot.slane %v3341_v63, 5  ;;  %v3371_v52 = vshll.u32 %v8978_v27, 16  ;;  %v9003_v31 = vrot.slane %v3306_v60, 4  ;;  %v9005_v39 = vrot.slane %v3320_v2, 4  ;;  %v464_v60 = vld [vmem:[#allocation2 + $0xc0] sm:$0x1] }
  0xf5   : > { %7344 = vmatprep.mubr.bf16.mxu0 %v8880_v48  ;;  %7421 = vmatpush3.bf16.msra.mxu0 %v7668_v46  ;;  %v3330_v48 = vor.u32 %v3329_v28, %v8976_v47  ;;  %v9008_v46 = vld [vmem:[#allocation2 + $0xb0] sm:$0x1]  ;;  %v3375_v38 = vshrl.u32 %v8978_v27, 16  ;;  %v9013_v63 = vrot.slane %v3333_v11, 5  ;;  %v9015_v44 = vrot.slane %v3347_v26, 5  ;;  %v7667_v2 = vld [vmem:[%s10599_s3 + $0x168] sm:$0xff]  }
  0xf6   : > { %7422 = vmatprep.subr.bf16.mxu0 %v8959_v59  ;;  %v3353_v57 = vrot.slane %v3351_v45, 4  ;;  %v3357_v7 = vshll.u32 %v8993_v19, 16  ;;  %v3364_v28 = vrot.slane %v3362_v37, 4  ;;  %v3367_v8 = vrot.slane %v3365_v6, 5  ;;  %v556_v27 = vld [vmem:[%s7849_s6 + $0x78] sm:$0xf] }
  0xf7   : > { %v3386_v13 = vshrl.u32 %v3043_v20, 16  ;;  %v3389_v54 = vshll.u32 %v3043_v20, 16  ;;  %v10678_v11 = vsel %vm7956_vm11, %v8919_v61, %v8898_v29  ;;  %v9038_v20 = vld [vmem:[%s10599_s3 + $0x190] sm:$0xff]   ;;  %v3344_v45 = vor.u32 %v3343_v58, %v3340_v25 }
  0xf8   : > { %7289 = vmatmul.mubr.bf16.vlgmr.msra.gmra.mxu1 %v7658_v34  ;;  %v10679_v34 = vsel %vm7956_vm11, %v8914_v50, %v8860_v1  ;;  %v7662_v37 = vld [vmem:[#allocation2 + $0x30] sm:$0xff]   ;;  %v3377_v29 = vrot.slane %v3375_v38, 4  ;;  %v3399_v50 = vshrl.u32 %v9011_v32, 16  ;;  %v10680_v6 = vsel %vm7956_vm11, %v8930_v15, %v8921_v41  ;;  %v557_v38 = vld [vmem:[%s7849_s6 + $0x7c] sm:$0xf] }
  0xf9   : > { %7369 = vmatpush3.bf16.msra.mxu1 %v8739_v22  ;;  %7292 = vmatprep.mubr.bf16.mxu1 %v7661_v21  ;;  %v9033_v26 = vcombine.low %v10679_v34, %v10678_v11  ;;  %v9040_v22 = vrot.slane %v3371_v52, 5  ;;  %v3395_v21 = vshll.u32 %v9011_v32, 16  ;;  %v3388_v61 = vrot.slane %v3386_v13, 4  ;;  %v7665_v11 = vld [vmem:[#allocation2 + $0x3c] sm:$0xff]  }
  0xfa   : > { %7370 = vmatprep.subr.bf16.mxu1 %v7663_v12  ;;  %7423 = vmatpush3.bf16.msra.mxu0 %v8959_v59  ;;  %v3391_v1 = vrot.slane %v3389_v54, 5  ;;  %v10681_v25 = vsel %vm7956_vm11, %v8928_v3, %v8875_v35  ;;  %v9057_v52 = vrot.slane %v3330_v48, 4  ;;  %v3354_v13 = vor.u32 %v3353_v57, %v9015_v44  ;;  %v9061_v59 = vld [vmem:[#allocation2 + $0xbc] sm:$0x1] }
  0xfb   : > { %v9055_v58 = vcombine.low %v10681_v25, %v10680_v6  ;;  %7424 = vmatprep.subr.bf16.mxu0 %v7676_v62  ;;  %v3381_v54 = vshll.u32 %v9008_v46, 16  ;;  %v3368_v41 = vor.u32 %v3367_v8, %v3364_v28  ;;  %v9065_v15 = vrot.slane %v3395_v21, 5  ;;  %v520_v6 = vld [vmem:[#allocation2 + $0xc8] sm:$0x1] }
  0xfc   : > { %7345 = vmatmul.mubr.bf16.gmra.mxu0 %v8884_v23  ;;  %v3401_v34 = vrot.slane %v3399_v50, 4  ;;  %v465_v3 = vsel %vm7840_vm3, 0, %v464_v60  ;;  %v3278_v57 = vsel %vm7956_vm11, %v8980_v24, %v8932_v40  ;;  %v3288_v23 = vsel %vm7956_vm11, %v8989_v10, %v8966_v16  ;;  %v7684_v24 = vld [vmem:[%s10599_s3 + $0x188] sm:$0xff]  }
  0xfd   : > { %7371 = vmatpush3.bf16.msra.mxu1 %v7663_v12  ;;  %7348 = vmatprep.mubr.bf16.mxu0 %v8941_v18  ;;  %466 = vst [vmem:[#allocation2 + $0xc0] sm:$0x1] %v465_v3  ;;  %v816_v8 = vshrl.u32 %v556_v27, 16  ;;  %v819_v48 = vshll.u32 %v556_v27, 16  ;;  %v7671_v12 = vld [vmem:[%s10599_s3 + $0x160] sm:$0xff]   ;;  %v9081_v18 = vrot.slane %v3344_v45, 4  ;;  %v3378_v40 = vor.u32 %v3377_v29, %v9040_v22 }
  0xfe   : > { %7372 = vmatprep.subr.bf16.mxu1 %v7667_v2  ;;  %7425 = vmatpush3.bf16.msra.mxu0 %v7676_v62  ;;  %v9083_v60 = vrot.slane %v3357_v7, 5  ;;  %v3392_v16 = vor.u32 %v3391_v1, %v3388_v61  ;;  %v824_v10 = vshrl.u32 %v557_v38, 16  ;;  %v827_v28 = vshll.u32 %v557_v38, 16  ;;  %v7675_v61 = vld [vmem:[%s10599_s3 + $0x158] sm:$0xff]  }
  0xff   : > { %7426 = vmatprep.subr.bf16.mxu0 %v9038_v20  ;;  %v818_v27 = vrot.slane %v816_v8, 7  ;;  %v521_v50 = vsel %vm7855_vm4, 0, %v520_v6  ;;  %v9092_v62 = vrot.slane %v3354_v13, 4  ;;  %v9094_v7 = vrot.slane %v3368_v41, 4  ;;  %v9106_v13 = vld [vmem:[%s10599_s3 + $0x180] sm:$0xff]  }
 0x100   : > { %7293 = vmatmul.mubr.bf16.gmra.mxu1 %v7662_v37  ;;  %v9096_v45 = vrot.slane %v3381_v54, 5  ;;  %v3405_v29 = vshll.u32 %v9061_v59, 16  ;;  %522 = vst [vmem:[#allocation2 + $0xc8] sm:$0x1] %v521_v50  ;;  %v3402_v1 = vor.u32 %v3401_v34, %v9065_v15  ;;  %v826_v37 = vrot.slane %v824_v10, 7  ;;  %v7666_v54 = vld [vmem:[#allocation2 + $0x48] sm:$0xff]  }
 0x101   : > { %7296 = vmatprep.mubr.bf16.mxu1 %v7665_v11  ;;  %7373 = vmatpush3.bf16.msra.mxu1 %v7667_v2  ;;  %v821_v25 = vor.u32 %v819_v48, %v818_v27  ;;  %v822_v38 = vrot.slane %v818_v27, 4  ;;  %v9108_v41 = vcombine.low %v3278_v57, %v3288_v23  ;;  %v3302_v2 = vsel %vm7956_vm11, %v8996_v53, %v8937_v17  ;;  %v9115_v11 = vld [vmem:[#allocation2 + $0xc] sm:$0xe]  ;;  %v7669_v34 = vld [vmem:[#allocation2 + $0x54] sm:$0xff]   ;;  %v3757_v8 = vld [vmem:[#allocation2 + $0x24] sm:$0xe] }
 0x102   : > { %7374 = vmatprep.subr.bf16.mxu1 %v7671_v12  ;;  %7427 = vmatpush3.bf16.msra.mxu0 %v9038_v20  ;;  %v3312_v3 = vsel %vm7956_vm11, %v9003_v31, %v8991_v5  ;;  %v9121_v6 = vrot.slane %v3378_v40, 4  ;;  %v9123_v57 = vrot.slane %v3392_v16, 4  ;;  %v829_v23 = vor.u32 %v827_v28, %v826_v37  ;;  %v9129_v17 = vld [vmem:[%s10599_s3 + $0x150] sm:$0xff]   ;;  %v10684_v5 = vld [vmem:[#allocation9_spill] sm:$0xff]  ;;  %v9429_v10 = vld [vmem:[#allocation2 + $0x20] sm:$0x1] }
 0x103   : > { %7428 = vmatprep.subr.bf16.mxu0 %v7684_v24  ;;  %v9131_v53 = vrot.slane %v3405_v29, 5  ;;  %v831_v20 = vrot.slane %v826_v37, 4  ;;  %v6556_v27 = vrot.slane %v3757_v8, 9  ;;  %v3835_v31 = vrot.slane %v10684_v5, 5  ;;  %v9145_v29 = vld [vmem:[%s10599_s3 + $0x238] sm:$0xff]   ;;  %v10687_v5 = vld [vmem:[#allocation10_spill] sm:$0xff] }
 0x104   : > { %7349 = vmatmul.mubr.bf16.gmra.mxu0 %v9033_v26  ;;  %v988_v48 = vld [vmem:[#allocation2 + $0xc0] sm:$0xf]  ;;  %v9135_v40 = vrot.slane %v3402_v1, 4  ;;  %v830_v26 = vsel %vm7893_vm8, %v822_v38, %v829_v23  ;;  %v6554_v50 = vrot.slane %v9115_v11, 9  ;;  %v3758_v37 = vld [vmem:[#allocation2 + $0x30] sm:$0xe] }
 0x105   : > { %7375 = vmatpush3.bf16.msra.mxu1 %v7671_v12  ;;  %7352 = vmatprep.mubr.bf16.mxu0 %v9055_v58  ;;  %v989_v28 = vsel %vm7882_vm7, %v821_v25, %v988_v48  ;;  %v6540_v12 = vcombine.low %v3302_v2, %v3312_v3  ;;  %991 = vst [vmem:[#allocation2 + $0xc4] sm:$0xf] %v830_v26  ;;  %v3837_v1 = vrot.slane %v3835_v31, 4  ;;  %v3838_v25 = vrot.slane %v8695_v43, 5  ;;  %v9153_v23 = vld [vmem:[#allocation2 + $0x10] sm:$0xf] }
 0x106   : > { %7376 = vmatprep.subr.bf16.mxu1 %v7675_v61  ;;  %7429 = vmatpush3.bf16.msra.mxu0 %v7684_v24  ;;  %990 = vst [vmem:[#allocation2 + $0xc0] sm:$0xf] %v989_v28  ;;  %v9149_v58 = vsel %vm8349_vm14, %v6556_v27, %v3835_v31  ;;  %v3821_v8 = vrot.slane %v9153_v23, 5  ;;  %v6557_v48 = vrot.slane %v3758_v37, 9  ;;  %v3842_v2 = vrot.slane %v10687_v5, 5  ;;  %v7683_v27 = vld [vmem:[%s10599_s3 + $0x148] sm:$0xff]  }
 0x107   : > { %v992_v38 = vld [vmem:[#allocation2 + $0xc8] sm:$0x1]  ;;  %7430 = vmatprep.subr.bf16.mxu0 %v9106_v13  ;;  %v3845_v24 = vrot.slane %v8726_v33, 5  ;;  %v3326_v3 = vsel %vm7956_vm11, %v9005_v39, %v8976_v47  ;;  %v3336_v43 = vsel %vm7956_vm11, %v9057_v52, %v9013_v63  ;;  %v9173_v33 = vsel %vm8349_vm14, %v3837_v1, %v3838_v25  ;;  %v3759_v52 = vld [vmem:[#allocation2 + $0x3c] sm:$0xe]  ;;  %v7670_v26 = vld [vmem:[#allocation2 + $0x60] sm:$0xff]  }
 0x108   : > { %7297 = vmatmul.mubr.bf16.gmra.mxu1 %v7666_v54  ;;  %v993_v31 = vsel %vm7840_vm3, %v831_v20, %v992_v38  ;;  %v6588_v39 = vcombine.low %v9149_v58, %v9173_v33  ;;  %v9179_v47 = vsel %vm8349_vm14, %v6557_v48, %v3842_v2  ;;  %v3844_v63 = vrot.slane %v3842_v2, 4  ;;  %v10688_v54 = vld [vmem:[#allocation11_spill] sm:$0xff]  ;;  %v7673_v37 = vld [vmem:[#allocation2 + $0x6c] sm:$0xff]   ;;  %v10689_v1 = vld [vmem:[#allocation8_spill] sm:$0xff] }
 0x109   : > { %7300 = vmatprep.mubr.bf16.mxu1 %v7669_v34  ;;  %7377 = vmatpush3.bf16.msra.mxu1 %v7675_v61  ;;  %994 = vst [vmem:[#allocation2 + $0xc8] sm:$0x1] %v993_v31  ;;  %v3849_v16 = vrot.slane %v10688_v54, 5  ;;  %v3350_v61 = vsel %vm7956_vm11, %v9081_v18, %v9015_v44  ;;  %v3360_v34 = vsel %vm7956_vm11, %v9092_v62, %v9083_v60  ;;  %v6558_v20 = vrot.slane %v3759_v52, 9  ;;  %v3760_v18 = vld [vmem:[#allocation2 + $0x48] sm:$0xe] }
 0x10a   : > { %7378 = vmatprep.subr.bf16.mxu1 %v9129_v17  ;;  %7431 = vmatpush3.bf16.msra.mxu0 %v9106_v13  ;;  %v3852_v28 = vrot.slane %v8765_v14, 5  ;;  %v3824_v25 = vrot.slane %v10689_v1, 5  ;;  %v9197_v38 = vsel %vm8349_vm14, %v3844_v63, %v3845_v24  ;;  %v3856_v48 = vrot.slane %v8728_v0, 5  ;;  %v7687_v60 = vld [vmem:[%s10599_s3 + $0x140] sm:$0xff]   ;;  %v10690_v5 = vld [vmem:[#allocation13_spill] sm:$0xff] }
 0x10b   : > { %7512 = vmatprep.subr.bf16.mxu0 %v9145_v29  ;;  %v3851_v44 = vrot.slane %v3849_v16, 4  ;;  %v9208_v62 = vsel %vm8349_vm14, %v6558_v20, %v3849_v16  ;;  %v6559_v13 = vrot.slane %v3760_v18, 9  ;;  %v3859_v2 = vrot.slane %v10690_v5, 5  ;;  %v10691_v31 = vld [vmem:[#allocation12_spill] sm:$0xff]  ;;  %v9455_v58 = vld [vmem:[#allocation2 + $0x2c] sm:$0x1] }
 0x10c   : > { %7353 = vmatmul.mubr.bf16.gmra.mxu0 %v9108_v41  ;;  %v6541_v24 = vcombine.low %v3326_v3, %v3336_v43  ;;  %v3858_v41 = vrot.slane %v3856_v48, 4  ;;  %v3863_v63 = vrot.slane %v10691_v31, 5  ;;  %v6542_v52 = vcombine.low %v3350_v61, %v3360_v34  ;;  %v9221_v20 = vld [vmem:[#allocation2 + $0xc4] sm:$0xf] }
 0x10d   : > { %7356 = vmatprep.mubr.bf16.mxu0 %v6540_v12  ;;  %7379 = vmatpush3.bf16.msra.mxu1 %v9129_v17  ;;  %v9214_v0 = vsel %vm8349_vm14, %v3851_v44, %v3852_v28  ;;  %v3374_v54 = vsel %vm7956_vm11, %v9094_v7, %v9040_v22  ;;  %v3046_v16 = vld [vmem:[#allocation2 + $0xc0] sm:$0xf]  ;;  %v9227_v12 = vsel %vm8349_vm14, %v6559_v13, %v3856_v48  ;;  %v3419_v61 = vshll.u32 %v9221_v20, 16  ;;  %v3761_v13 = vld [vmem:[#allocation2 + $0x54] sm:$0xe] }
 0x10e   : > { %7380 = vmatprep.subr.bf16.mxu1 %v7683_v27  ;;  %v3410_v3 = vshrl.u32 %v3046_v16, 16  ;;  %v3413_v43 = vshll.u32 %v3046_v16, 16  ;;  %v3423_v34 = vshrl.u32 %v9221_v20, 16  ;;  %v3384_v22 = vsel %vm7956_vm11, %v9121_v6, %v9096_v45  ;;  %v7674_v16 = vld [vmem:[#allocation2 + $0x78] sm:$0xff]   ;;  %v7686_v11 = vld [vmem:[#allocation2 + $0xc0] sm:$0xff]  }
 0x10f   : > { %v3398_v7 = vsel %vm7956_vm11, %v9123_v57, %v9065_v15  ;;  %v3408_v28 = vsel %vm7956_vm11, %v9135_v40, %v9131_v53  ;;  %v9249_v6 = vrot.slane %v3419_v61, 5  ;;  %v9255_v57 = vld [vmem:[%s10599_s3 + $0x1f8] sm:$0xff]   ;;  %v6560_v40 = vrot.slane %v3761_v13, 9  ;;  %v5395_v17 = vld [vmem:[#allocation2 + $0x24] sm:$0xe] }
 0x110   : > { %7301 = vmatmul.mubr.bf16.gmra.mxu1 %v7670_v26  ;;  %v9243_v44 = vld [vmem:[#allocation2 + $0xc8] sm:$0x1]  ;;  %v9247_v26 = vsel %vm8349_vm14, %v3858_v41, %v3859_v2  ;;  %v3412_v18 = vrot.slane %v3410_v3, 4  ;;  %v3415_v45 = vrot.slane %v3413_v43, 5  ;;  %v3425_v48 = vrot.slane %v3423_v34, 4 }
 0x111   : > { %7304 = vmatprep.mubr.bf16.mxu1 %v7673_v37  ;;  %7381 = vmatpush3.bf16.msra.mxu1 %v7683_v27  ;;  %v3429_v15 = vshll.u32 %v9243_v44, 16  ;;  %v3865_v37 = vrot.slane %v3863_v63, 4  ;;  %v3866_v2 = vrot.slane %v8795_v55, 5  ;;  %v3762_v41 = vld [vmem:[#allocation2 + $0x60] sm:$0xe]  ;;  %v3870_v31 = vrot.slane %v8805_v51, 5 }
 0x112   : > { %7382 = vmatprep.subr.bf16.mxu1 %v7687_v60  ;;  %v3416_v27 = vor.u32 %v3415_v45, %v3412_v18  ;;  %v3426_v5 = vor.u32 %v3425_v48, %v9249_v6  ;;  %v9264_v3 = vrot.slane %v3821_v8, 4  ;;  %v9268_v43 = vsel %vm8349_vm14, %v6560_v40, %v3863_v63  ;;  %v7677_v18 = vld [vmem:[#allocation2 + $0x84] sm:$0xff]  }
 0x113   : > { %v6561_v61 = vrot.slane %v3762_v41, 9  ;;  %v3873_v34 = vrot.slane %v8839_v42, 5  ;;  %v3431_v55 = vrot.slane %v3429_v15, 5  ;;  %v9273_v51 = vsel %vm8349_vm14, %v3865_v37, %v3866_v2  ;;  %v9453_v37 = vld [vmem:[#allocation2 + $0x34] sm:$0xf] }
 0x114   : > { %7357 = vmatmul.mubr.bf16.gmra.mxu0 %v6541_v24  ;;  %v3417_v45 = vrot.slane %v3416_v27, 4  ;;  %v3872_v24 = vrot.slane %v3870_v31, 4  ;;  %v6543_v42 = vcombine.low %v3374_v54, %v3384_v22  ;;  %v3427_v13 = vrot.slane %v3426_v5, 4  ;;  %v10692_v5 = vld [vmem:[#allocation14_spill] sm:$0xff] }
 0x115   : > { %7360 = vmatprep.mubr.bf16.mxu0 %v6542_v52  ;;  %7383 = vmatpush3.bf16.msra.mxu1 %v7687_v60  ;;  %v9280_v63 = vsel %vm8349_vm14, %v6561_v61, %v3870_v31  ;;  %v3763_v60 = vld [vmem:[#allocation2 + $0x6c] sm:$0xe]  ;;  %v3877_v15 = vrot.slane %v8825_v4, 5  ;;  %v6544_v40 = vcombine.low %v3398_v7, %v3408_v28  ;;  %v3880_v2 = vrot.slane %v8862_v49, 5  ;;  %v3764_v31 = vld [vmem:[#allocation2 + $0x78] sm:$0xe] }
 0x116   : > { %7464 = vmatprep.subr.bf16.mxu1 %v9255_v57  ;;  %v9284_v52 = vsel %vm8349_vm14, %v3872_v24, %v3873_v34  ;;  %v6562_v27 = vrot.slane %v3763_v60, 9  ;;  %v3884_v54 = vrot.slane %v8882_v9, 5  ;;  %v3887_v22 = vrot.slane %v8900_v56, 5  ;;  %v7678_v34 = vld [vmem:[#allocation2 + $0x90] sm:$0xff]   ;;  %v10693_v28 = vld [vmem:[#allocation16_spill] sm:$0xff] }
 0x117   : > { %v3879_v41 = vrot.slane %v3877_v15, 4  ;;  %v3891_v61 = vrot.slane %v10692_v5, 5  ;;  %v6563_v7 = vrot.slane %v3764_v31, 9  ;;  %v7681_v24 = vld [vmem:[#allocation2 + $0x9c] sm:$0xff]   ;;  %v3422_v9 = vsel %vm7956_vm11, %v3417_v45, %v9249_v6  ;;  %v3765_v31 = vld [vmem:[#allocation2 + $0x84] sm:$0xe] }
 0x118   : > { %7305 = vmatmul.mubr.bf16.gmra.mxu1 %v7674_v16  ;;  %v9295_v4 = vsel %vm8349_vm14, %v6562_v27, %v3877_v15  ;;  %v3894_v16 = vrot.slane %v10693_v28, 5  ;;  %v3432_v56 = vsel %vm7956_vm11, %v3427_v13, %v3431_v55  ;;  %v10694_v45 = vld [vmem:[#allocation15_spill] sm:$0xff]  ;;  %v10695_v5 = vld [vmem:[#allocation17_spill] sm:$0xff]  ;;  %v4746_v35 = vshll.u32 %v9453_v37, 16 }
 0x119   : > { %7308 = vmatprep.mubr.bf16.mxu1 %v7677_v18  ;;  %v9300_v49 = vsel %vm8349_vm14, %v3879_v41, %v3880_v2  ;;  %v3886_v18 = vrot.slane %v3884_v54, 4  ;;  %v3893_v60 = vrot.slane %v3891_v61, 4  ;;  %v9311_v27 = vsel %vm8349_vm14, %v6563_v7, %v3884_v54  ;;  %v3766_v41 = vld [vmem:[#allocation2 + $0x90] sm:$0xe]  ;;  %v10696_v7 = vld [vmem:[#allocation7_spill] sm:$0xff] }
 0x11a   : > { %v3898_v55 = vrot.slane %v10694_v45, 5  ;;  %v3901_v54 = vrot.slane %v10695_v5, 5  ;;  %v3905_v28 = vrot.slane %v10696_v7, 5  ;;  %v3767_v7 = vld [vmem:[#allocation2 + $0x9c] sm:$0xe]  ;;  %v10702_v21 = vcombine.low %v9179_v47, %v9197_v38 }
 0x11b   : > { %v9315_v2 = vsel %vm8349_vm14, %v3886_v18, %v3887_v22  ;;  %v9319_v6 = vsel %vm8349_vm14, %v3893_v60, %v3894_v16  ;;  %v6565_v18 = vrot.slane %v3766_v41, 9  ;;  %v6545_v16 = vcombine.low %v3422_v9, %v3432_v56  ;;  %v3768_v56 = vld [vmem:[#allocation2 + $0xa8] sm:$0xe]  ;;  %v10697_v41 = vld [vmem:[#allocation18_spill] sm:$0xff]  ;;  %v7707_v38 = vld [vmem:[%s10599_s3 + $0x1d8] sm:$0xff]  }
 0x11c   : > { %7361 = vmatmul.mubr.bf16.gmra.mxu0 %v6543_v42  ;;  %v6564_v42 = vrot.slane %v3765_v31, 9  ;;  %v3900_v31 = vrot.slane %v3898_v55, 4  ;;  %v3907_v13 = vrot.slane %v3905_v28, 4  ;;  %v6566_v9 = vrot.slane %v3767_v7, 9  ;;  %v7685_v60 = vld [vmem:[#allocation2 + $0xb4] sm:$0xff]  }
 0x11d   : > { %7364 = vmatprep.mubr.bf16.mxu0 %v6544_v40  ;;  %v7689_v40 = vld [vmem:[#allocation2 + $0x18] sm:$0xff]   ;;  %v9334_v45 = vsel %vm8349_vm14, %v6565_v18, %v3898_v55  ;;  %v6567_v18 = vrot.slane %v3768_v56, 9  ;;  %v7693_v56 = vld [vmem:[#allocation2 + $0x30] sm:$0xff]   ;;  %v3926_v7 = vrot.slane %v9221_v20, 5  ;;  %v9488_v47 = vrot.slane %v4746_v35, 5 }
 0x11e   : > { %v9328_v22 = vsel %vm8349_vm14, %v6564_v42, %v3891_v61  ;;  %v9338_v5 = vsel %vm8349_vm14, %v3900_v31, %v3901_v54  ;;  %v3908_v61 = vrot.slane %v8993_v19, 5  ;;  %v7682_v42 = vld [vmem:[#allocation2 + $0xa8] sm:$0xff]   ;;  %v3915_v54 = vrot.slane %v9008_v46, 5  ;;  %v4649_v35 = vld [vmem:[#allocation2 + $0x3c] sm:$0xf] }
 0x11f   : > { %v9351_v19 = vsel %vm8349_vm14, %v6566_v9, %v3905_v28  ;;  %v3922_v9 = vrot.slane %v9061_v59, 5 }
 0x120   : > { %7309 = vmatmul.mubr.bf16.gmra.mxu1 %v7678_v34  ;;  %v9346_v55 = vsel %vm8349_vm14, %v3907_v13, %v3908_v61  ;;  %v3919_v34 = vrot.slane %v9011_v32, 5  ;;  %v3769_v13 = vld [vmem:[#allocation2 + $0xb4] sm:$0xe]  ;;  %v7690_v61 = vld [vmem:[#allocation2 + $0x24] sm:$0xff]   ;;  %v467_v32 = vld [vmem:[#allocation2 + $0xcc] sm:$0x1] }
 0x121   : > { %7312 = vmatprep.mubr.bf16.mxu1 %v7681_v24  ;;  %v3912_v24 = vrot.slane %v10697_v41, 5 }
 0x122   : > { %v3921_v28 = vrot.slane %v3919_v34, 4 }
 0x123   : > { %v3914_v31 = vrot.slane %v3912_v24, 4  ;;  %v9358_v41 = vsel %vm8349_vm14, %v6567_v18, %v3912_v24  ;;  %v3929_v24 = vrot.slane %v9243_v44, 5  ;;  %v7748_v18 = vld [vmem:[#allocation2 + $0x1c] sm:$0xf]  ;;  %v3928_v44 = vrot.slane %v3926_v7, 4 }
 0x124   : > { %7365 = vmatmul.mubr.bf16.gmra.mxu0 %v6545_v16  ;;  %v6568_v16 = vrot.slane %v3769_v13, 9  ;;  %v3828_v15 = vrot.slane %v7748_v18, 5  ;;  %v9378_v59 = vsel %vm8349_vm14, %v3921_v28, %v3922_v9 }
 0x125   : > { %7432 = vmatprep.mubr.bf16.mxu0 %v7689_v40  ;;  %v9362_v46 = vsel %vm8349_vm14, %v3914_v31, %v3915_v54  ;;  %v3770_v40 = vld [vmem:[#allocation2 + $0xc0] sm:$0xe]  ;;  %v7696_v54 = vld [vmem:[%s10599_s3 + $0x230] sm:$0xff]   ;;  %v9401_v23 = vsel %vm8349_vm14, %v3928_v44, %v3929_v24 }
 0x126   : > { %v9374_v31 = vsel %vm8349_vm14, %v6568_v16, %v3919_v34  ;;  %v6569_v13 = vrot.slane %v3770_v40, 9  ;;  %v3822_v34 = vsel %vm8349_vm14, %v6554_v50, %v3821_v8  ;;  %v3756_v16 = vld [vmem:[#allocation2 + $0x18] sm:$0xe]  ;;  %10698 = vst [vmem:[#allocation9_spill] sm:$0xff] %v9401_v23  ;;  %v3830_v9 = vrot.slane %v3828_v15, 4  ;;  %v7704_v44 = vld [vmem:[%s10599_s3 + $0x220] sm:$0xff]  }
 0x127   : > { %v6555_v1 = vrot.slane %v3756_v16, 9  ;;  %v9409_v40 = vld [vmem:[#allocation2 + $0x1c] sm:$0xf] }
 0x128   : > { %7313 = vmatmul.mubr.bf16.gmra.mxu1 %v7682_v42  ;;  %v468_v42 = vsel %vm7840_vm3, 0, %v467_v32  ;;  %v9397_v28 = vsel %vm8349_vm14, %v6569_v13, %v3926_v7  ;;  %v7749_v32 = vld [vmem:[#allocation2 + $0x20] sm:$0x1]  ;;  %v4640_v7 = vld [vmem:[#allocation2 + $0x18] sm:$0xf] }
 0x129   : > { %7316 = vmatprep.mubr.bf16.mxu1 %v7685_v60  ;;  %v3825_v60 = vsel %vm8349_vm14, %v9264_v3, %v3824_v25  ;;  %469 = vst [vmem:[#allocation2 + $0xcc] sm:$0x1] %v468_v42  ;;  %v3831_v25 = vrot.slane %v7749_v32, 5  ;;  %v7700_v3 = vld [vmem:[%s10599_s3 + $0x228] sm:$0xff]   ;;  %v3829_v24 = vsel %vm8349_vm14, %v6555_v1, %v3828_v15  ;;  %v4689_v13 = vshrl.u32 %v4640_v7, 16  ;;  %v7695_v1 = vld [vmem:[%s10599_s3 + $0x1f0] sm:$0xff]  }
 0x12a   : > { %v6586_v8 = vcombine.low %v3822_v34, %v3825_v60  ;;  %v4692_v34 = vshll.u32 %v4640_v7, 16  ;;  %v4698_v60 = vshll.u32 %v9409_v40, 16  ;;  %v4702_v15 = vshrl.u32 %v9409_v40, 16 }
 0x12b   : > { %v3832_v18 = vsel %vm8349_vm14, %v3830_v9, %v3831_v25  ;;  %v4691_v9 = vrot.slane %v4689_v13, 4 }
 0x12c   : > { %7433 = vmatmul.mubr.bf16.vlgmr.msra.gmra.mxu0 %v7690_v61  ;;  %v7694_v61 = vld [vmem:[#allocation2 + $0x3c] sm:$0xff]   ;;  %v6587_v16 = vcombine.low %v3829_v24, %v3832_v18  ;;  %v4694_v32 = vrot.slane %v4692_v34, 5  ;;  %v9431_v25 = vrot.slane %v4698_v60, 5  ;;  %v4704_v7 = vrot.slane %v4702_v15, 4  ;;  %v5394_v15 = vld [vmem:[#allocation2 + $0x18] sm:$0xe] }
 0x12d   : > { %7513 = vmatpush3.bf16.msra.mxu0 %v9145_v29  ;;  %7436 = vmatprep.mubr.bf16.mxu0 %v7693_v56  ;;  %v7697_v29 = vld [vmem:[#allocation2 + $0x48] sm:$0xff]   ;;  %v7701_v34 = vld [vmem:[#allocation2 + $0x60] sm:$0xff]   ;;  %v4708_v60 = vshll.u32 %v9429_v10, 16  ;;  %v6690_v14 = vrot.slane %v5394_v15, 9 }
 0x12e   : > { %7514 = vmatprep.subr.bf16.mxu0 %v7696_v54  ;;  %v4695_v50 = vor.u32 %v4694_v32, %v4691_v9  ;;  %v4705_v20 = vor.u32 %v4704_v7, %v9431_v25 }
 0x130   : > { %7317 = vmatmul.mubr.bf16.gmra.mxu1 %v7686_v11  ;;  %v1043_v56 = vld [vmem:[#allocation2 + $0xcc] sm:$0xf]  ;;  %v4643_v11 = vld [vmem:[#allocation2 + $0x24] sm:$0xf] }
 0x131   : > { %7384 = vmatprep.mubr.bf16.mxu1 %v6586_v8  ;;  %7515 = vmatpush3.bf16.msra.mxu0 %v7696_v54  ;;  %v1044_v42 = vsel %vm7882_vm7, 0, %v1043_v56  ;;  %v9422_v54 = vpop.f32.mrf.mxu0  ;;  %v9424_v8 = vld [vmem:[#allocation2 + $0x28] sm:$0xf]  ;;  %v4713_v24 = vshrl.u32 %v4643_v11, 16  ;;  %v4716_v18 = vshll.u32 %v4643_v11, 16 }
 0x132   : > { %7516 = vmatprep.subr.bf16.mxu0 %v7700_v3  ;;  %1045 = vst [vmem:[#allocation2 + $0xcc] sm:$0xf] %v1044_v42  ;;  %10699 = vst [vmem:[#allocation6_spill] sm:$0xff] %v9422_v54  ;;  %v4722_v56 = vshll.u32 %v9424_v8, 16  ;;  %v4726_v42 = vshrl.u32 %v9424_v8, 16  ;;  %v5467_v9 = vrot.slane %v9424_v8, 5 }
 0x133   : > { %v9441_v13 = vpop.f32.mrf.mxu0  ;;  %v4646_v11 = vld [vmem:[#allocation2 + $0x30] sm:$0xf]  ;;  %v4715_v33 = vrot.slane %v4713_v24, 4  ;;  %v4750_v24 = vshrl.u32 %v9453_v37, 16  ;;  %v5463_v8 = vrot.slane %v9429_v10, 5 }
 0x134   : > { %7437 = vmatmul.mubr.bf16.gmra.mxu0 %v7694_v61  ;;  %v7708_v61 = vld [vmem:[%s10599_s3 + $0x218] sm:$0xff]   ;;  %10700 = vst [vmem:[#allocation5_spill] sm:$0xff] %v9441_v13  ;;  %v9457_v48 = vrot.slane %v4722_v56, 5  ;;  %v4728_v53 = vrot.slane %v4726_v42, 4  ;;  %v4737_v32 = vshrl.u32 %v4646_v11, 16  ;;  %v4740_v7 = vshll.u32 %v4646_v11, 16 }
 0x135   : > { %7440 = vmatprep.mubr.bf16.mxu0 %v7697_v29  ;;  %7517 = vmatpush3.bf16.msra.mxu0 %v7700_v3  ;;  %v7698_v3 = vld [vmem:[#allocation2 + $0x54] sm:$0xff]   ;;  %v7699_v29 = vld [vmem:[%s10599_s3 + $0x1e8] sm:$0xff]   ;;  %v4696_v56 = vrot.slane %v4695_v50, 4  ;;  %v6691_v11 = vrot.slane %v5395_v17, 9  ;;  %v5470_v13 = vrot.slane %v9455_v58, 5 }
 0x136   : > { %7518 = vmatprep.subr.bf16.mxu0 %v7704_v44  ;;  %v4729_v15 = vor.u32 %v4728_v53, %v9457_v48  ;;  %v7702_v50 = vld [vmem:[#allocation2 + $0x6c] sm:$0xff]   ;;  %v4739_v54 = vrot.slane %v4737_v32, 4  ;;  %v4742_v23 = vrot.slane %v4740_v7, 5  ;;  %v7705_v17 = vld [vmem:[#allocation2 + $0x78] sm:$0xff]   ;;  %v9510_v32 = vld [vmem:[#allocation2 + $0x40] sm:$0xf] }
 0x137   : > { %v9486_v53 = vld [vmem:[#allocation2 + $0x38] sm:$0x1]  ;;  %v9518_v7 = vsel %vm8349_vm14, %v6691_v11, %v5467_v9 }
 0x138   : > { %7385 = vmatmul.mubr.bf16.vlgmr.msra.gmra.mxu1 %v6587_v16  ;;  %v7712_v16 = vld [vmem:[%s10599_s3 + $0x210] sm:$0xff]  }
 0x139   : > { %7465 = vmatpush3.bf16.msra.mxu1 %v9255_v57  ;;  %7388 = vmatprep.mubr.bf16.mxu1 %v6588_v39  ;;  %v5460_v57 = vrot.slane %v9409_v40, 5  ;;  %v4718_v39 = vrot.slane %v4716_v18, 5  ;;  %v9462_v40 = vrot.slane %v4708_v60, 5  ;;  %v7703_v18 = vld [vmem:[%s10599_s3 + $0x1e0] sm:$0xff]  }
 0x13a   : > { %7466 = vmatprep.subr.bf16.mxu1 %v7695_v1  ;;  %7519 = vmatpush3.bf16.msra.mxu0 %v7704_v44  ;;  %v9459_v44 = vpop.f32.mrf.mxu0 }
 0x13b   : > { %7520 = vmatprep.subr.bf16.mxu0 %v7708_v61  ;;  %10701 = vst [vmem:[#allocation10_spill] sm:$0xff] %v9459_v44  ;;  %v5462_v42 = vrot.slane %v5460_v57, 4  ;;  %v4719_v60 = vor.u32 %v4718_v39, %v4715_v33  ;;  %v5469_v44 = vrot.slane %v5467_v9, 4  ;;  %v7711_v9 = vld [vmem:[%s10599_s3 + $0x1d0] sm:$0xff]  }
 0x13c   : > { %7441 = vmatmul.mubr.bf16.gmra.mxu0 %v7698_v3  ;;  %v7716_v3 = vld [vmem:[%s10599_s3 + $0x208] sm:$0xff]   ;;  %v9480_v10 = vpop.f32.mrf.mxu0 }
 0x13d   : > { %7467 = vmatpush3.bf16.msra.mxu1 %v7695_v1  ;;  %7444 = vmatprep.mubr.bf16.mxu0 %v7701_v34  ;;  %v4732_v1 = vshll.u32 %v9455_v58, 16  ;;  %v4706_v34 = vrot.slane %v4705_v20, 4  ;;  %10704 = vst [vmem:[#allocation8_spill] sm:$0xff] %v9480_v10  ;;  %v10705_v20 = vcombine.low %v9208_v62, %v9214_v0  ;;  %v4701_v58 = vsel %vm7956_vm11, %v4696_v56, %v9431_v25 }
 0x13e   : > { %7468 = vmatprep.subr.bf16.mxu1 %v7699_v29  ;;  %7521 = vmatpush3.bf16.msra.mxu0 %v7708_v61  ;;  %v9478_v61 = vpop.f32.mrf.mxu1  ;;  %v9498_v62 = vsel %vm8349_vm14, %v6690_v14, %v5460_v57  ;;  %v9502_v0 = vsel %vm8349_vm14, %v5462_v42, %v5463_v8  ;;  %v4720_v33 = vrot.slane %v4719_v60, 4  ;;  %v4730_v25 = vrot.slane %v4729_v15, 4  ;;  %v9514_v57 = vpop.f32.mrf.mxu0  ;;  %v5396_v42 = vld [vmem:[#allocation2 + $0x30] sm:$0xe]  ;;  %v7706_v15 = vld [vmem:[#allocation2 + $0x84] sm:$0xff]  }
 0x13f   : > { %7522 = vmatprep.subr.bf16.mxu0 %v7712_v16  ;;  %10703 = vst [vmem:[#allocation11_spill] sm:$0xff] %v9478_v61  ;;  %v4734_v39 = vrot.slane %v4732_v1, 5  ;;  %10707 = vst [vmem:[#allocation12_spill] sm:$0xff] %v9514_v57  ;;  %v4743_v56 = vor.u32 %v4742_v23, %v4739_v54  ;;  %v5474_v1 = vrot.slane %v9453_v37, 5  ;;  %v4764_v60 = vshll.u32 %v4649_v35, 16  ;;  %v7717_v57 = vld [vmem:[#allocation2 + $0xc0] sm:$0xff]  }
 0x140   : > { %7389 = vmatmul.mubr.bf16.gmra.mxu1 %v10702_v21  ;;  %v4752_v21 = vrot.slane %v4750_v24, 4  ;;  %v9512_v14 = vpop.f32.mrf.mxu1  ;;  %v9522_v24 = vsel %vm8349_vm14, %v5469_v44, %v5470_v13  ;;  %v4770_v54 = vshll.u32 %v9510_v32, 16  ;;  %v4774_v13 = vshrl.u32 %v9510_v32, 16  ;;  %v7709_v44 = vld [vmem:[#allocation2 + $0x90] sm:$0xff]  }
 0x141   : > { %7392 = vmatprep.mubr.bf16.mxu1 %v10705_v20  ;;  %7469 = vmatpush3.bf16.msra.mxu1 %v7699_v29  ;;  %v7720_v29 = vld [vmem:[%s10599_s3 + $0x200] sm:$0xff]   ;;  %10706 = vst [vmem:[#allocation13_spill] sm:$0xff] %v9512_v14  ;;  %v4725_v37 = vsel %vm7956_vm11, %v4720_v33, %v9457_v48  ;;  %v4735_v11 = vsel %vm7956_vm11, %v4730_v25, %v4734_v39  ;;  %v9541_v20 = vld [vmem:[#allocation2 + $0x4c] sm:$0xf]  ;;  %v5477_v25 = vrot.slane %v9486_v53, 5  ;;  %v4766_v23 = vrot.slane %v4764_v60, 5 }
 0x142   : > { %7470 = vmatprep.subr.bf16.mxu1 %v7703_v18  ;;  %7523 = vmatpush3.bf16.msra.mxu0 %v7712_v16  ;;  %v4711_v16 = vsel %vm7956_vm11, %v4706_v34, %v9462_v40  ;;  %v4756_v40 = vshll.u32 %v9486_v53, 16  ;;  %v4753_v8 = vor.u32 %v4752_v21, %v9488_v47  ;;  %v4761_v34 = vshrl.u32 %v4649_v35, 16  ;;  %v9546_v21 = vpop.f32.mrf.mxu1  ;;  %v9548_v35 = vpop.f32.mrf.mxu0  ;;  %v4655_v39 = vld [vmem:[#allocation2 + $0x54] sm:$0xf]  ;;  %v9561_v14 = vld [vmem:[#allocation2 + $0x44] sm:$0x1] }
 0x143   : > { %7524 = vmatprep.subr.bf16.mxu0 %v7716_v3  ;;  %10709 = vst [vmem:[#allocation14_spill] sm:$0xff] %v9546_v21  ;;  %10710 = vst [vmem:[#allocation16_spill] sm:$0xff] %v9548_v35  ;;  %v9559_v21 = vld [vmem:[#allocation2 + $0x58] sm:$0xf]  ;;  %v9565_v61 = vcombine.low %v4725_v37, %v4735_v11  ;;  %v4809_v60 = vshrl.u32 %v4655_v39, 16 }
 0x144   : > { %7445 = vmatmul.mubr.bf16.gmra.mxu0 %v7702_v50  ;;  %v6692_v50 = vrot.slane %v5396_v42, 9  ;;  %v4758_v33 = vrot.slane %v4756_v40, 5  ;;  %v5476_v42 = vrot.slane %v5474_v1, 4  ;;  %v4776_v40 = vrot.slane %v4774_v13, 4 }
 0x145   : > { %7471 = vmatpush3.bf16.msra.mxu1 %v7703_v18  ;;  %7448 = vmatprep.mubr.bf16.mxu0 %v7705_v17  ;;  %v9534_v18 = vcombine.low %v4701_v58, %v4711_v16  ;;  %v10708_v17 = vcombine.low %v9227_v12, %v9247_v26  ;;  %v7715_v58 = vld [vmem:[%s10599_s3 + $0x1c8] sm:$0xff]   ;;  %v4744_v16 = vrot.slane %v4743_v56, 4  ;;  %v10711_v12 = vcombine.low %v9268_v43, %v9273_v51 }
 0x146   : > { %7472 = vmatprep.subr.bf16.mxu1 %v7707_v38  ;;  %7525 = vmatpush3.bf16.msra.mxu0 %v7716_v3  ;;  %v4652_v3 = vld [vmem:[#allocation2 + $0x48] sm:$0xf]  ;;  %v4754_v26 = vrot.slane %v4753_v8, 4  ;;  %v9563_v56 = vrot.slane %v4770_v54, 5  ;;  %v9569_v43 = vsel %vm8349_vm14, %v6692_v50, %v5474_v1  ;;  %v4794_v51 = vshll.u32 %v9541_v20, 16  ;;  %v9573_v8 = vpop.f32.mrf.mxu1 }
 0x147   : > { %7526 = vmatprep.subr.bf16.mxu0 %v7720_v29  ;;  %v4785_v53 = vshrl.u32 %v4652_v3, 16  ;;  %v4788_v48 = vshll.u32 %v4652_v3, 16  ;;  %10712 = vst [vmem:[#allocation15_spill] sm:$0xff] %v9573_v8  ;;  %v4812_v54 = vshll.u32 %v4655_v39, 16  ;;  %v4818_v13 = vshll.u32 %v9559_v21, 16  ;;  %v7710_v3 = vld [vmem:[#allocation2 + $0x9c] sm:$0xff]  }
 0x148   : > { %7393 = vmatmul.mubr.bf16.gmra.mxu1 %v10708_v17  ;;  %v4763_v17 = vrot.slane %v4761_v34, 4  ;;  %v5397_v34 = vld [vmem:[#allocation2 + $0x3c] sm:$0xe]  ;;  %v4822_v37 = vshrl.u32 %v9559_v21, 16  ;;  %v4749_v1 = vsel %vm7956_vm11, %v4744_v16, %v9488_v47  ;;  %v9586_v11 = vsel %vm8349_vm14, %v5476_v42, %v5477_v25 }
 0x149   : > { %7396 = vmatprep.mubr.bf16.mxu1 %v10711_v12  ;;  %7473 = vmatpush3.bf16.msra.mxu1 %v7707_v38  ;;  %v4798_v38 = vshrl.u32 %v9541_v20, 16  ;;  %v4780_v50 = vshll.u32 %v9561_v14, 16  ;;  %v4777_v39 = vor.u32 %v4776_v40, %v9563_v56  ;;  %v4787_v12 = vrot.slane %v4785_v53, 4 }
 0x14a   : > { %7474 = vmatprep.subr.bf16.mxu1 %v7711_v9  ;;  %7527 = vmatpush3.bf16.msra.mxu0 %v7720_v29  ;;  %v9575_v29 = vpop.f32.mrf.mxu0  ;;  %v4790_v47 = vrot.slane %v4788_v48, 5  ;;  %v6693_v16 = vrot.slane %v5397_v34, 9  ;;  %v9596_v25 = vrot.slane %v4794_v51, 5  ;;  %v10714_v8 = vcombine.low %v9280_v63, %v9284_v52  ;;  %v7713_v51 = vld [vmem:[#allocation2 + $0xa8] sm:$0xff]   ;;  %v4658_v34 = vld [vmem:[#allocation2 + $0x60] sm:$0xf] }
 0x14b   : > { %10713 = vst [vmem:[#allocation17_spill] sm:$0xff] %v9575_v29  ;;  %v4800_v42 = vrot.slane %v4798_v38, 4  ;;  %v9601_v29 = vpop.f32.mrf.mxu1  ;;  %v4814_v48 = vrot.slane %v4812_v54, 5  ;;  %v9607_v40 = vrot.slane %v4818_v13, 5  ;;  %v10717_v53 = vcombine.low %v9295_v4, %v9300_v49  ;;  %v9624_v49 = vld [vmem:[#allocation2 + $0x64] sm:$0xf] }
 0x14c   : > { %7449 = vmatmul.mubr.bf16.gmra.mxu0 %v7706_v15  ;;  %v4759_v15 = vsel %vm7956_vm11, %v4754_v26, %v4758_v33  ;;  %v5481_v33 = vrot.slane %v9510_v32, 5  ;;  %v9594_v26 = vld [vmem:[#allocation2 + $0x50] sm:$0x1]  ;;  %10715 = vst [vmem:[#allocation7_spill] sm:$0xff] %v9601_v29  ;;  %v9603_v35 = vpop.f32.mrf.mxu0  ;;  %v4824_v32 = vrot.slane %v4822_v37, 4  ;;  %v9616_v52 = vrot.slane %v4780_v50, 5 }
 0x14d   : > { %7452 = vmatprep.mubr.bf16.mxu0 %v7709_v44  ;;  %7475 = vmatpush3.bf16.msra.mxu1 %v7711_v9  ;;  %v7719_v44 = vld [vmem:[%s10599_s3 + $0x1c0] sm:$0xff]   ;;  %v4767_v9 = vor.u32 %v4766_v23, %v4763_v17  ;;  %10716 = vst [vmem:[#allocation18_spill] sm:$0xff] %v9603_v35  ;;  %v9605_v23 = vld [vmem:[#allocation2 + $0x5c] sm:$0x1]  ;;  %v4811_v17 = vrot.slane %v4809_v60, 4  ;;  %v9612_v38 = vcombine.low %v4749_v1, %v4759_v15  ;;  %v9621_v54 = vrot.slane %v4777_v39, 4  ;;  %v9633_v50 = vpop.f32.mrf.mxu1 }
 0x14e   : > { %7476 = vmatprep.subr.bf16.mxu1 %v7715_v58  ;;  %v4791_v13 = vor.u32 %v4790_v47, %v4787_v12  ;;  %v4804_v4 = vshll.u32 %v9594_v26, 16  ;;  %v4801_v37 = vor.u32 %v4800_v42, %v9596_v25  ;;  %v5398_v1 = vld [vmem:[#allocation2 + $0x48] sm:$0xe]  ;;  %v4828_v15 = vshll.u32 %v9605_v23, 16  ;;  %10718 = vst [vmem:[#allocation19_spill] sm:$0xff] %v9633_v50 }
 0x14f   : > { %v9619_v60 = vrot.slane %v4767_v9, 4  ;;  %v9635_v9 = vpop.f32.mrf.mxu0  ;;  %v5483_v39 = vrot.slane %v5481_v33, 4  ;;  %v4815_v12 = vor.u32 %v4814_v48, %v4811_v17  ;;  %v4825_v47 = vor.u32 %v4824_v32, %v9607_v40 }
 0x150   : > { %7397 = vmatmul.mubr.bf16.gmra.mxu1 %v10714_v8  ;;  %v5484_v8 = vrot.slane %v9561_v14, 5  ;;  %v5488_v14 = vrot.slane %v9541_v20, 5  ;;  %10719 = vst [vmem:[#allocation20_spill] sm:$0xff] %v9635_v9  ;;  %v4833_v42 = vshrl.u32 %v4658_v34, 16  ;;  %v4836_v63 = vshll.u32 %v4658_v34, 16 }
 0x151   : > { %7400 = vmatprep.mubr.bf16.mxu1 %v10717_v53  ;;  %7477 = vmatpush3.bf16.msra.mxu1 %v7715_v58  ;;  %v9628_v58 = vsel %vm8349_vm14, %v6693_v16, %v5481_v33  ;;  %v5399_v53 = vld [vmem:[#allocation2 + $0x54] sm:$0xe]  ;;  %v5495_v16 = vrot.slane %v9559_v21, 5  ;;  %v4842_v20 = vshll.u32 %v9624_v49, 16  ;;  %v4846_v29 = vshrl.u32 %v9624_v49, 16  ;;  %v9647_v34 = vpop.f32.mrf.mxu0 }
 0x152   : > { %7478 = vmatprep.subr.bf16.mxu1 %v7719_v44  ;;  %v4806_v35 = vrot.slane %v4804_v4, 5  ;;  %v6694_v50 = vrot.slane %v5398_v1, 9  ;;  %v5491_v9 = vrot.slane %v9594_v26, 5  ;;  %v4802_v33 = vrot.slane %v4801_v37, 4  ;;  %v9653_v37 = vld [vmem:[#allocation2 + $0x68] sm:$0x1] }
 0x153   : > { %v5490_v17 = vrot.slane %v5488_v14, 4  ;;  %v4830_v48 = vrot.slane %v4828_v15, 5  ;;  %v6695_v32 = vrot.slane %v5399_v53, 9  ;;  %v10720_v21 = vcombine.low %v9311_v27, %v9315_v2 }
 0x154   : > { %7453 = vmatmul.mubr.bf16.gmra.mxu0 %v7710_v3  ;;  %v4792_v3 = vrot.slane %v4791_v13, 4  ;;  %v4816_v10 = vrot.slane %v4815_v12, 4  ;;  %v4826_v13 = vrot.slane %v4825_v47, 4  ;;  %v5497_v4 = vrot.slane %v5495_v16, 4 }
 0x155   : > { %7456 = vmatprep.mubr.bf16.mxu0 %v7713_v51  ;;  %7479 = vmatpush3.bf16.msra.mxu1 %v7719_v44  ;;  %v9645_v44 = vpop.f32.mrf.mxu1  ;;  %v7714_v51 = vld [vmem:[#allocation2 + $0xb4] sm:$0xff]   ;;  %v5498_v1 = vrot.slane %v9605_v23, 5  ;;  %v10722_v26 = vcombine.low %v9328_v22, %v9319_v6  ;;  %v4835_v15 = vrot.slane %v4833_v42, 4  ;;  %v4838_v27 = vrot.slane %v4836_v63, 5  ;;  %v4661_v63 = vld [vmem:[#allocation2 + $0x6c] sm:$0xf] }
 0x156   : > { %10721 = vst [vmem:[#allocation21_spill] sm:$0xff] %v9645_v44  ;;  %v9655_v2 = vrot.slane %v4842_v20, 5  ;;  %v4848_v53 = vrot.slane %v4846_v29, 4  ;;  %v4773_v12 = vsel %vm7956_vm11, %v9619_v60, %v9563_v56  ;;  %v4783_v23 = vsel %vm7956_vm11, %v9621_v54, %v9616_v52  ;;  %v9688_v54 = vpop.f32.mrf.mxu0 }
 0x157   : > { %v9667_v6 = vsel %vm8349_vm14, %v5483_v39, %v5484_v8  ;;  %v9671_v22 = vsel %vm8349_vm14, %v6694_v50, %v5488_v14  ;;  %v4797_v29 = vsel %vm7956_vm11, %v4792_v3, %v9596_v25  ;;  %v4807_v56 = vsel %vm7956_vm11, %v4802_v33, %v4806_v35  ;;  %v9686_v8 = vpop.f32.mrf.mxu1  ;;  %v7718_v3 = vld [vmem:[#allocation2 + $0xcc] sm:$0xff]  }
 0x158   : > { %7401 = vmatmul.mubr.bf16.gmra.mxu1 %v10720_v21  ;;  %v9680_v60 = vsel %vm8349_vm14, %v5490_v17, %v5491_v9  ;;  %v9684_v52 = vsel %vm8349_vm14, %v6695_v32, %v5495_v16  ;;  %10723 = vst [vmem:[#allocation22_spill] sm:$0xff] %v9686_v8  ;;  %v4821_v25 = vsel %vm7956_vm11, %v4816_v10, %v9607_v40  ;;  %v4852_v50 = vshll.u32 %v9653_v37, 16  ;;  %v5400_v9 = vld [vmem:[#allocation2 + $0x60] sm:$0xe]  ;;  %v9701_v16 = vld [vmem:[#allocation2 + $0x70] sm:$0xf] }
 0x159   : > { %7404 = vmatprep.mubr.bf16.mxu1 %v10722_v26  ;;  %v4831_v35 = vsel %vm7956_vm11, %v4826_v13, %v4830_v48  ;;  %v9697_v14 = vsel %vm8349_vm14, %v5497_v4, %v5498_v1  ;;  %v4839_v39 = vor.u32 %v4838_v27, %v4835_v15  ;;  %v4849_v47 = vor.u32 %v4848_v53, %v9655_v2  ;;  %v9716_v13 = vld [vmem:[#allocation2 + $0x7c] sm:$0xf]  ;;  %v9721_v1 = vpop.f32.mrf.mxu1  ;;  %v9723_v26 = vpop.f32.mrf.mxu0  ;;  %v9758_v40 = vld [vmem:[#allocation2 + $0x80] sm:$0x1] }
 0x15a   : > { %v4857_v42 = vshrl.u32 %v4661_v63, 16  ;;  %v4860_v20 = vshll.u32 %v4661_v63, 16  ;;  %v9703_v10 = vcombine.low %v4773_v12, %v4783_v23  ;;  %v9707_v33 = vcombine.low %v4797_v29, %v4807_v56  ;;  %10725 = vst [vmem:[#allocation23_spill] sm:$0xff] %v9721_v1  ;;  %v4667_v23 = vld [vmem:[#allocation2 + $0x84] sm:$0xf] }
 0x15b   : > { %v9711_v48 = vcombine.low %v4821_v25, %v4831_v35  ;;  %v6696_v32 = vrot.slane %v5400_v9, 9  ;;  %v5502_v21 = vrot.slane %v9624_v49, 5  ;;  %v10724_v4 = vcombine.low %v9334_v45, %v9338_v5  ;;  %v9731_v56 = vld [vmem:[#allocation2 + $0x88] sm:$0xf] }
 0x15c   : > { %7457 = vmatmul.mubr.bf16.gmra.mxu0 %v7714_v51  ;;  %v4664_v51 = vld [vmem:[#allocation2 + $0x78] sm:$0xf]  ;;  %v4854_v15 = vrot.slane %v4852_v50, 5  ;;  %v5505_v27 = vrot.slane %v9653_v37, 5  ;;  %v4866_v53 = vshll.u32 %v9701_v16, 16  ;;  %v4870_v12 = vshrl.u32 %v9701_v16, 16 }
 0x15d   : > { %7460 = vmatprep.mubr.bf16.mxu0 %v7717_v57  ;;  %v10726_v49 = vcombine.low %v9351_v19, %v9346_v55  ;;  %v4840_v63 = vrot.slane %v4839_v39, 4  ;;  %v4850_v29 = vrot.slane %v4849_v47, 4  ;;  %v4859_v45 = vrot.slane %v4857_v42, 4  ;;  %v4663_v57 = vld [vmem:[#allocation2 + $0x74] sm:$0x1]  ;;  %v9739_v39 = vpop.f32.mrf.mxu1 }
 0x15e   : > { %v4862_v5 = vrot.slane %v4860_v20, 5  ;;  %v4881_v25 = vshrl.u32 %v4664_v51, 16  ;;  %v4884_v35 = vshll.u32 %v4664_v51, 16  ;;  %v4890_v50 = vshll.u32 %v9716_v13, 16  ;;  %10727 = vst [vmem:[#allocation24_spill] sm:$0xff] %v9739_v39 }
 0x15f   : > { %v4894_v37 = vshrl.u32 %v9716_v13, 16  ;;  %v9737_v9 = vsel %vm8349_vm14, %v6696_v32, %v5502_v21  ;;  %v4905_v55 = vshrl.u32 %v4667_v23, 16  ;;  %v4908_v19 = vshll.u32 %v4667_v23, 16  ;;  %v5401_v51 = vld [vmem:[#allocation2 + $0x6c] sm:$0xe] }
 0x160   : > { %7405 = vmatmul.mubr.bf16.gmra.mxu1 %v10724_v4  ;;  %v5504_v4 = vrot.slane %v5502_v21, 4  ;;  %v9743_v42 = vrot.slane %v4866_v53, 5  ;;  %v4872_v20 = vrot.slane %v4870_v12, 4  ;;  %v4918_v17 = vshrl.u32 %v9731_v56, 16 }
 0x161   : > { %7408 = vmatprep.mubr.bf16.mxu1 %v10726_v49  ;;  %v4914_v49 = vshll.u32 %v9731_v56, 16  ;;  %v10729_v32 = vcombine.low %v9498_v62, %v9502_v0  ;;  %v4845_v21 = vsel %vm7956_vm11, %v4840_v63, %v9655_v2  ;;  %v4855_v23 = vsel %vm7956_vm11, %v4850_v29, %v4854_v15  ;;  %v9765_v15 = vpop.f32.mrf.mxu1 }
 0x162   : > { %v5509_v53 = vrot.slane %v9701_v16, 5  ;;  %v4883_v39 = vrot.slane %v4881_v25, 4  ;;  %v4886_v1 = vrot.slane %v4884_v35, 5  ;;  %v9760_v8 = vrot.slane %v4890_v50, 5  ;;  %10731 = vst [vmem:[#allocation26_spill] sm:$0xff] %v9765_v15 }
 0x163   : > { %v4896_v62 = vrot.slane %v4894_v37, 4  ;;  %v4876_v0 = vshll.u32 %v4663_v57, 16  ;;  %v4907_v44 = vrot.slane %v4905_v55, 4  ;;  %v10730_v2 = vcombine.low %v9358_v41, %v9362_v46  ;;  %v9782_v37 = vld [vmem:[#allocation2 + $0x8c] sm:$0x1] }
 0x164   : > { %v9741_v47 = vpop.f32.mrf.mxu0  ;;  %7461 = vmatmul.mubr.bf16.gmra.mxu0 %v7718_v3  ;;  %v4863_v3 = vor.u32 %v4862_v5, %v4859_v45  ;;  %v9771_v63 = vsel %vm8349_vm14, %v5504_v4, %v5505_v27  ;;  %v4873_v29 = vor.u32 %v4872_v20, %v9743_v42  ;;  %v9774_v45 = vrot.slane %v4914_v49, 5  ;;  %v5403_v49 = vld [vmem:[#allocation2 + $0x84] sm:$0xe] }
 0x165   : > { %10728 = vst [vmem:[#allocation25_spill] sm:$0xff] %v9741_v47  ;;  %7528 = vmatprep.mubr.bf16.mxu0 %v10729_v32  ;;  %v6697_v32 = vrot.slane %v5401_v51, 9  ;;  %v4910_v47 = vrot.slane %v4908_v19, 5  ;;  %v4920_v5 = vrot.slane %v4918_v17, 4  ;;  %v10732_v25 = vcombine.low %v9374_v31, %v9378_v59  ;;  %v5402_v17 = vld [vmem:[#allocation2 + $0x78] sm:$0xe] }
 0x166   : > { %v9756_v12 = vpop.f32.mrf.mxu0  ;;  %v9779_v35 = vrot.slane %v4863_v3, 4  ;;  %v5511_v41 = vrot.slane %v5509_v53, 4  ;;  %v5512_v46 = vrot.slane %v4663_v57, 5  ;;  %v4900_v50 = vshll.u32 %v9758_v40, 16  ;;  %v9796_v3 = vpop.f32.mrf.mxu1 }
 0x167   : > { %v9786_v27 = vcombine.low %v4845_v21, %v4855_v23  ;;  %v4887_v4 = vor.u32 %v4886_v1, %v4883_v39  ;;  %v4897_v19 = vor.u32 %v4896_v62, %v9760_v8  ;;  %v5516_v20 = vrot.slane %v9716_v13, 5  ;;  %10733 = vst [vmem:[#allocation27_spill] sm:$0xff] %v9796_v3 }
 0x168   : > { %7409 = vmatmul.mubr.bf16.gmra.mxu1 %v10730_v2  ;;  %v9767_v16 = vpop.f32.mrf.mxu0  ;;  %v4878_v59 = vrot.slane %v4876_v0, 5  ;;  %v9794_v57 = vsel %vm8349_vm14, %v6697_v32, %v5509_v53  ;;  %v4911_v51 = vor.u32 %v4910_v47, %v4907_v44  ;;  %v10734_v1 = vcombine.low %v9518_v7, %v9522_v24  ;;  %v4670_v0 = vld [vmem:[#allocation2 + $0x90] sm:$0xf] }
 0x169   : > { %7412 = vmatprep.mubr.bf16.mxu1 %v10732_v25  ;;  %v4874_v39 = vrot.slane %v4873_v29, 4  ;;  %v4921_v13 = vor.u32 %v4920_v5, %v9774_v45  ;;  %v4924_v23 = vshll.u32 %v9782_v37, 16  ;;  %v5523_v62 = vrot.slane %v9731_v56, 5 }
 0x16a   : > { %v9784_v55 = vpop.f32.mrf.mxu0  ;;  %v10735_v44 = vcombine.low %v9569_v43, %v9586_v11  ;;  %v4869_v47 = vsel %vm7956_vm11, %v9779_v35, %v9743_v42  ;;  %v9815_v7 = vsel %vm8349_vm14, %v5511_v41, %v5512_v46  ;;  %v4902_v24 = vrot.slane %v4900_v50, 5  ;;  %v9820_v43 = vld [vmem:[#allocation2 + $0x94] sm:$0xf]  ;;  %v10737_v35 = vld [vmem:[#allocation9_spill] sm:$0xff] }
 0x16b   : > { %v6698_v53 = vrot.slane %v5402_v17, 9  ;;  %v4888_v2 = vrot.slane %v4887_v4, 4  ;;  %v4898_v56 = vrot.slane %v4897_v19, 4  ;;  %v5518_v29 = vrot.slane %v5516_v20, 4 }
 0x16c   : > { %v9798_v21 = vpop.f32.mrf.mxu0  ;;  %7529 = vmatmul.mubr.bf16.vlgmr.msra.gmra.mxu0 %v10734_v1  ;;  %v5519_v5 = vrot.slane %v9758_v40, 5  ;;  %v4912_v11 = vrot.slane %v4911_v51, 4  ;;  %v6699_v25 = vrot.slane %v5403_v49, 9  ;;  %v4929_v1 = vshrl.u32 %v4670_v0, 16 }
 0x16d   : > { %7532 = vmatprep.mubr.bf16.mxu0 %v10735_v44  ;;  %v4932_v44 = vshll.u32 %v4670_v0, 16  ;;  %v10738_v41 = vcombine.low %v9397_v28, %v10737_v35  ;;  %v4922_v50 = vrot.slane %v4921_v13, 4  ;;  %v4926_v4 = vrot.slane %v4924_v23, 5  ;;  %v4673_v0 = vld [vmem:[#allocation2 + $0x9c] sm:$0xf] }
 0x16e   : > { %v9817_v32 = vpop.f32.mrf.mxu0  ;;  %v5525_v19 = vrot.slane %v5523_v62, 4  ;;  %v5526_v17 = vrot.slane %v9782_v37, 5  ;;  %v4879_v40 = vsel %vm7956_vm11, %v4874_v39, %v4878_v59  ;;  %v9837_v49 = vsel %vm8349_vm14, %v6698_v53, %v5516_v20  ;;  %v9861_v35 = vld [vmem:[#allocation2 + $0x98] sm:$0x1] }
 0x16f   : > { %v4938_v28 = vshll.u32 %v9820_v43, 16  ;;  %v4903_v37 = vsel %vm7956_vm11, %v4898_v56, %v4902_v24  ;;  %v9851_v59 = vsel %vm8349_vm14, %v5518_v29, %v5519_v5  ;;  %v4942_v20 = vshrl.u32 %v9820_v43, 16 }
 0x170   : > { %v9822_v42 = vpop.f32.mrf.mxu1  ;;  %7413 = vmatmul.mubr.bf16.gmra.mxu1 %v10738_v41  ;;  %v9827_v46 = vpop.f32.mrf.mxu0  ;;  %v4917_v39 = vsel %vm7956_vm11, %v4912_v11, %v9774_v45  ;;  %v9859_v53 = vsel %vm8349_vm14, %v6699_v25, %v5523_v62  ;;  %v9863_v41 = vld [vmem:[#allocation2 + $0xa0] sm:$0xf]  ;;  %v10741_v29 = vcombine.low %v9628_v58, %v9667_v6  ;;  %v4927_v45 = vsel %vm7956_vm11, %v4922_v50, %v4926_v4  ;;  %v5404_v50 = vld [vmem:[#allocation2 + $0x90] sm:$0xe]  ;;  %v4676_v4 = vld [vmem:[#allocation2 + $0xa8] sm:$0xf] }
 0x171   : > { %10736 = vst [vmem:[#allocation28_spill] sm:$0xff] %v9822_v42  ;;  %7480 = vmatprep.mubr.bf16.mxu1 %v9534_v18  ;;  %v4893_v18 = vsel %vm7956_vm11, %v4888_v2, %v9760_v8  ;;  %v4931_v8 = vrot.slane %v4929_v1, 4  ;;  %v4934_v2 = vrot.slane %v4932_v44, 5  ;;  %v9876_v62 = vsel %vm8349_vm14, %v5525_v19, %v5526_v17  ;;  %v9924_v42 = vld [vmem:[#allocation2 + $0xa4] sm:$0x1] }
 0x172   : > { %v9840_v13 = vpop.f32.mrf.mxu1  ;;  %v9842_v23 = vpop.f32.mrf.mxu0  ;;  %v4953_v5 = vshrl.u32 %v4673_v0, 16  ;;  %v4956_v11 = vshll.u32 %v4673_v0, 16  ;;  %v10742_v25 = vcombine.low %v9671_v22, %v9680_v60  ;;  %v9881_v1 = vcombine.low %v4869_v47, %v4879_v40  ;;  %v9896_v47 = vld [vmem:[#allocation2 + $0xac] sm:$0xf] }
 0x173   : > { %10739 = vst [vmem:[#allocation9_spill] sm:$0xff] %v9840_v13  ;;  %v9883_v44 = vcombine.low %v4893_v18, %v4903_v37  ;;  %v9887_v6 = vrot.slane %v4938_v28, 5  ;;  %v4944_v17 = vrot.slane %v4942_v20, 4  ;;  %v4948_v0 = vshll.u32 %v9861_v35, 16 }
 0x174   : > { %v9865_v24 = vpop.f32.mrf.mxu1  ;;  %v9867_v56 = vpop.f32.mrf.mxu0  ;;  %7533 = vmatmul.mubr.bf16.gmra.mxu0 %v10741_v29  ;;  %v4962_v22 = vshll.u32 %v9863_v41, 16  ;;  %v4966_v60 = vshrl.u32 %v9863_v41, 16  ;;  %v9898_v40 = vcombine.low %v4917_v39, %v4927_v45  ;;  %v4935_v18 = vor.u32 %v4934_v2, %v4931_v8 }
 0x175   : > { %10740 = vst [vmem:[#allocation29_spill] sm:$0xff] %v9865_v24  ;;  %7536 = vmatprep.mubr.bf16.mxu0 %v10742_v25  ;;  %v5530_v37 = vrot.slane %v9820_v43, 5  ;;  %v4955_v58 = vrot.slane %v4953_v5, 4  ;;  %v4958_v51 = vrot.slane %v4956_v11, 5  ;;  %v4977_v31 = vshrl.u32 %v4676_v4, 16  ;;  %v10745_v24 = vld [vmem:[#allocation6_spill] sm:$0xff] }
 0x176   : > { %v9889_v29 = vpop.f32.mrf.mxu1  ;;  %v9891_v19 = vpop.f32.mrf.mxu0  ;;  %10744 = vst [vmem:[#allocation31_spill] sm:$0xff] %v9898_v40  ;;  %v6700_v39 = vrot.slane %v5404_v50, 9  ;;  %v4986_v45 = vshll.u32 %v9896_v47, 16  ;;  %v4990_v8 = vshrl.u32 %v9896_v47, 16  ;;  %v9913_v28 = vrot.slane %v4948_v0, 5 }
 0x177   : > { %10743 = vst [vmem:[#allocation30_spill] sm:$0xff] %v9889_v29  ;;  %v4980_v29 = vshll.u32 %v4676_v4, 16  ;;  %v9915_v5 = vrot.slane %v4962_v22, 5  ;;  %v4968_v11 = vrot.slane %v4966_v60, 4  ;;  %v9921_v50 = vrot.slane %v4935_v18, 4  ;;  %v10749_v18 = vld [vmem:[#allocation10_spill] sm:$0xff] }
 0x178   : > { %v7194_v25 = vpop.f32.mrf.mxu1  ;;  %7481 = vmatmul.mubr.bf16.vlgmr.msra.gmra.mxu1 %v9565_v61  ;;  %v9904_v20 = vpop.f32.mrf.mxu0  ;;  %v4945_v61 = vor.u32 %v4944_v17, %v9887_v6  ;;  %v10748_v17 = vcombine.low %v9684_v52, %v9697_v14  ;;  %v5532_v0 = vrot.slane %v5530_v37, 4  ;;  %v4959_v22 = vor.u32 %v4958_v51, %v4955_v58  ;;  %v10751_v51 = vld [vmem:[#allocation8_spill] sm:$0xff] }
 0x179   : > { %v2012_v13 = vadd.f32 %v7194_v25, %v10745_v24  ;;  %7484 = vmatprep.mubr.bf16.mxu1 %v9612_v38  ;;  %v10747_v24 = vld [vmem:[#allocation5_spill] sm:$0xff]  ;;  %v5533_v25 = vrot.slane %v9861_v35, 5  ;;  %v4979_v60 = vrot.slane %v4977_v31, 4  ;;  %v10750_v35 = vcombine.low %v9737_v9, %v9771_v63 }
 0x17a   : > { %v2003_v2 = vpop.f32.mrf.mxu1  ;;  %v9910_v43 = vpop.f32.mrf.mxu0  ;;  %v9940_v40 = vrot.slane %v4986_v45, 5  ;;  %v4992_v52 = vrot.slane %v4990_v8, 4  ;;  %v9946_v31 = vsel %vm8349_vm14, %v6700_v39, %v5530_v37  ;;  %v5537_v9 = vrot.slane %v9863_v41, 5 }
 0x17b   : > { %v9918_v4 = vadd.f32 %v9798_v21, %v2012_v13  ;;  %v2004_v38 = vadd.f32 %v2003_v2, %v10747_v24  ;;  %v4982_v21 = vrot.slane %v4980_v29, 5  ;;  %v5405_v24 = vld [vmem:[#allocation2 + $0x9c] sm:$0xe]  ;;  %v4941_v29 = vsel %vm7956_vm11, %v9921_v50, %v9887_v6 }
 0x17c   : > { %v7195_v3 = vpop.f32.mrf.mxu1  ;;  %v9926_v15 = vpop.f32.mrf.mxu0  ;;  %7537 = vmatmul.mubr.bf16.gmra.mxu0 %v10748_v17  ;;  %v4946_v45 = vrot.slane %v4945_v61, 4  ;;  %v9964_v39 = vsel %vm8349_vm14, %v5532_v0, %v5533_v25  ;;  %v4960_v41 = vrot.slane %v4959_v22, 4  ;;  %v5539_v0 = vrot.slane %v5537_v9, 4 }
 0x17d   : > { %10746 = vst [vmem:[#allocation6_spill] sm:$0xff] %v9918_v4  ;;  %v9932_v13 = vadd.f32 %v9817_v32, %v2004_v38  ;;  %v2015_v2 = vadd.f32 %v7195_v3, %v10749_v18  ;;  %7540 = vmatprep.mubr.bf16.mxu0 %v10750_v35  ;;  %v9938_v4 = vld [vmem:[#allocation2 + $0xb0] sm:$0x1]  ;;  %v4969_v32 = vor.u32 %v4968_v11, %v9915_v5  ;;  %v4972_v3 = vshll.u32 %v9924_v42, 16  ;;  %v10752_v18 = vld [vmem:[#allocation12_spill] sm:$0xff] }
 0x17e   : > { %v2006_v14 = vpop.f32.mrf.mxu1  ;;  %v9942_v17 = vpop.f32.mrf.mxu0  ;;  %v4996_v11 = vshll.u32 %v9938_v4, 16  ;;  %v4983_v6 = vor.u32 %v4982_v21, %v4979_v60  ;;  %v5540_v22 = vrot.slane %v9924_v42, 5  ;;  %v6732_v60 = vcombine.low %v9946_v31, %v9964_v39  ;;  %v5406_v21 = vld [vmem:[#allocation2 + $0xa8] sm:$0xe] }
 0x17f   : > { %v9952_v63 = vadd.f32 %v9827_v46, %v2015_v2  ;;  %v2007_v58 = vadd.f32 %v2006_v14, %v10751_v51  ;;  %v6701_v46 = vrot.slane %v5405_v24, 9  ;;  %v4970_v35 = vrot.slane %v4969_v32, 4 }
 0x180   : > { %v7198_v8 = vpop.f32.mrf.mxu1  ;;  %7485 = vmatmul.mubr.bf16.gmra.mxu1 %v9703_v10  ;;  %v9960_v37 = vpop.f32.mrf.mxu0  ;;  %v4993_v10 = vor.u32 %v4992_v52, %v9940_v40  ;;  %v4974_v25 = vrot.slane %v4972_v3, 5  ;;  %v4679_v52 = vld [vmem:[#allocation2 + $0xb4] sm:$0xf]  ;;  %v10754_v42 = vcombine.low %v9794_v57, %v9815_v7  ;;  %v5544_v31 = vrot.slane %v9896_v47, 5 }
 0x181   : > { %v9968_v38 = vadd.f32 %v9842_v23, %v2007_v58  ;;  %v2028_v2 = vadd.f32 %v7198_v8, %v10752_v18  ;;  %7488 = vmatprep.mubr.bf16.mxu1 %v9707_v33  ;;  %v10753_v23 = vld [vmem:[#allocation16_spill] sm:$0xff]  ;;  %v4951_v33 = vsel %vm7956_vm11, %v4946_v45, %v9913_v28  ;;  %v9995_v3 = vsel %vm8349_vm14, %v6701_v46, %v5537_v9  ;;  %v523_v58 = vld [vmem:[#allocation2 + $0xd4] sm:$0x1]  ;;  %v10755_v8 = vld [vmem:[#allocation17_spill] sm:$0xff] }
 0x182   : > { %v2019_v61 = vpop.f32.mrf.mxu1  ;;  %v9973_v50 = vpop.f32.mrf.mxu0  ;;  %v4998_v28 = vrot.slane %v4996_v11, 5  ;;  %v10756_v57 = vcombine.low %v9837_v49, %v9851_v59  ;;  %v4984_v7 = vrot.slane %v4983_v6, 4  ;;  %v4994_v18 = vrot.slane %v4993_v10, 4  ;;  %v10757_v49 = vld [vmem:[#allocation18_spill] sm:$0xff] }
 0x183   : > { %v9977_v24 = vadd.f32 %v9867_v56, %v2028_v2  ;;  %v2020_v14 = vadd.f32 %v2019_v61, %v10753_v23  ;;  %v4965_v56 = vsel %vm7956_vm11, %v4960_v41, %v9915_v5  ;;  %v10005_v5 = vld [vmem:[#allocation2 + $0xb8] sm:$0xf]  ;;  %v4975_v47 = vsel %vm7956_vm11, %v4970_v35, %v4974_v25 }
 0x184   : > { %v7199_v51 = vpop.f32.mrf.mxu1  ;;  %v9985_v32 = vpop.f32.mrf.mxu0  ;;  %7541 = vmatmul.mubr.bf16.gmra.mxu0 %v10754_v42  ;;  %v6702_v46 = vrot.slane %v5406_v21, 9  ;;  %v5001_v11 = vshrl.u32 %v4679_v52, 16  ;;  %v5004_v6 = vshll.u32 %v4679_v52, 16  ;;  %v524_v61 = vsel %vm7855_vm4, 0, %v523_v58  ;;  %v10759_v21 = vld [vmem:[#allocation20_spill] sm:$0xff] }
 0x185   : > { %v9999_v45 = vadd.f32 %v9891_v19, %v2020_v14  ;;  %v2031_v39 = vadd.f32 %v7199_v51, %v10755_v8  ;;  %7544 = vmatprep.mubr.bf16.mxu0 %v10756_v57  ;;  %v10013_v19 = vsel %vm8349_vm14, %v5539_v0, %v5540_v22  ;;  %v10024_v35 = vcombine.low %v4941_v29, %v4951_v33  ;;  %v5407_v58 = vld [vmem:[#allocation2 + $0xb4] sm:$0xe]  ;;  %v4683_v57 = vld [vmem:[#allocation2 + $0xc4] sm:$0xf] }
 0x186   : > { %v2022_v41 = vpop.f32.mrf.mxu1  ;;  %v10007_v9 = vpop.f32.mrf.mxu0  ;;  %v5546_v25 = vrot.slane %v5544_v31, 4  ;;  %v5547_v0 = vrot.slane %v9938_v4, 5  ;;  %v5010_v22 = vshll.u32 %v10005_v5, 16  ;;  %525 = vst [vmem:[#allocation2 + $0xd4] sm:$0x1] %v524_v61  ;;  %v4999_v29 = vsel %vm7956_vm11, %v4994_v18, %v4998_v28 }
 0x187   : > { %v10016_v2 = vadd.f32 %v9904_v20, %v2031_v39  ;;  %v2023_v59 = vadd.f32 %v2022_v41, %v10757_v49  ;;  %v10040_v4 = vcombine.low %v4965_v56, %v4975_v47  ;;  %v10046_v42 = vsel %vm8349_vm14, %v6702_v46, %v5544_v31  ;;  %v4682_v39 = vld [vmem:[#allocation2 + $0xc0] sm:$0xf] }
 0x188   : > { %v7202_v23 = vpop.f32.mrf.mxu1  ;;  %7489 = vmatmul.mubr.bf16.gmra.mxu1 %v9711_v48  ;;  %v10022_v14 = vpop.f32.mrf.mxu0  ;;  %v4989_v48 = vsel %vm7956_vm11, %v4984_v7, %v9940_v40  ;;  %v10054_v8 = vrot.slane %v5004_v6, 5  ;;  %v5551_v56 = vrot.slane %v10005_v5, 5  ;;  %v10760_v31 = vcombine.low %v9859_v53, %v9876_v62 }
 0x189   : > { %v10029_v20 = vadd.f32 %v9910_v43, %v2023_v59  ;;  %v2044_v52 = vadd.f32 %v7202_v23, %v10759_v21  ;;  %7492 = vmatprep.mubr.bf16.mxu1 %v9786_v27  ;;  %v6733_v43 = vcombine.low %v9995_v3, %v10013_v19  ;;  %v10048_v27 = vrot.slane %v5001_v11, 4  ;;  %v5408_v11 = vld [vmem:[#allocation2 + $0xc0] sm:$0xe]  ;;  %v10075_v59 = vld [vmem:[#allocation2 + $0xbc] sm:$0x1] }
 0x18a   : > { %v2035_v33 = vpop.f32.mrf.mxu1  ;;  %v10038_v51 = vpop.f32.mrf.mxu0  ;;  %v10062_v18 = vcombine.low %v4989_v48, %v4999_v29  ;;  %v10066_v41 = vrot.slane %v5010_v22, 5  ;;  %v6703_v46 = vrot.slane %v5407_v58, 9  ;;  %v5558_v49 = vrot.slane %v4683_v57, 5  ;;  %v10086_v48 = vld [vmem:[#allocation2 + $0xc8] sm:$0x1] }
 0x18b   : > { %v10051_v40 = vadd.f32 %v9926_v15, %v2044_v52  ;;  %v2036_v28 = vadd.f32 %v2035_v33, %v9647_v34  ;;  %v5548_v15 = vsel %vm8349_vm14, %v5546_v25, %v5547_v0  ;;  %v5014_v34 = vshrl.u32 %v10005_v5, 16  ;;  %v10762_v58 = vld [vmem:[#allocation25_spill] sm:$0xff]  ;;  %v10763_v33 = vld [vmem:[#allocation31_spill] sm:$0xff] }
 0x18c   : > { %v7203_v7 = vpop.f32.mrf.mxu1  ;;  %v10057_v3 = vpop.f32.mrf.mxu0  ;;  %7545 = vmatmul.mubr.bf16.gmra.mxu0 %v10760_v31  ;;  %v5025_v6 = vshrl.u32 %v4682_v39, 16  ;;  %v5028_v10 = vshll.u32 %v4682_v39, 16  ;;  %v5034_v61 = vshll.u32 %v4683_v57, 16  ;;  %v5038_v23 = vshrl.u32 %v4683_v57, 16 }
 0x18d   : > { %v10070_v47 = vadd.f32 %v9942_v17, %v2036_v28  ;;  %v2047_v19 = vadd.f32 %v7203_v7, %v9688_v54  ;;  %7548 = vmatprep.mubr.bf16.mxu0 %v6732_v60  ;;  %v5553_v25 = vrot.slane %v5551_v56, 4  ;;  %v5554_v54 = vrot.slane %v10075_v59, 5  ;;  %v1047_v60 = vld [vmem:[#allocation2 + $0xd4] sm:$0x1] }
 0x18e   : > { %v2038_v53 = vpop.f32.mrf.mxu1  ;;  %v10073_v62 = vpop.f32.mrf.mxu0  ;;  %v6734_v21 = vcombine.low %v10046_v42, %v5548_v15  ;;  %v5016_v52 = vrot.slane %v5014_v34, 4  ;;  %v6704_v29 = vrot.slane %v5408_v11, 9  ;;  %v5560_v39 = vrot.slane %v5558_v49, 4 }
 0x18f   : > { %v10078_v5 = vadd.f32 %v9960_v37, %v2047_v19  ;;  %v2039_v17 = vadd.f32 %v2038_v53, %v9723_v26  ;;  %v1048_v37 = vsel %vm7840_vm3, 0, %v1047_v60  ;;  %v5027_v7 = vrot.slane %v5025_v6, 4 }
 0x190   : > { %v7206_v0 = vpop.f32.mrf.mxu1  ;;  %7493 = vmatmul.mubr.bf16.gmra.mxu1 %v9881_v1  ;;  %v10083_v22 = vpop.f32.mrf.mxu0  ;;  %v5561_v1 = vrot.slane %v10086_v48, 5  ;;  %1049 = vst [vmem:[#allocation2 + $0xd4] sm:$0x1] %v1048_v37  ;;  %v5030_v31 = vrot.slane %v5028_v10, 5  ;;  %v10098_v15 = vrot.slane %v5034_v61, 5  ;;  %v5040_v34 = vrot.slane %v5038_v23, 4 }
 0x191   : > { %v10091_v26 = vadd.f32 %v9973_v50, %v2039_v17  ;;  %v2060_v28 = vadd.f32 %v7206_v0, %v10762_v58  ;;  %7496 = vmatprep.mubr.bf16.mxu1 %v9883_v44  ;;  %v5552_v44 = vsel %vm8349_vm14, %v6703_v46, %v5551_v56  ;;  %v5555_v11 = vsel %vm8349_vm14, %v5553_v25, %v5554_v54  ;;  %v4685_v61 = vld [vmem:[#allocation2 + $0xcc] sm:$0xf]  ;;  %v4686_v23 = vld [vmem:[#allocation2 + $0xd0] sm:$0xf] }
 0x192   : > { %v2051_v57 = vpop.f32.mrf.mxu1  ;;  %v10096_v42 = vpop.f32.mrf.mxu0  ;;  %v5007_v6 = vor.u32 %v10054_v8, %v10048_v27  ;;  %v5017_v10 = vor.u32 %v5016_v52, %v10066_v41  ;;  %v5409_v25 = vld [vmem:[#allocation2 + $0xcc] sm:$0xe]  ;;  %v5565_v27 = vrot.slane %v4686_v23, 5  ;;  %v5031_v60 = vor.u32 %v5030_v31, %v5027_v7 }
 0x193   : > { %v10101_v19 = vadd.f32 %v9985_v32, %v2060_v28  ;;  %v2052_v50 = vadd.f32 %v2051_v57, %v9756_v12  ;;  %v5020_v32 = vshll.u32 %v10075_v59, 16  ;;  %v5559_v12 = vsel %vm8349_vm14, %v6704_v29, %v5558_v49 }
 0x194   : > { %v7207_v53 = vpop.f32.mrf.mxu1  ;;  %v10108_v17 = vpop.f32.mrf.mxu0  ;;  %7549 = vmatmul.mubr.bf16.gmra.mxu0 %v6733_v43  ;;  %v5562_v43 = vsel %vm8349_vm14, %v5560_v39, %v5561_v1  ;;  %v6735_v59 = vcombine.low %v5552_v44, %v5555_v11  ;;  %v5041_v49 = vor.u32 %v5040_v34, %v10098_v15  ;;  %v5044_v0 = vshll.u32 %v10086_v48, 16  ;;  %v10764_v48 = vld [vmem:[#allocation11_spill] sm:$0xff] }
 0x195   : > { %v10117_v56 = vadd.f32 %v10007_v9, %v2052_v50  ;;  %v2063_v46 = vadd.f32 %v7207_v53, %v9767_v16  ;;  %7552 = vmatprep.mubr.bf16.mxu0 %v6734_v21  ;;  %v5049_v21 = vshrl.u32 %v4685_v61, 16  ;;  %v5052_v52 = vshll.u32 %v4685_v61, 16 }
 0x196   : > { %v2054_v8 = vpop.f32.mrf.mxu1  ;;  %v10122_v54 = vpop.f32.mrf.mxu0  ;;  %v6736_v58 = vcombine.low %v5559_v12, %v5562_v43  ;;  %v5058_v39 = vshll.u32 %v4686_v23, 16  ;;  %v5062_v1 = vshrl.u32 %v4686_v23, 16  ;;  %v6705_v57 = vrot.slane %v5409_v25, 9  ;;  %v10765_v23 = vld [vmem:[#allocation13_spill] sm:$0xff] }
 0x197   : > { %v10127_v9 = vadd.f32 %v10022_v14, %v2063_v46  ;;  %v2055_v16 = vadd.f32 %v2054_v8, %v9784_v55  ;;  %v4687_v28 = vld [vmem:[#allocation2 + $0xd4] sm:$0x1]  ;;  %v5567_v55 = vrot.slane %v5565_v27, 4  ;;  %v5008_v44 = vrot.slane %v5007_v6, 4 }
 0x198   : > { %v7210_v29 = vpop.f32.mrf.mxu1  ;;  %7497 = vmatmul.mubr.bf16.gmra.mxu1 %v10763_v33  ;;  %v10131_v37 = vpop.f32.mrf.mxu0  ;;  %v5568_v31 = vrot.slane %v4687_v28, 5  ;;  %v5018_v11 = vrot.slane %v5017_v10, 4  ;;  %v5022_v53 = vrot.slane %v5020_v32, 5  ;;  %v5032_v61 = vrot.slane %v5031_v60, 4  ;;  %v10766_v6 = vld [vmem:[#allocation14_spill] sm:$0xff] }
 0x199   : > { %v10134_v7 = vadd.f32 %v10038_v51, %v2055_v16  ;;  %v2076_v14 = vadd.f32 %v7210_v29, %v10764_v48  ;;  %7500 = vmatprep.mubr.bf16.mxu1 %v10024_v35  ;;  %v5042_v43 = vrot.slane %v5041_v49, 4  ;;  %v5046_v51 = vrot.slane %v5044_v0, 5  ;;  %v10767_v0 = vld [vmem:[#allocation15_spill] sm:$0xff] }
 0x19a   : > { %v2067_v34 = vpop.f32.mrf.mxu1  ;;  %v2539_v50 = vpop.f32.mrf.mxu0  ;;  %v5051_v16 = vrot.slane %v5049_v21, 4  ;;  %v5054_v35 = vrot.slane %v5052_v52, 5  ;;  %v5060_v29 = vrot.slane %v5058_v39, 5  ;;  %v5064_v33 = vrot.slane %v5062_v1, 4 }
 0x19b   : > { %v10139_v12 = vadd.f32 %v10057_v3, %v2076_v14  ;;  %v2068_v46 = vadd.f32 %v2067_v34, %v10765_v23  ;;  %v5566_v3 = vsel %vm8349_vm14, %v6705_v57, %v5565_v27  ;;  %v5569_v32 = vsel %vm8349_vm14, %v5567_v55, %v5568_v31 }
 0x19c   : > { %v7211_v25 = vpop.f32.mrf.mxu1  ;;  %v7266_v8 = vpop.f32.mrf.mxu0  ;;  %7553 = vmatmul.mubr.bf16.gmra.mxu0 %v6735_v59  ;;  %v5023_v52 = vsel %vm7956_vm11, %v5018_v11, %v5022_v53  ;;  %v5037_v30 = vsel %vm7956_vm11, %v5032_v61, %v10098_v15  ;;  %v5055_v39 = vor.u32 %v5054_v35, %v5051_v16  ;;  %v6737_v1 = vcombine.low %v5566_v3, %v5569_v32  ;;  %v10769_v15 = vld [vmem:[#allocation19_spill] sm:$0xff] }
 0x19d   : > { %v10143_v48 = vadd.f32 %v10073_v62, %v2068_v46  ;;  %v2079_v10 = vadd.f32 %v7211_v25, %v10766_v6  ;;  %7556 = vmatprep.mubr.bf16.mxu0 %v6736_v58  ;;  %v5013_v62 = vsel %vm7956_vm11, %v5008_v44, %v10066_v41  ;;  %v10768_v41 = vld [vmem:[#allocation7_spill] sm:$0xff]  ;;  %v5065_v55 = vor.u32 %v5064_v33, %v5060_v29  ;;  %v10771_v33 = vld [vmem:[#allocation22_spill] sm:$0xff] }
 0x19e   : > { %v2070_v60 = vpop.f32.mrf.mxu1  ;;  %v2552_v49 = vpop.f32.mrf.mxu0  ;;  %v5068_v31 = vshll.u32 %v4687_v28, 16  ;;  %v6679_v61 = vcombine.low %v5013_v62, %v5023_v52 }
 0x19f   : > { %v10151_v59 = vadd.f32 %v10083_v22, %v2079_v10  ;;  %v2071_v21 = vadd.f32 %v2070_v60, %v10767_v0  ;;  %v5047_v22 = vsel %vm7956_vm11, %v5042_v43, %v5046_v51  ;;  %v5056_v43 = vrot.slane %v5055_v39, 4  ;;  %v10770_v51 = vld [vmem:[#allocation21_spill] sm:$0xff]  ;;  %v10772_v60 = vld [vmem:[#allocation23_spill] sm:$0xff] }
 0x1a0   : > { %v7214_v58 = vpop.f32.mrf.mxu1  ;;  %7501 = vmatmul.mubr.bf16.gmra.mxu1 %v10040_v4  ;;  %v7267_v27 = vpop.f32.mrf.mxu0  ;;  %v6680_v23 = vcombine.low %v5037_v30, %v5047_v22  ;;  %v5066_v25 = vrot.slane %v5065_v55, 4  ;;  %v5070_v28 = vrot.slane %v5068_v31, 5 }
 0x1a1   : > { %v10166_v57 = vadd.f32 %v10096_v42, %v2071_v21  ;;  %v2092_v14 = vadd.f32 %v7214_v58, %v10768_v41  ;;  %7504 = vmatprep.mubr.bf16.mxu1 %v10062_v18  ;;  %v10773_v58 = vld [vmem:[#allocation24_spill] sm:$0xff]  ;;  %v10774_v41 = vld [vmem:[#allocation26_spill] sm:$0xff] }
 0x1a2   : > { %v2083_v4 = vpop.f32.mrf.mxu1  ;;  %v2555_v34 = vpop.f32.mrf.mxu0  ;;  %v5071_v21 = vsel %vm7956_vm11, %v5066_v25, %v5070_v28 }
 0x1a3   : > { %v10171_v44 = vadd.f32 %v10108_v17, %v2092_v14  ;;  %v2084_v11 = vadd.f32 %v2083_v4, %v10769_v15 }
 0x1a4   : > { %v7215_v53 = vpop.f32.mrf.mxu1  ;;  %v7270_v46 = vpop.f32.mrf.mxu0  ;;  %7557 = vmatmul.mubr.bf16.gmra.mxu0 %v6737_v1 }
 0x1a5   : > { %v10175_v42 = vadd.f32 %v10122_v54, %v2084_v11  ;;  %v2095_v18 = vadd.f32 %v7215_v53, %v10770_v51  ;;  %v5061_v54 = vsel %vm7956_vm11, %v5056_v43, %v5060_v29  ;;  %v10775_v29 = vld [vmem:[#allocation27_spill] sm:$0xff]  ;;  %v10776_v53 = vld [vmem:[#allocation28_spill] sm:$0xff] }
 0x1a6   : > { %v2086_v16 = vpop.f32.mrf.mxu1  ;;  %v2568_v35 = vpop.f32.mrf.mxu0  ;;  %v6681_v39 = vcombine.low %v5061_v54, %v5071_v21 }
 0x1a7   : > { %v10179_v17 = vadd.f32 %v10131_v37, %v2095_v18  ;;  %v2087_v6 = vadd.f32 %v2086_v16, %v10771_v33 }
 0x1a8   : > { %v7218_v10 = vpop.f32.mrf.mxu1  ;;  %7505 = vmatmul.mubr.bf16.gmra.mxu1 %v6679_v61  ;;  %v7271_v3 = vpop.f32.mrf.mxu0 }
 0x1a9   : > { %v10182_v32 = vadd.f32 %v2539_v50, %v2087_v6  ;;  %v2108_v0 = vadd.f32 %v7218_v10, %v10772_v60  ;;  %7508 = vmatprep.mubr.bf16.mxu1 %v6680_v23 }
 0x1aa   : > { %v2099_v62 = vpop.f32.mrf.mxu1  ;;  %v2571_v52 = vpop.f32.mrf.mxu0 }
 0x1ab   : > { %v10189_v37 = vadd.f32 %v7266_v8, %v2108_v0  ;;  %v2100_v30 = vadd.f32 %v2099_v62, %v10773_v58 }
 0x1ac   : > { %v7219_v22 = vpop.f32.mrf.mxu1  ;;  %v7338_v1 = vpop.f32.mrf.mxu0 }
 0x1ad   : > { %v10192_v50 = vadd.f32 %v2552_v49, %v2100_v30  ;;  %v2111_v14 = vadd.f32 %v7219_v22, %v10774_v41  ;;  %v10777_v49 = vld [vmem:[#allocation9_spill] sm:$0xff] }
 0x1ae   : > { %v2102_v55 = vpop.f32.mrf.mxu1  ;;  %v3596_v31 = vpop.f32.mrf.mxu0 }
 0x1af   : > { %v10195_v4 = vadd.f32 %v7267_v27, %v2111_v14  ;;  %v2103_v36 = vadd.f32 %v2102_v55, %v10775_v29  ;;  %v10778_v27 = vld [vmem:[#allocation29_spill] sm:$0xff] }
 0x1b0   : > { %v7222_v15 = vpop.f32.mrf.mxu1  ;;  %7509 = vmatmul.mubr.bf16.gmra.mxu1 %v6681_v39  ;;  %v7339_v11 = vpop.f32.mrf.mxu0 }
 0x1b1   : > { %v10198_v8 = vadd.f32 %v2555_v34, %v2103_v36  ;;  %v2124_v61 = vadd.f32 %v7222_v15, %v10776_v53  ;;  %v10779_v34 = vld [vmem:[#allocation30_spill] sm:$0xff] }
 0x1b2   : > { %v2115_v23 = vpop.f32.mrf.mxu1  ;;  %v3599_v43 = vpop.f32.mrf.mxu0 }
 0x1b3   : > { %v10201_v51 = vadd.f32 %v7270_v46, %v2124_v61  ;;  %v2116_v18 = vadd.f32 %v2115_v23, %v10777_v49  ;;  %v10780_v46 = vld [vmem:[#allocation6_spill] sm:$0xff] }
 0x1b4   : > { %v7223_v25 = vpop.f32.mrf.mxu1  ;;  %v7342_v28 = vpop.f32.mrf.mxu0 }
 0x1b5   : > { %v10204_v16 = vadd.f32 %v2568_v35, %v2116_v18  ;;  %v2127_v33 = vadd.f32 %v7223_v25, %v10778_v27 }
 0x1b6   : > { %v2118_v6 = vpop.f32.mrf.mxu1  ;;  %v3612_v10 = vpop.f32.mrf.mxu0 }
 0x1b7   : > { %v10207_v60 = vadd.f32 %v7271_v3, %v2127_v33  ;;  %v2119_v0 = vadd.f32 %v2118_v6, %v10779_v34 }
 0x1b8   : > { %v7290_v54 = vpop.f32.mrf.mxu1  ;;  %v7343_v21 = vpop.f32.mrf.mxu0 }
 0x1b9   : > { %v10210_v62 = vadd.f32 %v2571_v52, %v2119_v0  ;;  %v2971_v58 = vadd.f32 %v7290_v54, %v10780_v46 }
 0x1ba   : > { %v2842_v30 = vpop.f32.mrf.mxu1  ;;  %v3615_v22 = vpop.f32.mrf.mxu0 }
 0x1bb   : > { %v10213_v39 = vadd.f32 %v7338_v1, %v2971_v58  ;;  %v2969_v35 = vadd.f32 %v2842_v30, %v9932_v13 }
 0x1bc   : > { %v7291_v41 = vpop.f32.mrf.mxu1  ;;  %v7346_v14 = vpop.f32.mrf.mxu0 }
 0x1bd   : > { %v10216_v55 = vadd.f32 %v3596_v31, %v2969_v35  ;;  %v2972_v3 = vadd.f32 %v7291_v41, %v9952_v63 }
 0x1be   : > { %v2845_v29 = vpop.f32.mrf.mxu1  ;;  %v3628_v36 = vpop.f32.mrf.mxu0 }
 0x1bf   : > { %v10219_v15 = vadd.f32 %v7339_v11, %v2972_v3  ;;  %v2970_v52 = vadd.f32 %v2845_v29, %v9968_v38 }
 0x1c0   : > { %v7294_v53 = vpop.f32.mrf.mxu1  ;;  %v7347_v61 = vpop.f32.mrf.mxu0 }
 0x1c1   : > { %v10222_v23 = vadd.f32 %v3599_v43, %v2970_v52  ;;  %v2975_v1 = vadd.f32 %v7294_v53, %v9977_v24 }
 0x1c2   : > { %v2858_v49 = vpop.f32.mrf.mxu1  ;;  %v3631_v13 = vpop.f32.mrf.mxu0 }
 0x1c3   : > { %v10225_v18 = vadd.f32 %v7342_v28, %v2975_v1  ;;  %v2973_v31 = vadd.f32 %v2858_v49, %v9999_v45 }
 0x1c4   : > { %v7295_v25 = vpop.f32.mrf.mxu1  ;;  %v7350_v63 = vpop.f32.mrf.mxu0 }
 0x1c5   : > { %v10228_v27 = vadd.f32 %v3612_v10, %v2973_v31  ;;  %v2976_v11 = vadd.f32 %v7295_v25, %v10016_v2 }
 0x1c6   : > { %v2861_v33 = vpop.f32.mrf.mxu1  ;;  %v3644_v38 = vpop.f32.mrf.mxu0 }
 0x1c7   : > { %v10231_v6 = vadd.f32 %v7343_v21, %v2976_v11  ;;  %v2974_v43 = vadd.f32 %v2861_v33, %v10029_v20 }
 0x1c8   : > { %v7298_v34 = vpop.f32.mrf.mxu1  ;;  %v7351_v24 = vpop.f32.mrf.mxu0 }
 0x1c9   : > { %v10234_v0 = vadd.f32 %v3615_v22, %v2974_v43  ;;  %v2979_v28 = vadd.f32 %v7298_v34, %v10051_v40 }
 0x1ca   : > { %v2874_v54 = vpop.f32.mrf.mxu1  ;;  %v3647_v45 = vpop.f32.mrf.mxu0 }
 0x1cb   : > { %v10237_v46 = vadd.f32 %v7346_v14, %v2979_v28  ;;  %v2977_v10 = vadd.f32 %v2874_v54, %v10070_v47 }
 0x1cc   : > { %v7299_v58 = vpop.f32.mrf.mxu1  ;;  %v7354_v2 = vpop.f32.mrf.mxu0 }
 0x1cd   : > { %v10240_v30 = vadd.f32 %v3628_v36, %v2977_v10  ;;  %v2980_v21 = vadd.f32 %v7299_v58, %v10078_v5 }
 0x1ce   : > { %v2877_v35 = vpop.f32.mrf.mxu1  ;;  %v3660_v20 = vpop.f32.mrf.mxu0 }
 0x1cf   : > { %v10243_v41 = vadd.f32 %v7347_v61, %v2980_v21  ;;  %v2978_v22 = vadd.f32 %v2877_v35, %v10091_v26 }
 0x1d0   : > { %v7302_v3 = vpop.f32.mrf.mxu1  ;;  %v7355_v40 = vpop.f32.mrf.mxu0 }
 0x1d1   : > { %v10246_v29 = vadd.f32 %v3631_v13, %v2978_v22  ;;  %v2983_v14 = vadd.f32 %v7302_v3, %v10101_v19 }
 0x1d2   : > { %v2890_v52 = vpop.f32.mrf.mxu1  ;;  %v3663_v47 = vpop.f32.mrf.mxu0 }
 0x1d3   : > { %v10249_v53 = vadd.f32 %v7350_v63, %v2983_v14  ;;  %v2981_v36 = vadd.f32 %v2890_v52, %v10117_v56 }
 0x1d4   : > { %v7303_v1 = vpop.f32.mrf.mxu1  ;;  %v7358_v5 = vpop.f32.mrf.mxu0 }
 0x1d5   : > { %v10252_v49 = vadd.f32 %v3644_v38, %v2981_v36  ;;  %v2984_v61 = vadd.f32 %v7303_v1, %v10127_v9 }
 0x1d6   : > { %v2893_v31 = vpop.f32.mrf.mxu1  ;;  %v3676_v26 = vpop.f32.mrf.mxu0 }
 0x1d7   : > { %v10255_v25 = vadd.f32 %v7351_v24, %v2984_v61  ;;  %v2982_v13 = vadd.f32 %v2893_v31, %v10134_v7 }
 0x1d8   : > { %v7306_v11 = vpop.f32.mrf.mxu1  ;;  %v7359_v19 = vpop.f32.mrf.mxu0 }
 0x1d9   : > { %v10258_v33 = vadd.f32 %v3647_v45, %v2982_v13  ;;  %v2987_v63 = vadd.f32 %v7306_v11, %v10139_v12 }
 0x1da   : > { %v2906_v43 = vpop.f32.mrf.mxu1  ;;  %v3679_v56 = vpop.f32.mrf.mxu0 }
 0x1db   : > { %v10261_v34 = vadd.f32 %v7354_v2, %v2987_v63  ;;  %v2985_v38 = vadd.f32 %v2906_v43, %v10143_v48 }
 0x1dc   : > { %v7307_v28 = vpop.f32.mrf.mxu1  ;;  %v7362_v9 = vpop.f32.mrf.mxu0 }
 0x1dd   : > { %v10264_v54 = vadd.f32 %v3660_v20, %v2985_v38  ;;  %v2988_v24 = vadd.f32 %v7307_v28, %v10151_v59 }
 0x1de   : > { %v2909_v10 = vpop.f32.mrf.mxu1  ;;  %v3692_v7 = vpop.f32.mrf.mxu0 }
 0x1df   : > { %v10267_v58 = vadd.f32 %v7355_v40, %v2988_v24  ;;  %v2986_v45 = vadd.f32 %v2909_v10, %v10166_v57 }
 0x1e0   : > { %v7310_v21 = vpop.f32.mrf.mxu1  ;;  %v7363_v12 = vpop.f32.mrf.mxu0 }
 0x1e1   : > { %v10270_v35 = vadd.f32 %v3663_v47, %v2986_v45  ;;  %v2991_v2 = vadd.f32 %v7310_v21, %v10171_v44 }
 0x1e2   : > { %v2922_v22 = vpop.f32.mrf.mxu1  ;;  %v3695_v48 = vpop.f32.mrf.mxu0 }
 0x1e3   : > { %v10273_v3 = vadd.f32 %v7358_v5, %v2991_v2  ;;  %v2989_v20 = vadd.f32 %v2922_v22, %v10175_v42 }
 0x1e4   : > { %v7311_v14 = vpop.f32.mrf.mxu1  ;;  %v7366_v59 = vpop.f32.mrf.mxu0 }
 0x1e5   : > { %v10276_v52 = vadd.f32 %v3676_v26, %v2989_v20  ;;  %v2992_v40 = vadd.f32 %v7311_v14, %v10179_v17 }
 0x1e6   : > { %v2925_v36 = vpop.f32.mrf.mxu1  ;;  %v3708_v57 = vpop.f32.mrf.mxu0 }
 0x1e7   : > { %10781 = vst [vmem:[#allocation5_spill] sm:$0xff] %v10276_v52  ;;  %v10279_v1 = vadd.f32 %v7359_v19, %v2992_v40  ;;  %v2990_v47 = vadd.f32 %v2925_v36, %v10182_v32 }
 0x1e8   : > { %v7314_v61 = vpop.f32.mrf.mxu1  ;;  %v7367_v44 = vpop.f32.mrf.mxu0 }
 0x1e9   : > { %10782 = vst [vmem:[#allocation10_spill] sm:$0xff] %v10279_v1  ;;  %v10282_v31 = vadd.f32 %v3679_v56, %v2990_v47  ;;  %v2995_v5 = vadd.f32 %v7314_v61, %v10189_v37 }
 0x1ea   : > { %v2938_v13 = vpop.f32.mrf.mxu1  ;;  %v3711_v42 = vpop.f32.mrf.mxu0 }
 0x1eb   : > { %10783 = vst [vmem:[#allocation8_spill] sm:$0xff] %v10282_v31  ;;  %v10285_v11 = vadd.f32 %v7362_v9, %v2995_v5  ;;  %v2993_v26 = vadd.f32 %v2938_v13, %v10192_v50 }
 0x1ec   : > { %v7315_v63 = vpop.f32.mrf.mxu1  ;;  %v7434_v17 = vpop.f32.mrf.mxu0 }
 0x1ed   : > { %v10288_v43 = vadd.f32 %v3692_v7, %v2993_v26  ;;  %v2996_v19 = vadd.f32 %v7315_v63, %v10195_v4 }
 0x1ee   : > { %v2941_v38 = vpop.f32.mrf.mxu1  ;;  %v4481_v32 = vpop.f32.mrf.mxu0 }
 0x1ef   : > { %10784 = vst [vmem:[#allocation12_spill] sm:$0xff] %v10288_v43  ;;  %v10291_v28 = vadd.f32 %v7363_v12, %v2996_v19  ;;  %v2994_v56 = vadd.f32 %v2941_v38, %v10198_v8 }
 0x1f0   : > { %v7318_v24 = vpop.f32.mrf.mxu1  ;;  %v10294_v37 = vpop.f32.mrf.mxu0 }
 0x1f1   : > { %10785 = vst [vmem:[#allocation16_spill] sm:$0xff] %v10291_v28  ;;  %v10296_v10 = vadd.f32 %v3695_v48, %v2994_v56  ;;  %v2999_v9 = vadd.f32 %v7318_v24, %v10201_v51 }
 0x1f2   : > { %v2954_v50 = vpop.f32.mrf.mxu1  ;;  %v10299_v45 = vpop.f32.mrf.mxu0 }
 0x1f3   : > { %10786 = vst [vmem:[#allocation17_spill] sm:$0xff] %v10296_v10  ;;  %v10301_v7 = vadd.f32 %v7366_v59, %v2999_v9  ;;  %v2997_v4 = vadd.f32 %v2954_v50, %v10204_v16 }
 0x1f4   : > { %v7319_v21 = vpop.f32.mrf.mxu1  ;;  %v7438_v2 = vpop.f32.mrf.mxu0 }
 0x1f5   : > { %v10304_v12 = vadd.f32 %v3708_v57, %v2997_v4  ;;  %v3000_v8 = vadd.f32 %v7319_v21, %v10207_v60 }
 0x1f6   : > { %v2957_v22 = vpop.f32.mrf.mxu1  ;;  %v10307_v20 = vpop.f32.mrf.mxu0 }
 0x1f7   : > { %10787 = vst [vmem:[#allocation18_spill] sm:$0xff] %v10304_v12  ;;  %v10309_v48 = vadd.f32 %v7367_v44, %v3000_v8  ;;  %v2998_v51 = vadd.f32 %v2957_v22, %v10210_v62 }
 0x1f8   : > { %v7386_v14 = vpop.f32.mrf.mxu1  ;;  %v10312_v40 = vpop.f32.mrf.mxu0 }
 0x1f9   : > { %10788 = vst [vmem:[#allocation4_spill] sm:$0xff] %v10309_v48  ;;  %v10314_v59 = vadd.f32 %v3711_v42, %v2998_v51  ;;  %v4223_v16 = vadd.f32 %v7386_v14, %v10213_v39 }
 0x1fa   : > { %v4094_v36 = vpop.f32.mrf.mxu1  ;;  %v10317_v47 = vpop.f32.mrf.mxu0 }
 0x1fb   : > { %10789 = vst [vmem:[#allocation20_spill] sm:$0xff] %v10314_v59  ;;  %v10319_v57 = vadd.f32 %v7434_v17, %v4223_v16  ;;  %v4221_v60 = vadd.f32 %v4094_v36, %v10216_v55 }
 0x1fc   : > { %v10322_v61 = vpop.f32.mrf.mxu1  ;;  %v7442_v44 = vpop.f32.mrf.mxu0 }
 0x1fd   : > { %v10324_v5 = vadd.f32 %v4481_v32, %v4221_v60 }
 0x1fe   : > { %v10326_v62 = vpop.f32.mrf.mxu1  ;;  %v10328_v13 = vpop.f32.mrf.mxu0 }
 0x200   : > { %v7390_v42 = vpop.f32.mrf.mxu1  ;;  %v10330_v26 = vpop.f32.mrf.mxu0 }
 0x201   : > { %v4227_v39 = vadd.f32 %v7390_v42, %v10225_v18 }
 0x202   : > { %v10333_v63 = vpop.f32.mrf.mxu1  ;;  %v10335_v17 = vpop.f32.mrf.mxu0 }
 0x203   : > { %v10337_v19 = vadd.f32 %v7438_v2, %v4227_v39 }
 0x204   : > { %v10339_v55 = vpop.f32.mrf.mxu1  ;;  %v7446_v38 = vpop.f32.mrf.mxu0 }
 0x206   : > { %v10341_v32 = vpop.f32.mrf.mxu1  ;;  %v10343_v56 = vpop.f32.mrf.mxu0 }
 0x208   : > { %v7394_v24 = vpop.f32.mrf.mxu1  ;;  %v10345_v9 = vpop.f32.mrf.mxu0 }
 0x209   : > { %v4231_v50 = vadd.f32 %v7394_v24, %v10237_v46 }
 0x20a   : > { %v10348_v4 = vpop.f32.mrf.mxu1  ;;  %v10350_v18 = vpop.f32.mrf.mxu0 }
 0x20b   : > { %v10352_v21 = vadd.f32 %v7442_v44, %v4231_v50 }
 0x20c   : > { %v10354_v2 = vpop.f32.mrf.mxu1  ;;  %v7450_v8 = vpop.f32.mrf.mxu0 }
 0x20e   : > { %v10356_v22 = vpop.f32.mrf.mxu1  ;;  %v10358_v51 = vpop.f32.mrf.mxu0 }
 0x210   : > { %v7398_v14 = vpop.f32.mrf.mxu1  ;;  %v10360_v16 = vpop.f32.mrf.mxu0 }
 0x211   : > { %10790 = vst [vmem:[#allocation3_spill] sm:$0xff] %v10360_v16  ;;  %v4235_v36 = vadd.f32 %v7398_v14, %v10249_v53 }
 0x212   : > { %v10363_v60 = vpop.f32.mrf.mxu1  ;;  %v10365_v46 = vpop.f32.mrf.mxu0 }
 0x213   : > { %10791 = vst [vmem:[#allocation25_spill] sm:$0xff] %v10365_v46  ;;  %v10367_v42 = vadd.f32 %v7446_v38, %v4235_v36 }
 0x214   : > { %v10369_v44 = vpop.f32.mrf.mxu1  ;;  %v7454_v39 = vpop.f32.mrf.mxu0 }
 0x216   : > { %v10371_v24 = vpop.f32.mrf.mxu1  ;;  %v10373_v50 = vpop.f32.mrf.mxu0 }
 0x217   : > { %10792 = vst [vmem:[#allocation31_spill] sm:$0xff] %v10373_v50 }
 0x218   : > { %v7402_v59 = vpop.f32.mrf.mxu1  ;;  %v10375_v48 = vpop.f32.mrf.mxu0 }
 0x219   : > { %10793 = vst [vmem:[#allocation11_spill] sm:$0xff] %v10375_v48  ;;  %v4239_v12 = vadd.f32 %v7402_v59, %v10261_v34 }
 0x21a   : > { %v10378_v10 = vpop.f32.mrf.mxu1  ;;  %v10380_v53 = vpop.f32.mrf.mxu0 }
 0x21b   : > { %10794 = vst [vmem:[#allocation13_spill] sm:$0xff] %v10380_v53  ;;  %v10382_v14 = vadd.f32 %v7450_v8, %v4239_v12 }
 0x21c   : > { %v10384_v38 = vpop.f32.mrf.mxu1  ;;  %v7458_v36 = vpop.f32.mrf.mxu0 }
 0x21d   : > { %10795 = vst [vmem:[#allocation14_spill] sm:$0xff] %v10382_v14 }
 0x21e   : > { %v10386_v28 = vpop.f32.mrf.mxu1  ;;  %v10388_v43 = vpop.f32.mrf.mxu0 }
 0x21f   : > { %10796 = vst [vmem:[#allocation15_spill] sm:$0xff] %v10388_v43 }
 0x220   : > { %v7406_v31 = vpop.f32.mrf.mxu1  ;;  %v10390_v50 = vpop.f32.mrf.mxu0 }
 0x221   : > { %10797 = vst [vmem:[#allocation7_spill] sm:$0xff] %v10390_v50  ;;  %v4243_v48 = vadd.f32 %v7406_v31, %v10273_v3 }
 0x222   : > { %v10393_v1 = vpop.f32.mrf.mxu1  ;;  %v10395_v34 = vpop.f32.mrf.mxu0 }
 0x223   : > { %10798 = vst [vmem:[#allocation19_spill] sm:$0xff] %v10393_v1  ;;  %10799 = vst [vmem:[#allocation21_spill] sm:$0xff] %v10395_v34  ;;  %v10397_v59 = vadd.f32 %v7454_v39, %v4243_v48 }
 0x224   : > { %v10399_v12 = vpop.f32.mrf.mxu1  ;;  %v7462_v8 = vpop.f32.mrf.mxu0 }
 0x225   : > { %10800 = vst [vmem:[#allocation22_spill] sm:$0xff] %v10397_v59  ;;  %10801 = vst [vmem:[#allocation23_spill] sm:$0xff] %v10399_v12 }
 0x226   : > { %v10401_v53 = vpop.f32.mrf.mxu1  ;;  %v10403_v52 = vpop.f32.mrf.mxu0 }
 0x227   : > { %10802 = vst [vmem:[#allocation24_spill] sm:$0xff] %v10401_v53  ;;  %10803 = vst [vmem:[#allocation26_spill] sm:$0xff] %v10403_v52 }
 0x228   : > { %v7410_v46 = vpop.f32.mrf.mxu1  ;;  %v10405_v43 = vpop.f32.mrf.mxu0 }
 0x229   : > { %10804 = vst [vmem:[#allocation27_spill] sm:$0xff] %v10405_v43  ;;  %v4247_v50 = vadd.f32 %v7410_v46, %v10285_v11 }
 0x22a   : > { %v10408_v14 = vpop.f32.mrf.mxu1  ;;  %v10410_v3 = vpop.f32.mrf.mxu0 }
 0x22b   : > { %10805 = vst [vmem:[#allocation28_spill] sm:$0xff] %v10408_v14  ;;  %10806 = vst [vmem:[#allocation9_spill] sm:$0xff] %v10410_v3  ;;  %v10412_v31 = vadd.f32 %v7458_v36, %v4247_v50  ;;  %v4222_v14 = vadd.f32 %v10326_v62, %v10222_v23  ;;  %v4228_v23 = vadd.f32 %v10339_v55, %v10231_v6 }
 0x22c   : > { %v10414_v48 = vpop.f32.mrf.mxu1  ;;  %v7530_v39 = vpop.f32.mrf.mxu0 }
 0x22d   : > { %10807 = vst [vmem:[#allocation29_spill] sm:$0xff] %v10412_v31  ;;  %10808 = vst [vmem:[#allocation30_spill] sm:$0xff] %v10414_v48  ;;  %v4224_v31 = vadd.f32 %v10322_v61, %v10219_v15  ;;  %v4225_v61 = vadd.f32 %v10333_v63, %v10228_v27  ;;  %v4615_v55 = vadd.f32 %v10312_v40, %v4228_v23 }
 0x22e   : > { %v10416_v34 = vpop.f32.mrf.mxu1  ;;  %v5733_v59 = vpop.f32.mrf.mxu0 }
 0x22f   : > { %10809 = vst [vmem:[#allocation6_spill] sm:$0xff] %v10416_v34  ;;  %v4612_v63 = vadd.f32 %v10307_v20, %v4225_v61  ;;  %v4232_v61 = vadd.f32 %v10354_v2, %v10243_v41 }
 0x230   : > { %v7414_v53 = vpop.f32.mrf.mxu1  ;;  %v7531_v12 = vpop.f32.mrf.mxu0 }
 0x231   : > { %v4251_v52 = vadd.f32 %v7414_v53, %v10301_v7 }
 0x232   : > { %v10419_v1 = vpop.f32.mrf.mxu1  ;;  %v5736_v43 = vpop.f32.mrf.mxu0 }
 0x233   : > { %10810 = vst [vmem:[#allocation32_spill] sm:$0xff] %v10419_v1  ;;  %v10421_v11 = vadd.f32 %v7462_v8, %v4251_v52  ;;  %v4611_v1 = vadd.f32 %v10294_v37, %v4224_v31 }
 0x234   : > { %v10423_v46 = vpop.f32.mrf.mxu1  ;;  %v7534_v3 = vpop.f32.mrf.mxu0 }
 0x235   : > { %10811 = vst [vmem:[#allocation33_spill] sm:$0xff] %v10421_v11  ;;  %10812 = vst [vmem:[#allocation34_spill] sm:$0xff] %v10423_v46  ;;  %v4609_v46 = vadd.f32 %v10299_v45, %v4222_v14 }
 0x236   : > { %v10425_v50 = vpop.f32.mrf.mxu1  ;;  %v5749_v36 = vpop.f32.mrf.mxu0 }
 0x237   : > { %10813 = vst [vmem:[#allocation35_spill] sm:$0xff] %v10425_v50 }
 0x238   : > { %v7482_v34 = vpop.f32.mrf.mxu1  ;;  %v7535_v48 = vpop.f32.mrf.mxu0 }
 0x239   : > { %v5364_v52 = vadd.f32 %v7482_v34, %v10319_v57 }
 0x23a   : > { %v5235_v7 = vpop.f32.mrf.mxu1  ;;  %v5752_v53 = vpop.f32.mrf.mxu0 }
 0x23b   : > { %v5362_v8 = vadd.f32 %v5235_v7, %v10324_v5  ;;  %v5862_v37 = vadd.f32 %v7530_v39, %v5364_v52  ;;  %v4226_v5 = vadd.f32 %v10341_v32, %v10234_v0 }
 0x23c   : > { %v7483_v11 = vpop.f32.mrf.mxu1  ;;  %v10434_v50 = vpop.f32.mrf.mxu0 }
 0x23d   : > { %v5365_v15 = vadd.f32 %v7483_v11, %v4611_v1  ;;  %v5860_v31 = vadd.f32 %v5733_v59, %v5362_v8  ;;  %v6091_v40 = vmul.f32 %v5862_v37, %v5862_v37 }
 0x23e   : > { %v5238_v62 = vpop.f32.mrf.mxu1  ;;  %v10441_v16 = vpop.f32.mrf.mxu0 }
 0x23f   : > { %v5863_v57 = vadd.f32 %v7531_v12, %v5365_v15  ;;  %v5363_v34 = vadd.f32 %v5238_v62, %v4609_v46  ;;  %v6089_v59 = vmul.f32 %v5860_v31, %v5860_v31  ;;  %v4613_v46 = vadd.f32 %v10317_v47, %v4226_v5 }
 0x240   : > { %v7486_v27 = vpop.f32.mrf.mxu1  ;;  %v10452_v1 = vpop.f32.mrf.mxu0 }
 0x241   : > { %v6825_v6 = vpack.c.bf16 %v5863_v57, %v5862_v37  ;;  %v5861_v45 = vadd.f32 %v5736_v43, %v5363_v34  ;;  %v5368_v14 = vadd.f32 %v7486_v27, %v10337_v19  ;;  %v4229_v43 = vadd.f32 %v10348_v4, %v10240_v30 }
 0x242   : > { %v5251_v0 = vpop.f32.mrf.mxu1  ;;  %v10457_v32 = vpop.f32.mrf.mxu0  ;;  %v6092_v23 = vmul.f32 %v5863_v57, %v5863_v57 }
 0x243   : > { %6897 = vst [vmem:[%s10450_s20 + $0x8] sm:$0xff] %v6825_v6   ;;  %v6820_v12 = vpack.c.bf16 %v5861_v45, %v5860_v31  ;;  %v6052_v39 = vadd.f32 %v5861_v45, %v5860_v31  ;;  %v6090_v11 = vmul.f32 %v5861_v45, %v5861_v45  ;;  %v5366_v7 = vadd.f32 %v5251_v0, %v4612_v63 }
 0x244   : > { %v7487_v20 = vpop.f32.mrf.mxu1  ;;  %v10463_v52 = vpop.f32.mrf.mxu0  ;;  %v5866_v62 = vadd.f32 %v7534_v3, %v5368_v14  ;;  %v4616_v6 = vadd.f32 %v10328_v13, %v4229_v43  ;;  %v4236_v43 = vadd.f32 %v10369_v44, %v10255_v25 }
 0x245   : > { %6821 = vst [vmem:[%s10450_s20] sm:$0xff] %v6820_v12   ;;  %v6053_v19 = vadd.f32 %v6052_v39, %v5862_v37  ;;  %v6121_v8 = vadd.f32 %v6090_v11, %v6089_v59  ;;  %v5369_v15 = vadd.f32 %v7487_v20, %v4615_v55  ;;  %v5864_v31 = vadd.f32 %v5749_v36, %v5366_v7 }
 0x246   : > { %v5254_v34 = vpop.f32.mrf.mxu1  ;;  %v10468_v47 = vpop.f32.mrf.mxu0  ;;  %v4230_v37 = vadd.f32 %v10356_v22, %v10246_v29  ;;  %v6095_v7 = vmul.f32 %v5866_v62, %v5866_v62 }
 0x247   : > { %v6122_v5 = vadd.f32 %v6121_v8, %v6091_v40  ;;  %v6054_v30 = vadd.f32 %v6053_v19, %v5863_v57  ;;  %v5867_v4 = vadd.f32 %v7535_v48, %v5369_v15  ;;  %v5367_v27 = vadd.f32 %v5254_v34, %v4613_v46 }
 0x248   : > { %v7490_v45 = vpop.f32.mrf.mxu1  ;;  %v10473_v63 = vpop.f32.mrf.mxu0  ;;  %v6093_v2 = vmul.f32 %v5864_v31, %v5864_v31  ;;  %v4619_v48 = vadd.f32 %v10330_v26, %v4232_v61  ;;  %v4617_v46 = vadd.f32 %v10335_v17, %v4230_v37 }
 0x249   : > { %v6055_v41 = vadd.f32 %v6054_v30, %v5864_v31  ;;  %v6123_v3 = vadd.f32 %v6122_v5, %v6092_v23  ;;  %v6835_v36 = vpack.c.bf16 %v5867_v4, %v5866_v62  ;;  %v5865_v55 = vadd.f32 %v5752_v53, %v5367_v27 }
 0x24a   : > { %v5267_v14 = vpop.f32.mrf.mxu1  ;;  %v10475_v0 = vpop.f32.mrf.mxu0  ;;  %v5372_v13 = vadd.f32 %v7490_v45, %v10352_v21  ;;  %v4233_v53 = vadd.f32 %v10363_v60, %v10252_v49  ;;  %v6096_v49 = vmul.f32 %v5867_v4, %v5867_v4 }
 0x24b   : > { %v6124_v57 = vadd.f32 %v6123_v3, %v6093_v2  ;;  %6899 = vst [vmem:[%s10450_s20 + $0x18] sm:$0xff] %v6835_v36   ;;  %v5370_v59 = vadd.f32 %v5267_v14, %v4616_v6  ;;  %v6830_v29 = vpack.c.bf16 %v5865_v55, %v5864_v31  ;;  %v6056_v22 = vadd.f32 %v6055_v41, %v5865_v55 }
 0x24c   : > { %v6094_v12 = vmul.f32 %v5865_v55, %v5865_v55  ;;  %v7491_v39 = vpop.f32.mrf.mxu1  ;;  %v10480_v11 = vpop.f32.mrf.mxu0  ;;  %v5870_v15 = vadd.f32 %v10434_v50, %v5372_v13  ;;  %v4623_v50 = vadd.f32 %v10345_v9, %v4236_v43  ;;  %v4240_v3 = vadd.f32 %v10384_v38, %v10267_v58 }
 0x24d   : > { %v5373_v26 = vadd.f32 %v7491_v39, %v4619_v48  ;;  %6898 = vst [vmem:[%s10450_s20 + $0x10] sm:$0xff] %v6830_v29   ;;  %v6057_v20 = vadd.f32 %v6056_v22, %v5866_v62  ;;  %v5868_v40 = vadd.f32 %v10441_v16, %v5370_v59  ;;  %v4620_v62 = vadd.f32 %v10343_v56, %v4233_v53  ;;  %v10814_v53 = vld [vmem:[#allocation3_spill] sm:$0xff] }
 0x24e   : > { %v6125_v21 = vadd.f32 %v6124_v57, %v6094_v12  ;;  %v5270_v19 = vpop.f32.mrf.mxu1  ;;  %v10489_v8 = vpop.f32.mrf.mxu0  ;;  %v4234_v16 = vadd.f32 %v10371_v24, %v10258_v33  ;;  %v6099_v55 = vmul.f32 %v5870_v15, %v5870_v15 }
 0x24f   : > { %v5871_v17 = vadd.f32 %v10452_v1, %v5373_v26  ;;  %v5371_v61 = vadd.f32 %v5270_v19, %v4617_v46  ;;  %v6058_v23 = vadd.f32 %v6057_v20, %v5867_v4  ;;  %v6097_v1 = vmul.f32 %v5868_v40, %v5868_v40  ;;  %v10815_v19 = vld [vmem:[#allocation14_spill] sm:$0xff] }
 0x250   : > { %v6126_v60 = vadd.f32 %v6125_v21, %v6095_v7  ;;  %v7494_v25 = vpop.f32.mrf.mxu1  ;;  %v10493_v44 = vpop.f32.mrf.mxu0  ;;  %v4621_v9 = vadd.f32 %v10350_v18, %v4234_v16  ;;  %v10820_v16 = vld [vmem:[#allocation23_spill] sm:$0xff] }
 0x251   : > { %v6845_v31 = vpack.c.bf16 %v5871_v17, %v5870_v15  ;;  %v5869_v34 = vadd.f32 %v10457_v32, %v5371_v61  ;;  %v6059_v5 = vadd.f32 %v6058_v23, %v5868_v40  ;;  %v5376_v56 = vadd.f32 %v7494_v25, %v10367_v42  ;;  %v10818_v23 = vld [vmem:[#allocation19_spill] sm:$0xff] }
 0x252   : > { %v6127_v30 = vadd.f32 %v6126_v60, %v6096_v49  ;;  %v5283_v27 = vpop.f32.mrf.mxu1  ;;  %v10500_v6 = vpop.f32.mrf.mxu0  ;;  %v4237_v32 = vadd.f32 %v10378_v10, %v10264_v54  ;;  %v6100_v54 = vmul.f32 %v5871_v17, %v5871_v17  ;;  %v10817_v60 = vld [vmem:[#allocation5_spill] sm:$0xff] }
 0x253   : > { %6901 = vst [vmem:[%s10450_s20 + $0x28] sm:$0xff] %v6845_v31   ;;  %v6840_v4 = vpack.c.bf16 %v5869_v34, %v5868_v40  ;;  %v6098_v37 = vmul.f32 %v5869_v34, %v5869_v34  ;;  %v5374_v45 = vadd.f32 %v5283_v27, %v4620_v62  ;;  %v6060_v33 = vadd.f32 %v6059_v5, %v5869_v34  ;;  %v10819_v62 = vld [vmem:[#allocation10_spill] sm:$0xff] }
 0x254   : > { %v6128_v41 = vadd.f32 %v6127_v30, %v6097_v1  ;;  %v7495_v24 = vpop.f32.mrf.mxu1  ;;  %v10504_v2 = vpop.f32.mrf.mxu0  ;;  %v5874_v59 = vadd.f32 %v10463_v52, %v5376_v56  ;;  %v4624_v12 = vadd.f32 %v10358_v51, %v4237_v32  ;;  %v4627_v52 = vadd.f32 %v10814_v53, %v4240_v3  ;;  %v10821_v32 = vld [vmem:[#allocation31_spill] sm:$0xff]  ;;  %v10826_v53 = vld [vmem:[#allocation13_spill] sm:$0xff] }
 0x255   : > { %6900 = vst [vmem:[%s10450_s20 + $0x20] sm:$0xff] %v6840_v4   ;;  %v5377_v36 = vadd.f32 %v7495_v24, %v4623_v50  ;;  %v6061_v14 = vadd.f32 %v6060_v33, %v5870_v15  ;;  %v5872_v42 = vadd.f32 %v10468_v47, %v5374_v45  ;;  %v4238_v47 = vadd.f32 %v10386_v28, %v10270_v35 }
 0x256   : > { %v6129_v48 = vadd.f32 %v6128_v41, %v6098_v37  ;;  %v5286_v57 = vpop.f32.mrf.mxu1  ;;  %v10513_v13 = vpop.f32.mrf.mxu0  ;;  %v4241_v25 = vadd.f32 %v10818_v23, %v10817_v60  ;;  %v4244_v31 = vadd.f32 %v10820_v16, %v10819_v62  ;;  %v6103_v50 = vmul.f32 %v5874_v59, %v5874_v59 }
 0x257   : > { %v5875_v18 = vadd.f32 %v10473_v63, %v5377_v36  ;;  %v5375_v29 = vadd.f32 %v5286_v57, %v4621_v9  ;;  %v6062_v22 = vadd.f32 %v6061_v14, %v5871_v17  ;;  %v6101_v63 = vmul.f32 %v5872_v42, %v5872_v42  ;;  %v10822_v36 = vld [vmem:[#allocation8_spill] sm:$0xff] }
 0x258   : > { %v6130_v10 = vadd.f32 %v6129_v48, %v6099_v55  ;;  %v7498_v58 = vpop.f32.mrf.mxu1  ;;  %v10517_v38 = vpop.f32.mrf.mxu0  ;;  %v4628_v3 = vadd.f32 %v10821_v32, %v4241_v25  ;;  %v10823_v55 = vld [vmem:[#allocation24_spill] sm:$0xff] }
 0x259   : > { %v6855_v39 = vpack.c.bf16 %v5875_v18, %v5874_v59  ;;  %v5873_v46 = vadd.f32 %v10475_v0, %v5375_v29  ;;  %v6063_v43 = vadd.f32 %v6062_v22, %v5872_v42  ;;  %v5380_v51 = vadd.f32 %v7498_v58, %v10815_v19  ;;  %v10816_v0 = vld [vmem:[#allocation25_spill] sm:$0xff] }
 0x25a   : > { %v6131_v26 = vadd.f32 %v6130_v10, %v6100_v54  ;;  %v5299_v7 = vpop.f32.mrf.mxu1  ;;  %v10524_v20 = vpop.f32.mrf.mxu0  ;;  %v4625_v49 = vadd.f32 %v10816_v0, %v4238_v47  ;;  %v6104_v45 = vmul.f32 %v5875_v18, %v5875_v18  ;;  %v4242_v14 = vadd.f32 %v10823_v55, %v10822_v36  ;;  %v10825_v10 = vld [vmem:[#allocation22_spill] sm:$0xff] }
 0x25b   : > { %6903 = vst [vmem:[%s10450_s20 + $0x38] sm:$0xff] %v6855_v39   ;;  %v6850_v21 = vpack.c.bf16 %v5873_v46, %v5872_v42  ;;  %v6102_v40 = vmul.f32 %v5873_v46, %v5873_v46  ;;  %v5378_v15 = vadd.f32 %v5299_v7, %v4624_v12  ;;  %v6064_v35 = vadd.f32 %v6063_v43, %v5873_v46  ;;  %v10824_v42 = vld [vmem:[#allocation11_spill] sm:$0xff]  ;;  %v10828_v43 = vld [vmem:[#allocation28_spill] sm:$0xff]  ;;  %v10830_v7 = vld [vmem:[#allocation30_spill] sm:$0xff] }
 0x25c   : > { %v6132_v17 = vadd.f32 %v6131_v26, %v6101_v63  ;;  %v7499_v28 = vpop.f32.mrf.mxu1  ;;  %v10528_v61 = vpop.f32.mrf.mxu0  ;;  %v5878_v4 = vadd.f32 %v10480_v11, %v5380_v51  ;;  %v4631_v11 = vadd.f32 %v10824_v42, %v4244_v31  ;;  %v10829_v26 = vld [vmem:[#allocation16_spill] sm:$0xff]  ;;  %v10831_v31 = vld [vmem:[#allocation15_spill] sm:$0xff] }
 0x25d   : > { %6902 = vst [vmem:[%s10450_s20 + $0x30] sm:$0xff] %v6850_v21   ;;  %v5381_v34 = vadd.f32 %v7499_v28, %v4627_v52  ;;  %v6065_v5 = vadd.f32 %v6064_v35, %v5874_v59  ;;  %v5876_v30 = vadd.f32 %v10489_v8, %v5378_v15  ;;  %v4629_v52 = vadd.f32 %v10826_v53, %v4242_v14  ;;  %v10838_v42 = vld [vmem:[#allocation32_spill] sm:$0xff] }
 0x25e   : > { %v6133_v1 = vadd.f32 %v6132_v17, %v6102_v40  ;;  %v5302_v27 = vpop.f32.mrf.mxu1  ;;  %v10539_v9 = vpop.f32.mrf.mxu0  ;;  %v4248_v21 = vadd.f32 %v10830_v7, %v10829_v26  ;;  %v6107_v19 = vmul.f32 %v5878_v4, %v5878_v4  ;;  %v10841_v26 = vld [vmem:[#allocation26_spill] sm:$0xff] }
 0x25f   : > { %v5879_v37 = vadd.f32 %v10493_v44, %v5381_v34  ;;  %v5379_v56 = vadd.f32 %v5302_v27, %v4625_v49  ;;  %v6066_v33 = vadd.f32 %v6065_v5, %v5875_v18  ;;  %v6105_v44 = vmul.f32 %v5876_v30, %v5876_v30  ;;  %v10833_v5 = vld [vmem:[#allocation6_spill] sm:$0xff]  ;;  %v10834_v27 = vld [vmem:[#allocation7_spill] sm:$0xff] }
 0x260   : > { %v6134_v41 = vadd.f32 %v6133_v1, %v6103_v50  ;;  %v7502_v24 = vpop.f32.mrf.mxu1  ;;  %v7555_v46 = vpop.f32.mrf.mxu0  ;;  %v10832_v50 = vld [vmem:[#allocation17_spill] sm:$0xff] }
 0x261   : > { %v6865_v48 = vpack.c.bf16 %v5879_v37, %v5878_v4  ;;  %v5877_v8 = vadd.f32 %v10500_v6, %v5379_v56  ;;  %v6067_v57 = vadd.f32 %v6066_v33, %v5876_v30  ;;  %v5384_v22 = vadd.f32 %v7502_v24, %v10825_v10  ;;  %v10827_v6 = vld [vmem:[#allocation12_spill] sm:$0xff]  ;;  %v10835_v33 = vld [vmem:[#allocation29_spill] sm:$0xff] }
 0x262   : > { %v6135_v59 = vadd.f32 %v6134_v41, %v6104_v45  ;;  %v5315_v29 = vpop.f32.mrf.mxu1  ;;  %v4245_v63 = vadd.f32 %v10828_v43, %v10827_v6  ;;  %v6108_v60 = vmul.f32 %v5879_v37, %v5879_v37  ;;  %v5832_v16 = vpop.f32.mrf.mxu0  ;;  %v4246_v1 = vadd.f32 %v10833_v5, %v10832_v50  ;;  %v10846_v5 = vld [vmem:[#allocation9_spill] sm:$0xff] }
 0x263   : > { %6905 = vst [vmem:[%s10450_s20 + $0x48] sm:$0xff] %v6865_v48   ;;  %v6860_v18 = vpack.c.bf16 %v5877_v8, %v5876_v30  ;;  %v6106_v54 = vmul.f32 %v5877_v8, %v5877_v8  ;;  %v5382_v58 = vadd.f32 %v5315_v29, %v4628_v3  ;;  %v6068_v47 = vadd.f32 %v6067_v57, %v5877_v8  ;;  %v10836_v48 = vld [vmem:[#allocation21_spill] sm:$0xff]  ;;  %v10839_v57 = vld [vmem:[#allocation4_spill] sm:$0xff] }
 0x264   : > { %v6136_v12 = vadd.f32 %v6135_v59, %v6105_v44  ;;  %v7503_v39 = vpop.f32.mrf.mxu1  ;;  %v5882_v28 = vadd.f32 %v10504_v2, %v5384_v22  ;;  %v4632_v34 = vadd.f32 %v10831_v31, %v4245_v63  ;;  %v7558_v14 = vpop.f32.mrf.mxu0  ;;  %v4633_v8 = vadd.f32 %v10836_v48, %v4246_v1  ;;  %v10840_v44 = vld [vmem:[#allocation34_spill] sm:$0xff] }
 0x265   : > { %6904 = vst [vmem:[%s10450_s20 + $0x40] sm:$0xff] %v6860_v18   ;;  %v5385_v40 = vadd.f32 %v7503_v39, %v4631_v11  ;;  %v6069_v51 = vadd.f32 %v6068_v47, %v5878_v4  ;;  %v5880_v17 = vadd.f32 %v10513_v13, %v5382_v58  ;;  %v4635_v4 = vadd.f32 %v10834_v27, %v4248_v21  ;;  %v10842_v21 = vld [vmem:[#allocation20_spill] sm:$0xff] }
 0x266   : > { %v6137_v15 = vadd.f32 %v6136_v12, %v6106_v54  ;;  %v5318_v35 = vpop.f32.mrf.mxu1  ;;  %v4252_v59 = vadd.f32 %v10840_v44, %v10839_v57  ;;  %v6111_v18 = vmul.f32 %v5882_v28, %v5882_v28  ;;  %v5845_v63 = vpop.f32.mrf.mxu0 }
 0x267   : > { %v5883_v0 = vadd.f32 %v10517_v38, %v5385_v40  ;;  %v5383_v49 = vadd.f32 %v5318_v35, %v4629_v52  ;;  %v6070_v25 = vadd.f32 %v6069_v51, %v5879_v37  ;;  %v6109_v38 = vmul.f32 %v5880_v17, %v5880_v17  ;;  %v10843_v40 = vld [vmem:[#allocation35_spill] sm:$0xff] }
 0x268   : > { %v6138_v23 = vadd.f32 %v6137_v15, %v6107_v19  ;;  %v7506_v62 = vpop.f32.mrf.mxu1  ;;  %v4250_v19 = vadd.f32 %v10843_v40, %v10842_v21  ;;  %v7559_v50 = vpop.f32.mrf.mxu0 }
 0x269   : > { %v6875_v30 = vpack.c.bf16 %v5883_v0, %v5882_v28  ;;  %v5881_v13 = vadd.f32 %v10524_v20, %v5383_v49  ;;  %v6071_v2 = vadd.f32 %v6070_v25, %v5880_v17  ;;  %v5388_v24 = vadd.f32 %v7506_v62, %v10835_v33  ;;  %v10837_v20 = vld [vmem:[#allocation18_spill] sm:$0xff] }
 0x26a   : > { %v6139_v56 = vadd.f32 %v6138_v23, %v6108_v60  ;;  %v5331_v45 = vpop.f32.mrf.mxu1  ;;  %v4249_v11 = vadd.f32 %v10838_v42, %v10837_v20  ;;  %v6112_v53 = vmul.f32 %v5883_v0, %v5883_v0  ;;  %v4637_v1 = vadd.f32 %v10846_v5, %v4250_v19 }
 0x26b   : > { %6907 = vst [vmem:[%s10450_s20 + $0x58] sm:$0xff] %v6875_v30   ;;  %v6870_v41 = vpack.c.bf16 %v5881_v13, %v5880_v17  ;;  %v6110_v37 = vmul.f32 %v5881_v13, %v5881_v13  ;;  %v5386_v32 = vadd.f32 %v5331_v45, %v4632_v34  ;;  %v6072_v36 = vadd.f32 %v6071_v2, %v5881_v13  ;;  %v10844_v17 = vld [vmem:[#allocation27_spill] sm:$0xff] }
 0x26c   : > { %v6140_v3 = vadd.f32 %v6139_v56, %v6109_v38  ;;  %v7507_v55 = vpop.f32.mrf.mxu1  ;;  %v5886_v12 = vadd.f32 %v10528_v61, %v5388_v24  ;;  %v4636_v7 = vadd.f32 %v10841_v26, %v4249_v11  ;;  %v5848_v24 = vpop.f32.mrf.mxu0 }
 0x26d   : > { %6906 = vst [vmem:[%s10450_s20 + $0x50] sm:$0xff] %v6870_v41   ;;  %v5389_v29 = vadd.f32 %v7507_v55, %v4635_v4  ;;  %v6073_v54 = vadd.f32 %v6072_v36, %v5882_v28  ;;  %v5884_v22 = vadd.f32 %v10539_v9, %v5386_v32  ;;  %v4639_v9 = vadd.f32 %v10844_v17, %v4252_v59 }
 0x26e   : > { %v6141_v10 = vadd.f32 %v6140_v3, %v6110_v37  ;;  %v5334_v58 = vpop.f32.mrf.mxu1  ;;  %v6115_v30 = vmul.f32 %v5886_v12, %v5886_v12 }
 0x26f   : > { %v5887_v47 = vadd.f32 %v7555_v46, %v5389_v29  ;;  %v5387_v39 = vadd.f32 %v5334_v58, %v4633_v8  ;;  %v6074_v6 = vadd.f32 %v6073_v54, %v5883_v0  ;;  %v6113_v61 = vmul.f32 %v5884_v22, %v5884_v22  ;;  %v10845_v0 = vld [vmem:[#allocation33_spill] sm:$0xff] }
 0x270   : > { %v6142_v52 = vadd.f32 %v6141_v10, %v6111_v18  ;;  %v7510_v43 = vpop.f32.mrf.mxu1 }
 0x271   : > { %v6885_v51 = vpack.c.bf16 %v5887_v47, %v5886_v12  ;;  %v5885_v15 = vadd.f32 %v5832_v16, %v5387_v39  ;;  %v6075_v35 = vadd.f32 %v6074_v6, %v5884_v22  ;;  %v5392_v23 = vadd.f32 %v7510_v43, %v10845_v0 }
 0x272   : > { %v6143_v46 = vadd.f32 %v6142_v52, %v6112_v53  ;;  %v5347_v28 = vpop.f32.mrf.mxu1  ;;  %v6116_v41 = vmul.f32 %v5887_v47, %v5887_v47 }
 0x273   : > { %6909 = vst [vmem:[%s10450_s20 + $0x68] sm:$0xff] %v6885_v51   ;;  %v6880_v49 = vpack.c.bf16 %v5885_v15, %v5884_v22  ;;  %v6114_v60 = vmul.f32 %v5885_v15, %v5885_v15  ;;  %v5390_v25 = vadd.f32 %v5347_v28, %v4636_v7  ;;  %v6076_v31 = vadd.f32 %v6075_v35, %v5885_v15 }
 0x274   : > { %v6144_v62 = vadd.f32 %v6143_v46, %v6113_v61  ;;  %v7511_v34 = vpop.f32.mrf.mxu1  ;;  %v5890_v38 = vadd.f32 %v7558_v14, %v5392_v23 }
 0x275   : > { %6908 = vst [vmem:[%s10450_s20 + $0x60] sm:$0xff] %v6880_v49   ;;  %v5393_v16 = vadd.f32 %v7511_v34, %v4639_v9  ;;  %v6077_v13 = vadd.f32 %v6076_v31, %v5886_v12  ;;  %v5888_v4 = vadd.f32 %v5845_v63, %v5390_v25 }
 0x276   : > { %v6145_v27 = vadd.f32 %v6144_v62, %v6114_v60  ;;  %v5350_v2 = vpop.f32.mrf.mxu1  ;;  %v6119_v57 = vmul.f32 %v5890_v38, %v5890_v38 }
 0x277   : > { %v5891_v56 = vadd.f32 %v7559_v50, %v5393_v16  ;;  %v5391_v45 = vadd.f32 %v5350_v2, %v4637_v1  ;;  %v6078_v33 = vadd.f32 %v6077_v13, %v5887_v47  ;;  %v6117_v55 = vmul.f32 %v5888_v4, %v5888_v4 }
 0x278   : > { %v6146_v37 = vadd.f32 %v6145_v27, %v6115_v30 }
 0x279   : > { %v6895_v32 = vpack.c.bf16 %v5891_v56, %v5890_v38  ;;  %v5889_v3 = vadd.f32 %v5848_v24, %v5391_v45  ;;  %v6079_v36 = vadd.f32 %v6078_v33, %v5888_v4  ;;  %v6120_v59 = vmul.f32 %v5891_v56, %v5891_v56 }
 0x27a   : > { %v6147_v48 = vadd.f32 %v6146_v37, %v6116_v41 }
 0x27b   : > { %6911 = vst [vmem:[%s10450_s20 + $0x78] sm:$0xff] %v6895_v32   ;;  %v6890_v8 = vpack.c.bf16 %v5889_v3, %v5888_v4  ;;  %v6118_v20 = vmul.f32 %v5889_v3, %v5889_v3  ;;  %v6080_v11 = vadd.f32 %v6079_v36, %v5889_v3 }
 0x27c   : > { %v6148_v42 = vadd.f32 %v6147_v48, %v6117_v55 }
 0x27d   : > { %6910 = vst [vmem:[%s10450_s20 + $0x70] sm:$0xff] %v6890_v8   ;;  %v6081_v14 = vadd.f32 %v6080_v11, %v5890_v38 }
 0x27e   : > { %v6149_v44 = vadd.f32 %v6148_v42, %v6118_v20 }
 0x27f   : > { %v6082_v29 = vadd.f32 %v6081_v14, %v5891_v56 }
 0x280   : > { %v6150_v18 = vadd.f32 %v6149_v44, %v6119_v57 }
 0x281   : > { %v6083_v54 = vrot.slane %v6082_v29, 4 }
 0x282   : > { %v6151_v10 = vadd.f32 %v6150_v18, %v6120_v59 }
 0x283   : > { %v6084_v22 = vadd.f32 %v6083_v54, %v6082_v29 }
 0x284   : > { %v6152_v58 = vrot.slane %v6151_v10, 4 }
 0x285   : > { %v6085_v12 = vrot.slane %v6084_v22, 2 }
 0x286   : > { %v6153_v47 = vadd.f32 %v6152_v58, %v6151_v10 }
 0x287   : > { %v6086_v39 = vadd.f32 %v6085_v12, %v6084_v22 }
 0x288   : > { %v6154_v53 = vrot.slane %v6153_v47, 2 }
 0x289   : > { %v6087_v52 = vrot.slane %v6086_v39, 1 }
 0x28a   : > { %v6155_v6 = vadd.f32 %v6154_v53, %v6153_v47 }
 0x28b   : > { %v6088_v63 = vadd.f32 %v6087_v52, %v6086_v39 }
 0x28c   : > { %v6156_v43 = vrot.slane %v6155_v6, 1 }
 0x28e   : > { %v6157_v26 = vadd.f32 %v6156_v43, %v6155_v6 }
 0x290   : > { %v6159_v7 = vsel %vm413_vm0, %v6088_v63, %v6157_v26 }
 0x291   : > { %6160 = vst [vmem:[%s411_s23] sm:$0x3] %v6159_v7 }
 0x292 PF: > { %s16_s0 = sadd.s32 1, %s7772_s0   ;;  %s10847_s18 = smov %s7768_s19 }
 0x293   : > { %p13_p5 = scmp.ge.s32.totalorder %s16_s0, 4   ;;  %s10848_s19 = smov %s10850_s2 }
 0x295   :  { %15 = sbr.rel (!%p13_p5) target bundleno = 2 (0x2), region = 112 }

// kernel: _lambda_.4
= control target key start
LH: loop header
LB: loop body
LE: loop exit
PB: predicated region body
PF: predicated region fallthrough
CT: control target
= control target key end

     0   :  { %s8290_s23 = smov 0   ;;  %s8292_s24 = smov 0   ;;  %s10969_s0 = inlined_call_operand.vmem [shape: bf16[2,16,16,128], index: 0, kind: input, shape index: {}, may-alias: {0,1,2}]   ;;  %s10970_s1 = inlined_call_operand.vmem [shape: bf16[2,16,16,128], index: 1, kind: input, shape index: {}, may-alias: {0,1,2}]   ;;  %s10971_s2 = inlined_call_operand.vmem [shape: bf16[2,16,16,128], index: 2, kind: input, shape index: {}, may-alias: {0,1,2}]   ;;  %s10972_s3 = inlined_call_operand.vmem [shape: f32[1,128], index: 3, kind: input, shape index: {}]   ;;  %s10973_s4 = inlined_call_operand.vmem [shape: f32[1,128], index: 4, kind: input, shape index: {}]   ;;  %s10974_s5 = inlined_call_operand.vmem [shape: bf16[9,128,128], index: 5, kind: input, shape index: {}]   ;;  %s10975_s6 = inlined_call_operand.vmem [shape: bf16[2,16,16,128], index: 6, kind: output, shape index: {0}]   ;;  %s10976_s7 = inlined_call_operand.vmem [shape: f32[2,1,2,128], index: 7, kind: output, shape index: {1}]  }
   0x1   :  { %s8294_s2 = smov 0  }
   0x2 LB: > { %s30_s25 = sadd.s32 1, %s8243_s24  ;;  %p6664_p0 = scmp.ge.s32.totalorder %s8247_s2, 1  ;;  %s8247_s2 = sphi %s8294_s2, %s18_s2   ;;  %s8243_s24 = sphi %s8292_s24, %s11207_s24   ;;  %s8239_s23 = sphi %s8290_s23, %s11206_s23  }
   0x3   : > { %p32_p1 = scmp.ge.s32.totalorder %s30_s25, 2  ;;  %p328_p2 = scmp.lt.s32.totalorder %s8247_s2, 3 }
   0x5   : > { %s11209_s25 = smov (%p32_p1, %s30_s25), 0  ;;  %p329_p3 = pnand %p6664_p0, %p328_p2 }
   0x7   : > { %332 = sbr.rel (%p329_p3) target bundleno = 686 (0x2ae), region = 44 }
   0xc   : > { %v8074_v0 = vld [vmem:[%s10974_s5 + $0x78] sm:$0xff]   ;;  %v8075_v1 = vld [vmem:[%s10974_s5 + $0x70] sm:$0xff]   ;;  %v8249_v2 = vmov 0   ;;  %p421_p4 = scmp.lt.s32.totalorder %s8239_s23, 1  ;;  %v8076_v3 = vld [vmem:[%s10974_s5 + $0x68] sm:$0xff]   ;;  %vm469_vm0 = vcmask 1040384  }
   0xd   : > { %7601 = vmatprep.subr.bf16.mxu0 %v8074_v0  ;;  %8033 = vmatprep.subr.bf16.mxu1 %v8074_v0  ;;  %1294 = vst [vmem:[#allocation2 + $0x4] sm:$0xf] %v8249_v2  ;;  %1352 = vst [vmem:[#allocation2 + $0xd0] sm:$0xf] %v8249_v2  ;;  %v8077_v4 = vld [vmem:[%s10974_s5 + $0x60] sm:$0xff]   ;;  %v10987_v6 = vmov 0 }
   0xe   : > { %7602 = vmatpush3.bf16.msra.mxu0 %v8074_v0  ;;  %8041 = vmatpush3.bf16.msra.mxu1 %v8074_v0  ;;  %s11211_s23 = smov (!%p421_p4, %s8239_s23), 1  ;;  %vm470_vm1 = vsmask.f32 256  ;;  %v472_v5 = vld [vmem:[#allocation2] sm:$0x1]  ;;  %v8078_v8 = vld [vmem:[%s10974_s5 + $0x58] sm:$0xff]  }
   0xf   : > { %7603 = vmatprep.subr.bf16.mxu0 %v8075_v1  ;;  %8034 = vmatprep.subr.bf16.mxu1 %v8075_v1  ;;  %s7139_s11 = sshll.u32 %s11211_s23, 7  ;;  %vm526_vm2 = vsmask.f32 7938  ;;  %vm8332_vm3 = vmand %vm469_vm0, %vm470_vm1  ;;  %v528_v7 = vld [vmem:[#allocation2 + $0x8] sm:$0x1]  ;;  %v10990_v10 = vmov 0 }
  0x10   : > { %s8328_s14 = scalar_lea.vmem %s10970_s1, %s7139_s11  ;;  %v10988_v6 = vsel %vm8332_vm3, 4294967295, %v10987_v6  ;;  %v473_v9 = vsel %vm8332_vm3, 0, %v472_v5  ;;  %vm8343_vm4 = vmand %vm469_vm0, %vm526_vm2  ;;  %vm1173_vm5 = vcmask 1043456   ;;  %v8352_v15 = vld [vmem:[%s10972_s3] ss:$0 sm:$0xff]  ;;  %v8079_v32 = vld [vmem:[%s10974_s5 + $0x50] sm:$0xff]   ;;  %s10825_s13 = scalar_lea.vmem %s10975_s6, %s7139_s11 }
  0x11   : > { %10989 = vst [vmem:[#allocation3_spill] sm:$0xff] %v10988_v6  ;;  %v10991_v10 = vsel %vm8343_vm4, 4294967295, %v10990_v10  ;;  %474 = vst [vmem:[#allocation2] sm:$0x1] %v473_v9  ;;  %v529_v12 = vsel %vm8343_vm4, 0, %v528_v7  ;;  %v7212_v16 = vld [vmem:[%s8328_s14] sm:$0xff]  }
  0x12   : > { %7604 = vmatpush3.bf16.msra.mxu0 %v8075_v1  ;;  %8042 = vmatpush3.bf16.msra.mxu1 %v8075_v1  ;;  %10992 = vst [vmem:[#allocation4_spill] sm:$0xff] %v10991_v10  ;;  %530 = vst [vmem:[#allocation2 + $0x8] sm:$0x1] %v529_v12  ;;  %v8358_v17 = vld [vmem:[%s10973_s4] ss:$0 sm:$0xff]  ;;  %v7213_v20 = vunpack.c.l.bf16 %v7212_v16  ;;  %v7214_v21 = vunpack.c.h.bf16 %v7212_v16  ;;  %v7361_v31 = vld [vmem:[%s8328_s14 + $0x38] sm:$0xff]  }
  0x13   : > { %7605 = vmatprep.subr.bf16.mxu0 %v8076_v3  ;;  %8035 = vmatprep.subr.bf16.mxu1 %v8076_v3  ;;  %v475_v18 = vld [vmem:[#allocation2 + $0xc] sm:$0x1]  ;;  %v531_v19 = vld [vmem:[#allocation2 + $0x14] sm:$0x1]  ;;  %v496_v26 = vld [vmem:[#allocation2 + $0x60] sm:$0x1]  ;;  %v7241_v34 = vunpack.c.l.bf16 %v7361_v31  ;;  %v7242_v35 = vunpack.c.h.bf16 %v7361_v31 }
  0x14   : > { %v1405_v11 = vld [vmem:[#allocation2 + $0x4] sm:$0xf]  ;;  %v476_v24 = vsel %vm8332_vm3, 0, %v475_v18  ;;  %v532_v25 = vsel %vm8343_vm4, 0, %v531_v19  ;;  %v652_v27 = vmul.f32 %v7213_v20, %v8352_v15  ;;  %v653_v28 = vmul.f32 %v7214_v21, %v8352_v15  ;;  %v552_v30 = vld [vmem:[#allocation2 + $0x68] sm:$0x1]  ;;  %vm8378_vm6 = vmand %vm1173_vm5, %vm526_vm2 }
  0x15   : > { %v1481_v13 = vshll.u32 %v1405_v11, 16  ;;  %v1485_v14 = vshrl.u32 %v1405_v11, 16  ;;  %477 = vst [vmem:[#allocation2 + $0xc] sm:$0x1] %v476_v24  ;;  %533 = vst [vmem:[#allocation2 + $0x14] sm:$0x1] %v532_v25  ;;  %v666_v41 = vmul.f32 %v7241_v34, %v8352_v15  ;;  %v667_v42 = vmul.f32 %v7242_v35, %v8352_v15 }
  0x16   : > { %7606 = vmatpush3.bf16.msra.mxu0 %v8076_v3  ;;  %8043 = vmatpush3.bf16.msra.mxu1 %v8076_v3  ;;  %v497_v29 = vsel %vm8332_vm3, 0, %v496_v26  ;;  %v553_v33 = vsel %vm8343_vm4, 0, %v552_v30  ;;  %v10993_v36 = vmov 0  ;;  %v690_v37 = vadd.f32 %v8358_v17, %v652_v27  ;;  %v499_v39 = vld [vmem:[#allocation2 + $0x6c] sm:$0x1]  ;;  %v7362_v45 = vld [vmem:[%s8328_s14 + $0x40] sm:$0xff]  }
  0x17   : > { %7607 = vmatprep.subr.bf16.mxu0 %v8077_v4  ;;  %8036 = vmatprep.subr.bf16.mxu1 %v8077_v4  ;;  %v8360_v22 = vrot.slane %v1481_v13, 5  ;;  %v1487_v23 = vrot.slane %v1485_v14, 4  ;;  %498 = vst [vmem:[#allocation2 + $0x60] sm:$0x1] %v497_v29  ;;  %v10994_v36 = vsel %vm8378_vm6, 4294967295, %v10993_v36  ;;  %v691_v38 = vadd.f32 %v8358_v17, %v653_v28  ;;  %v8080_v51 = vld [vmem:[%s10974_s5 + $0x48] sm:$0xff]  }
  0x18   : > { %10995 = vst [vmem:[#allocation5_spill] sm:$0xff] %v10994_v36  ;;  %vm850_vm7 = vsmask.f32 4368  ;;  %554 = vst [vmem:[#allocation2 + $0x68] sm:$0x1] %v553_v33  ;;  %v500_v43 = vsel %vm8332_vm3, 0, %v499_v39  ;;  %v7245_v50 = vunpack.c.l.bf16 %v7362_v45  ;;  %v704_v54 = vadd.f32 %v8358_v17, %v666_v41 }
  0x19   : > { %v1488_v40 = vor.u32 %v1487_v23, %v8360_v22  ;;  %v555_v44 = vld [vmem:[#allocation2 + $0x74] sm:$0x1]  ;;  %v1291_v46 = vld [vmem:[#allocation2] sm:$0xf]  ;;  %v722_v47 = vmax.f32 %v690_v37, 0.0  ;;  %v723_v48 = vmax.f32 %v691_v38, 0.0  ;;  %v705_v55 = vadd.f32 %v8358_v17, %v667_v42  ;;  %vm8418_vm10 = vmor %vm470_vm1, %vm850_vm7 }
  0x1a   : > { %7608 = vmatpush3.bf16.msra.mxu0 %v8077_v4  ;;  %8044 = vmatpush3.bf16.msra.mxu1 %v8077_v4  ;;  %501 = vst [vmem:[#allocation2 + $0x6c] sm:$0x1] %v500_v43  ;;  %v556_v49 = vsel %vm8343_vm4, 0, %v555_v44  ;;  %v1292_v52 = vsel %vm8378_vm6, 0, %v1291_v46  ;;  %v1295_v53 = vld [vmem:[#allocation2 + $0x8] sm:$0x1]  ;;  %v7246_v56 = vunpack.c.h.bf16 %v7362_v45  ;;  %v668_v60 = vmul.f32 %v7245_v50, %v8352_v15 }
  0x1b   : > { %7609 = vmatprep.subr.bf16.mxu0 %v8078_v8  ;;  %8037 = vmatprep.subr.bf16.mxu1 %v8078_v8  ;;  %vm1468_vm8 = vsmask.f32 3328  ;;  %vm1469_vm9 = vsmask.f32 7440  ;;  %557 = vst [vmem:[#allocation2 + $0x74] sm:$0x1] %v556_v49  ;;  %v7143_v58 = vpack.c.bf16 %v722_v47, %v722_v47  ;;  %v7144_v59 = vpack.c.bf16 %v723_v48, %v723_v48 }
  0x1c   : > { %1293 = vst [vmem:[#allocation2] sm:$0xf] %v1292_v52  ;;  %v1296_v57 = vsel %vm8332_vm3, 0, %v1295_v53  ;;  %v8403_v61 = vld [vmem:[%s8328_s14 + $0x8] sm:$0xff]   ;;  %v8405_v62 = vrot.slane %v1488_v40, 4  ;;  %v736_v63 = vmax.f32 %v704_v54, 0.0  ;;  %v669_v1 = vmul.f32 %v7246_v56, %v8352_v15  ;;  %vm8444_vm11 = vmor %vm1468_vm8, %vm1469_vm9 }
  0x1d   : > { %1297 = vst [vmem:[#allocation2 + $0x8] sm:$0x1] %v1296_v57  ;;  %v737_v0 = vmax.f32 %v705_v55, 0.0  ;;  %v853_v2 = vshrl.u32 %v7143_v58, 16  ;;  %v856_v3 = vshll.u32 %v7143_v58, 16  ;;  %v861_v4 = vshrl.u32 %v7144_v59, 16 }
  0x1e   : > { %7610 = vmatpush3.bf16.msra.mxu0 %v8078_v8  ;;  %8045 = vmatpush3.bf16.msra.mxu1 %v8078_v8  ;;  %v864_v5 = vshll.u32 %v7144_v59, 16  ;;  %v7157_v7 = vpack.c.bf16 %v736_v63, %v736_v63  ;;  %v706_v9 = vadd.f32 %v8358_v17, %v668_v60  ;;  %v478_v11 = vld [vmem:[#allocation2 + $0x18] sm:$0x1]  ;;  %v7217_v12 = vunpack.c.l.bf16 %v8403_v61  ;;  %v8081_v13 = vld [vmem:[%s10974_s5 + $0x40] sm:$0xff]   ;;  %v1175_v21 = vld [vmem:[#allocation2 + $0xc] sm:$0xf] }
  0x1f   : > { %7611 = vmatprep.subr.bf16.mxu0 %v8079_v32  ;;  %8038 = vmatprep.subr.bf16.mxu1 %v8079_v32  ;;  %v7158_v8 = vpack.c.bf16 %v737_v0, %v737_v0  ;;  %v855_v14 = vrot.slane %v853_v2, 7  ;;  %v863_v16 = vrot.slane %v861_v4, 7  ;;  %v707_v18 = vadd.f32 %v8358_v17, %v669_v1  ;;  %v1179_v31 = vld [vmem:[#allocation2 + $0x14] sm:$0x1]  ;;  %v8430_v33 = vld [vmem:[%s10974_s5 + $0xb8] sm:$0xff]   ;;  %s6673_s11 = sshll.u32 %s11211_s23, 1 }
  0x20   : > { %v479_v19 = vsel %vm8332_vm3, 0, %v478_v11  ;;  %v10996_v20 = vmov 0  ;;  %v972_v23 = vshrl.u32 %v7157_v7, 16  ;;  %v975_v24 = vshll.u32 %v7157_v7, 16  ;;  %v1224_v45 = vld [vmem:[#allocation2 + $0x60] sm:$0xf]  ;;  %s465_s17 = scalar_lea.vmem %s10976_s7, %s6673_s11 }
  0x21   : > { %v10997_v20 = vsel %vm8418_vm10, 4294967295, %v10996_v20  ;;  %v980_v25 = vshrl.u32 %v7158_v8, 16  ;;  %v983_v26 = vshll.u32 %v7158_v8, 16  ;;  %480 = vst [vmem:[#allocation2 + $0x18] sm:$0x1] %v479_v19  ;;  %v858_v27 = vor.u32 %v856_v3, %v855_v14 }
  0x22   : > { %7612 = vmatpush3.bf16.msra.mxu0 %v8079_v32  ;;  %8046 = vmatpush3.bf16.msra.mxu1 %v8079_v32  ;;  %10998 = vst [vmem:[#allocation6_spill] sm:$0xff] %v10997_v20  ;;  %v859_v28 = vrot.slane %v855_v14, 4  ;;  %v866_v29 = vor.u32 %v864_v5, %v863_v16  ;;  %v868_v30 = vrot.slane %v863_v16, 4  ;;  %v8425_v32 = vld [vmem:[%s10974_s5 + $0x38] sm:$0xff]   ;;  %v974_v35 = vrot.slane %v972_v23, 7 }
  0x23   : > { %7613 = vmatprep.subr.bf16.mxu0 %v8080_v51  ;;  %8039 = vmatprep.subr.bf16.mxu1 %v8080_v51  ;;  %v1404_v34 = vld [vmem:[#allocation2] sm:$0xf]  ;;  %v982_v37 = vrot.slane %v980_v25, 7  ;;  %v738_v38 = vmax.f32 %v706_v9, 0.0  ;;  %v739_v39 = vmax.f32 %v707_v18, 0.0  ;;  %v1176_v44 = vsel %vm8378_vm6, %v858_v27, %v1175_v21 }
  0x24   : > { %v8432_v40 = vld [vmem:[#allocation2 + $0x8] sm:$0x1]  ;;  %v1472_v41 = vshrl.u32 %v1404_v34, 16  ;;  %v1475_v42 = vshll.u32 %v1404_v34, 16  ;;  %v867_v43 = vsel %vm8418_vm10, %v859_v28, %v866_v29  ;;  %1177 = vst [vmem:[#allocation2 + $0xc] sm:$0xf] %v1176_v44  ;;  %v1180_v47 = vsel %vm8332_vm3, %v868_v30, %v1179_v31 }
  0x25   : > { %v1491_v46 = vshll.u32 %v8432_v40, 16  ;;  %1178 = vst [vmem:[#allocation2 + $0x10] sm:$0xf] %v867_v43  ;;  %v977_v48 = vor.u32 %v975_v24, %v974_v35  ;;  %v1228_v49 = vld [vmem:[#allocation2 + $0x68] sm:$0x1]  ;;  %v978_v55 = vrot.slane %v974_v35, 4  ;;  %v985_v56 = vor.u32 %v983_v26, %v982_v37 }
  0x26   : > { %7614 = vmatpush3.bf16.msra.mxu0 %v8080_v51  ;;  %8047 = vmatpush3.bf16.msra.mxu1 %v8080_v51  ;;  %v534_v50 = vld [vmem:[#allocation2 + $0x20] sm:$0x1]  ;;  %v7218_v51 = vunpack.c.h.bf16 %v8403_v61  ;;  %v1474_v53 = vrot.slane %v1472_v41, 4  ;;  %v1477_v54 = vrot.slane %v1475_v42, 5  ;;  %1181 = vst [vmem:[#allocation2 + $0x14] sm:$0x1] %v1180_v47  ;;  %v7159_v63 = vpack.c.bf16 %v738_v38, %v738_v38 }
  0x27   : > { %7615 = vmatprep.subr.bf16.mxu0 %v8081_v13  ;;  %8040 = vmatprep.subr.bf16.mxu1 %v8081_v13  ;;  %v481_v57 = vld [vmem:[#allocation2 + $0x24] sm:$0x1]  ;;  %v1493_v58 = vrot.slane %v1491_v46, 5  ;;  %v987_v59 = vrot.slane %v982_v37, 4  ;;  %v1225_v60 = vsel %vm8378_vm6, %v977_v48, %v1224_v45  ;;  %v986_v1 = vsel %vm8418_vm10, %v978_v55, %v985_v56  ;;  %v537_v4 = vld [vmem:[#allocation2 + $0x2c] sm:$0x1] }
  0x28   : > { %v1478_v0 = vor.u32 %v1477_v54, %v1474_v53  ;;  %1226 = vst [vmem:[#allocation2 + $0x60] sm:$0xf] %v1225_v60  ;;  %v7160_v2 = vpack.c.bf16 %v739_v39, %v739_v39  ;;  %v535_v3 = vsel %vm8343_vm4, 0, %v534_v50  ;;  %1227 = vst [vmem:[#allocation2 + $0x64] sm:$0xf] %v986_v1  ;;  %v989_v8 = vshrl.u32 %v7159_v63, 16 }
  0x29   : > { %v1494_v5 = vsel %vm8444_vm11, %v8405_v62, %v1493_v58  ;;  %v1229_v7 = vsel %vm8332_vm3, %v987_v59, %v1228_v49  ;;  %536 = vst [vmem:[#allocation2 + $0x20] sm:$0x1] %v535_v3  ;;  %v992_v11 = vshll.u32 %v7159_v63, 16  ;;  %v654_v14 = vmul.f32 %v7217_v12, %v8352_v15  ;;  %v1231_v55 = vld [vmem:[#allocation2 + $0x6c] sm:$0xf] }
  0x2a   : > { %7616 = vmatpush3.bf16.msra.mxu0 %v8081_v13  ;;  %8048 = vmatpush3.bf16.msra.mxu1 %v8081_v13  ;;  %v1479_v9 = vrot.slane %v1478_v0, 4  ;;  %1230 = vst [vmem:[#allocation2 + $0x68] sm:$0x1] %v1229_v7  ;;  %v997_v13 = vshrl.u32 %v7160_v2, 16  ;;  %v2506_v16 = vrot.slane %v8432_v40, 5  ;;  %v991_v18 = vrot.slane %v989_v8, 7 }
  0x2b   : > { %7649 = vmatprep.subr.bf16.mxu1 %v8425_v32  ;;  %7697 = vmatprep.subr.bf16.mxu0 %v8430_v33  ;;  %v482_v62 = vsel %vm8332_vm3, 0, %v481_v57  ;;  %v538_v19 = vsel %vm8343_vm4, 0, %v537_v4  ;;  %v1406_v23 = vld [vmem:[#allocation2 + $0xc] sm:$0xf]  ;;  %v1000_v26 = vshll.u32 %v7160_v2, 16  ;;  %v655_v61 = vmul.f32 %v7218_v51, %v8352_v15 }
  0x2c   : > { %v1484_v21 = vsel %vm8444_vm11, %v1479_v9, %v8360_v22  ;;  %v1407_v24 = vld [vmem:[#allocation2 + $0x10] sm:$0xf]  ;;  %v999_v25 = vrot.slane %v997_v13, 7  ;;  %483 = vst [vmem:[#allocation2 + $0x24] sm:$0x1] %v482_v62  ;;  %v1496_v28 = vshrl.u32 %v1406_v23, 16  ;;  %v994_v35 = vor.u32 %v992_v11, %v991_v18 }
  0x2d   : > { %539 = vst [vmem:[#allocation2 + $0x2c] sm:$0x1] %v538_v19  ;;  %v6728_v12 = vcombine.low %v1484_v21, %v1494_v5  ;;  %v1453_v27 = vld [vmem:[#allocation2 + $0x14] sm:$0x1]  ;;  %v1499_v29 = vshll.u32 %v1406_v23, 16  ;;  %v1505_v30 = vshll.u32 %v1407_v24, 16  ;;  %v692_v37 = vadd.f32 %v8358_v17, %v654_v14 }
  0x2e   : > { %v1509_v31 = vshrl.u32 %v1407_v24, 16  ;;  %v1515_v34 = vshll.u32 %v1453_v27, 16  ;;  %v7356_v22 = vld [vmem:[%s8328_s14 + $0x10] sm:$0xff]   ;;  %v1498_v38 = vrot.slane %v1496_v28, 4  ;;  %v995_v43 = vrot.slane %v991_v18, 4 }
  0x2f   : > { %7617 = vmatprep.mubr.bf16.mxu0 %v6728_v12  ;;  %v1501_v39 = vrot.slane %v1499_v29, 5  ;;  %v1507_v41 = vrot.slane %v1505_v30, 5  ;;  %v1420_v42 = vld [vmem:[#allocation2 + $0x60] sm:$0xf]  ;;  %v1421_v46 = vld [vmem:[#allocation2 + $0x64] sm:$0xf]  ;;  %v1002_v54 = vor.u32 %v1000_v26, %v999_v25  ;;  %v7221_v1 = vunpack.c.l.bf16 %v7356_v22 }
  0x30   : > { %v1511_v44 = vrot.slane %v1509_v31, 4  ;;  %v1517_v45 = vrot.slane %v1515_v34, 5  ;;  %v1664_v47 = vshrl.u32 %v1420_v42, 16  ;;  %v1667_v48 = vshll.u32 %v1420_v42, 16  ;;  %v1235_v7 = vld [vmem:[#allocation2 + $0x74] sm:$0x1] }
  0x31   : > { %v1502_v49 = vor.u32 %v1501_v39, %v1498_v38  ;;  %v1460_v50 = vld [vmem:[#allocation2 + $0x68] sm:$0x1]  ;;  %v1673_v51 = vshll.u32 %v1421_v46, 16  ;;  %v1677_v53 = vshrl.u32 %v1421_v46, 16  ;;  %v1003_v5 = vsel %vm8418_vm10, %v995_v43, %v1002_v54  ;;  %v502_v21 = vld [vmem:[#allocation2 + $0x78] sm:$0x1] }
  0x32   : > { %v1512_v56 = vor.u32 %v1511_v44, %v1507_v41  ;;  %v1666_v57 = vrot.slane %v1664_v47, 4  ;;  %v1669_v58 = vrot.slane %v1667_v48, 5  ;;  %v1683_v59 = vshll.u32 %v1460_v50, 16  ;;  %1234 = vst [vmem:[#allocation2 + $0x70] sm:$0xf] %v1003_v5  ;;  %v8085_v12 = vld [vmem:[%s10974_s5 + $0xb0] sm:$0xff]  }
  0x33   : > { %v1503_v60 = vrot.slane %v1502_v49, 4  ;;  %v1675_v63 = vrot.slane %v1673_v51, 5  ;;  %v1679_v0 = vrot.slane %v1677_v53, 4  ;;  %v1004_v11 = vrot.slane %v999_v25, 4  ;;  %v558_v23 = vld [vmem:[#allocation2 + $0x80] sm:$0x1] }
  0x34   : > { %v1513_v2 = vrot.slane %v1512_v56, 4  ;;  %v1670_v3 = vor.u32 %v1669_v58, %v1666_v57  ;;  %v1685_v4 = vrot.slane %v1683_v59, 5  ;;  %v1232_v13 = vsel %vm8378_vm6, %v994_v35, %v1231_v55  ;;  %v8493_v31 = vld [vmem:[%s8328_s14 + $0x48] sm:$0xff]   ;;  %v505_v38 = vld [vmem:[#allocation2 + $0x84] sm:$0x1] }
  0x35   : > { %v1508_v8 = vsel %vm8444_vm11, %v1503_v60, %v1507_v41  ;;  %v1680_v9 = vor.u32 %v1679_v0, %v1675_v63  ;;  %1233 = vst [vmem:[#allocation2 + $0x6c] sm:$0xf] %v1232_v13  ;;  %v693_v62 = vadd.f32 %v8358_v17, %v655_v61  ;;  %v724_v19 = vmax.f32 %v692_v37, 0.0  ;;  %v1182_v44 = vld [vmem:[#allocation2 + $0x18] sm:$0xf]  ;;  %v8087_v49 = vld [vmem:[%s10974_s5 + $0xa8] sm:$0xff]  }
  0x36   : > { %v1518_v14 = vsel %vm8444_vm11, %v1513_v2, %v1517_v45  ;;  %v1671_v18 = vrot.slane %v1670_v3, 4  ;;  %v1236_v25 = vsel %vm8332_vm3, %v1004_v11, %v1235_v7  ;;  %v7222_v27 = vunpack.c.h.bf16 %v7356_v22 }
  0x37   : > { %v6729_v24 = vcombine.low %v1508_v8, %v1518_v14  ;;  %v1681_v26 = vrot.slane %v1680_v9, 4  ;;  %1237 = vst [vmem:[#allocation2 + $0x74] sm:$0x1] %v1236_v25  ;;  %v725_v29 = vmax.f32 %v693_v62, 0.0  ;;  %v7145_v30 = vpack.c.bf16 %v724_v19, %v724_v19  ;;  %v8089_v8 = vld [vmem:[%s10974_s5 + $0xa0] sm:$0xff]  }
  0x38   : > { %v1676_v28 = vsel %vm8444_vm11, %v1671_v18, %v1675_v63  ;;  %v656_v61 = vmul.f32 %v7221_v1, %v8352_v15  ;;  %v657_v35 = vmul.f32 %v7222_v27, %v8352_v15  ;;  %v503_v37 = vsel %vm8332_vm3, 0, %v502_v21  ;;  %v1186_v18 = vld [vmem:[#allocation2 + $0x20] sm:$0x1]  ;;  %v561_v27 = vld [vmem:[#allocation2 + $0x8c] sm:$0x1] }
  0x39   : > { %7618 = vmatmul.mubr.bf16.vlgmr.msra.gmra.mxu0 %v6729_v24  ;;  %v1686_v34 = vsel %vm8444_vm11, %v1681_v26, %v1685_v4  ;;  %v559_v22 = vsel %vm8343_vm4, 0, %v558_v23  ;;  %v7146_v41 = vpack.c.bf16 %v725_v29, %v725_v29  ;;  %v870_v42 = vshrl.u32 %v7145_v30, 16  ;;  %504 = vst [vmem:[#allocation2 + $0x78] sm:$0x1] %v503_v37 }
  0x3a   : > { %v6736_v39 = vcombine.low %v1676_v28, %v1686_v34  ;;  %7698 = vmatpush3.bf16.msra.mxu0 %v8430_v33  ;;  %v873_v43 = vshll.u32 %v7145_v30, 16  ;;  %560 = vst [vmem:[#allocation2 + $0x80] sm:$0x1] %v559_v22  ;;  %v694_v45 = vadd.f32 %v8358_v17, %v656_v61  ;;  %v695_v46 = vadd.f32 %v8358_v17, %v657_v35  ;;  %v1423_v33 = vld [vmem:[#allocation2 + $0x70] sm:$0xf] }
  0x3b   : > { %7699 = vmatprep.subr.bf16.mxu0 %v8085_v12  ;;  %v7249_v47 = vunpack.c.l.bf16 %v8493_v31  ;;  %v7250_v48 = vunpack.c.h.bf16 %v8493_v31  ;;  %v872_v50 = vrot.slane %v870_v42, 7  ;;  %v878_v51 = vshrl.u32 %v7146_v41, 16  ;;  %v8091_v31 = vld [vmem:[%s10974_s5 + $0x98] sm:$0xff]   ;;  %v1189_v42 = vld [vmem:[#allocation2 + $0x24] sm:$0xf] }
  0x3c   : > { %7633 = vmatprep.mubr.bf16.mxu1 %v6736_v39  ;;  %v881_v53 = vshll.u32 %v7146_v41, 16  ;;  %v506_v54 = vsel %vm8332_vm3, 0, %v505_v38  ;;  %v1422_v55 = vld [vmem:[#allocation2 + $0x6c] sm:$0xf]  ;;  %v1697_v56 = vshll.u32 %v1423_v33, 16  ;;  %v1701_v57 = vshrl.u32 %v1423_v33, 16 }
  0x3d   : > { %v726_v58 = vmax.f32 %v694_v45, 0.0  ;;  %v727_v59 = vmax.f32 %v695_v46, 0.0  ;;  %507 = vst [vmem:[#allocation2 + $0x84] sm:$0x1] %v506_v54  ;;  %v1688_v60 = vshrl.u32 %v1422_v55, 16  ;;  %v1691_v63 = vshll.u32 %v1422_v55, 16 }
  0x3e   : > { %7700 = vmatpush3.bf16.msra.mxu0 %v8085_v12  ;;  %v875_v0 = vor.u32 %v873_v43, %v872_v50  ;;  %v876_v1 = vrot.slane %v872_v50, 4  ;;  %v1461_v2 = vld [vmem:[#allocation2 + $0x74] sm:$0x1]  ;;  %v1699_v3 = vrot.slane %v1697_v56, 5  ;;  %v1703_v4 = vrot.slane %v1701_v57, 4 }
  0x3f   : > { %v880_v5 = vrot.slane %v878_v51, 7  ;;  %v7147_v7 = vpack.c.bf16 %v726_v58, %v726_v58  ;;  %7701 = vmatprep.subr.bf16.mxu0 %v8087_v49  ;;  %v1690_v9 = vrot.slane %v1688_v60, 4  ;;  %v1693_v11 = vrot.slane %v1691_v63, 5  ;;  %v7364_v38 = vld [vmem:[%s8328_s14 + $0x50] sm:$0xff]   ;;  %v1193_v43 = vld [vmem:[#allocation2 + $0x2c] sm:$0x1] }
  0x40   : > { %v1707_v13 = vshll.u32 %v1461_v2, 16  ;;  %v1183_v14 = vsel %vm8378_vm6, %v875_v0, %v1182_v44  ;;  %v1704_v62 = vor.u32 %v1703_v4, %v1699_v3  ;;  %v7148_v23 = vpack.c.bf16 %v727_v59, %v727_v59  ;;  %v8093_v55 = vld [vmem:[%s10974_s5 + $0x90] sm:$0xff]   ;;  %v8544_v63 = vld [vmem:[%s8328_s14 + $0x18] sm:$0xff]   ;;  %v8086_v4 = vld [vmem:[%s10974_s5 + $0x28] sm:$0xff]  }
  0x41   : > { %v883_v19 = vor.u32 %v881_v53, %v880_v5  ;;  %v885_v21 = vrot.slane %v880_v5, 4  ;;  %1184 = vst [vmem:[#allocation2 + $0x18] sm:$0xf] %v1183_v14  ;;  %v1694_v24 = vor.u32 %v1693_v11, %v1690_v9  ;;  %v887_v25 = vshrl.u32 %v7147_v7, 16  ;;  %v8095_v11 = vld [vmem:[%s10974_s5 + $0x88] sm:$0xff]  }
  0x42   : > { %v1709_v26 = vrot.slane %v1707_v13, 5  ;;  %v890_v12 = vshll.u32 %v7147_v7, 16  ;;  %7702 = vmatpush3.bf16.msra.mxu0 %v8087_v49  ;;  %v1705_v28 = vrot.slane %v1704_v62, 4  ;;  %v895_v61 = vshrl.u32 %v7148_v23, 16  ;;  %v8084_v49 = vld [vmem:[%s10974_s5 + $0x30] sm:$0xff]  }
  0x43   : > { %v884_v29 = vsel %vm8418_vm10, %v876_v1, %v883_v19  ;;  %v1187_v30 = vsel %vm8332_vm3, %v885_v21, %v1186_v18  ;;  %7703 = vmatprep.subr.bf16.mxu0 %v8089_v8  ;;  %v1695_v34 = vrot.slane %v1694_v24, 4  ;;  %v889_v35 = vrot.slane %v887_v25, 7 }
  0x44   : > { %1185 = vst [vmem:[#allocation2 + $0x1c] sm:$0xf] %v884_v29  ;;  %1188 = vst [vmem:[#allocation2 + $0x20] sm:$0x1] %v1187_v30  ;;  %v898_v37 = vshll.u32 %v7148_v23, 16  ;;  %v670_v22 = vmul.f32 %v7249_v47, %v8352_v15  ;;  %v1710_v39 = vsel %vm8444_vm11, %v1705_v28, %v1709_v26  ;;  %v897_v41 = vrot.slane %v895_v61, 7 }
  0x45   : > { %v671_v44 = vmul.f32 %v7250_v48, %v8352_v15  ;;  %v562_v45 = vsel %vm8343_vm4, 0, %v561_v27  ;;  %v1700_v46 = vsel %vm8444_vm11, %v1695_v34, %v1699_v3  ;;  %v892_v47 = vor.u32 %v890_v12, %v889_v35  ;;  %v484_v29 = vld [vmem:[#allocation2 + $0x30] sm:$0x1] }
  0x46   : > { %v893_v33 = vrot.slane %v889_v35, 4  ;;  %v708_v50 = vadd.f32 %v8358_v17, %v670_v22  ;;  %563 = vst [vmem:[#allocation2 + $0x8c] sm:$0x1] %v562_v45  ;;  %7704 = vmatpush3.bf16.msra.mxu0 %v8089_v8  ;;  %v6737_v51 = vcombine.low %v1700_v46, %v1710_v39  ;;  %v900_v53 = vor.u32 %v898_v37, %v897_v41  ;;  %v8088_v35 = vld [vmem:[%s10974_s5 + $0x20] sm:$0xff]  }
  0x47   : > { %v902_v48 = vrot.slane %v897_v41, 4  ;;  %v709_v54 = vadd.f32 %v8358_v17, %v671_v44  ;;  %7705 = vmatprep.subr.bf16.mxu0 %v8091_v31  ;;  %v1190_v57 = vsel %vm8378_vm6, %v892_v47, %v1189_v42  ;;  %v7253_v59 = vunpack.c.l.bf16 %v7364_v38  ;;  %v8097_v41 = vld [vmem:[%s10974_s5 + $0x80] sm:$0xff]  }
  0x48   : > { %v1408_v56 = vld [vmem:[#allocation2 + $0x18] sm:$0xf]  ;;  %v740_v58 = vmax.f32 %v708_v50, 0.0  ;;  %v7254_v60 = vunpack.c.h.bf16 %v7364_v38  ;;  %7634 = vmatmul.mubr.bf16.vlgmr.msra.gmra.mxu1 %v6737_v51  ;;  %v901_v2 = vsel %vm8418_vm10, %v893_v33, %v900_v53  ;;  %1191 = vst [vmem:[#allocation2 + $0x24] sm:$0xf] %v1190_v57  ;;  %v7226_v19 = vunpack.c.h.bf16 %v8544_v63 }
  0x49   : > { %v1520_v0 = vshrl.u32 %v1408_v56, 16  ;;  %v1523_v1 = vshll.u32 %v1408_v56, 16  ;;  %v1194_v3 = vsel %vm8332_vm3, %v902_v48, %v1193_v43  ;;  %7650 = vmatpush3.bf16.msra.mxu1 %v8425_v32  ;;  %1192 = vst [vmem:[#allocation2 + $0x28] sm:$0xf] %v901_v2  ;;  %v741_v5 = vmax.f32 %v709_v54, 0.0 }
  0x4a   : > { %1195 = vst [vmem:[#allocation2 + $0x2c] sm:$0x1] %v1194_v3  ;;  %v7161_v7 = vpack.c.bf16 %v740_v58, %v740_v58  ;;  %v672_v8 = vmul.f32 %v7253_v59, %v8352_v15  ;;  %v673_v9 = vmul.f32 %v7254_v60, %v8352_v15  ;;  %7706 = vmatpush3.bf16.msra.mxu0 %v8091_v31  ;;  %v7225_v32 = vunpack.c.l.bf16 %v8544_v63  ;;  %v1238_v48 = vld [vmem:[#allocation2 + $0x78] sm:$0xf]  ;;  %v1242_v58 = vld [vmem:[#allocation2 + $0x80] sm:$0x1] }
  0x4b   : > { %7651 = vmatprep.subr.bf16.mxu1 %v8084_v49  ;;  %v1409_v13 = vld [vmem:[#allocation2 + $0x1c] sm:$0xf]  ;;  %v1454_v14 = vld [vmem:[#allocation2 + $0x20] sm:$0x1]  ;;  %v1522_v18 = vrot.slane %v1520_v0, 4  ;;  %v1525_v62 = vrot.slane %v1523_v1, 5  ;;  %7707 = vmatprep.subr.bf16.mxu0 %v8093_v55  ;;  %v7162_v26 = vpack.c.bf16 %v741_v5, %v741_v5 }
  0x4c   : > { %v1529_v21 = vshll.u32 %v1409_v13, 16  ;;  %v1533_v23 = vshrl.u32 %v1409_v13, 16  ;;  %v1539_v24 = vshll.u32 %v1454_v14, 16  ;;  %v1006_v12 = vshrl.u32 %v7161_v7, 16  ;;  %v540_v59 = vld [vmem:[#allocation2 + $0x38] sm:$0x1] }
  0x4d   : > { %v1526_v25 = vor.u32 %v1525_v62, %v1522_v18  ;;  %v1009_v27 = vshll.u32 %v7161_v7, 16  ;;  %v710_v28 = vadd.f32 %v8358_v17, %v672_v8  ;;  %7652 = vmatpush3.bf16.msra.mxu1 %v8084_v49  ;;  %v1014_v34 = vshrl.u32 %v7162_v26, 16  ;;  %v8090_v3 = vld [vmem:[%s10974_s5 + $0x18] sm:$0xff]  }
  0x4e   : > { %v1531_v30 = vrot.slane %v1529_v21, 5  ;;  %v1535_v61 = vrot.slane %v1533_v23, 4  ;;  %v1541_v31 = vrot.slane %v1539_v24, 5  ;;  %7708 = vmatpush3.bf16.msra.mxu0 %v8093_v55  ;;  %v1008_v22 = vrot.slane %v1006_v12, 7  ;;  %7653 = vmatprep.subr.bf16.mxu1 %v8086_v4  ;;  %v487_v62 = vld [vmem:[#allocation2 + $0x3c] sm:$0x1] }
  0x4f   : > { %v1527_v37 = vrot.slane %v1526_v25, 4  ;;  %v1017_v38 = vshll.u32 %v7162_v26, 16  ;;  %v711_v39 = vadd.f32 %v8358_v17, %v673_v9  ;;  %7709 = vmatprep.subr.bf16.mxu0 %v8095_v11  ;;  %v1410_v43 = vld [vmem:[#allocation2 + $0x24] sm:$0xf]  ;;  %v1016_v44 = vrot.slane %v1014_v34, 7  ;;  %v8092_v12 = vld [vmem:[%s10974_s5 + $0x10] sm:$0xff]  }
  0x50   : > { %v1536_v42 = vor.u32 %v1535_v61, %v1531_v30  ;;  %v742_v45 = vmax.f32 %v710_v28, 0.0  ;;  %v485_v46 = vsel %vm8332_vm3, 0, %v484_v29  ;;  %v1411_v47 = vld [vmem:[#allocation2 + $0x28] sm:$0xf]  ;;  %v1544_v50 = vshrl.u32 %v1410_v43, 16 }
  0x51   : > { %v1532_v49 = vsel %vm8444_vm11, %v1527_v37, %v1531_v30  ;;  %v1455_v33 = vld [vmem:[#allocation2 + $0x2c] sm:$0x1]  ;;  %v1547_v51 = vshll.u32 %v1410_v43, 16  ;;  %v1011_v53 = vor.u32 %v1009_v27, %v1008_v22  ;;  %486 = vst [vmem:[#allocation2 + $0x30] sm:$0x1] %v485_v46  ;;  %v1553_v55 = vshll.u32 %v1411_v47, 16  ;;  %7654 = vmatpush3.bf16.msra.mxu1 %v8086_v4 }
  0x52   : > { %v1537_v54 = vrot.slane %v1536_v42, 4  ;;  %v1557_v56 = vshrl.u32 %v1411_v47, 16  ;;  %v1563_v57 = vshll.u32 %v1455_v33, 16  ;;  %7710 = vmatpush3.bf16.msra.mxu0 %v8095_v11  ;;  %v1546_v60 = vrot.slane %v1544_v50, 4  ;;  %7655 = vmatprep.subr.bf16.mxu1 %v8088_v35  ;;  %v8101_v4 = vld [vmem:[%s10974_s5 + $0x138] sm:$0xff]  }
  0x53   : > { %v1549_v0 = vrot.slane %v1547_v51, 5  ;;  %v1012_v1 = vrot.slane %v1008_v22, 4  ;;  %v1019_v2 = vor.u32 %v1017_v38, %v1016_v44  ;;  %7711 = vmatprep.subr.bf16.mxu0 %v8097_v41  ;;  %v1555_v7 = vrot.slane %v1553_v55, 5  ;;  %v543_v25 = vld [vmem:[#allocation2 + $0x44] sm:$0x1] }
  0x54   : > { %v1542_v5 = vsel %vm8444_vm11, %v1537_v54, %v1541_v31  ;;  %v1559_v8 = vrot.slane %v1557_v56, 4  ;;  %v1565_v9 = vrot.slane %v1563_v57, 5  ;;  %v1021_v18 = vrot.slane %v1016_v44, 4  ;;  %v508_v37 = vld [vmem:[#allocation2 + $0x90] sm:$0x1] }
  0x55   : > { %v6730_v11 = vcombine.low %v1532_v49, %v1542_v5  ;;  %v1550_v13 = vor.u32 %v1549_v0, %v1546_v60  ;;  %v1020_v14 = vsel %vm8418_vm10, %v1012_v1, %v1019_v2  ;;  %v1239_v23 = vsel %vm8378_vm6, %v1011_v53, %v1238_v48  ;;  %7656 = vmatpush3.bf16.msra.mxu1 %v8088_v35  ;;  %v1245_v46 = vld [vmem:[#allocation2 + $0x84] sm:$0xf]  ;;  %v1249_v53 = vld [vmem:[#allocation2 + $0x8c] sm:$0x1] }
  0x56   : > { %v1560_v21 = vor.u32 %v1559_v8, %v1555_v7  ;;  %1241 = vst [vmem:[#allocation2 + $0x7c] sm:$0xf] %v1020_v14  ;;  %v743_v24 = vmax.f32 %v711_v39, 0.0  ;;  %v7163_v26 = vpack.c.bf16 %v742_v45, %v742_v45  ;;  %7712 = vmatpush3.bf16.msra.mxu0 %v8097_v41  ;;  %1240 = vst [vmem:[#allocation2 + $0x78] sm:$0xf] %v1239_v23  ;;  %v541_v29 = vsel %vm8343_vm4, 0, %v540_v59 }
  0x57   : > { %7621 = vmatprep.mubr.bf16.mxu0 %v6730_v11  ;;  %v1551_v27 = vrot.slane %v1550_v13, 4  ;;  %v1243_v28 = vsel %vm8332_vm3, %v1021_v18, %v1242_v58  ;;  %v658_v30 = vmul.f32 %v7225_v32, %v8352_v15  ;;  %7657 = vmatprep.subr.bf16.mxu1 %v8090_v3  ;;  %542 = vst [vmem:[#allocation2 + $0x38] sm:$0x1] %v541_v29  ;;  %v488_v32 = vsel %vm8332_vm3, 0, %v487_v62  ;;  %v8604_v41 = vld [vmem:[%s8328_s14 + $0x20] sm:$0xff]  }
  0x58   : > { %v1561_v61 = vrot.slane %v1560_v21, 4  ;;  %1244 = vst [vmem:[#allocation2 + $0x80] sm:$0x1] %v1243_v28  ;;  %v7164_v31 = vpack.c.bf16 %v743_v24, %v743_v24  ;;  %v1023_v34 = vshrl.u32 %v7163_v26, 16  ;;  %v1026_v35 = vshll.u32 %v7163_v26, 16  ;;  %7793 = vmatprep.subr.bf16.mxu0 %v8101_v4  ;;  %v8099_v28 = vld [vmem:[%s10974_s5 + $0xf8] sm:$0xff]  }
  0x59   : > { %v1556_v22 = vsel %vm8444_vm11, %v1551_v27, %v1555_v7  ;;  %v659_v38 = vmul.f32 %v7226_v19, %v8352_v15  ;;  %v696_v39 = vadd.f32 %v8358_v17, %v658_v30  ;;  %489 = vst [vmem:[#allocation2 + $0x3c] sm:$0x1] %v488_v32  ;;  %7658 = vmatpush3.bf16.msra.mxu1 %v8090_v3  ;;  %v8094_v15 = vld [vmem:[%s10974_s5 + $0x8] sm:$0xff]   ;;  %v544_v47 = vsel %vm8343_vm4, 0, %v543_v25  ;;  %v564_v24 = vld [vmem:[#allocation2 + $0x98] sm:$0x1] }
  0x5a   : > { %v1566_v42 = vsel %vm8444_vm11, %v1561_v61, %v1565_v9  ;;  %v1025_v43 = vrot.slane %v1023_v34, 7  ;;  %v1031_v44 = vshrl.u32 %v7164_v31, 16  ;;  %v1034_v45 = vshll.u32 %v7164_v31, 16  ;;  %7659 = vmatprep.subr.bf16.mxu1 %v8092_v12  ;;  %545 = vst [vmem:[#allocation2 + $0x44] sm:$0x1] %v544_v47  ;;  %v8096_v9 = vld [vmem:[%s10974_s5] sm:$0xff]  }
  0x5b   : > { %v6731_v63 = vcombine.low %v1556_v22, %v1566_v42  ;;  %v697_v19 = vadd.f32 %v8358_v17, %v659_v38  ;;  %v728_v49 = vmax.f32 %v696_v39, 0.0  ;;  %v7229_v48 = vunpack.c.l.bf16 %v8604_v41  ;;  %v1196_v31 = vld [vmem:[#allocation2 + $0x30] sm:$0xf]  ;;  %v8633_v34 = vld [vmem:[%s10972_s3] ss:$0 sm:$0xff]  ;;  %v7365_v32 = vld [vmem:[%s8328_s14 + $0x58] sm:$0xff]  }
  0x5c   : > { %v1028_v33 = vor.u32 %v1026_v35, %v1025_v43  ;;  %v1029_v50 = vrot.slane %v1025_v43, 4  ;;  %v1033_v51 = vrot.slane %v1031_v44, 7  ;;  %v7230_v57 = vunpack.c.h.bf16 %v8604_v41  ;;  %v3327_v20 = vld [vmem:[#allocation2 + $0x24] sm:$0xf] }
  0x5d   : > { %7622 = vmatmul.mubr.bf16.gmra.mxu0 %v6731_v63  ;;  %v1425_v54 = vld [vmem:[#allocation2 + $0x7c] sm:$0xf]  ;;  %v729_v55 = vmax.f32 %v697_v19, 0.0  ;;  %v7149_v56 = vpack.c.bf16 %v728_v49, %v728_v49  ;;  %v509_v17 = vsel %vm8332_vm3, 0, %v508_v37  ;;  %v1424_v58 = vld [vmem:[#allocation2 + $0x78] sm:$0xf]  ;;  %7660 = vmatpush3.bf16.msra.mxu1 %v8092_v12  ;;  %v660_v35 = vmul.f32 %v8633_v34, %v7229_v48 }
  0x5e   : > { %v1721_v59 = vshll.u32 %v1425_v54, 16  ;;  %v1725_v60 = vshrl.u32 %v1425_v54, 16  ;;  %v1036_v0 = vor.u32 %v1034_v45, %v1033_v51  ;;  %v1038_v1 = vrot.slane %v1033_v51, 4  ;;  %510 = vst [vmem:[#allocation2 + $0x90] sm:$0x1] %v509_v17  ;;  %7661 = vmatprep.subr.bf16.mxu1 %v8094_v15 }
  0x5f   : > { %v1462_v2 = vld [vmem:[#allocation2 + $0x80] sm:$0x1]  ;;  %v1712_v3 = vshrl.u32 %v1424_v58, 16  ;;  %v1715_v5 = vshll.u32 %v1424_v58, 16  ;;  %v1246_v7 = vsel %vm8378_vm6, %v1028_v33, %v1245_v46  ;;  %v7150_v8 = vpack.c.bf16 %v729_v55, %v729_v55  ;;  %v1200_v44 = vld [vmem:[#allocation2 + $0x38] sm:$0x1] }
  0x60   : > { %v1723_v4 = vrot.slane %v1721_v59, 5  ;;  %v1727_v11 = vrot.slane %v1725_v60, 4  ;;  %v1731_v13 = vshll.u32 %v1462_v2, 16  ;;  %v1037_v14 = vsel %vm8418_vm10, %v1029_v50, %v1036_v0  ;;  %1247 = vst [vmem:[#allocation2 + $0x84] sm:$0xf] %v1246_v7 }
  0x61   : > { %v1714_v18 = vrot.slane %v1712_v3, 4  ;;  %v1717_v62 = vrot.slane %v1715_v5, 5  ;;  %1248 = vst [vmem:[#allocation2 + $0x88] sm:$0xf] %v1037_v14  ;;  %v1250_v21 = vsel %vm8332_vm3, %v1038_v1, %v1249_v53  ;;  %v904_v23 = vshrl.u32 %v7149_v56, 16  ;;  %7662 = vmatpush3.bf16.msra.mxu1 %v8094_v15 }
  0x62   : > { %v1728_v26 = vor.u32 %v1727_v11, %v1723_v4  ;;  %v1733_v25 = vrot.slane %v1731_v13, 5  ;;  %1251 = vst [vmem:[#allocation2 + $0x8c] sm:$0x1] %v1250_v21  ;;  %v907_v12 = vshll.u32 %v7149_v56, 16  ;;  %v912_v27 = vshrl.u32 %v7150_v8, 16  ;;  %7663 = vmatprep.subr.bf16.mxu1 %v8096_v9 }
  0x63   : > { %v1718_v29 = vor.u32 %v1717_v62, %v1714_v18  ;;  %v906_v30 = vrot.slane %v904_v23, 7  ;;  %v915_v61 = vshll.u32 %v7150_v8, 16  ;;  %v661_v38 = vmul.f32 %v8633_v34, %v7230_v57  ;;  %v8643_v45 = vld [vmem:[%s10973_s4] ss:$0 sm:$0xff]  ;;  %v511_v11 = vld [vmem:[#allocation2 + $0x9c] sm:$0x1] }
  0x64   : > { %v1729_v37 = vrot.slane %v1728_v26, 4  ;;  %v914_v22 = vrot.slane %v912_v27, 7  ;;  %v565_v39 = vsel %vm8343_vm4, 0, %v564_v24  ;;  %v698_v46 = vadd.f32 %v8643_v45, %v660_v35  ;;  %v567_v21 = vld [vmem:[#allocation2 + $0xa4] sm:$0x1] }
  0x65   : > { %v1719_v41 = vrot.slane %v1718_v29, 4  ;;  %v909_v42 = vor.u32 %v907_v12, %v906_v30  ;;  %v910_v43 = vrot.slane %v906_v30, 4  ;;  %566 = vst [vmem:[#allocation2 + $0x98] sm:$0x1] %v565_v39  ;;  %v699_v49 = vadd.f32 %v8643_v45, %v661_v38  ;;  %7664 = vmatpush3.bf16.msra.mxu1 %v8096_v9 }
  0x66   : > { %v1734_v15 = vsel %vm8444_vm11, %v1729_v37, %v1733_v25  ;;  %v917_v63 = vor.u32 %v915_v61, %v914_v22  ;;  %v919_v19 = vrot.slane %v914_v22, 4  ;;  %v730_v51 = vmax.f32 %v698_v46, 0.0  ;;  %7745 = vmatprep.subr.bf16.mxu1 %v8099_v28 }
  0x67   : > { %v1724_v47 = vsel %vm8444_vm11, %v1719_v41, %v1723_v4  ;;  %v1426_v33 = vld [vmem:[#allocation2 + $0x84] sm:$0xf]  ;;  %v1197_v50 = vsel %vm8378_vm6, %v909_v42, %v1196_v31  ;;  %v7257_v53 = vunpack.c.l.bf16 %v7365_v32  ;;  %v731_v0 = vmax.f32 %v699_v49, 0.0  ;;  %v1203_v42 = vld [vmem:[#allocation2 + $0x3c] sm:$0xf] }
  0x68   : > { %v6738_v48 = vcombine.low %v1724_v47, %v1734_v15  ;;  %v1427_v54 = vld [vmem:[#allocation2 + $0x88] sm:$0xf]  ;;  %v1736_v55 = vshrl.u32 %v1426_v33, 16  ;;  %v1739_v56 = vshll.u32 %v1426_v33, 16  ;;  %v918_v57 = vsel %vm8418_vm10, %v910_v43, %v917_v63  ;;  %1198 = vst [vmem:[#allocation2 + $0x30] sm:$0xf] %v1197_v50 }
  0x69   : > { %v1463_v17 = vld [vmem:[#allocation2 + $0x8c] sm:$0x1]  ;;  %v1745_v58 = vshll.u32 %v1427_v54, 16  ;;  %v1749_v59 = vshrl.u32 %v1427_v54, 16  ;;  %1199 = vst [vmem:[#allocation2 + $0x34] sm:$0xf] %v918_v57  ;;  %v1201_v60 = vsel %vm8332_vm3, %v919_v19, %v1200_v44  ;;  %v7151_v5 = vpack.c.bf16 %v730_v51, %v730_v51 }
  0x6a   : > { %7637 = vmatprep.mubr.bf16.mxu1 %v6738_v48  ;;  %v1738_v1 = vrot.slane %v1736_v55, 4  ;;  %v1741_v2 = vrot.slane %v1739_v56, 5  ;;  %v1755_v3 = vshll.u32 %v1463_v17, 16  ;;  %1202 = vst [vmem:[#allocation2 + $0x38] sm:$0x1] %v1201_v60  ;;  %v7152_v9 = vpack.c.bf16 %v731_v0, %v731_v0  ;;  %v7366_v56 = vld [vmem:[%s8328_s14 + $0x60] sm:$0xff]  }
  0x6b   : > { %v1747_v7 = vrot.slane %v1745_v58, 5  ;;  %v1751_v8 = vrot.slane %v1749_v59, 4  ;;  %v7258_v4 = vunpack.c.h.bf16 %v7365_v32  ;;  %v921_v18 = vshrl.u32 %v7151_v5, 16  ;;  %v1207_v50 = vld [vmem:[#allocation2 + $0x44] sm:$0x1] }
  0x6c   : > { %v1742_v13 = vor.u32 %v1741_v2, %v1738_v1  ;;  %v1757_v14 = vrot.slane %v1755_v3, 5  ;;  %v924_v62 = vshll.u32 %v7151_v5, 16  ;;  %v929_v24 = vshrl.u32 %v7152_v9, 16  ;;  %v490_v51 = vld [vmem:[#allocation2 + $0x48] sm:$0x1] }
  0x6d   : > { %v1752_v23 = vor.u32 %v1751_v8, %v1747_v7  ;;  %v932_v26 = vshll.u32 %v7152_v9, 16  ;;  %v674_v25 = vmul.f32 %v8633_v34, %v7257_v53  ;;  %v923_v27 = vrot.slane %v921_v18, 7  ;;  %v546_v57 = vld [vmem:[#allocation2 + $0x50] sm:$0x1] }
  0x6e   : > { %v1743_v12 = vrot.slane %v1742_v13, 4  ;;  %v675_v28 = vmul.f32 %v8633_v34, %v7258_v4  ;;  %v512_v29 = vsel %vm8332_vm3, 0, %v511_v11  ;;  %v931_v31 = vrot.slane %v929_v24, 7  ;;  %v7359_v4 = vld [vmem:[%s8328_s14 + $0x28] sm:$0xff]  }
  0x6f   : > { %v1753_v30 = vrot.slane %v1752_v23, 4  ;;  %v1412_v61 = vld [vmem:[#allocation2 + $0x30] sm:$0xf]  ;;  %v712_v35 = vadd.f32 %v8643_v45, %v674_v25  ;;  %513 = vst [vmem:[#allocation2 + $0x9c] sm:$0x1] %v512_v29  ;;  %v568_v37 = vsel %vm8343_vm4, 0, %v567_v21  ;;  %v926_v41 = vor.u32 %v924_v62, %v923_v27 }
  0x70   : > { %v1748_v22 = vsel %vm8444_vm11, %v1743_v12, %v1747_v7  ;;  %v8666_v38 = vld [vmem:[#allocation2 + $0x34] sm:$0xf]  ;;  %v1568_v39 = vshrl.u32 %v1412_v61, 16  ;;  %v1571_v32 = vshll.u32 %v1412_v61, 16  ;;  %569 = vst [vmem:[#allocation2 + $0xa4] sm:$0x1] %v568_v37  ;;  %v934_v54 = vor.u32 %v932_v26, %v931_v31 }
  0x71   : > { %v1758_v43 = vsel %vm8444_vm11, %v1753_v30, %v1757_v14  ;;  %v8670_v44 = vld [vmem:[#allocation2 + $0x38] sm:$0x1]  ;;  %v1577_v46 = vshll.u32 %v8666_v38, 16  ;;  %v1581_v15 = vshrl.u32 %v8666_v38, 16  ;;  %v927_v63 = vrot.slane %v923_v27, 4 }
  0x72   : > { %v6739_v19 = vcombine.low %v1748_v22, %v1758_v43  ;;  %v1570_v49 = vrot.slane %v1568_v39, 4  ;;  %v1573_v47 = vrot.slane %v1571_v32, 5  ;;  %v1587_v33 = vshll.u32 %v8670_v44, 16  ;;  %v493_v26 = vld [vmem:[#allocation2 + $0x54] sm:$0x1] }
  0x73   : > { %v1579_v53 = vrot.slane %v1577_v46, 5  ;;  %v1583_v48 = vrot.slane %v1581_v15, 4  ;;  %v936_v55 = vrot.slane %v931_v31, 4  ;;  %v1204_v59 = vsel %vm8378_vm6, %v926_v41, %v1203_v42  ;;  %v549_v29 = vld [vmem:[#allocation2 + $0x5c] sm:$0x1] }
  0x74   : > { %7638 = vmatmul.mubr.bf16.gmra.mxu1 %v6739_v19  ;;  %v1574_v17 = vor.u32 %v1573_v47, %v1570_v49  ;;  %v1589_v58 = vrot.slane %v1587_v33, 5  ;;  %v713_v60 = vadd.f32 %v8643_v45, %v675_v28  ;;  %v935_v1 = vsel %vm8418_vm10, %v927_v63, %v934_v54  ;;  %1205 = vst [vmem:[#allocation2 + $0x3c] sm:$0xf] %v1204_v59  ;;  %v1252_v22 = vld [vmem:[#allocation2 + $0x90] sm:$0xf] }
  0x75   : > { %v1584_v0 = vor.u32 %v1583_v48, %v1579_v53  ;;  %v1208_v2 = vsel %vm8332_vm3, %v936_v55, %v1207_v50  ;;  %v744_v3 = vmax.f32 %v712_v35, 0.0  ;;  %1206 = vst [vmem:[#allocation2 + $0x40] sm:$0xf] %v935_v1  ;;  %v7261_v8 = vunpack.c.l.bf16 %v7366_v56 }
  0x76   : > { %v1575_v5 = vrot.slane %v1574_v17, 4  ;;  %1209 = vst [vmem:[#allocation2 + $0x44] sm:$0x1] %v1208_v2  ;;  %v745_v7 = vmax.f32 %v713_v60, 0.0  ;;  %v7262_v9 = vunpack.c.h.bf16 %v7366_v56  ;;  %v491_v14 = vsel %vm8332_vm3, 0, %v490_v51 }
  0x77   : > { %v1585_v11 = vrot.slane %v1584_v0, 4  ;;  %v7165_v13 = vpack.c.bf16 %v744_v3, %v744_v3  ;;  %v547_v18 = vsel %vm8343_vm4, 0, %v546_v57  ;;  %v676_v23 = vmul.f32 %v8633_v34, %v7261_v8  ;;  %492 = vst [vmem:[#allocation2 + $0x48] sm:$0x1] %v491_v14  ;;  %v1256_v56 = vld [vmem:[#allocation2 + $0x98] sm:$0x1] }
  0x78   : > { %v1580_v62 = vsel %vm8444_vm11, %v1575_v5, %v1579_v53  ;;  %v7166_v21 = vpack.c.bf16 %v745_v7, %v745_v7  ;;  %v677_v24 = vmul.f32 %v8633_v34, %v7262_v9  ;;  %548 = vst [vmem:[#allocation2 + $0x50] sm:$0x1] %v547_v18  ;;  %v7233_v28 = vunpack.c.l.bf16 %v7359_v4  ;;  %v7360_v3 = vld [vmem:[%s8328_s14 + $0x30] sm:$0xff]  }
  0x79   : > { %v1590_v25 = vsel %vm8444_vm11, %v1585_v11, %v1589_v58  ;;  %v1040_v12 = vshrl.u32 %v7165_v13, 16  ;;  %v1043_v27 = vshll.u32 %v7165_v13, 16  ;;  %v714_v35 = vadd.f32 %v8643_v45, %v676_v23 }
  0x7a   : > { %v6732_v30 = vcombine.low %v1580_v62, %v1590_v25  ;;  %v1048_v61 = vshrl.u32 %v7166_v21, 16  ;;  %v1051_v31 = vshll.u32 %v7166_v21, 16  ;;  %v715_v39 = vadd.f32 %v8643_v45, %v677_v24 }
  0x7b   : > { %v1042_v37 = vrot.slane %v1040_v12, 7  ;;  %v7234_v32 = vunpack.c.h.bf16 %v7359_v4  ;;  %v662_v41 = vmul.f32 %v8633_v34, %v7233_v28  ;;  %v8697_v42 = vld [vmem:[#allocation2 + $0x3c] sm:$0xf]  ;;  %v746_v46 = vmax.f32 %v714_v35, 0.0 }
  0x7c   : > { %7625 = vmatprep.mubr.bf16.mxu0 %v6732_v30  ;;  %v1050_v43 = vrot.slane %v1048_v61, 7  ;;  %v494_v15 = vsel %vm8332_vm3, 0, %v493_v26  ;;  %v550_v63 = vsel %vm8343_vm4, 0, %v549_v29  ;;  %v8703_v19 = vld [vmem:[#allocation2 + $0x40] sm:$0xf]  ;;  %v1592_v47 = vshrl.u32 %v8697_v42, 16 }
  0x7d   : > { %v8705_v49 = vld [vmem:[#allocation2 + $0x44] sm:$0x1]  ;;  %v1595_v33 = vshll.u32 %v8697_v42, 16  ;;  %v1045_v50 = vor.u32 %v1043_v27, %v1042_v37  ;;  %v663_v51 = vmul.f32 %v8633_v34, %v7234_v32  ;;  %495 = vst [vmem:[#allocation2 + $0x54] sm:$0x1] %v494_v15  ;;  %v1601_v53 = vshll.u32 %v8703_v19, 16 }
  0x7e   : > { %551 = vst [vmem:[#allocation2 + $0x5c] sm:$0x1] %v550_v63  ;;  %v1605_v48 = vshrl.u32 %v8703_v19, 16  ;;  %v1611_v54 = vshll.u32 %v8705_v49, 16  ;;  %v1046_v55 = vrot.slane %v1042_v37, 4  ;;  %v1594_v57 = vrot.slane %v1592_v47, 4 }
  0x7f   : > { %v1597_v17 = vrot.slane %v1595_v33, 5  ;;  %v1053_v58 = vor.u32 %v1051_v31, %v1050_v43  ;;  %v1055_v59 = vrot.slane %v1050_v43, 4  ;;  %v1603_v60 = vrot.slane %v1601_v53, 5  ;;  %v1259_v35 = vld [vmem:[#allocation2 + $0x9c] sm:$0xf] }
  0x80   : > { %v1607_v0 = vrot.slane %v1605_v48, 4  ;;  %v1613_v1 = vrot.slane %v1611_v54, 5  ;;  %v1253_v2 = vsel %vm8378_vm6, %v1045_v50, %v1252_v22  ;;  %v747_v9 = vmax.f32 %v715_v39, 0.0 }
  0x81   : > { %v1598_v5 = vor.u32 %v1597_v17, %v1594_v57  ;;  %v1054_v7 = vsel %vm8418_vm10, %v1046_v55, %v1053_v58  ;;  %1254 = vst [vmem:[#allocation2 + $0x90] sm:$0xf] %v1253_v2  ;;  %v1257_v8 = vsel %vm8332_vm3, %v1055_v59, %v1256_v56  ;;  %v7167_v11 = vpack.c.bf16 %v746_v46, %v746_v46 }
  0x82   : > { %v1608_v4 = vor.u32 %v1607_v0, %v1603_v60  ;;  %1255 = vst [vmem:[#allocation2 + $0x94] sm:$0xf] %v1054_v7  ;;  %1258 = vst [vmem:[#allocation2 + $0x98] sm:$0x1] %v1257_v8  ;;  %v700_v13 = vadd.f32 %v8643_v45, %v662_v41  ;;  %v701_v14 = vadd.f32 %v8643_v45, %v663_v51  ;;  %v7237_v21 = vunpack.c.l.bf16 %v7360_v3  ;;  %v1263_v41 = vld [vmem:[#allocation2 + $0xa4] sm:$0x1] }
  0x83   : > { %v1599_v18 = vrot.slane %v1598_v5, 4  ;;  %v7168_v62 = vpack.c.bf16 %v747_v9, %v747_v9  ;;  %v7238_v23 = vunpack.c.h.bf16 %v7360_v3  ;;  %v1057_v26 = vshrl.u32 %v7167_v11, 16  ;;  %v514_v3 = vld [vmem:[#allocation2 + $0xa8] sm:$0x1] }
  0x84   : > { %v1609_v24 = vrot.slane %v1608_v4, 4  ;;  %v1060_v25 = vshll.u32 %v7167_v11, 16  ;;  %v732_v12 = vmax.f32 %v700_v13, 0.0  ;;  %v733_v30 = vmax.f32 %v701_v14, 0.0 }
  0x85   : > { %v1604_v27 = vsel %vm8444_vm11, %v1599_v18, %v1603_v60  ;;  %v1065_v28 = vshrl.u32 %v7168_v62, 16  ;;  %v1068_v29 = vshll.u32 %v7168_v62, 16  ;;  %v1059_v31 = vrot.slane %v1057_v26, 7  ;;  %v570_v18 = vld [vmem:[#allocation2 + $0xb0] sm:$0x1] }
  0x86   : > { %v1614_v61 = vsel %vm8444_vm11, %v1609_v24, %v1613_v1  ;;  %v7153_v37 = vpack.c.bf16 %v732_v12, %v732_v12  ;;  %v664_v22 = vmul.f32 %v8633_v34, %v7237_v21  ;;  %v7154_v43 = vpack.c.bf16 %v733_v30, %v733_v30  ;;  %v1210_v21 = vld [vmem:[#allocation2 + $0x48] sm:$0xf]  ;;  %v1214_v30 = vld [vmem:[#allocation2 + $0x50] sm:$0x1] }
  0x87   : > { %v6733_v39 = vcombine.low %v1604_v27, %v1614_v61  ;;  %v1067_v32 = vrot.slane %v1065_v28, 7  ;;  %v665_v46 = vmul.f32 %v8633_v34, %v7238_v23  ;;  %v1062_v63 = vor.u32 %v1060_v25, %v1059_v31 }
  0x88   : > { %v8728_v15 = vld [vmem:[#allocation2 + $0x90] sm:$0xf]  ;;  %v1063_v47 = vrot.slane %v1059_v31, 4  ;;  %v938_v33 = vshrl.u32 %v7153_v37, 16  ;;  %v941_v50 = vshll.u32 %v7153_v37, 16  ;;  %v702_v56 = vadd.f32 %v8643_v45, %v664_v22  ;;  %v7367_v37 = vld [vmem:[%s8328_s14 + $0x68] sm:$0xff]  }
  0x89   : > { %7626 = vmatmul.mubr.bf16.gmra.mxu0 %v6733_v39  ;;  %v8730_v51 = vld [vmem:[#allocation2 + $0x94] sm:$0xf]  ;;  %v8732_v53 = vld [vmem:[#allocation2 + $0x98] sm:$0x1]  ;;  %v1760_v48 = vshrl.u32 %v8728_v15, 16  ;;  %v1763_v54 = vshll.u32 %v8728_v15, 16  ;;  %v1070_v55 = vor.u32 %v1068_v29, %v1067_v32  ;;  %v1260_v2 = vsel %vm8378_vm6, %v1062_v63, %v1259_v35 }
  0x8a   : > { %v1769_v57 = vshll.u32 %v8730_v51, 16  ;;  %v1773_v17 = vshrl.u32 %v8730_v51, 16  ;;  %v1779_v58 = vshll.u32 %v8732_v53, 16  ;;  %v1072_v59 = vrot.slane %v1067_v32, 4  ;;  %1261 = vst [vmem:[#allocation2 + $0x9c] sm:$0xf] %v1260_v2 }
  0x8b   : > { %v1762_v60 = vrot.slane %v1760_v48, 4  ;;  %v1765_v0 = vrot.slane %v1763_v54, 5  ;;  %v1071_v1 = vsel %vm8418_vm10, %v1063_v47, %v1070_v55  ;;  %v940_v11 = vrot.slane %v938_v33, 7 }
  0x8c   : > { %v1771_v5 = vrot.slane %v1769_v57, 5  ;;  %v1775_v7 = vrot.slane %v1773_v17, 4  ;;  %v1781_v8 = vrot.slane %v1779_v58, 5  ;;  %1262 = vst [vmem:[#allocation2 + $0xa0] sm:$0xf] %v1071_v1  ;;  %v1264_v9 = vsel %vm8332_vm3, %v1072_v59, %v1263_v41 }
  0x8d   : > { %v1766_v4 = vor.u32 %v1765_v0, %v1762_v60  ;;  %1265 = vst [vmem:[#allocation2 + $0xa4] sm:$0x1] %v1264_v9  ;;  %v946_v13 = vshrl.u32 %v7154_v43, 16  ;;  %v949_v14 = vshll.u32 %v7154_v43, 16  ;;  %v703_v23 = vadd.f32 %v8643_v45, %v665_v46  ;;  %v517_v0 = vld [vmem:[#allocation2 + $0xb4] sm:$0x1] }
  0x8e   : > { %v1776_v62 = vor.u32 %v1775_v7, %v1771_v5  ;;  %v734_v24 = vmax.f32 %v702_v56, 0.0  ;;  %v515_v26 = vsel %vm8332_vm3, 0, %v514_v3  ;;  %v943_v12 = vor.u32 %v941_v50, %v940_v11 }
  0x8f   : > { %v1767_v25 = vrot.slane %v1766_v4, 4  ;;  %v944_v27 = vrot.slane %v940_v11, 4  ;;  %v948_v28 = vrot.slane %v946_v13, 7  ;;  %516 = vst [vmem:[#allocation2 + $0xa8] sm:$0x1] %v515_v26  ;;  %v735_v61 = vmax.f32 %v703_v23, 0.0 }
  0x90   : > { %v1777_v29 = vrot.slane %v1776_v62, 4  ;;  %v7155_v31 = vpack.c.bf16 %v734_v24, %v734_v24  ;;  %v571_v35 = vsel %vm8343_vm4, 0, %v570_v18  ;;  %v1211_v41 = vsel %vm8378_vm6, %v943_v12, %v1210_v21  ;;  %v1217_v11 = vld [vmem:[#allocation2 + $0x54] sm:$0xf]  ;;  %v1221_v24 = vld [vmem:[#allocation2 + $0x5c] sm:$0x1] }
  0x91   : > { %v1772_v22 = vsel %vm8444_vm11, %v1767_v25, %v1771_v5  ;;  %v951_v39 = vor.u32 %v949_v14, %v948_v28  ;;  %v953_v32 = vrot.slane %v948_v28, 4  ;;  %572 = vst [vmem:[#allocation2 + $0xb0] sm:$0x1] %v571_v35  ;;  %1212 = vst [vmem:[#allocation2 + $0x48] sm:$0xf] %v1211_v41  ;;  %v7156_v46 = vpack.c.bf16 %v735_v61, %v735_v61 }
  0x92   : > { %v1782_v43 = vsel %vm8444_vm11, %v1777_v29, %v1781_v8  ;;  %v955_v63 = vshrl.u32 %v7155_v31, 16  ;;  %v958_v47 = vshll.u32 %v7155_v31, 16  ;;  %v8758_v50 = vld [vmem:[#allocation2 + $0x9c] sm:$0xf]  ;;  %v7265_v56 = vunpack.c.l.bf16 %v7367_v37 }
  0x93   : > { %v6740_v33 = vcombine.low %v1772_v22, %v1782_v43  ;;  %v8760_v48 = vld [vmem:[#allocation2 + $0xa0] sm:$0xf]  ;;  %v952_v54 = vsel %vm8418_vm10, %v944_v27, %v951_v39  ;;  %v1215_v55 = vsel %vm8332_vm3, %v953_v32, %v1214_v30  ;;  %v1784_v17 = vshrl.u32 %v8758_v50, 16 }
  0x94   : > { %v8766_v57 = vld [vmem:[#allocation2 + $0xa4] sm:$0x1]  ;;  %v1787_v58 = vshll.u32 %v8758_v50, 16  ;;  %v1793_v59 = vshll.u32 %v8760_v48, 16  ;;  %v1797_v60 = vshrl.u32 %v8760_v48, 16  ;;  %v957_v2 = vrot.slane %v955_v63, 7 }
  0x95   : > { %1213 = vst [vmem:[#allocation2 + $0x4c] sm:$0xf] %v952_v54  ;;  %1216 = vst [vmem:[#allocation2 + $0x50] sm:$0x1] %v1215_v55  ;;  %7641 = vmatprep.mubr.bf16.mxu1 %v6740_v33  ;;  %v1803_v1 = vshll.u32 %v8766_v57, 16  ;;  %v963_v3 = vshrl.u32 %v7156_v46, 16  ;;  %v7266_v26 = vunpack.c.h.bf16 %v7367_v37  ;;  %v678_v25 = vmul.f32 %v8633_v34, %v7265_v56 }
  0x96   : > { %v966_v5 = vshll.u32 %v7156_v46, 16  ;;  %v1786_v7 = vrot.slane %v1784_v17, 4  ;;  %v1789_v8 = vrot.slane %v1787_v58, 5  ;;  %v1795_v9 = vrot.slane %v1793_v59, 5  ;;  %v7368_v37 = vld [vmem:[%s8328_s14 + $0x70] sm:$0xff]  }
  0x97   : > { %v1799_v4 = vrot.slane %v1797_v60, 4  ;;  %v1805_v13 = vrot.slane %v1803_v1, 5  ;;  %v960_v14 = vor.u32 %v958_v47, %v957_v2  ;;  %v961_v18 = vrot.slane %v957_v2, 4  ;;  %v573_v47 = vld [vmem:[#allocation2 + $0xbc] sm:$0x1] }
  0x98   : > { %v965_v62 = vrot.slane %v963_v3, 7  ;;  %v1790_v21 = vor.u32 %v1789_v8, %v1786_v7  ;;  %v8774_v12 = vld [vmem:[#allocation2 + $0x48] sm:$0xf]  ;;  %v518_v30 = vsel %vm8332_vm3, 0, %v517_v0  ;;  %v679_v46 = vmul.f32 %v8633_v34, %v7266_v26 }
  0x99   : > { %v1800_v23 = vor.u32 %v1799_v4, %v1795_v9  ;;  %v1218_v29 = vsel %vm8378_vm6, %v960_v14, %v1217_v11  ;;  %v1616_v35 = vshrl.u32 %v8774_v12, 16  ;;  %v1619_v22 = vshll.u32 %v8774_v12, 16  ;;  %519 = vst [vmem:[#allocation2 + $0xb4] sm:$0x1] %v518_v30 }
  0x9a   : > { %v968_v27 = vor.u32 %v966_v5, %v965_v62  ;;  %v970_v28 = vrot.slane %v965_v62, 4  ;;  %v1791_v61 = vrot.slane %v1790_v21, 4  ;;  %1219 = vst [vmem:[#allocation2 + $0x54] sm:$0xf] %v1218_v29  ;;  %v716_v63 = vadd.f32 %v8643_v45, %v678_v25 }
  0x9b   : > { %v1801_v31 = vrot.slane %v1800_v23, 4  ;;  %v1618_v55 = vrot.slane %v1616_v35, 4  ;;  %v1621_v56 = vrot.slane %v1619_v22, 5  ;;  %v717_v1 = vadd.f32 %v8643_v45, %v679_v46 }
  0x9c   : > { %v8783_v39 = vld [vmem:[#allocation2 + $0x4c] sm:$0xf]  ;;  %v8785_v32 = vld [vmem:[#allocation2 + $0x50] sm:$0x1]  ;;  %v969_v41 = vsel %vm8418_vm10, %v961_v18, %v968_v27  ;;  %v1222_v43 = vsel %vm8332_vm3, %v970_v28, %v1221_v24  ;;  %v1796_v33 = vsel %vm8444_vm11, %v1791_v61, %v1795_v9  ;;  %v748_v2 = vmax.f32 %v716_v63, 0.0 }
  0x9d   : > { %v1806_v54 = vsel %vm8444_vm11, %v1801_v31, %v1805_v13  ;;  %1220 = vst [vmem:[#allocation2 + $0x58] sm:$0xf] %v969_v41  ;;  %1223 = vst [vmem:[#allocation2 + $0x5c] sm:$0x1] %v1222_v43  ;;  %v1625_v58 = vshll.u32 %v8783_v39, 16  ;;  %v1629_v59 = vshrl.u32 %v8783_v39, 16  ;;  %v1622_v0 = vor.u32 %v1621_v56, %v1618_v55 }
  0x9e   : > { %v6741_v17 = vcombine.low %v1796_v33, %v1806_v54  ;;  %v1635_v60 = vshll.u32 %v8785_v32, 16  ;;  %v574_v3 = vsel %vm8343_vm4, 0, %v573_v47  ;;  %v7269_v9 = vunpack.c.l.bf16 %v7368_v37  ;;  %v2450_v43 = vld [vmem:[#allocation2] sm:$0xe] }
  0x9f   : > { %v1627_v5 = vrot.slane %v1625_v58, 5  ;;  %v1631_v7 = vrot.slane %v1629_v59, 4  ;;  %575 = vst [vmem:[#allocation2 + $0xbc] sm:$0x1] %v574_v3  ;;  %v1623_v4 = vrot.slane %v1622_v0, 4  ;;  %v749_v11 = vmax.f32 %v717_v1, 0.0 }
  0xa0   : > { %7642 = vmatmul.mubr.bf16.gmra.mxu1 %v6741_v17  ;;  %v1637_v8 = vrot.slane %v1635_v60, 5  ;;  %v7169_v13 = vpack.c.bf16 %v748_v2, %v748_v2  ;;  %v7270_v14 = vunpack.c.h.bf16 %v7368_v37  ;;  %v680_v21 = vmul.f32 %v8633_v34, %v7269_v9  ;;  %v1266_v17 = vld [vmem:[#allocation2 + $0xa8] sm:$0xf] }
  0xa1   : > { %v1632_v18 = vor.u32 %v1631_v7, %v1627_v5  ;;  %v8803_v62 = vld [vmem:[#allocation2 + $0x54] sm:$0xf]  ;;  %vm2498_vm12 = vcmask 1042432   ;;  %vm2499_vm13 = vcmask 1046532   ;;  %v1628_v23 = vsel %vm8444_vm11, %v1623_v4, %v1627_v5  ;;  %v1270_v5 = vld [vmem:[#allocation2 + $0xb0] sm:$0x1] }
  0xa2   : > { %v1640_v24 = vshrl.u32 %v8803_v62, 16  ;;  %v1643_v26 = vshll.u32 %v8803_v62, 16  ;;  %v7170_v25 = vpack.c.bf16 %v749_v11, %v749_v11  ;;  %v1074_v30 = vshrl.u32 %v7169_v13, 16  ;;  %vm8826_vm14 = vmor %vm2498_vm12, %vm2499_vm13 }
  0xa3   : > { %v1633_v27 = vrot.slane %v1632_v18, 4  ;;  %v681_v61 = vmul.f32 %v8633_v34, %v7270_v14  ;;  %v718_v31 = vadd.f32 %v8643_v45, %v680_v21  ;;  %v1077_v33 = vshll.u32 %v7169_v13, 16 }
  0xa4   : > { %v8810_v28 = vld [vmem:[#allocation2 + $0x58] sm:$0xf]  ;;  %v8812_v29 = vld [vmem:[#allocation2 + $0x5c] sm:$0x1]  ;;  %v1642_v35 = vrot.slane %v1640_v24, 4  ;;  %v1645_v22 = vrot.slane %v1643_v26, 5 }
  0xa5   : > { %v1649_v37 = vshll.u32 %v8810_v28, 16  ;;  %v1653_v41 = vshrl.u32 %v8810_v28, 16  ;;  %v1638_v46 = vsel %vm8444_vm11, %v1633_v27, %v1637_v8  ;;  %v1659_v63 = vshll.u32 %v8812_v29, 16  ;;  %v8197_v24 = vld [vmem:[#allocation2 + $0x14] sm:$0x1] }
  0xa6   : > { %v1076_v47 = vrot.slane %v1074_v30, 7  ;;  %v6734_v54 = vcombine.low %v1628_v23, %v1638_v46  ;;  %v1646_v55 = vor.u32 %v1645_v22, %v1642_v35  ;;  %v1082_v0 = vshrl.u32 %v7170_v25, 16  ;;  %v8832_v23 = vld [vmem:[#allocation2 + $0x4] sm:$0xf] }
  0xa7   : > { %v1651_v56 = vrot.slane %v1649_v37, 5  ;;  %v1655_v34 = vrot.slane %v1653_v41, 4  ;;  %v1661_v58 = vrot.slane %v1659_v63, 5  ;;  %v1085_v3 = vshll.u32 %v7170_v25, 16  ;;  %v2452_v41 = vld [vmem:[#allocation2 + $0x18] sm:$0xe] }
  0xa8   : > { %v1079_v59 = vor.u32 %v1077_v33, %v1076_v47  ;;  %v1080_v60 = vrot.slane %v1076_v47, 4  ;;  %7629 = vmatprep.mubr.bf16.mxu0 %v6734_v54  ;;  %v1647_v1 = vrot.slane %v1646_v55, 4  ;;  %v719_v7 = vadd.f32 %v8643_v45, %v681_v61  ;;  %v2451_v61 = vld [vmem:[#allocation2 + $0xc] sm:$0xe] }
  0xa9   : > { %v1656_v2 = vor.u32 %v1655_v34, %v1651_v56  ;;  %v1084_v8 = vrot.slane %v1082_v0, 7  ;;  %v750_v4 = vmax.f32 %v718_v31, 0.0  ;;  %v11001_v11 = vmov 0 }
  0xaa   : > { %v1267_v9 = vsel %vm8378_vm6, %v1079_v59, %v1266_v17  ;;  %v11002_v11 = vsel %vm8826_vm14, 4294967295, %v11001_v11  ;;  %v6776_v13 = vrot.slane %v2450_v43, 9  ;;  %v1652_v14 = vsel %vm8444_vm11, %v1647_v1, %v1651_v56  ;;  %v1273_v56 = vld [vmem:[#allocation2 + $0xb4] sm:$0xf]  ;;  %v8850_v1 = vld [vmem:[#allocation2 + $0x68] sm:$0x1] }
  0xab   : > { %11003 = vst [vmem:[#allocation7_spill] sm:$0xff] %v11002_v11  ;;  %v1657_v18 = vrot.slane %v1656_v2, 4  ;;  %1268 = vst [vmem:[#allocation2 + $0xa8] sm:$0xf] %v1267_v9  ;;  %v751_v21 = vmax.f32 %v719_v7, 0.0  ;;  %v2503_v45 = vrot.slane %v8832_v23, 5  ;;  %v1087_v25 = vor.u32 %v1085_v3, %v1084_v8 }
  0xac   : > { %v2513_v26 = vrot.slane %v8197_v24, 5  ;;  %v1089_v27 = vrot.slane %v1084_v8, 4  ;;  %v7171_v30 = vpack.c.bf16 %v750_v4, %v750_v4  ;;  %v6777_v59 = vrot.slane %v2451_v61, 9  ;;  %v8853_v7 = vld [vmem:[#allocation2 + $0x1c] sm:$0xf] }
  0xad   : > { %v1662_v31 = vsel %vm8444_vm11, %v1657_v18, %v1661_v58  ;;  %v7172_v35 = vpack.c.bf16 %v751_v21, %v751_v21  ;;  %v2504_v22 = vsel %vm8826_vm14, %v6776_v13, %v2503_v45  ;;  %v2505_v37 = vrot.slane %v2503_v45, 4  ;;  %v1277_v4 = vld [vmem:[#allocation2 + $0xbc] sm:$0x1] }
  0xae   : > { %v6735_v43 = vcombine.low %v1652_v14, %v1662_v31  ;;  %v1088_v46 = vsel %vm8418_vm10, %v1080_v60, %v1087_v25  ;;  %v1271_v63 = vsel %vm8332_vm3, %v1089_v27, %v1270_v5  ;;  %v1091_v47 = vshrl.u32 %v7171_v30, 16  ;;  %v8847_v60 = vld [vmem:[#allocation2 + $0x10] sm:$0xf]  ;;  %v2453_v25 = vld [vmem:[#allocation2 + $0x24] sm:$0xe] }
  0xaf   : > { %1269 = vst [vmem:[#allocation2 + $0xac] sm:$0xf] %v1088_v46  ;;  %1272 = vst [vmem:[#allocation2 + $0xb0] sm:$0x1] %v1271_v63  ;;  %v1094_v33 = vshll.u32 %v7171_v30, 16  ;;  %v1099_v54 = vshrl.u32 %v7172_v35, 16  ;;  %v2507_v34 = vsel %vm8826_vm14, %v2505_v37, %v2506_v16 }
  0xb0   : > { %v1102_v55 = vshll.u32 %v7172_v35, 16  ;;  %7630 = vmatmul.mubr.bf16.gmra.mxu0 %v6735_v43  ;;  %v1093_v17 = vrot.slane %v1091_v47, 7  ;;  %v6808_v58 = vcombine.low %v2504_v22, %v2507_v34  ;;  %v2510_v0 = vrot.slane %v8847_v60, 5  ;;  %v8864_v30 = vld [vmem:[#allocation2] sm:$0xf]  ;;  %v8105_v22 = vld [vmem:[%s10974_s5 + $0x130] sm:$0xff]  }
  0xb1   : > { %v1101_v3 = vrot.slane %v1099_v54, 7  ;;  %v6778_v5 = vrot.slane %v2452_v41, 9  ;;  %v2517_v40 = vrot.slane %v8853_v7, 5  ;;  %v8202_v54 = vld [vmem:[#allocation2 + $0x20] sm:$0x1] }
  0xb2   : > { %v8856_v8 = vld [vmem:[#allocation2 + $0xa8] sm:$0xf]  ;;  %v1096_v16 = vor.u32 %v1094_v33, %v1093_v17  ;;  %v1097_v9 = vrot.slane %v1093_v17, 4  ;;  %7713 = vmatprep.mubr.bf16.mxu0 %v6808_v58  ;;  %v2511_v13 = vsel %vm8826_vm14, %v6777_v59, %v2510_v0  ;;  %v2512_v14 = vrot.slane %v2510_v0, 4  ;;  %v8886_v0 = vld [vmem:[#allocation2 + $0xc] sm:$0xf] }
  0xb3   : > { %v1808_v18 = vshrl.u32 %v8856_v8, 16  ;;  %v1811_v21 = vshll.u32 %v8856_v8, 16  ;;  %v1104_v45 = vor.u32 %v1102_v55, %v1101_v3  ;;  %v1106_v24 = vrot.slane %v1101_v3, 4  ;;  %v2456_v3 = vld [vmem:[#allocation2 + $0x48] sm:$0xe] }
  0xb4   : > { %v1274_v27 = vsel %vm8378_vm6, %v1096_v16, %v1273_v56  ;;  %v2514_v31 = vsel %vm8826_vm14, %v2512_v14, %v2513_v26  ;;  %v2519_v35 = vrot.slane %v2517_v40, 4  ;;  %v2518_v33 = vsel %vm8826_vm14, %v6778_v5, %v2517_v40  ;;  %v8892_v5 = vld [vmem:[#allocation2 + $0x28] sm:$0xf]  ;;  %v2455_v14 = vld [vmem:[#allocation2 + $0x3c] sm:$0xe] }
  0xb5   : > { %v1810_v37 = vrot.slane %v1808_v18, 4  ;;  %v1813_v41 = vrot.slane %v1811_v21, 5  ;;  %v1105_v43 = vsel %vm8418_vm10, %v1097_v9, %v1104_v45  ;;  %1275 = vst [vmem:[#allocation2 + $0xb4] sm:$0xf] %v1274_v27  ;;  %v1278_v46 = vsel %vm8332_vm3, %v1106_v24, %v1277_v4  ;;  %v8205_v9 = vld [vmem:[#allocation2 + $0x2c] sm:$0x1] }
  0xb6   : > { %v8877_v63 = vld [vmem:[#allocation2 + $0xac] sm:$0xf]  ;;  %v8879_v47 = vld [vmem:[#allocation2 + $0xb0] sm:$0x1]  ;;  %1276 = vst [vmem:[#allocation2 + $0xb8] sm:$0xf] %v1105_v43  ;;  %v6809_v26 = vcombine.low %v2511_v13, %v2514_v31 }
  0xb7   : > { %1279 = vst [vmem:[#allocation2 + $0xbc] sm:$0x1] %v1278_v46  ;;  %v2520_v55 = vrot.slane %v8202_v54, 5  ;;  %v6779_v56 = vrot.slane %v2453_v25, 9  ;;  %v1814_v34 = vor.u32 %v1813_v41, %v1810_v37  ;;  %v1817_v17 = vshll.u32 %v8877_v63, 16  ;;  %v8206_v24 = vld [vmem:[%s10974_s5 + $0x138] sm:$0xff]  }
  0xb8   : > { %v1821_v58 = vshrl.u32 %v8877_v63, 16  ;;  %v1827_v59 = vshll.u32 %v8879_v47, 16  ;;  %7714 = vmatmul.mubr.bf16.vlgmr.msra.gmra.mxu0 %v6809_v26  ;;  %v2524_v40 = vrot.slane %v8892_v5, 5  ;;  %v2527_v4 = vrot.slane %v8205_v9, 5  ;;  %v2454_v13 = vld [vmem:[#allocation2 + $0x30] sm:$0xe] }
  0xb9   : > { %v2521_v16 = vsel %vm8826_vm14, %v2519_v35, %v2520_v55  ;;  %v1815_v18 = vrot.slane %v1814_v34, 4  ;;  %v1819_v21 = vrot.slane %v1817_v17, 5  ;;  %7794 = vmatpush3.bf16.msra.mxu0 %v8206_v24  ;;  %v8898_v25 = vld [vmem:[#allocation2 + $0x18] sm:$0xf]  ;;  %v8109_v31 = vld [vmem:[%s10974_s5 + $0x128] sm:$0xff]   ;;  %v6780_v55 = vrot.slane %v2454_v13, 9 }
  0xba   : > { %v1823_v45 = vrot.slane %v1821_v58, 4  ;;  %v1829_v35 = vrot.slane %v1827_v59, 5  ;;  %v6810_v37 = vcombine.low %v2518_v33, %v2521_v16  ;;  %v2525_v41 = vsel %vm8826_vm14, %v6779_v56, %v2524_v40  ;;  %7795 = vmatprep.subr.bf16.mxu0 %v8105_v22  ;;  %v8907_v26 = vld [vmem:[#allocation2 + $0x24] sm:$0xf] }
  0xbb   : > { %v2526_v43 = vrot.slane %v2524_v40, 4  ;;  %v2531_v34 = vrot.slane %v8666_v38, 5  ;;  %v2534_v58 = vrot.slane %v8670_v44, 5  ;;  %v6781_v56 = vrot.slane %v2455_v14, 9 }
  0xbc   : > { %v1824_v46 = vor.u32 %v1823_v45, %v1819_v21  ;;  %v8912_v17 = vld [vmem:[#allocation2 + $0xb4] sm:$0xf]  ;;  %7717 = vmatprep.mubr.bf16.mxu0 %v6810_v37  ;;  %v2538_v59 = vrot.slane %v8703_v19, 5  ;;  %v1820_v16 = vsel %vm8444_vm11, %v1815_v18, %v1819_v21 }
  0xbd   : > { %v2528_v33 = vsel %vm8826_vm14, %v2526_v43, %v2527_v4  ;;  %v8920_v9 = vld [vmem:[#allocation2 + $0xb8] sm:$0xf]  ;;  %v1832_v45 = vshrl.u32 %v8912_v17, 16  ;;  %7796 = vmatpush3.bf16.msra.mxu0 %v8105_v22  ;;  %v1835_v37 = vshll.u32 %v8912_v17, 16  ;;  %v2532_v43 = vsel %vm8826_vm14, %v6780_v55, %v2531_v34  ;;  %v8113_v22 = vld [vmem:[%s10974_s5 + $0x120] sm:$0xff]  }
  0xbe   : > { %v1825_v40 = vrot.slane %v1824_v46, 4  ;;  %v8922_v13 = vld [vmem:[#allocation2 + $0xbc] sm:$0x1]  ;;  %v6811_v24 = vcombine.low %v2525_v41, %v2528_v33  ;;  %v1841_v4 = vshll.u32 %v8920_v9, 16  ;;  %v1845_v44 = vshrl.u32 %v8920_v9, 16  ;;  %7797 = vmatprep.subr.bf16.mxu0 %v8109_v31 }
  0xbf   : > { %v1851_v14 = vshll.u32 %v8922_v13, 16  ;;  %v1834_v21 = vrot.slane %v1832_v45, 4  ;;  %v2533_v46 = vrot.slane %v2531_v34, 4  ;;  %v1837_v33 = vrot.slane %v1835_v37, 5  ;;  %v2457_v37 = vld [vmem:[#allocation2 + $0x54] sm:$0xe] }
  0xc0   : > { %v1830_v18 = vsel %vm8444_vm11, %v1825_v40, %v1829_v35  ;;  %v1843_v54 = vrot.slane %v1841_v4, 5  ;;  %v1847_v27 = vrot.slane %v1845_v44, 4  ;;  %7718 = vmatmul.mubr.bf16.gmra.mxu0 %v6811_v24  ;;  %v2539_v35 = vsel %vm8826_vm14, %v6781_v56, %v2538_v59  ;;  %v8117_v24 = vld [vmem:[%s10974_s5 + $0x118] sm:$0xff]  }
  0xc1   : > { %v6742_v41 = vcombine.low %v1820_v16, %v1830_v18  ;;  %v2535_v2 = vsel %vm8826_vm14, %v2533_v46, %v2534_v58  ;;  %v2540_v40 = vrot.slane %v2538_v59, 4  ;;  %v2541_v55 = vrot.slane %v8705_v49, 5  ;;  %7798 = vmatpush3.bf16.msra.mxu0 %v8109_v31  ;;  %v2458_v49 = vld [vmem:[#allocation2 + $0x60] sm:$0xe] }
  0xc2   : > { %v1838_v34 = vor.u32 %v1837_v33, %v1834_v21  ;;  %v1848_v45 = vor.u32 %v1847_v27, %v1843_v54  ;;  %v1853_v61 = vrot.slane %v1851_v14, 5  ;;  %v6812_v16 = vcombine.low %v2532_v43, %v2535_v2  ;;  %7799 = vmatprep.subr.bf16.mxu0 %v8113_v22  ;;  %v2459_v14 = vld [vmem:[#allocation2 + $0x6c] sm:$0xe] }
  0xc3   : > { %7645 = vmatprep.mubr.bf16.mxu1 %v6742_v41  ;;  %v2542_v58 = vsel %vm8826_vm14, %v2540_v40, %v2541_v55  ;;  %v6782_v4 = vrot.slane %v2456_v3, 9  ;;  %v2545_v56 = vrot.slane %v8783_v39, 5  ;;  %v2548_v59 = vrot.slane %v8785_v32, 5  ;;  %v8960_v40 = vld [vmem:[#allocation2 + $0x30] sm:$0xf] }
  0xc4   : > { %v1839_v31 = vrot.slane %v1838_v34, 4  ;;  %v1849_v44 = vrot.slane %v1848_v45, 4  ;;  %7721 = vmatprep.mubr.bf16.mxu0 %v6812_v16  ;;  %v6813_v27 = vcombine.low %v2539_v35, %v2542_v58  ;;  %v6783_v43 = vrot.slane %v2457_v37, 9  ;;  %v8971_v16 = vld [vmem:[#allocation2 + $0x64] sm:$0xf] }
  0xc5   : > { %v2546_v18 = vsel %vm8826_vm14, %v6782_v4, %v2545_v56  ;;  %v2547_v21 = vrot.slane %v2545_v56, 4  ;;  %v2552_v3 = vrot.slane %v8810_v28, 5  ;;  %7800 = vmatpush3.bf16.msra.mxu0 %v8113_v22  ;;  %v2555_v41 = vrot.slane %v8812_v29, 5  ;;  %v2460_v58 = vld [vmem:[#allocation2 + $0x78] sm:$0xe] }
  0xc6   : > { %v1844_v32 = vsel %vm8444_vm11, %v1839_v31, %v1843_v54  ;;  %v1854_v46 = vsel %vm8444_vm11, %v1849_v44, %v1853_v61  ;;  %7801 = vmatprep.subr.bf16.mxu0 %v8117_v24  ;;  %v8121_v61 = vld [vmem:[%s10974_s5 + $0x110] sm:$0xff]   ;;  %v6784_v45 = vrot.slane %v2458_v49, 9  ;;  %v2559_v37 = vrot.slane %v8971_v16, 5  ;;  %v2461_v4 = vld [vmem:[#allocation2 + $0x84] sm:$0xe] }
  0xc7   : > { %v6743_v35 = vcombine.low %v1844_v32, %v1854_v46  ;;  %v2549_v22 = vsel %vm8826_vm14, %v2547_v21, %v2548_v59  ;;  %v2554_v34 = vrot.slane %v2552_v3, 4  ;;  %v2553_v54 = vsel %vm8826_vm14, %v6783_v43, %v2552_v3  ;;  %v8976_v31 = vld [vmem:[#allocation2 + $0x70] sm:$0xf] }
  0xc8   : > { %7722 = vmatmul.mubr.bf16.gmra.mxu0 %v6813_v27  ;;  %v6814_v29 = vcombine.low %v2546_v18, %v2549_v22  ;;  %v6785_v59 = vrot.slane %v2459_v14, 9  ;;  %v2566_v44 = vrot.slane %v8976_v31, 5  ;;  %v8212_v27 = vld [vmem:[#allocation2 + $0x74] sm:$0x1]  ;;  %v11004_v49 = vcombine.low %v8864_v30, %v8832_v23  ;;  %v8986_v14 = vld [vmem:[#allocation2 + $0x60] sm:$0xf] }
  0xc9   : > { %7646 = vmatmul.mubr.bf16.gmra.mxu1 %v6743_v35  ;;  %v2556_v56 = vsel %vm8826_vm14, %v2554_v34, %v2555_v41  ;;  %v2569_v18 = vrot.slane %v8212_v27, 5  ;;  %7802 = vmatpush3.bf16.msra.mxu0 %v8117_v24  ;;  %v2560_v43 = vsel %vm8826_vm14, %v6784_v45, %v2559_v37  ;;  %v2561_v3 = vrot.slane %v2559_v37, 4  ;;  %v8125_v24 = vld [vmem:[%s10974_s5 + $0x108] sm:$0xff]   ;;  %v8993_v41 = vld [vmem:[#allocation2 + $0x7c] sm:$0xf] }
  0xca   : > { %7665 = vmatprep.mubr.bf16.mxu1 %v11004_v49  ;;  %7725 = vmatprep.mubr.bf16.mxu0 %v6814_v29  ;;  %v6815_v46 = vcombine.low %v2553_v54, %v2556_v56  ;;  %v2568_v23 = vrot.slane %v2566_v44, 4  ;;  %v6786_v30 = vrot.slane %v2460_v58, 9  ;;  %v2573_v35 = vrot.slane %v8993_v41, 5  ;;  %v2462_v22 = vld [vmem:[#allocation2 + $0x90] sm:$0xe] }
  0xcb   : > { %7803 = vmatprep.subr.bf16.mxu0 %v8121_v61  ;;  %v11005_v34 = vrot.slane %v8850_v1, 5  ;;  %v9002_v45 = vsel %vm8826_vm14, %v6785_v59, %v2566_v44  ;;  %v8215_v37 = vld [vmem:[#allocation2 + $0x80] sm:$0x1]  ;;  %v6787_v54 = vrot.slane %v2461_v4, 9  ;;  %v2463_v56 = vld [vmem:[#allocation2 + $0x9c] sm:$0xe]  ;;  %v11007_v33 = vcombine.low %v8898_v25, %v8853_v7 }
  0xcc   : > { %v2576_v27 = vrot.slane %v8215_v37, 5  ;;  %v9006_v49 = vsel %vm8826_vm14, %v2568_v23, %v2569_v18  ;;  %v9010_v32 = vsel %vm8826_vm14, %v6786_v30, %v2573_v35  ;;  %v2575_v1 = vrot.slane %v2573_v35, 4  ;;  %v9016_v44 = vld [vmem:[#allocation2 + $0x78] sm:$0xf]  ;;  %v8219_v23 = vld [vmem:[#allocation2 + $0x8c] sm:$0x1] }
  0xcd   : > { %v2563_v29 = vsel %vm8826_vm14, %v2561_v3, %v11005_v34  ;;  %7804 = vmatpush3.bf16.msra.mxu0 %v8121_v61  ;;  %v9012_v3 = vld [vmem:[#allocation2 + $0x6c] sm:$0xf]  ;;  %v2583_v34 = vrot.slane %v8219_v23, 5  ;;  %v8103_v61 = vld [vmem:[%s10974_s5 + $0xf0] sm:$0xff]   ;;  %v6817_v30 = vcombine.low %v9002_v45, %v9006_v49  ;;  %v2587_v37 = vrot.slane %v8730_v51, 5 }
  0xce   : > { %v6816_v58 = vcombine.low %v2560_v43, %v2563_v29  ;;  %v9020_v43 = vld [vmem:[#allocation2 + $0x88] sm:$0xf]  ;;  %7805 = vmatprep.subr.bf16.mxu0 %v8125_v24  ;;  %v9030_v35 = vsel %vm8826_vm14, %v2575_v1, %v2576_v27  ;;  %v6788_v29 = vrot.slane %v2462_v22, 9  ;;  %v9035_v59 = vld [vmem:[#allocation2 + $0x84] sm:$0xf]  ;;  %v2590_v2 = vrot.slane %v8732_v53, 5 }
  0xcf   : > { %v2580_v18 = vrot.slane %v9020_v43, 5  ;;  %v6818_v4 = vcombine.low %v9010_v32, %v9030_v35  ;;  %v2464_v45 = vld [vmem:[#allocation2 + $0xa8] sm:$0xe]  ;;  %v8129_v27 = vld [vmem:[%s10974_s5 + $0x100] sm:$0xff]   ;;  %v11006_v22 = vcombine.low %v8886_v0, %v8847_v60  ;;  %v6789_v49 = vrot.slane %v2463_v56, 9  ;;  %v8221_v53 = vld [vmem:[%s10974_s5 + $0xf8] sm:$0xff]  }
  0xd0   : > { %7726 = vmatmul.mubr.bf16.gmra.mxu0 %v6815_v46  ;;  %v2589_v46 = vrot.slane %v2587_v37, 4  ;;  %v2594_v1 = vrot.slane %v8760_v48, 5  ;;  %v2465_v35 = vld [vmem:[#allocation2 + $0xb4] sm:$0xe]  ;;  %v9071_v7 = vsel %vm8826_vm14, %v6788_v29, %v2587_v37  ;;  %v2601_v29 = vrot.slane %v8877_v63, 5 }
  0xd1   : > { %v2582_v23 = vrot.slane %v2580_v18, 4  ;;  %7666 = vmatmul.mubr.bf16.vlgmr.msra.gmra.mxu1 %v11006_v22  ;;  %7729 = vmatprep.mubr.bf16.mxu0 %v6816_v58  ;;  %v9048_v32 = vsel %vm8826_vm14, %v6787_v54, %v2580_v18  ;;  %v2597_v54 = vrot.slane %v8766_v57, 5  ;;  %v3321_v58 = vld [vmem:[#allocation2 + $0xc] sm:$0xf]  ;;  %v6790_v57 = vrot.slane %v2464_v45, 9 }
  0xd2   : > { %7746 = vmatpush3.bf16.msra.mxu1 %v8221_v53  ;;  %7669 = vmatprep.mubr.bf16.mxu1 %v11007_v33  ;;  %v8107_v18 = vld [vmem:[%s10974_s5 + $0xe8] sm:$0xff]   ;;  %v9075_v25 = vsel %vm8826_vm14, %v6789_v49, %v2594_v1  ;;  %v2596_v33 = vrot.slane %v2594_v1, 4  ;;  %v2604_v37 = vrot.slane %v8879_v47, 5  ;;  %v6791_v1 = vrot.slane %v2465_v35, 9  ;;  %v3323_v56 = vld [vmem:[#allocation2 + $0x14] sm:$0x1] }
  0xd3   : > { %v9059_v60 = vsel %vm8826_vm14, %v2582_v23, %v2583_v34  ;;  %7747 = vmatprep.subr.bf16.mxu1 %v8103_v61  ;;  %7806 = vmatpush3.bf16.msra.mxu0 %v8125_v24  ;;  %v9077_v34 = vld [vmem:[#allocation2 + $0x10] sm:$0xf]  ;;  %v9082_v23 = vld [vmem:[%s10974_s5 + $0x1b8] sm:$0xff]   ;;  %v9092_v24 = vsel %vm8826_vm14, %v2589_v46, %v2590_v2  ;;  %v2608_v53 = vrot.slane %v8920_v9, 5  ;;  %v2603_v0 = vrot.slane %v2601_v29, 4  ;;  %v8111_v35 = vld [vmem:[%s10974_s5 + $0xe0] sm:$0xff]  }
  0xd4   : > { %11008 = vst [vmem:[#allocation8_spill] sm:$0xff] %v9077_v34  ;;  %7807 = vmatprep.subr.bf16.mxu0 %v8129_v27  ;;  %v9096_v45 = vsel %vm8826_vm14, %v2596_v33, %v2597_v54  ;;  %v2611_v49 = vrot.slane %v8922_v13, 5  ;;  %v3324_v2 = vld [vmem:[#allocation2 + $0x18] sm:$0xf]  ;;  %v9104_v46 = vld [vmem:[#allocation2 + $0x1c] sm:$0xf] }
  0xd5   : > { %11009 = vst [vmem:[#allocation9_spill] sm:$0xff] %v9104_v46  ;;  %v2610_v54 = vrot.slane %v2608_v53, 4  ;;  %v3370_v33 = vshrl.u32 %v3321_v58, 16  ;;  %v3373_v47 = vshll.u32 %v3321_v58, 16  ;;  %v9115_v13 = vsel %vm8826_vm14, %v2603_v0, %v2604_v37  ;;  %v9140_v37 = vld [vmem:[#allocation2 + $0x28] sm:$0xf] }
  0xd6   : > { %7748 = vmatpush3.bf16.msra.mxu1 %v8103_v61  ;;  %v9111_v61 = vsel %vm8826_vm14, %v6790_v57, %v2601_v29  ;;  %v3379_v21 = vshll.u32 %v9077_v34, 16  ;;  %v3383_v22 = vshrl.u32 %v9077_v34, 16  ;;  %v3389_v55 = vshll.u32 %v3323_v56, 16  ;;  %v9129_v29 = vld [vmem:[#allocation2 + $0x20] sm:$0x1] }
  0xd7   : > { %7749 = vmatprep.subr.bf16.mxu1 %v8107_v18  ;;  %7808 = vmatpush3.bf16.msra.mxu0 %v8129_v27  ;;  %v11010_v57 = vcombine.low %v8907_v26, %v8892_v5  ;;  %v9127_v27 = vsel %vm8826_vm14, %v6791_v1, %v2608_v53  ;;  %v3372_v0 = vrot.slane %v3370_v33, 4  ;;  %v3375_v58 = vrot.slane %v3373_v47, 5 }
  0xd8   : > { %7730 = vmatmul.mubr.bf16.gmra.mxu0 %v6817_v30  ;;  %7889 = vmatprep.subr.bf16.mxu0 %v9082_v23  ;;  %v6820_v30 = vcombine.low %v9071_v7, %v9092_v24  ;;  %v11011_v56 = vcombine.low %v8960_v40, %v8666_v38  ;;  %v9138_v26 = vsel %vm8826_vm14, %v2610_v54, %v2611_v49  ;;  %v3385_v7 = vrot.slane %v3383_v22, 4  ;;  %v8115_v24 = vld [vmem:[%s10974_s5 + $0xd8] sm:$0xff]   ;;  %v9147_v49 = vld [vmem:[#allocation2 + $0x2c] sm:$0x1]  ;;  %v8119_v22 = vld [vmem:[%s10974_s5 + $0xd0] sm:$0xff]  }
  0xd9   : > { %7670 = vmatmul.mubr.bf16.gmra.mxu1 %v11010_v57  ;;  %7733 = vmatprep.mubr.bf16.mxu0 %v6818_v4  ;;  %v3381_v4 = vrot.slane %v3379_v21, 5  ;;  %v3376_v1 = vor.u32 %v3375_v58, %v3372_v0  ;;  %v3394_v38 = vshrl.u32 %v3324_v2, 16  ;;  %v3397_v40 = vshll.u32 %v3324_v2, 16  ;;  %v3330_v0 = vld [vmem:[#allocation2 + $0x30] sm:$0xf] }
  0xda   : > { %7673 = vmatprep.mubr.bf16.mxu1 %v11011_v56  ;;  %7750 = vmatpush3.bf16.msra.mxu1 %v8107_v18  ;;  %v3403_v18 = vshll.u32 %v9104_v46, 16  ;;  %v3391_v47 = vrot.slane %v3389_v55, 5  ;;  %v3407_v33 = vshrl.u32 %v9104_v46, 16  ;;  %v3418_v21 = vshrl.u32 %v3327_v20, 16 }
  0xdb   : > { %7751 = vmatprep.subr.bf16.mxu1 %v8111_v35  ;;  %v3386_v53 = vor.u32 %v3385_v7, %v3381_v4  ;;  %v3377_v54 = vrot.slane %v3376_v1, 4  ;;  %v3396_v57 = vrot.slane %v3394_v38, 4  ;;  %v3399_v56 = vrot.slane %v3397_v40, 5 }
  0xdc   : > { %v9152_v5 = vrot.slane %v3403_v18, 5  ;;  %v3409_v58 = vrot.slane %v3407_v33, 4  ;;  %v3413_v55 = vshll.u32 %v9129_v29, 16  ;;  %v3420_v7 = vrot.slane %v3418_v21, 4 }
  0xdd   : > { %v3387_v2 = vrot.slane %v3386_v53, 4  ;;  %v3400_v11 = vor.u32 %v3399_v56, %v3396_v57  ;;  %v3421_v34 = vshll.u32 %v3327_v20, 16  ;;  %v3427_v46 = vshll.u32 %v9140_v37, 16  ;;  %v9166_v53 = vld [vmem:[#allocation2 + $0x34] sm:$0xf] }
  0xde   : > { %7752 = vmatpush3.bf16.msra.mxu1 %v8111_v35  ;;  %v11012_v1 = vcombine.low %v9048_v32, %v9059_v60  ;;  %v3382_v35 = vsel %vm8444_vm11, %v3377_v54, %v3381_v4  ;;  %v3410_v38 = vor.u32 %v3409_v58, %v9152_v5  ;;  %v3431_v40 = vshrl.u32 %v9140_v37, 16  ;;  %v9175_v4 = vld [vmem:[#allocation2 + $0x38] sm:$0x1]  ;;  %v3333_v54 = vld [vmem:[#allocation2 + $0x3c] sm:$0xf] }
  0xdf   : > { %7753 = vmatprep.subr.bf16.mxu1 %v8115_v24  ;;  %v3437_v18 = vshll.u32 %v9147_v49, 16  ;;  %v11013_v20 = vcombine.low %v8697_v42, %v8703_v19  ;;  %v3392_v32 = vsel %vm8444_vm11, %v3387_v2, %v3391_v47  ;;  %v3401_v60 = vrot.slane %v3400_v11, 4  ;;  %v8123_v11 = vld [vmem:[%s10974_s5 + $0xc8] sm:$0xff]  }
  0xe0   : > { %7734 = vmatmul.mubr.bf16.gmra.mxu0 %v11012_v1  ;;  %v3423_v33 = vrot.slane %v3421_v34, 5  ;;  %v9173_v21 = vrot.slane %v3427_v46, 5  ;;  %v11014_v57 = vcombine.low %v8774_v12, %v8783_v39  ;;  %v3411_v56 = vrot.slane %v3410_v38, 4 }
  0xe1   : > { %7674 = vmatmul.mubr.bf16.gmra.mxu1 %v11013_v20  ;;  %7737 = vmatprep.mubr.bf16.mxu0 %v6820_v30  ;;  %v3415_v58 = vrot.slane %v3413_v55, 5  ;;  %v3433_v42 = vrot.slane %v3431_v40, 4  ;;  %v3442_v19 = vshrl.u32 %v3330_v0, 16  ;;  %v9180_v30 = vld [vmem:[#allocation2 + $0x40] sm:$0xf]  ;;  %v3439_v46 = vrot.slane %v3437_v18, 5 }
  0xe2   : > { %7677 = vmatprep.mubr.bf16.mxu1 %v11014_v57  ;;  %7754 = vmatpush3.bf16.msra.mxu1 %v8115_v24  ;;  %v3424_v34 = vor.u32 %v3423_v33, %v3420_v7  ;;  %v3445_v47 = vshll.u32 %v3330_v0, 16  ;;  %v3451_v2 = vshll.u32 %v9166_v53, 16  ;;  %v9186_v1 = vcombine.low %v3382_v35, %v3392_v32  ;;  %v8127_v55 = vld [vmem:[%s10974_s5 + $0xc0] sm:$0xff]   ;;  %v3336_v35 = vld [vmem:[#allocation2 + $0x48] sm:$0xf] }
  0xe3   : > { %7755 = vmatprep.subr.bf16.mxu1 %v8119_v22  ;;  %v3434_v12 = vor.u32 %v3433_v42, %v9173_v21  ;;  %v3444_v39 = vrot.slane %v3442_v19, 4  ;;  %v3455_v24 = vshrl.u32 %v9166_v53, 16  ;;  %v3406_v38 = vsel %vm8444_vm11, %v3401_v60, %v9152_v5  ;;  %v9198_v18 = vld [vmem:[#allocation2 + $0x44] sm:$0x1]  ;;  %v9204_v60 = vld [vmem:[#allocation2 + $0x4c] sm:$0xf] }
  0xe4   : > { %v3425_v7 = vrot.slane %v3424_v34, 4  ;;  %v3447_v40 = vrot.slane %v3445_v47, 5  ;;  %v9196_v0 = vrot.slane %v3451_v2, 5  ;;  %v3461_v33 = vshll.u32 %v9175_v4, 16 }
  0xe5   : > { %v3435_v20 = vrot.slane %v3434_v12, 4  ;;  %v3457_v32 = vrot.slane %v3455_v24, 4  ;;  %v3466_v57 = vshrl.u32 %v3333_v54, 16  ;;  %v3416_v42 = vsel %vm8444_vm11, %v3411_v56, %v3415_v58 }
  0xe6   : > { %7756 = vmatpush3.bf16.msra.mxu1 %v8119_v22  ;;  %v3448_v19 = vor.u32 %v3447_v40, %v3444_v39  ;;  %v3469_v36 = vshll.u32 %v3333_v54, 16  ;;  %v3475_v5 = vshll.u32 %v9180_v30, 16  ;;  %v11015_v34 = vcombine.low %v9075_v25, %v9096_v45  ;;  %v9224_v25 = vld [vmem:[%s10974_s5 + $0x178] sm:$0xff]   ;;  %v9226_v39 = vld [vmem:[#allocation2 + $0x50] sm:$0x1] }
  0xe7   : > { %7757 = vmatprep.subr.bf16.mxu1 %v8123_v11  ;;  %v3430_v22 = vsel %vm8444_vm11, %v3425_v7, %v9173_v21  ;;  %v3440_v47 = vsel %vm8444_vm11, %v3435_v20, %v3439_v46  ;;  %v3458_v2 = vor.u32 %v3457_v32, %v9196_v0  ;;  %v3468_v56 = vrot.slane %v3466_v57, 4  ;;  %v3339_v7 = vld [vmem:[#allocation2 + $0x54] sm:$0xf]  ;;  %v9241_v57 = vld [vmem:[#allocation2 + $0x58] sm:$0xf] }
  0xe8   : > { %7738 = vmatmul.mubr.bf16.gmra.mxu0 %v11015_v34  ;;  %v11016_v54 = vcombine.low %v8803_v62, %v8810_v28  ;;  %v11017_v58 = vcombine.low %v9111_v61, %v9115_v13  ;;  %v3449_v45 = vrot.slane %v3448_v19, 4  ;;  %v3463_v21 = vrot.slane %v3461_v33, 5 }
  0xe9   : > { %v3471_v12 = vrot.slane %v3469_v36, 5  ;;  %v3477_v46 = vrot.slane %v3475_v5, 5  ;;  %v11018_v24 = vcombine.low %v8986_v14, %v8971_v16  ;;  %v3459_v62 = vrot.slane %v3458_v2, 4 }
  0xea   : > { %7678 = vmatmul.mubr.bf16.gmra.mxu1 %v11016_v54  ;;  %7741 = vmatprep.mubr.bf16.mxu0 %v11017_v58  ;;  %v3479_v28 = vshrl.u32 %v9180_v30, 16  ;;  %v3485_v61 = vshll.u32 %v9198_v18, 16  ;;  %v3490_v13 = vshrl.u32 %v3336_v35, 16  ;;  %v9233_v40 = vcombine.low %v3406_v38, %v3416_v42  ;;  %v9245_v38 = vld [vmem:[#allocation2 + $0x5c] sm:$0x1] }
  0xeb   : > { %7681 = vmatprep.mubr.bf16.mxu1 %v11018_v24  ;;  %7758 = vmatpush3.bf16.msra.mxu1 %v8123_v11  ;;  %v3472_v20 = vor.u32 %v3471_v12, %v3468_v56  ;;  %v3493_v36 = vshll.u32 %v3336_v35, 16  ;;  %v3499_v32 = vshll.u32 %v9204_v60, 16  ;;  %v9236_v33 = vcombine.low %v3430_v22, %v3440_v47  ;;  %v3342_v56 = vld [vmem:[#allocation2 + $0x60] sm:$0xf] }
  0xec   : > { %7759 = vmatprep.subr.bf16.mxu1 %v8127_v55  ;;  %v3454_v16 = vsel %vm8444_vm11, %v3449_v45, %v9196_v0  ;;  %v3481_v14 = vrot.slane %v3479_v28, 4  ;;  %v3492_v11 = vrot.slane %v3490_v13, 4  ;;  %v3487_v5 = vrot.slane %v3485_v61, 5  ;;  %v9258_v13 = vld [vmem:[#allocation2 + $0x64] sm:$0xf] }
  0xed   : > { %v3473_v19 = vrot.slane %v3472_v20, 4  ;;  %v3495_v34 = vrot.slane %v3493_v36, 5  ;;  %v9243_v2 = vrot.slane %v3499_v32, 5  ;;  %v3503_v42 = vshrl.u32 %v9204_v60, 16  ;;  %v3345_v32 = vld [vmem:[#allocation2 + $0x6c] sm:$0xf] }
  0xee   : > { %v3482_v35 = vor.u32 %v3481_v14, %v3477_v46  ;;  %v3509_v22 = vshll.u32 %v9226_v39, 16  ;;  %v3514_v47 = vshrl.u32 %v3339_v7, 16  ;;  %v3464_v0 = vsel %vm8444_vm11, %v3459_v62, %v3463_v21 }
  0xef   : > { %7760 = vmatpush3.bf16.msra.mxu1 %v8127_v55  ;;  %v3496_v54 = vor.u32 %v3495_v34, %v3492_v11  ;;  %v3517_v58 = vshll.u32 %v3339_v7, 16  ;;  %v3523_v45 = vshll.u32 %v9241_v57, 16  ;;  %v11019_v12 = vcombine.low %v9127_v27, %v9138_v26  ;;  %v9267_v26 = vld [vmem:[#allocation2 + $0x68] sm:$0x1] }
  0xf0   : > { %7841 = vmatprep.subr.bf16.mxu1 %v9224_v25  ;;  %v3478_v55 = vsel %vm8444_vm11, %v3473_v19, %v3477_v46  ;;  %v3483_v24 = vrot.slane %v3482_v35, 4  ;;  %v3505_v28 = vrot.slane %v3503_v42, 4  ;;  %v3516_v61 = vrot.slane %v3514_v47, 4 }
  0xf1   : > { %7742 = vmatmul.mubr.bf16.gmra.mxu0 %v11019_v12  ;;  %v11020_v20 = vcombine.low %v9012_v3, %v8976_v31  ;;  %v3511_v21 = vrot.slane %v3509_v22, 5  ;;  %v3519_v62 = vrot.slane %v3517_v58, 5  ;;  %v9264_v7 = vrot.slane %v3523_v45, 5 }
  0xf2   : > { %7809 = vmatprep.mubr.bf16.mxu0 %v9186_v1  ;;  %v3527_v27 = vshrl.u32 %v9241_v57, 16  ;;  %v11021_v46 = vcombine.low %v9016_v44, %v8993_v41  ;;  %v3488_v36 = vsel %vm8444_vm11, %v3483_v24, %v3487_v5  ;;  %v3506_v31 = vor.u32 %v3505_v28, %v9243_v2  ;;  %v9280_v44 = vld [vmem:[#allocation2 + $0x70] sm:$0xf] }
  0xf3   : > { %7682 = vmatmul.mubr.bf16.gmra.mxu1 %v11020_v20  ;;  %v3533_v3 = vshll.u32 %v9245_v38, 16  ;;  %v3538_v1 = vshrl.u32 %v3342_v56, 16  ;;  %v9276_v14 = vcombine.low %v3454_v16, %v3464_v0  ;;  %v3497_v11 = vrot.slane %v3496_v54, 4  ;;  %v8137_v5 = vld [vmem:[%s10974_s5 + $0x1b0] sm:$0xff]  }
  0xf4   : > { %7685 = vmatprep.mubr.bf16.mxu1 %v11021_v46  ;;  %v3520_v19 = vor.u32 %v3519_v62, %v3516_v61  ;;  %v3529_v34 = vrot.slane %v3527_v27, 4  ;;  %v9278_v35 = vcombine.low %v3478_v55, %v3488_v36  ;;  %v3507_v42 = vrot.slane %v3506_v31, 4  ;;  %v9288_v54 = vld [vmem:[#allocation2 + $0x74] sm:$0x1]  ;;  %v8141_v62 = vld [vmem:[%s10974_s5 + $0x1a8] sm:$0xff]  }
  0xf5   : > { %v3540_v22 = vrot.slane %v3538_v1, 4  ;;  %v3541_v41 = vshll.u32 %v3342_v56, 16  ;;  %v3547_v16 = vshll.u32 %v9258_v13, 16  ;;  %v3551_v0 = vshrl.u32 %v9258_v13, 16 }
  0xf6   : > { %v3521_v47 = vrot.slane %v3520_v19, 4  ;;  %v3530_v58 = vor.u32 %v3529_v34, %v9264_v7  ;;  %v3535_v45 = vrot.slane %v3533_v3, 5  ;;  %v3557_v55 = vshll.u32 %v9267_v26, 16  ;;  %v9311_v19 = vld [vmem:[#allocation2 + $0x7c] sm:$0xf] }
  0xf7   : > { %v3543_v12 = vrot.slane %v3541_v41, 5  ;;  %v3562_v56 = vshrl.u32 %v3345_v32, 16  ;;  %v3502_v24 = vsel %vm8444_vm11, %v3497_v11, %v9243_v2  ;;  %v3512_v28 = vsel %vm8444_vm11, %v3507_v42, %v3511_v21  ;;  %v3348_v2 = vld [vmem:[#allocation2 + $0x78] sm:$0xf]  ;;  %v9321_v41 = vld [vmem:[#allocation2 + $0x80] sm:$0x1] }
  0xf8   : > { %v3531_v61 = vrot.slane %v3530_v58, 4  ;;  %v9296_v20 = vrot.slane %v3547_v16, 5  ;;  %v3526_v27 = vsel %vm8444_vm11, %v3521_v47, %v9264_v7  ;;  %v3553_v36 = vrot.slane %v3551_v0, 4  ;;  %v3351_v58 = vld [vmem:[#allocation2 + $0x84] sm:$0xf] }
  0xf9   : > { %7810 = vmatmul.mubr.bf16.vlgmr.msra.gmra.mxu0 %v9233_v40  ;;  %v3544_v46 = vor.u32 %v3543_v12, %v3540_v22  ;;  %v3559_v31 = vrot.slane %v3557_v55, 5  ;;  %v11022_v21 = vcombine.low %v9035_v59, %v9020_v43  ;;  %v3564_v3 = vrot.slane %v3562_v56, 4  ;;  %v9326_v56 = vld [vmem:[#allocation2 + $0x88] sm:$0xf] }
  0xfa   : > { %7890 = vmatpush3.bf16.msra.mxu0 %v9082_v23  ;;  %v3565_v40 = vshll.u32 %v3345_v32, 16  ;;  %v3571_v1 = vshll.u32 %v9280_v44, 16  ;;  %v3575_v11 = vshrl.u32 %v9280_v44, 16  ;;  %v11023_v7 = vcombine.low %v8728_v15, %v8730_v51  ;;  %7813 = vmatprep.mubr.bf16.mxu0 %v9236_v33 }
  0xfb   : > { %7686 = vmatmul.mubr.bf16.gmra.mxu1 %v11022_v21  ;;  %v3536_v59 = vsel %vm8444_vm11, %v3531_v61, %v3535_v45  ;;  %v3545_v43 = vrot.slane %v3544_v46, 4  ;;  %v3554_v23 = vor.u32 %v3553_v36, %v9296_v20  ;;  %v3581_v32 = vshll.u32 %v9288_v54, 16  ;;  %7891 = vmatprep.subr.bf16.mxu0 %v8137_v5  ;;  %v9334_v36 = vld [vmem:[#allocation2 + $0x8c] sm:$0x1] }
  0xfc   : > { %7689 = vmatprep.mubr.bf16.mxu1 %v11023_v7  ;;  %v3567_v34 = vrot.slane %v3565_v40, 5  ;;  %v3573_v42 = vrot.slane %v3571_v1, 5  ;;  %v3577_v22 = vrot.slane %v3575_v11, 4  ;;  %v3586_v47 = vshrl.u32 %v3348_v2, 16  ;;  %v3354_v40 = vld [vmem:[#allocation2 + $0x90] sm:$0xf] }
  0xfd   : > { %v9323_v15 = vcombine.low %v3502_v24, %v3512_v28  ;;  %v3555_v51 = vrot.slane %v3554_v23, 4  ;;  %v3583_v33 = vrot.slane %v3581_v32, 5  ;;  %v3589_v16 = vshll.u32 %v3348_v2, 16  ;;  %v8145_v2 = vld [vmem:[%s10974_s5 + $0x1a0] sm:$0xff]  }
  0xfe   : > { %7892 = vmatpush3.bf16.msra.mxu0 %v8137_v5  ;;  %v3568_v0 = vor.u32 %v3567_v34, %v3564_v3  ;;  %v3578_v45 = vor.u32 %v3577_v22, %v3573_v42  ;;  %v3588_v12 = vrot.slane %v3586_v47, 4  ;;  %v3595_v55 = vshll.u32 %v9311_v19, 16  ;;  %v9357_v34 = vld [vmem:[#allocation2 + $0x94] sm:$0xf] }
  0xff   : > { %7893 = vmatprep.subr.bf16.mxu0 %v8141_v62  ;;  %v9328_v61 = vcombine.low %v3526_v27, %v3536_v59  ;;  %v3550_v46 = vsel %vm8444_vm11, %v3545_v43, %v9296_v20  ;;  %v3591_v24 = vrot.slane %v3589_v16, 5  ;;  %v3599_v28 = vshrl.u32 %v9311_v19, 16  ;;  %v9369_v16 = vld [vmem:[#allocation2 + $0x98] sm:$0x1] }
 0x100   : > { %v3560_v5 = vsel %vm8444_vm11, %v3555_v51, %v3559_v31  ;;  %v3569_v21 = vrot.slane %v3568_v0, 4  ;;  %v3579_v3 = vrot.slane %v3578_v45, 4  ;;  %v9341_v27 = vrot.slane %v3595_v55, 5  ;;  %v3357_v0 = vld [vmem:[#allocation2 + $0x9c] sm:$0xf] }
 0x101   : > { %7814 = vmatmul.mubr.bf16.gmra.mxu0 %v9276_v14  ;;  %v3592_v20 = vor.u32 %v3591_v24, %v3588_v12  ;;  %v3601_v1 = vrot.slane %v3599_v28, 4  ;;  %v3605_v11 = vshll.u32 %v9321_v41, 16  ;;  %v3610_v7 = vshrl.u32 %v3351_v58, 16  ;;  %v8149_v14 = vld [vmem:[%s10974_s5 + $0x198] sm:$0xff]   ;;  %v9373_v55 = vld [vmem:[#allocation2 + $0xa0] sm:$0xf] }
 0x102   : > { %v11024_v59 = vcombine.low %v8758_v50, %v8760_v48  ;;  %7817 = vmatprep.mubr.bf16.mxu0 %v9278_v35  ;;  %v3574_v31 = vsel %vm8444_vm11, %v3569_v21, %v3573_v42  ;;  %v3584_v43 = vsel %vm8444_vm11, %v3579_v3, %v3583_v33  ;;  %v3613_v23 = vshll.u32 %v3351_v58, 16  ;;  %7894 = vmatpush3.bf16.msra.mxu0 %v8141_v62  ;;  %v8153_v21 = vld [vmem:[%s10974_s5 + $0x190] sm:$0xff]  }
 0x103   : > { %v3619_v32 = vshll.u32 %v9326_v56, 16  ;;  %v11025_v50 = vcombine.low %v8856_v8, %v8877_v63  ;;  %v9362_v48 = vcombine.low %v3550_v46, %v3560_v5  ;;  %v3593_v35 = vrot.slane %v3592_v20, 4  ;;  %7895 = vmatprep.subr.bf16.mxu0 %v8145_v2  ;;  %v8130_v8 = vld [vmem:[#allocation2 + $0xc] sm:$0xff]  }
 0x104   : > { %7690 = vmatmul.mubr.bf16.gmra.mxu1 %v11024_v59  ;;  %v3602_v42 = vor.u32 %v3601_v1, %v9341_v27  ;;  %v3612_v22 = vrot.slane %v3610_v7, 4  ;;  %v3615_v47 = vrot.slane %v3613_v23, 5  ;;  %v3623_v58 = vshrl.u32 %v9326_v56, 16 }
 0x105   : > { %7693 = vmatprep.mubr.bf16.mxu1 %v11025_v50  ;;  %v9365_v51 = vrot.slane %v3619_v32, 5  ;;  %v3629_v33 = vshll.u32 %v9334_v36, 16  ;;  %v9371_v63 = vcombine.low %v3574_v31, %v3584_v43  ;;  %v3607_v62 = vrot.slane %v3605_v11, 5  ;;  %v9386_v43 = vld [vmem:[#allocation2 + $0xa4] sm:$0x1] }
 0x106   : > { %v3634_v45 = vshrl.u32 %v3354_v40, 16  ;;  %v3637_v12 = vshll.u32 %v3354_v40, 16  ;;  %v3603_v46 = vrot.slane %v3602_v42, 4  ;;  %v3616_v24 = vor.u32 %v3615_v47, %v3612_v22  ;;  %7896 = vmatpush3.bf16.msra.mxu0 %v8145_v2  ;;  %v3360_v42 = vld [vmem:[#allocation2 + $0xa8] sm:$0xf] }
 0x107   : > { %v3625_v28 = vrot.slane %v3623_v58, 4  ;;  %v3643_v5 = vshll.u32 %v9357_v34, 16  ;;  %v3631_v3 = vrot.slane %v3629_v33, 5  ;;  %v3647_v7 = vshrl.u32 %v9357_v34, 16  ;;  %7897 = vmatprep.subr.bf16.mxu0 %v8149_v14 }
 0x108   : > { %v3636_v20 = vrot.slane %v3634_v45, 4  ;;  %v3639_v1 = vrot.slane %v3637_v12, 5  ;;  %v3598_v40 = vsel %vm8444_vm11, %v3593_v35, %v9341_v27  ;;  %v3617_v11 = vrot.slane %v3616_v24, 4  ;;  %v9403_v45 = vld [vmem:[#allocation2 + $0xac] sm:$0xf]  ;;  %v8132_v12 = vld [vmem:[#allocation2 + $0x18] sm:$0xff]  }
 0x109   : > { %v3626_v59 = vor.u32 %v3625_v28, %v9365_v51  ;;  %v9384_v31 = vrot.slane %v3643_v5, 5  ;;  %7818 = vmatmul.mubr.bf16.gmra.mxu0 %v9323_v15  ;;  %v3649_v23 = vrot.slane %v3647_v7, 4  ;;  %v3653_v32 = vshll.u32 %v9369_v16, 16 }
 0x10a   : > { %v3640_v2 = vor.u32 %v3639_v1, %v3636_v20  ;;  %v3658_v50 = vshrl.u32 %v3357_v0, 16  ;;  %v11026_v22 = vcombine.low %v8912_v17, %v8920_v9  ;;  %7821 = vmatprep.mubr.bf16.mxu0 %v9328_v61  ;;  %v3608_v27 = vsel %vm8444_vm11, %v3603_v46, %v3607_v62  ;;  %7898 = vmatpush3.bf16.msra.mxu0 %v8149_v14  ;;  %v8134_v20 = vld [vmem:[#allocation2 + $0x24] sm:$0xff]  }
 0x10b   : > { %v3627_v35 = vrot.slane %v3626_v59, 4  ;;  %v3661_v47 = vshll.u32 %v3357_v0, 16  ;;  %v3667_v58 = vshll.u32 %v9373_v55, 16  ;;  %v3622_v15 = vsel %vm8444_vm11, %v3617_v11, %v9365_v51  ;;  %7899 = vmatprep.subr.bf16.mxu0 %v8153_v21  ;;  %v8157_v51 = vld [vmem:[%s10974_s5 + $0x188] sm:$0xff]  }
 0x10c   : > { %7694 = vmatmul.mubr.bf16.gmra.mxu1 %v11026_v22  ;;  %v9400_v33 = vrot.slane %v3640_v2, 4  ;;  %v3650_v17 = vor.u32 %v3649_v23, %v9384_v31  ;;  %v3660_v9 = vrot.slane %v3658_v50, 4  ;;  %v3671_v14 = vshrl.u32 %v9373_v55, 16  ;;  %v9422_v2 = vld [vmem:[#allocation2 + $0xb8] sm:$0xf]  ;;  %v8135_v23 = vld [vmem:[%s10974_s5 + $0x170] sm:$0xff]  }
 0x10d   : > { %7761 = vmatprep.mubr.bf16.mxu1 %v8130_v8  ;;  %v3632_v61 = vsel %vm8444_vm11, %v3627_v35, %v3631_v3  ;;  %v3663_v0 = vrot.slane %v3661_v47, 5  ;;  %v9407_v62 = vrot.slane %v3667_v58, 5  ;;  %v9410_v8 = vld [vmem:[#allocation2 + $0xb0] sm:$0x1]  ;;  %v9415_v46 = vcombine.low %v3598_v40, %v3608_v27  ;;  %v3363_v3 = vld [vmem:[#allocation2 + $0xb4] sm:$0xf] }
 0x10e   : > { %v9417_v24 = vrot.slane %v3650_v17, 4  ;;  %v9419_v28 = vrot.slane %v3653_v32, 5  ;;  %v3677_v5 = vshll.u32 %v9386_v43, 16  ;;  %v3673_v7 = vrot.slane %v3671_v14, 4  ;;  %7900 = vmatpush3.bf16.msra.mxu0 %v8153_v21 }
 0x10f   : > { %v3664_v1 = vor.u32 %v3663_v0, %v3660_v9  ;;  %v3682_v11 = vshrl.u32 %v3360_v42, 16  ;;  %v3685_v59 = vshll.u32 %v3360_v42, 16  ;;  %v9427_v40 = vcombine.low %v3622_v15, %v3632_v61  ;;  %7901 = vmatprep.subr.bf16.mxu0 %v8157_v51  ;;  %v8161_v9 = vld [vmem:[%s10974_s5 + $0x180] sm:$0xff]  }
 0x110   : > { %v9429_v50 = vrot.slane %v3677_v5, 5  ;;  %v3691_v32 = vshll.u32 %v9403_v45, 16  ;;  %v3695_v22 = vshrl.u32 %v9403_v45, 16  ;;  %v3646_v42 = vsel %vm8444_vm11, %v9400_v33, %v9384_v31  ;;  %v8139_v31 = vld [vmem:[%s10974_s5 + $0x168] sm:$0xff]  }
 0x111   : > { %v3665_v27 = vrot.slane %v3664_v1, 4  ;;  %v3674_v35 = vor.u32 %v3673_v7, %v9407_v62  ;;  %v3684_v47 = vrot.slane %v3682_v11, 4  ;;  %7822 = vmatmul.mubr.bf16.gmra.mxu0 %v9362_v48  ;;  %v3687_v58 = vrot.slane %v3685_v59, 5  ;;  %v9458_v1 = vld [vmem:[#allocation2 + $0xbc] sm:$0x1] }
 0x112   : > { %v9439_v21 = vrot.slane %v3691_v32, 5  ;;  %v3697_v15 = vrot.slane %v3695_v22, 4  ;;  %v3701_v17 = vshll.u32 %v9410_v8, 16  ;;  %7825 = vmatprep.mubr.bf16.mxu0 %v9371_v63  ;;  %v3656_v48 = vsel %vm8444_vm11, %v9417_v24, %v9419_v28  ;;  %v520_v7 = vld [vmem:[#allocation2 + $0xc0] sm:$0x1]  ;;  %v7369_v11 = vld [vmem:[%s8328_s14 + $0x78] sm:$0xff]   ;;  %7902 = vmatpush3.bf16.msra.mxu0 %v8157_v51 }
 0x113   : > { %v3675_v33 = vrot.slane %v3674_v35, 4  ;;  %v3706_v61 = vshrl.u32 %v3363_v3, 16  ;;  %v3709_v0 = vshll.u32 %v3363_v3, 16  ;;  %v3670_v14 = vsel %vm8444_vm11, %v3665_v27, %v9407_v62  ;;  %7903 = vmatprep.subr.bf16.mxu0 %v8161_v9  ;;  %v9469_v27 = vld [vmem:[%s10974_s5 + $0x238] sm:$0xff]   ;;  %v8136_v35 = vld [vmem:[#allocation2 + $0x30] sm:$0xff]  }
 0x114   : > { %7762 = vmatmul.mubr.bf16.vlgmr.msra.gmra.mxu1 %v8132_v12  ;;  %v3688_v12 = vor.u32 %v3687_v58, %v3684_v47  ;;  %v3698_v5 = vor.u32 %v3697_v15, %v9439_v21  ;;  %v3715_v63 = vshll.u32 %v9422_v2, 16  ;;  %v3703_v24 = vrot.slane %v3701_v17, 5  ;;  %v8138_v17 = vld [vmem:[#allocation2 + $0x3c] sm:$0xff]  }
 0x115   : > { %7842 = vmatpush3.bf16.msra.mxu1 %v9224_v25  ;;  %7765 = vmatprep.mubr.bf16.mxu1 %v8134_v20  ;;  %v3708_v28 = vrot.slane %v3706_v61, 4  ;;  %v3711_v3 = vrot.slane %v3709_v0, 5  ;;  %v3719_v25 = vshrl.u32 %v9422_v2, 16  ;;  %v576_v20 = vld [vmem:[#allocation2 + $0xc8] sm:$0x1]  ;;  %v3680_v62 = vsel %vm8444_vm11, %v3675_v33, %v9429_v50  ;;  %v8143_v0 = vld [vmem:[%s10974_s5 + $0x160] sm:$0xff]  }
 0x116   : > { %7843 = vmatprep.subr.bf16.mxu1 %v8135_v23  ;;  %v3689_v59 = vrot.slane %v3688_v12, 4  ;;  %v3699_v32 = vrot.slane %v3698_v5, 4  ;;  %v3717_v22 = vrot.slane %v3715_v63, 5  ;;  %v3725_v58 = vshll.u32 %v9458_v1, 16  ;;  %v4076_v61 = vld [vmem:[#allocation2 + $0x18] sm:$0xe]  ;;  %7904 = vmatpush3.bf16.msra.mxu0 %v8161_v9 }
 0x117   : > { %v3712_v51 = vor.u32 %v3711_v3, %v3708_v28  ;;  %v3721_v47 = vrot.slane %v3719_v25, 4  ;;  %v521_v15 = vsel %vm8332_vm3, 0, %v520_v7  ;;  %v577_v50 = vsel %vm8343_vm4, 0, %v576_v20  ;;  %v8222_v3 = vld [vmem:[%s10972_s3] ss:$0 sm:$0xff]  ;;  %7985 = vmatprep.subr.bf16.mxu0 %v9469_v27 }
 0x118   : > { %522 = vst [vmem:[#allocation2 + $0xc0] sm:$0x1] %v521_v15  ;;  %v7273_v33 = vunpack.c.l.bf16 %v7369_v11  ;;  %v3727_v63 = vrot.slane %v3725_v58, 5  ;;  %578 = vst [vmem:[#allocation2 + $0xc8] sm:$0x1] %v577_v50  ;;  %v6900_v7 = vcombine.low %v3670_v14, %v3680_v62  ;;  %v7274_v28 = vunpack.c.h.bf16 %v7369_v11  ;;  %v11028_v15 = vld [vmem:[#allocation8_spill] sm:$0xff] }
 0x119   : > { %7844 = vmatpush3.bf16.msra.mxu1 %v8135_v23  ;;  %v3713_v12 = vrot.slane %v3712_v51, 4  ;;  %v3722_v5 = vor.u32 %v3721_v47, %v3717_v22  ;;  %7826 = vmatmul.mubr.bf16.gmra.mxu0 %v9415_v46  ;;  %v6899_v23 = vcombine.low %v3646_v42, %v3656_v48  ;;  %v4077_v20 = vld [vmem:[#allocation2 + $0x24] sm:$0xe]  ;;  %v3694_v9 = vsel %vm8444_vm11, %v3689_v59, %v9439_v21  ;;  %v8223_v62 = vld [vmem:[%s10973_s4] ss:$0 sm:$0xff]  ;;  %v8147_v21 = vld [vmem:[%s10974_s5 + $0x158] sm:$0xff]  }
 0x11a   : > { %7845 = vmatprep.subr.bf16.mxu1 %v8139_v31  ;;  %v682_v25 = vmul.f32 %v8222_v3, %v7273_v33  ;;  %7829 = vmatprep.mubr.bf16.mxu0 %v9427_v40  ;;  %v3704_v46 = vsel %vm8444_vm11, %v3699_v32, %v3703_v24  ;;  %v6913_v48 = vrot.slane %v4076_v61, 9  ;;  %v683_v11 = vmul.f32 %v8222_v3, %v7274_v28  ;;  %v11027_v59 = vld [vmem:[#allocation9_spill] sm:$0xff]  ;;  %v8142_v28 = vld [vmem:[#allocation2 + $0x54] sm:$0xff]  }
 0x11b   : > { %v3723_v42 = vrot.slane %v3722_v5, 4  ;;  %v3718_v14 = vsel %vm8444_vm11, %v3713_v12, %v3717_v22  ;;  %v4148_v32 = vrot.slane %v11027_v59, 5  ;;  %v4078_v22 = vld [vmem:[#allocation2 + $0x30] sm:$0xe]  ;;  %v9502_v51 = vcombine.low %v3694_v9, %v3704_v46  ;;  %v8140_v50 = vld [vmem:[#allocation2 + $0x48] sm:$0xff]  }
 0x11c   : > { %7766 = vmatmul.mubr.bf16.gmra.mxu1 %v8136_v35  ;;  %v720_v40 = vadd.f32 %v8223_v62, %v682_v25  ;;  %v6914_v35 = vrot.slane %v4077_v20, 9  ;;  %v721_v47 = vadd.f32 %v8223_v62, %v683_v11  ;;  %v4158_v25 = vrot.slane %v9147_v49, 5  ;;  %v8151_v9 = vld [vmem:[%s10974_s5 + $0x150] sm:$0xff]   ;;  %v4079_v62 = vld [vmem:[#allocation2 + $0x3c] sm:$0xe] }
 0x11d   : > { %7769 = vmatprep.mubr.bf16.mxu1 %v8138_v17  ;;  %7846 = vmatpush3.bf16.msra.mxu1 %v8139_v31  ;;  %v3728_v24 = vsel %vm8444_vm11, %v3723_v42, %v3727_v63  ;;  %v4151_v31 = vrot.slane %v9129_v29, 5  ;;  %v4141_v17 = vrot.slane %v11028_v15, 5  ;;  %v9509_v12 = vsel %vm8826_vm14, %v6913_v48, %v4148_v32  ;;  %v8173_v15 = vld [vmem:[%s10974_s5 + $0x228] sm:$0xff]  }
 0x11e   : > { %7847 = vmatprep.subr.bf16.mxu1 %v8143_v0  ;;  %v752_v58 = vmax.f32 %v720_v40, 0.0  ;;  %v9505_v33 = vcombine.low %v3718_v14, %v3728_v24  ;;  %v4150_v5 = vrot.slane %v4148_v32, 4  ;;  %v4155_v63 = vrot.slane %v9140_v37, 5 }
 0x11f   : > { %v753_v29 = vmax.f32 %v721_v47, 0.0  ;;  %v6915_v20 = vrot.slane %v4078_v22, 9  ;;  %v8155_v22 = vld [vmem:[%s10974_s5 + $0x148] sm:$0xff]   ;;  %v1280_v47 = vld [vmem:[#allocation2 + $0xc0] sm:$0xf] }
 0x120   : > { %v7173_v3 = vpack.c.bf16 %v752_v58, %v752_v58  ;;  %v9518_v46 = vsel %vm8826_vm14, %v4150_v5, %v4151_v31  ;;  %v9522_v42 = vsel %vm8826_vm14, %v6914_v35, %v4155_v63  ;;  %v4157_v37 = vrot.slane %v4155_v63, 4 }
 0x121   : > { %7848 = vmatpush3.bf16.msra.mxu1 %v8143_v0  ;;  %v4162_v0 = vrot.slane %v9166_v53, 5  ;;  %7830 = vmatmul.mubr.bf16.gmra.mxu0 %v6899_v23  ;;  %v7174_v48 = vpack.c.bf16 %v753_v29, %v753_v29  ;;  %v6945_v11 = vcombine.low %v9509_v12, %v9518_v46  ;;  %v4165_v53 = vrot.slane %v9175_v4, 5  ;;  %v4088_v29 = vld [vmem:[#allocation2 + $0xa8] sm:$0xe] }
 0x122   : > { %7849 = vmatprep.subr.bf16.mxu1 %v8147_v21  ;;  %v1108_v49 = vshrl.u32 %v7173_v3, 16  ;;  %v1111_v14 = vshll.u32 %v7173_v3, 16  ;;  %7833 = vmatprep.mubr.bf16.mxu0 %v6900_v7  ;;  %v9529_v40 = vsel %vm8826_vm14, %v4157_v37, %v4158_v25  ;;  %v4080_v7 = vld [vmem:[#allocation2 + $0x48] sm:$0xe]  ;;  %v6916_v4 = vrot.slane %v4079_v62, 9  ;;  %v8144_v25 = vld [vmem:[#allocation2 + $0x60] sm:$0xff]  }
 0x123   : > { %v9533_v24 = vsel %vm8826_vm14, %v6915_v20, %v4162_v0  ;;  %v4164_v59 = vrot.slane %v4162_v0, 4  ;;  %v1116_v32 = vshrl.u32 %v7174_v48, 16  ;;  %v1119_v31 = vshll.u32 %v7174_v48, 16  ;;  %v4081_v3 = vld [vmem:[#allocation2 + $0x54] sm:$0xe] }
 0x124   : > { %7770 = vmatmul.mubr.bf16.gmra.mxu1 %v8140_v50  ;;  %v1110_v23 = vrot.slane %v1108_v49, 7  ;;  %v6946_v35 = vcombine.low %v9522_v42, %v9529_v40  ;;  %v4172_v50 = vrot.slane %v9198_v18, 5  ;;  %v1284_v20 = vld [vmem:[#allocation2 + $0xc8] sm:$0x1]  ;;  %v6917_v48 = vrot.slane %v4080_v7, 9 }
 0x125   : > { %7773 = vmatprep.mubr.bf16.mxu1 %v8142_v28  ;;  %7850 = vmatpush3.bf16.msra.mxu1 %v8147_v21  ;;  %v9543_v58 = vsel %vm8826_vm14, %v4164_v59, %v4165_v53  ;;  %v4169_v21 = vrot.slane %v9180_v30, 5  ;;  %v1118_v28 = vrot.slane %v1116_v32, 7  ;;  %v4176_v49 = vrot.slane %v9204_v60, 5  ;;  %v8146_v30 = vld [vmem:[#allocation2 + $0x6c] sm:$0xff]   ;;  %v8159_v32 = vld [vmem:[%s10974_s5 + $0x140] sm:$0xff]  }
 0x126   : > { %7851 = vmatprep.subr.bf16.mxu1 %v8151_v9  ;;  %v1113_v5 = vor.u32 %v1111_v14, %v1110_v23  ;;  %v1114_v63 = vrot.slane %v1110_v23, 4  ;;  %v4179_v53 = vrot.slane %v9226_v39, 5  ;;  %v4082_v23 = vld [vmem:[#allocation2 + $0x60] sm:$0xe]  ;;  %v4960_v62 = vld [vmem:[#allocation2 + $0x18] sm:$0xf] }
 0x127   : > { %v9551_v37 = vsel %vm8826_vm14, %v6916_v4, %v4169_v21  ;;  %v4171_v0 = vrot.slane %v4169_v21, 4  ;;  %v1121_v18 = vor.u32 %v1119_v31, %v1118_v28  ;;  %v1123_v14 = vrot.slane %v1118_v28, 4 }
 0x128   : > { %v1281_v59 = vsel %vm8378_vm6, %v1113_v5, %v1280_v47  ;;  %v9566_v60 = vsel %vm8826_vm14, %v6917_v48, %v4176_v49  ;;  %v6918_v31 = vrot.slane %v4081_v3, 9  ;;  %v4083_v5 = vld [vmem:[#allocation2 + $0x6c] sm:$0xe]  ;;  %v6919_v28 = vrot.slane %v4082_v23, 9  ;;  %v8150_v23 = vld [vmem:[#allocation2 + $0x84] sm:$0xff]  }
 0x129   : > { %7852 = vmatpush3.bf16.msra.mxu1 %v8151_v9  ;;  %1282 = vst [vmem:[#allocation2 + $0xc0] sm:$0xf] %v1281_v59  ;;  %v9562_v7 = vsel %vm8826_vm14, %v4171_v0, %v4172_v50  ;;  %v4178_v9 = vrot.slane %v4176_v49, 4  ;;  %7834 = vmatmul.mubr.bf16.gmra.mxu0 %v9502_v51  ;;  %v1122_v47 = vsel %vm8418_vm10, %v1114_v63, %v1121_v18  ;;  %v4183_v50 = vrot.slane %v9241_v57, 5  ;;  %v4085_v59 = vld [vmem:[#allocation2 + $0x84] sm:$0xe] }
 0x12a   : > { %7853 = vmatprep.subr.bf16.mxu1 %v8155_v22  ;;  %v1285_v4 = vsel %vm8332_vm3, %v1123_v14, %v1284_v20  ;;  %7837 = vmatprep.mubr.bf16.mxu0 %v9505_v33  ;;  %1283 = vst [vmem:[#allocation2 + $0xc4] sm:$0xf] %v1122_v47  ;;  %v4186_v63 = vrot.slane %v9245_v38, 5  ;;  %v4190_v3 = vrot.slane %v9258_v13, 5  ;;  %v4084_v20 = vld [vmem:[#allocation2 + $0x78] sm:$0xe] }
 0x12b   : > { %1286 = vst [vmem:[#allocation2 + $0xc8] sm:$0x1] %v1285_v4  ;;  %v9579_v51 = vsel %vm8826_vm14, %v4178_v9, %v4179_v53  ;;  %v9587_v33 = vsel %vm8826_vm14, %v6918_v31, %v4183_v50  ;;  %v4193_v0 = vrot.slane %v9267_v26, 5  ;;  %v9593_v38 = vld [vmem:[%s10974_s5 + $0x1f8] sm:$0xff]   ;;  %v6920_v48 = vrot.slane %v4083_v5, 9  ;;  %v8152_v9 = vld [vmem:[#allocation2 + $0x90] sm:$0xff]  }
 0x12c   : > { %7774 = vmatmul.mubr.bf16.gmra.mxu1 %v8144_v25  ;;  %v4185_v25 = vrot.slane %v4183_v50, 4  ;;  %v9597_v13 = vsel %vm8826_vm14, %v6919_v28, %v4190_v3  ;;  %v4197_v49 = vrot.slane %v9280_v44, 5  ;;  %v4200_v26 = vrot.slane %v9288_v54, 5  ;;  %v8148_v53 = vld [vmem:[#allocation2 + $0x78] sm:$0xff]   ;;  %v4086_v5 = vld [vmem:[#allocation2 + $0x90] sm:$0xe] }
 0x12d   : > { %7777 = vmatprep.mubr.bf16.mxu1 %v8146_v30  ;;  %7854 = vmatpush3.bf16.msra.mxu1 %v8155_v22  ;;  %v4192_v22 = vrot.slane %v4190_v3, 4  ;;  %v6921_v18 = vrot.slane %v4084_v20, 9  ;;  %v4204_v14 = vrot.slane %v9311_v19, 5  ;;  %v4207_v50 = vrot.slane %v9321_v41, 5 }
 0x12e   : > { %7855 = vmatprep.subr.bf16.mxu1 %v8159_v32  ;;  %v9602_v30 = vsel %vm8826_vm14, %v4185_v25, %v4186_v63  ;;  %v9614_v44 = vsel %vm8826_vm14, %v6920_v48, %v4197_v49  ;;  %v4199_v39 = vrot.slane %v4197_v49, 4 }
 0x12f   : > { %v9610_v31 = vsel %vm8826_vm14, %v4192_v22, %v4193_v0  ;;  %v9620_v19 = vsel %vm8826_vm14, %v6921_v18, %v4204_v14  ;;  %v4206_v4 = vrot.slane %v4204_v14, 4  ;;  %v4087_v18 = vld [vmem:[#allocation2 + $0x9c] sm:$0xe] }
 0x130   : > { %v3366_v47 = vld [vmem:[#allocation2 + $0xc0] sm:$0xf]  ;;  %v9626_v3 = vsel %vm8826_vm14, %v4199_v39, %v4200_v26  ;;  %v4211_v39 = vrot.slane %v9326_v56, 5  ;;  %v6924_v56 = vrot.slane %v4087_v18, 9  ;;  %v4089_v18 = vld [vmem:[#allocation2 + $0xb4] sm:$0xe] }
 0x131   : > { %7856 = vmatpush3.bf16.msra.mxu1 %v8159_v32  ;;  %v3730_v63 = vshrl.u32 %v3366_v47, 16  ;;  %v3733_v28 = vshll.u32 %v3366_v47, 16  ;;  %v6922_v32 = vrot.slane %v4085_v59, 9  ;;  %v9628_v20 = vld [vmem:[#allocation2 + $0xc4] sm:$0xf]  ;;  %v9636_v41 = vsel %vm8826_vm14, %v4206_v4, %v4207_v50 }
 0x132   : > { %7937 = vmatprep.subr.bf16.mxu1 %v9593_v38  ;;  %v9630_v25 = vld [vmem:[#allocation2 + $0xc8] sm:$0x1]  ;;  %v3739_v49 = vshll.u32 %v9628_v20, 16  ;;  %v3743_v26 = vshrl.u32 %v9628_v20, 16  ;;  %v4214_v47 = vrot.slane %v9334_v36, 5  ;;  %v4213_v54 = vrot.slane %v4211_v39, 4 }
 0x133   : > { %v3732_v22 = vrot.slane %v3730_v63, 4  ;;  %v3735_v48 = vrot.slane %v3733_v28, 5  ;;  %v3749_v14 = vshll.u32 %v9630_v25, 16  ;;  %v6923_v63 = vrot.slane %v4086_v5, 9  ;;  %v8154_v36 = vld [vmem:[#allocation2 + $0x9c] sm:$0xff]  }
 0x134   : > { %7778 = vmatmul.mubr.bf16.gmra.mxu1 %v8148_v53  ;;  %v3741_v50 = vrot.slane %v3739_v49, 5  ;;  %v3745_v53 = vrot.slane %v3743_v26, 4  ;;  %v9647_v0 = vsel %vm8826_vm14, %v6922_v32, %v4211_v39  ;;  %v4221_v59 = vrot.slane %v9369_v16, 5  ;;  %v4966_v16 = vld [vmem:[#allocation2 + $0x30] sm:$0xf] }
 0x135   : > { %7781 = vmatprep.mubr.bf16.mxu1 %v8150_v23  ;;  %v3736_v4 = vor.u32 %v3735_v48, %v3732_v22  ;;  %v3751_v28 = vrot.slane %v3749_v14, 5  ;;  %v4218_v23 = vrot.slane %v9357_v34, 5  ;;  %v9653_v22 = vsel %vm8826_vm14, %v4213_v54, %v4214_v47  ;;  %v8162_v14 = vld [vmem:[#allocation2 + $0x18] sm:$0xff]  }
 0x136   : > { %v3746_v21 = vor.u32 %v3745_v53, %v3741_v50  ;;  %v4225_v48 = vrot.slane %v9373_v55, 5  ;;  %v4228_v26 = vrot.slane %v9386_v43, 5  ;;  %v6925_v47 = vrot.slane %v4088_v29, 9 }
 0x137   : > { %v3737_v57 = vrot.slane %v3736_v4, 4  ;;  %v9657_v5 = vsel %vm8826_vm14, %v6923_v63, %v4218_v23  ;;  %v4220_v32 = vrot.slane %v4218_v23, 4  ;;  %v4232_v43 = vrot.slane %v9403_v45, 5  ;;  %v4075_v23 = vld [vmem:[#allocation2 + $0xc] sm:$0xe] }
 0x138   : > { %v3747_v49 = vrot.slane %v3746_v21, 4  ;;  %v9671_v39 = vsel %vm8826_vm14, %v6924_v56, %v4225_v48  ;;  %v4227_v55 = vrot.slane %v4225_v48, 4  ;;  %v4235_v4 = vrot.slane %v9410_v8, 5 }
 0x139   : > { %v3742_v34 = vsel %vm8444_vm11, %v3737_v57, %v3741_v50  ;;  %v9667_v54 = vsel %vm8826_vm14, %v4220_v32, %v4221_v59  ;;  %v523_v50 = vld [vmem:[#allocation2 + $0xcc] sm:$0x1]  ;;  %v4090_v59 = vld [vmem:[#allocation2 + $0xc0] sm:$0xe]  ;;  %v6926_v29 = vrot.slane %v4089_v18, 9  ;;  %v9688_v45 = vsel %vm8826_vm14, %v6925_v47, %v4232_v43  ;;  %v8158_v18 = vld [vmem:[#allocation2 + $0xb4] sm:$0xff]  }
 0x13a   : > { %v3752_v21 = vsel %vm8444_vm11, %v3747_v49, %v3751_v28  ;;  %v9681_v63 = vsel %vm8826_vm14, %v4227_v55, %v4228_v26  ;;  %v4234_v8 = vrot.slane %v4232_v43, 4  ;;  %v4242_v56 = vrot.slane %v9458_v1, 5  ;;  %v8224_v47 = vld [vmem:[#allocation2 + $0x14] sm:$0x1] }
 0x13b   : > { %v6903_v53 = vcombine.low %v3742_v34, %v3752_v21  ;;  %v6927_v48 = vrot.slane %v4090_v59, 9  ;;  %v8156_v34 = vld [vmem:[#allocation2 + $0xa8] sm:$0xff]   ;;  %v4246_v26 = vrot.slane %v9628_v20, 5  ;;  %v4249_v1 = vrot.slane %v9630_v25, 5 }
 0x13c   : > { %7782 = vmatmul.mubr.bf16.gmra.mxu1 %v8152_v9  ;;  %v4239_v9 = vrot.slane %v9422_v2, 5  ;;  %v524_v2 = vsel %vm8332_vm3, 0, %v523_v50  ;;  %v9699_v49 = vsel %vm8826_vm14, %v4234_v8, %v4235_v4  ;;  %v6912_v55 = vrot.slane %v4075_v23, 9  ;;  %v8163_v59 = vld [vmem:[#allocation2 + $0x24] sm:$0xff]   ;;  %v8169_v23 = vld [vmem:[%s10974_s5 + $0x230] sm:$0xff]  }
 0x13d   : > { %7785 = vmatprep.mubr.bf16.mxu1 %v8154_v36  ;;  %7838 = vmatmul.mubr.bf16.gmra.mxu0 %v6903_v53  ;;  %525 = vst [vmem:[#allocation2 + $0xcc] sm:$0x1] %v524_v2  ;;  %v4144_v21 = vrot.slane %v8224_v47, 5  ;;  %v9715_v20 = vsel %vm8826_vm14, %v6927_v48, %v4246_v26  ;;  %v4248_v25 = vrot.slane %v4246_v26, 4  ;;  %v9717_v53 = vpop.f32.mrf.mxu0 }
 0x13e   : > { %v9693_v36 = vsel %vm8826_vm14, %v6926_v29, %v4239_v9  ;;  %v4241_v32 = vrot.slane %v4239_v9, 4  ;;  %7905 = vmatprep.mubr.bf16.mxu0 %v8162_v14  ;;  %v4143_v14 = vrot.slane %v4141_v17, 4  ;;  %v8166_v29 = vld [vmem:[#allocation2 + $0x30] sm:$0xff]  }
 0x13f   : > { %v9721_v9 = vsel %vm8826_vm14, %v4248_v25, %v4249_v1  ;;  %v9734_v2 = vpop.f32.mrf.mxu0  ;;  %v9749_v25 = vld [vmem:[#allocation2 + $0x20] sm:$0x1] }
 0x140   : > { %v9707_v50 = vsel %vm8826_vm14, %v4241_v32, %v4242_v56  ;;  %v4142_v56 = vsel %vm8826_vm14, %v6912_v55, %v4141_v17  ;;  %v4145_v32 = vsel %vm8826_vm14, %v4143_v14, %v4144_v21  ;;  %11032 = vst [vmem:[#allocation9_spill] sm:$0xff] %v9734_v2  ;;  %v8167_v17 = vld [vmem:[#allocation2 + $0x3c] sm:$0xff]   ;;  %v8170_v55 = vld [vmem:[#allocation2 + $0x48] sm:$0xff]   ;;  %v5783_v4 = vrot.slane %v9749_v25, 5 }
 0x141   : > { %v6944_v1 = vcombine.low %v4142_v56, %v4145_v32  ;;  %v4961_v21 = vld [vmem:[#allocation2 + $0x1c] sm:$0xf]  ;;  %v8168_v56 = vld [vmem:[%s10974_s5 + $0x1f0] sm:$0xff]  }
 0x142   : > { %v5780_v14 = vrot.slane %v4961_v21, 5  ;;  %v8181_v32 = vld [vmem:[%s10974_s5 + $0x218] sm:$0xff]  }
 0x144   : > { %7786 = vmatmul.mubr.bf16.gmra.mxu1 %v8156_v34  ;;  %v1349_v48 = vld [vmem:[#allocation2 + $0xcc] sm:$0xf]  ;;  %v8160_v34 = vld [vmem:[#allocation2 + $0xc0] sm:$0xff]   ;;  %v5782_v8 = vrot.slane %v5780_v14, 4 }
 0x145   : > { %7789 = vmatprep.mubr.bf16.mxu1 %v8158_v18  ;;  %7906 = vmatmul.mubr.bf16.vlgmr.msra.gmra.mxu0 %v8163_v59  ;;  %v1350_v26 = vsel %vm8378_vm6, 0, %v1349_v48  ;;  %v9742_v18 = vpop.f32.mrf.mxu0  ;;  %v5714_v59 = vld [vmem:[#allocation2 + $0x18] sm:$0xe]  ;;  %v4963_v48 = vld [vmem:[#allocation2 + $0x24] sm:$0xf] }
 0x146   : > { %7986 = vmatpush3.bf16.msra.mxu0 %v9469_v27  ;;  %7909 = vmatprep.mubr.bf16.mxu0 %v8166_v29  ;;  %1351 = vst [vmem:[#allocation2 + $0xcc] sm:$0xf] %v1350_v26  ;;  %11033 = vst [vmem:[#allocation8_spill] sm:$0xff] %v9742_v18  ;;  %v8177_v27 = vld [vmem:[%s10974_s5 + $0x220] sm:$0xff]   ;;  %v5009_v29 = vshrl.u32 %v4960_v62, 16  ;;  %v5033_v12 = vshrl.u32 %v4963_v48, 16  ;;  %v9790_v57 = vsel %vm8826_vm14, %v5782_v8, %v5783_v4 }
 0x147   : > { %7987 = vmatprep.subr.bf16.mxu0 %v8169_v23  ;;  %v9747_v47 = vpop.f32.mrf.mxu0  ;;  %v5036_v46 = vshll.u32 %v4963_v48, 16  ;;  %v8189_v4 = vld [vmem:[%s10974_s5 + $0x208] sm:$0xff]   ;;  %v8180_v18 = vld [vmem:[%s10974_s5 + $0x1d8] sm:$0xff]  }
 0x148   : > { %11034 = vst [vmem:[#allocation7_spill] sm:$0xff] %v9747_v47  ;;  %v5011_v43 = vrot.slane %v5009_v29, 4  ;;  %v9781_v29 = vld [vmem:[#allocation2 + $0x2c] sm:$0x1]  ;;  %v5035_v6 = vrot.slane %v5033_v12, 4  ;;  %v5060_v12 = vshll.u32 %v4966_v16, 16  ;;  %v9810_v47 = vpop.f32.mrf.mxu1 }
 0x149   : > { %v9757_v26 = vpop.f32.mrf.mxu0  ;;  %v5790_v8 = vrot.slane %v9781_v29, 5  ;;  %11039 = vst [vmem:[#allocation11_spill] sm:$0xff] %v9810_v47  ;;  %v9830_v47 = vld [vmem:[#allocation2 + $0x38] sm:$0x1] }
 0x14a   : > { %7988 = vmatpush3.bf16.msra.mxu0 %v8169_v23  ;;  %v5012_v23 = vshll.u32 %v4960_v62, 16  ;;  %11035 = vst [vmem:[#allocation5_spill] sm:$0xff] %v9757_v26  ;;  %v7048_v62 = vrot.slane %v5714_v59, 9  ;;  %v8178_v26 = vld [vmem:[#allocation2 + $0x78] sm:$0xff]   ;;  %v9848_v2 = vpop.f32.mrf.mxu1 }
 0x14b   : > { %7989 = vmatprep.subr.bf16.mxu0 %v8173_v15  ;;  %v9777_v40 = vpop.f32.mrf.mxu0  ;;  %11042 = vst [vmem:[#allocation13_spill] sm:$0xff] %v9848_v2 }
 0x14c   : > { %7790 = vmatmul.mubr.bf16.gmra.mxu1 %v8160_v34  ;;  %v8171_v34 = vld [vmem:[#allocation2 + $0x54] sm:$0xff]   ;;  %v5014_v28 = vrot.slane %v5012_v23, 5  ;;  %11036 = vst [vmem:[#allocation6_spill] sm:$0xff] %v9777_v40  ;;  %v9786_v48 = vsel %vm8826_vm14, %v7048_v62, %v5780_v14  ;;  %v5038_v40 = vrot.slane %v5036_v46, 5  ;;  %v8176_v14 = vld [vmem:[%s10974_s5 + $0x1e0] sm:$0xff]   ;;  %v5057_v62 = vshrl.u32 %v4966_v16, 16 }
 0x14d   : > { %7857 = vmatprep.mubr.bf16.mxu1 %v6944_v1  ;;  %7910 = vmatmul.mubr.bf16.gmra.mxu0 %v8167_v17  ;;  %v5018_v1 = vshll.u32 %v4961_v21, 16  ;;  %v9759_v17 = vld [vmem:[#allocation2 + $0x28] sm:$0xf]  ;;  %v4969_v46 = vld [vmem:[#allocation2 + $0x3c] sm:$0xf] }
 0x14e   : > { %7913 = vmatprep.mubr.bf16.mxu0 %v8170_v55  ;;  %7990 = vmatpush3.bf16.msra.mxu0 %v8173_v15  ;;  %v5022_v15 = vshrl.u32 %v4961_v21, 16  ;;  %v8174_v55 = vld [vmem:[#allocation2 + $0x60] sm:$0xff]   ;;  %v8185_v21 = vld [vmem:[%s10974_s5 + $0x210] sm:$0xff]   ;;  %v5046_v42 = vshrl.u32 %v9759_v17, 16  ;;  %v5787_v23 = vrot.slane %v9759_v17, 5 }
 0x14f   : > { %7991 = vmatprep.subr.bf16.mxu0 %v8177_v27 }
 0x150   : > { %v5024_v59 = vrot.slane %v5022_v15, 4 }
 0x152   : > { %7992 = vmatpush3.bf16.msra.mxu0 %v8177_v27  ;;  %v5715_v27 = vld [vmem:[#allocation2 + $0x24] sm:$0xe] }
 0x153   : > { %7993 = vmatprep.subr.bf16.mxu0 %v8181_v32  ;;  %v7049_v15 = vrot.slane %v5715_v27, 9  ;;  %v11038_v27 = vcombine.low %v9533_v24, %v9543_v58  ;;  %v11040_v24 = vcombine.low %v9551_v37, %v9562_v7  ;;  %v5052_v7 = vshll.u32 %v9781_v29, 16 }
 0x154   : > { %7858 = vmatmul.mubr.bf16.vlgmr.msra.gmra.mxu1 %v6945_v11  ;;  %v8172_v11 = vld [vmem:[%s10974_s5 + $0x1e8] sm:$0xff]  }
 0x155   : > { %7938 = vmatpush3.bf16.msra.mxu1 %v9593_v38  ;;  %7861 = vmatprep.mubr.bf16.mxu1 %v6946_v35  ;;  %v5042_v38 = vshll.u32 %v9759_v17, 16  ;;  %v9779_v35 = vrot.slane %v5018_v1, 5  ;;  %v5015_v1 = vor.u32 %v5014_v28, %v5011_v43  ;;  %v9793_v17 = vld [vmem:[#allocation2 + $0x34] sm:$0xf]  ;;  %v8175_v28 = vld [vmem:[#allocation2 + $0x6c] sm:$0xff]   ;;  %v9804_v43 = vpop.f32.mrf.mxu0 }
 0x156   : > { %7939 = vmatprep.subr.bf16.mxu1 %v8168_v56  ;;  %7914 = vmatmul.mubr.bf16.gmra.mxu0 %v8171_v34  ;;  %v5028_v34 = vshll.u32 %v9749_v25, 16  ;;  %11037 = vst [vmem:[#allocation10_spill] sm:$0xff] %v9804_v43  ;;  %v5066_v16 = vshll.u32 %v9793_v17, 16  ;;  %v5070_v43 = vshrl.u32 %v9793_v17, 16 }
 0x157   : > { %7917 = vmatprep.mubr.bf16.mxu0 %v8174_v55  ;;  %7994 = vmatpush3.bf16.msra.mxu0 %v8181_v32  ;;  %v9802_v25 = vrot.slane %v5042_v38, 5  ;;  %v5025_v32 = vor.u32 %v5024_v59, %v9779_v35  ;;  %v5789_v55 = vrot.slane %v5787_v23, 4  ;;  %v8193_v38 = vld [vmem:[%s10974_s5 + $0x200] sm:$0xff]   ;;  %v9824_v58 = vrot.slane %v5015_v1, 4 }
 0x158   : > { %7995 = vmatprep.subr.bf16.mxu0 %v8185_v21  ;;  %v9817_v59 = vrot.slane %v5028_v34, 5  ;;  %v5716_v34 = vld [vmem:[#allocation2 + $0x30] sm:$0xe]  ;;  %v5084_v1 = vshll.u32 %v4969_v46, 16  ;;  %v9851_v10 = vrot.slane %v5066_v16, 5 }
 0x159   : > { %7940 = vmatpush3.bf16.msra.mxu1 %v8168_v56  ;;  %v5048_v56 = vrot.slane %v5046_v42, 4  ;;  %v5794_v42 = vrot.slane %v9793_v17, 5  ;;  %v5059_v17 = vrot.slane %v5057_v62, 4  ;;  %v7050_v29 = vrot.slane %v5716_v34, 9 }
 0x15a   : > { %7941 = vmatprep.subr.bf16.mxu1 %v8172_v11  ;;  %v5054_v62 = vrot.slane %v5052_v7, 5  ;;  %v5086_v16 = vrot.slane %v5084_v1, 5  ;;  %v11044_v7 = vcombine.low %v9566_v60, %v9579_v51  ;;  %v8182_v1 = vld [vmem:[#allocation2 + $0x90] sm:$0xff]   ;;  %v11046_v60 = vcombine.low %v9587_v33, %v9602_v30  ;;  %v8188_v33 = vld [vmem:[%s10974_s5 + $0x1c8] sm:$0xff]  }
 0x15b   : > { %7996 = vmatpush3.bf16.msra.mxu0 %v8185_v21  ;;  %v9828_v21 = vsel %vm8826_vm14, %v7049_v15, %v5787_v23  ;;  %v5049_v37 = vor.u32 %v5048_v56, %v9802_v25  ;;  %v5081_v23 = vshrl.u32 %v4969_v46, 16  ;;  %v9846_v15 = vsel %vm8826_vm14, %v5789_v55, %v5790_v8 }
 0x15c   : > { %7862 = vmatmul.mubr.bf16.gmra.mxu1 %v11038_v27  ;;  %v5039_v27 = vor.u32 %v5038_v40, %v5035_v6  ;;  %7997 = vmatprep.subr.bf16.mxu0 %v8189_v4  ;;  %v9840_v6 = vpop.f32.mrf.mxu0  ;;  %v9842_v40 = vrot.slane %v5025_v32, 4  ;;  %v5797_v56 = vrot.slane %v9830_v47, 5  ;;  %v5796_v46 = vrot.slane %v5794_v42, 4 }
 0x15d   : > { %7865 = vmatprep.mubr.bf16.mxu1 %v11040_v24  ;;  %7942 = vmatpush3.bf16.msra.mxu1 %v8172_v11  ;;  %v9838_v11 = vld [vmem:[#allocation2 + $0x40] sm:$0xf]  ;;  %11041 = vst [vmem:[#allocation12_spill] sm:$0xff] %v9840_v6  ;;  %v5062_v24 = vrot.slane %v5060_v12, 5  ;;  %v5083_v12 = vrot.slane %v5081_v23, 4  ;;  %v9876_v23 = vpop.f32.mrf.mxu1 }
 0x15e   : > { %7943 = vmatprep.subr.bf16.mxu1 %v8176_v14  ;;  %7918 = vmatmul.mubr.bf16.gmra.mxu0 %v8175_v28  ;;  %v5072_v28 = vrot.slane %v5070_v43, 4  ;;  %v9853_v32 = vrot.slane %v5039_v27, 4  ;;  %v5090_v8 = vshll.u32 %v9838_v11, 16  ;;  %v5094_v55 = vshrl.u32 %v9838_v11, 16  ;;  %v8179_v43 = vld [vmem:[#allocation2 + $0x84] sm:$0xff]   ;;  %11045 = vst [vmem:[#allocation15_spill] sm:$0xff] %v9876_v23 }
 0x15f   : > { %7921 = vmatprep.mubr.bf16.mxu0 %v8178_v26  ;;  %7998 = vmatpush3.bf16.msra.mxu0 %v8189_v4  ;;  %v8184_v26 = vld [vmem:[%s10974_s5 + $0x1d0] sm:$0xff]   ;;  %v9860_v4 = vrot.slane %v5049_v37, 4  ;;  %v5021_v27 = vsel %vm8444_vm11, %v9824_v58, %v9779_v35  ;;  %v5031_v34 = vsel %vm8444_vm11, %v9842_v40, %v9817_v59  ;;  %v5063_v2 = vor.u32 %v5062_v24, %v5059_v17  ;;  %v4972_v6 = vld [vmem:[#allocation2 + $0x48] sm:$0xf]  ;;  %v4971_v40 = vld [vmem:[#allocation2 + $0x44] sm:$0x1] }
 0x160   : > { %7999 = vmatprep.subr.bf16.mxu0 %v8193_v38  ;;  %v5076_v37 = vshll.u32 %v9830_v47, 16  ;;  %v9882_v58 = vsel %vm8826_vm14, %v7050_v29, %v5794_v42  ;;  %v5073_v59 = vor.u32 %v5072_v28, %v9851_v10  ;;  %v5717_v47 = vld [vmem:[#allocation2 + $0x3c] sm:$0xe]  ;;  %v5801_v17 = vrot.slane %v9838_v11, 5  ;;  %v4973_v29 = vld [vmem:[#allocation2 + $0x4c] sm:$0xf] }
 0x161   : > { %7944 = vmatpush3.bf16.msra.mxu1 %v8176_v14  ;;  %v9862_v14 = vpop.f32.mrf.mxu0  ;;  %v5045_v51 = vsel %vm8444_vm11, %v9853_v32, %v9802_v25  ;;  %v9897_v42 = vrot.slane %v5090_v8, 5  ;;  %v5096_v24 = vrot.slane %v5094_v55, 4  ;;  %v5055_v30 = vsel %vm8444_vm11, %v9860_v4, %v5054_v62  ;;  %v5718_v55 = vld [vmem:[#allocation2 + $0x48] sm:$0xe]  ;;  %v8183_v23 = vld [vmem:[#allocation2 + $0x9c] sm:$0xff]  }
 0x162   : > { %7945 = vmatprep.subr.bf16.mxu1 %v8180_v18  ;;  %11043 = vst [vmem:[#allocation14_spill] sm:$0xff] %v9862_v14  ;;  %v5105_v11 = vshrl.u32 %v4972_v6, 16  ;;  %v5108_v25 = vshll.u32 %v4972_v6, 16  ;;  %v9909_v32 = vrot.slane %v5076_v37, 5  ;;  %v5804_v8 = vrot.slane %v4971_v40, 5  ;;  %v8192_v6 = vld [vmem:[%s10974_s5 + $0x1c0] sm:$0xff]  }
 0x163   : > { %8000 = vmatpush3.bf16.msra.mxu0 %v8193_v38  ;;  %v9895_v38 = vsel %vm8826_vm14, %v5796_v46, %v5797_v56  ;;  %v9905_v28 = vpop.f32.mrf.mxu0  ;;  %v9907_v56 = vrot.slane %v5063_v2, 4  ;;  %v7051_v46 = vrot.slane %v5717_v47, 9  ;;  %v5803_v35 = vrot.slane %v5801_v17, 4 }
 0x164   : > { %7866 = vmatmul.mubr.bf16.gmra.mxu1 %v11044_v7  ;;  %11047 = vst [vmem:[#allocation16_spill] sm:$0xff] %v9905_v28  ;;  %v9911_v7 = vpop.f32.mrf.mxu1  ;;  %v5114_v4 = vshll.u32 %v4973_v29, 16  ;;  %v5118_v62 = vshrl.u32 %v4973_v29, 16  ;;  %v9918_v2 = vcombine.low %v5021_v27, %v5031_v34  ;;  %v5107_v47 = vrot.slane %v5105_v11, 4  ;;  %v8186_v28 = vld [vmem:[#allocation2 + $0xa8] sm:$0xff]  }
 0x165   : > { %7869 = vmatprep.mubr.bf16.mxu1 %v11046_v60  ;;  %7946 = vmatpush3.bf16.msra.mxu1 %v8180_v18  ;;  %v5087_v18 = vor.u32 %v5086_v16, %v5083_v12  ;;  %11048 = vst [vmem:[#allocation17_spill] sm:$0xff] %v9911_v7  ;;  %v9913_v60 = vrot.slane %v5073_v59, 4  ;;  %v5097_v12 = vor.u32 %v5096_v24, %v9897_v42  ;;  %v5100_v16 = vshll.u32 %v4971_v40, 16  ;;  %v4975_v11 = vld [vmem:[#allocation2 + $0x54] sm:$0xf] }
 0x166   : > { %7947 = vmatprep.subr.bf16.mxu1 %v8184_v26  ;;  %7922 = vmatmul.mubr.bf16.gmra.mxu0 %v8179_v43  ;;  %v5808_v43 = vrot.slane %v4973_v29, 5  ;;  %v7052_v59 = vrot.slane %v5718_v55, 9  ;;  %v5110_v7 = vrot.slane %v5108_v25, 5  ;;  %v9925_v14 = vcombine.low %v5045_v51, %v5055_v30  ;;  %v9940_v29 = vpop.f32.mrf.mxu1  ;;  %v4978_v55 = vld [vmem:[#allocation2 + $0x60] sm:$0xf] }
 0x167   : > { %7925 = vmatprep.mubr.bf16.mxu0 %v8182_v1  ;;  %v9921_v37 = vrot.slane %v5087_v18, 4  ;;  %v4974_v1 = vld [vmem:[#allocation2 + $0x50] sm:$0x1]  ;;  %v5069_v34 = vsel %vm8444_vm11, %v9907_v56, %v9851_v10  ;;  %v9935_v40 = vsel %vm8826_vm14, %v7051_v46, %v5801_v17  ;;  %v11050_v24 = vcombine.low %v9597_v13, %v9610_v31  ;;  %11051 = vst [vmem:[#allocation19_spill] sm:$0xff] %v9940_v29  ;;  %v4976_v17 = vld [vmem:[#allocation2 + $0x58] sm:$0xf] }
 0x168   : > { %v5079_v51 = vsel %vm8444_vm11, %v9913_v60, %v9909_v32  ;;  %v9948_v30 = vsel %vm8826_vm14, %v5803_v35, %v5804_v8  ;;  %v9950_v10 = vrot.slane %v5114_v4, 5  ;;  %v5120_v18 = vrot.slane %v5118_v62, 4  ;;  %v5719_v4 = vld [vmem:[#allocation2 + $0x54] sm:$0xe] }
 0x169   : > { %7948 = vmatpush3.bf16.msra.mxu1 %v8184_v26  ;;  %v9923_v26 = vpop.f32.mrf.mxu0  ;;  %v11052_v13 = vcombine.low %v9614_v44, %v9626_v3  ;;  %v5098_v31 = vrot.slane %v5097_v12, 4  ;;  %v5102_v25 = vrot.slane %v5100_v16, 5  ;;  %v5810_v56 = vrot.slane %v5808_v43, 4  ;;  %v9963_v44 = vld [vmem:[#allocation2 + $0x5c] sm:$0x1] }
 0x16a   : > { %7949 = vmatprep.subr.bf16.mxu1 %v8188_v33  ;;  %11049 = vst [vmem:[#allocation18_spill] sm:$0xff] %v9923_v26  ;;  %v5811_v46 = vrot.slane %v4974_v1, 5  ;;  %v5093_v35 = vsel %vm8444_vm11, %v9921_v37, %v9897_v42  ;;  %v9961_v32 = vsel %vm8826_vm14, %v7052_v59, %v5808_v43  ;;  %v5111_v8 = vor.u32 %v5110_v7, %v5107_v47  ;;  %v9965_v3 = vld [vmem:[#allocation2 + $0x64] sm:$0xf] }
 0x16b   : > { %v5124_v60 = vshll.u32 %v4974_v1, 16  ;;  %v5129_v62 = vshrl.u32 %v4975_v11, 16  ;;  %v5132_v12 = vshll.u32 %v4975_v11, 16  ;;  %v5138_v16 = vshll.u32 %v4976_v17, 16 }
 0x16c   : > { %7870 = vmatmul.mubr.bf16.gmra.mxu1 %v11050_v24  ;;  %v5142_v24 = vshrl.u32 %v4976_v17, 16  ;;  %v5121_v42 = vor.u32 %v5120_v18, %v9950_v10  ;;  %v5815_v43 = vrot.slane %v4976_v17, 5  ;;  %v5153_v7 = vshrl.u32 %v4978_v55, 16 }
 0x16d   : > { %7873 = vmatprep.mubr.bf16.mxu1 %v11052_v13  ;;  %7950 = vmatpush3.bf16.msra.mxu1 %v8188_v33  ;;  %v9967_v33 = vpop.f32.mrf.mxu0  ;;  %v9969_v13 = vpop.f32.mrf.mxu1  ;;  %v5156_v37 = vshll.u32 %v4978_v55, 16  ;;  %v5103_v1 = vsel %vm8444_vm11, %v5098_v31, %v5102_v25  ;;  %v5162_v59 = vshll.u32 %v9965_v3, 16  ;;  %v5166_v47 = vshrl.u32 %v9965_v3, 16  ;;  %v8187_v55 = vld [vmem:[#allocation2 + $0xb4] sm:$0xff]  }
 0x16e   : > { %7951 = vmatprep.subr.bf16.mxu1 %v8192_v6  ;;  %7926 = vmatmul.mubr.bf16.gmra.mxu0 %v8183_v23  ;;  %11053 = vst [vmem:[#allocation20_spill] sm:$0xff] %v9967_v33  ;;  %11054 = vst [vmem:[#allocation21_spill] sm:$0xff] %v9969_v13  ;;  %v9976_v23 = vsel %vm8826_vm14, %v5810_v56, %v5811_v46  ;;  %v9980_v11 = vrot.slane %v5111_v8, 4  ;;  %v7053_v18 = vrot.slane %v5719_v4, 9  ;;  %v5818_v17 = vrot.slane %v9963_v44, 5  ;;  %v8190_v8 = vld [vmem:[#allocation2 + $0xc0] sm:$0xff]  }
 0x16f   : > { %7929 = vmatprep.mubr.bf16.mxu0 %v8186_v28  ;;  %v9982_v28 = vrot.slane %v5124_v60, 5  ;;  %v5131_v27 = vrot.slane %v5129_v62, 4  ;;  %v5134_v31 = vrot.slane %v5132_v12, 5  ;;  %v9987_v25 = vrot.slane %v5138_v16, 5  ;;  %v9992_v13 = vpop.f32.mrf.mxu1 }
 0x170   : > { %v5144_v56 = vrot.slane %v5142_v24, 4  ;;  %v11056_v46 = vcombine.low %v9620_v19, %v9636_v41  ;;  %11057 = vst [vmem:[#allocation23_spill] sm:$0xff] %v9992_v13  ;;  %v5122_v60 = vrot.slane %v5121_v42, 4  ;;  %v5817_v29 = vrot.slane %v5815_v43, 4  ;;  %v4980_v19 = vld [vmem:[#allocation2 + $0x68] sm:$0x1] }
 0x171   : > { %7952 = vmatpush3.bf16.msra.mxu1 %v8192_v6  ;;  %v9985_v6 = vpop.f32.mrf.mxu0  ;;  %v5155_v4 = vrot.slane %v5153_v7, 4  ;;  %v5158_v33 = vrot.slane %v5156_v37, 5  ;;  %v11058_v26 = vcombine.low %v9647_v0, %v9653_v22  ;;  %v9999_v12 = vcombine.low %v5069_v34, %v5079_v51  ;;  %v5720_v37 = vld [vmem:[#allocation2 + $0x60] sm:$0xe] }
 0x172   : > { %11055 = vst [vmem:[#allocation22_spill] sm:$0xff] %v9985_v6  ;;  %v10003_v41 = vrot.slane %v5162_v59, 5  ;;  %v5168_v24 = vrot.slane %v5166_v47, 4  ;;  %v10011_v0 = vsel %vm8826_vm14, %v7053_v18, %v5815_v43  ;;  %v5148_v22 = vshll.u32 %v9963_v44, 16  ;;  %v4982_v59 = vld [vmem:[#allocation2 + $0x70] sm:$0xf]  ;;  %v10022_v43 = vpop.f32.mrf.mxu1 }
 0x173   : > { %v9997_v62 = vpop.f32.mrf.mxu0  ;;  %v5117_v51 = vsel %vm8444_vm11, %v9980_v11, %v9950_v10  ;;  %v5145_v7 = vor.u32 %v5144_v56, %v9987_v25  ;;  %11061 = vst [vmem:[#allocation26_spill] sm:$0xff] %v10022_v43  ;;  %v5127_v44 = vsel %vm8444_vm11, %v5122_v60, %v9982_v28  ;;  %v10029_v47 = vsel %vm8826_vm14, %v5817_v29, %v5818_v17  ;;  %v8191_v60 = vld [vmem:[#allocation2 + $0xcc] sm:$0xff]  }
 0x174   : > { %7874 = vmatmul.mubr.bf16.gmra.mxu1 %v11056_v46  ;;  %11059 = vst [vmem:[#allocation24_spill] sm:$0xff] %v9997_v62  ;;  %v10005_v46 = vcombine.low %v5093_v35, %v5103_v1  ;;  %v5135_v35 = vor.u32 %v5134_v31, %v5131_v27  ;;  %v5822_v1 = vrot.slane %v9965_v3, 5  ;;  %v5159_v18 = vor.u32 %v5158_v33, %v5155_v4  ;;  %v10031_v27 = vld [vmem:[#allocation2 + $0x74] sm:$0x1] }
 0x175   : > { %7877 = vmatprep.mubr.bf16.mxu1 %v11058_v26  ;;  %v4981_v26 = vld [vmem:[#allocation2 + $0x6c] sm:$0xf]  ;;  %v10014_v34 = vpop.f32.mrf.mxu0  ;;  %v5172_v10 = vshll.u32 %v4980_v19, 16  ;;  %v5169_v3 = vor.u32 %v5168_v24, %v10003_v41  ;;  %v5829_v31 = vrot.slane %v4982_v59, 5  ;;  %v5150_v42 = vrot.slane %v5148_v22, 5  ;;  %v10041_v24 = vpop.f32.mrf.mxu1 }
 0x176   : > { %7930 = vmatmul.mubr.bf16.gmra.mxu0 %v8187_v55  ;;  %11060 = vst [vmem:[#allocation25_spill] sm:$0xff] %v10014_v34  ;;  %v5721_v55 = vld [vmem:[#allocation2 + $0x6c] sm:$0xe]  ;;  %v5177_v56 = vshrl.u32 %v4981_v26, 16  ;;  %v7054_v16 = vrot.slane %v5720_v37, 9  ;;  %v5186_v43 = vshll.u32 %v4982_v59, 16 }
 0x177   : > { %7933 = vmatprep.mubr.bf16.mxu0 %v8190_v8  ;;  %v10033_v11 = vpop.f32.mrf.mxu0  ;;  %v5180_v8 = vshll.u32 %v4981_v26, 16  ;;  %v5190_v28 = vshrl.u32 %v4982_v59, 16  ;;  %v5136_v29 = vrot.slane %v5135_v35, 4  ;;  %v5146_v33 = vrot.slane %v5145_v7, 4  ;;  %11065 = vst [vmem:[#allocation29_spill] sm:$0xff] %v10041_v24 }
 0x178   : > { %11062 = vst [vmem:[#allocation27_spill] sm:$0xff] %v10033_v11  ;;  %v5824_v17 = vrot.slane %v5822_v1, 4  ;;  %v5825_v4 = vrot.slane %v4980_v19, 5  ;;  %v11064_v11 = vcombine.low %v9657_v5, %v9667_v54  ;;  %v5160_v34 = vrot.slane %v5159_v18, 4  ;;  %v4984_v37 = vld [vmem:[#allocation2 + $0x78] sm:$0xf] }
 0x179   : > { %v10036_v13 = vpop.f32.mrf.mxu0  ;;  %v5174_v62 = vrot.slane %v5172_v10, 5  ;;  %v7055_v26 = vrot.slane %v5721_v55, 9  ;;  %v5832_v22 = vrot.slane %v10031_v27, 5  ;;  %v11066_v59 = vcombine.low %v9671_v39, %v9681_v63  ;;  %v10065_v55 = vpop.f32.mrf.mxu1  ;;  %v5725_v24 = vld [vmem:[#allocation2 + $0x9c] sm:$0xe] }
 0x17a   : > { %11063 = vst [vmem:[#allocation28_spill] sm:$0xff] %v10036_v13  ;;  %v5170_v7 = vrot.slane %v5169_v3, 4  ;;  %v5831_v19 = vrot.slane %v5829_v31, 4  ;;  %v5179_v6 = vrot.slane %v5177_v56, 4  ;;  %v5182_v13 = vrot.slane %v5180_v8, 5  ;;  %11067 = vst [vmem:[#allocation30_spill] sm:$0xff] %v10065_v55 }
 0x17b   : > { %v10047_v35 = vpop.f32.mrf.mxu0  ;;  %v10049_v5 = vcombine.low %v5117_v51, %v5127_v44  ;;  %v10053_v18 = vrot.slane %v5186_v43, 5  ;;  %v5192_v10 = vrot.slane %v5190_v28, 4  ;;  %v10059_v39 = vsel %vm8826_vm14, %v7054_v16, %v5822_v1  ;;  %v5722_v3 = vld [vmem:[#allocation2 + $0x78] sm:$0xe]  ;;  %v4985_v28 = vld [vmem:[#allocation2 + $0x7c] sm:$0xf] }
 0x17c   : > { %7878 = vmatmul.mubr.bf16.gmra.mxu1 %v11064_v11  ;;  %v10063_v63 = vsel %vm8826_vm14, %v5824_v17, %v5825_v4  ;;  %v5201_v51 = vshrl.u32 %v4984_v37, 16  ;;  %v5204_v44 = vshll.u32 %v4984_v37, 16  ;;  %v11068_v43 = vcombine.low %v9786_v48, %v9790_v57  ;;  %v4987_v17 = vld [vmem:[#allocation2 + $0x84] sm:$0xf] }
 0x17d   : > { %7881 = vmatprep.mubr.bf16.mxu1 %v11066_v59  ;;  %v10055_v11 = vpop.f32.mrf.mxu0  ;;  %v5141_v56 = vsel %vm8444_vm11, %v5136_v29, %v9987_v25  ;;  %v5151_v16 = vsel %vm8444_vm11, %v5146_v33, %v5150_v42  ;;  %v5165_v1 = vsel %vm8444_vm11, %v5160_v34, %v10003_v41  ;;  %v10080_v8 = vsel %vm8826_vm14, %v7055_v26, %v5829_v31  ;;  %v10090_v42 = vld [vmem:[#allocation2 + $0x80] sm:$0x1]  ;;  %v10098_v59 = vld [vmem:[#allocation2 + $0x88] sm:$0xf] }
 0x17e   : > { %7934 = vmatmul.mubr.bf16.gmra.mxu0 %v8191_v60  ;;  %v5175_v57 = vsel %vm8444_vm11, %v5170_v7, %v5174_v62  ;;  %v10088_v48 = vsel %vm8826_vm14, %v5831_v19, %v5832_v22  ;;  %v5183_v25 = vor.u32 %v5182_v13, %v5179_v6  ;;  %v5836_v29 = vrot.slane %v4985_v28, 5  ;;  %v10103_v6 = vpop.f32.mrf.mxu1 }
 0x17f   : > { %8001 = vmatprep.mubr.bf16.mxu0 %v11068_v43  ;;  %v10082_v60 = vpop.f32.mrf.mxu0  ;;  %v5193_v34 = vor.u32 %v5192_v10, %v10053_v18  ;;  %v5196_v31 = vshll.u32 %v10031_v27, 16  ;;  %v7056_v33 = vrot.slane %v5722_v3, 9  ;;  %v5203_v62 = vrot.slane %v5201_v51, 4  ;;  %11070 = vst [vmem:[#allocation31_spill] sm:$0xff] %v10103_v6  ;;  %v10112_v3 = vld [vmem:[#allocation2 + $0x94] sm:$0xf] }
 0x180   : > { %v5206_v26 = vrot.slane %v5204_v44, 5  ;;  %v5210_v37 = vshll.u32 %v4985_v28, 16  ;;  %v5214_v22 = vshrl.u32 %v4985_v28, 16  ;;  %v11069_v13 = vcombine.low %v9688_v45, %v9699_v49 }
 0x181   : > { %v10096_v4 = vpop.f32.mrf.mxu0  ;;  %v10105_v7 = vcombine.low %v5141_v56, %v5151_v16  ;;  %v10107_v19 = vcombine.low %v5165_v1, %v5175_v57  ;;  %v5839_v10 = vrot.slane %v10090_v42, 5  ;;  %v11071_v51 = vcombine.low %v9693_v36, %v9707_v50  ;;  %v4990_v16 = vld [vmem:[#allocation2 + $0x90] sm:$0xf] }
 0x182   : > { %v5184_v45 = vrot.slane %v5183_v25, 4  ;;  %v5838_v49 = vrot.slane %v5836_v29, 4  ;;  %v5225_v43 = vshrl.u32 %v4987_v17, 16  ;;  %v5228_v56 = vshll.u32 %v4987_v17, 16 }
 0x183   : > { %v10117_v44 = vpop.f32.mrf.mxu0  ;;  %v5194_v1 = vrot.slane %v5193_v34, 4  ;;  %v5198_v28 = vrot.slane %v5196_v31, 5  ;;  %v5234_v57 = vshll.u32 %v10098_v59, 16  ;;  %v11072_v27 = vcombine.low %v9828_v21, %v9846_v15  ;;  %v10132_v34 = vpop.f32.mrf.mxu1 }
 0x184   : > { %7882 = vmatmul.mubr.bf16.gmra.mxu1 %v11069_v13  ;;  %v5238_v13 = vshrl.u32 %v10098_v59, 16  ;;  %v10128_v36 = vsel %vm8826_vm14, %v7056_v33, %v5836_v29  ;;  %v5207_v50 = vor.u32 %v5206_v26, %v5203_v62  ;;  %v10130_v25 = vrot.slane %v5210_v37, 5  ;;  %11073 = vst [vmem:[#allocation32_spill] sm:$0xff] %v10132_v34  ;;  %v4989_v37 = vld [vmem:[#allocation2 + $0x8c] sm:$0x1] }
 0x185   : > { %7885 = vmatprep.mubr.bf16.mxu1 %v11071_v51  ;;  %v10124_v41 = vpop.f32.mrf.mxu0  ;;  %v5216_v17 = vrot.slane %v5214_v22, 4  ;;  %v11074_v31 = vcombine.low %v9882_v58, %v9895_v38  ;;  %v5723_v51 = vld [vmem:[#allocation2 + $0x84] sm:$0xe]  ;;  %v5249_v54 = vshrl.u32 %v4990_v16, 16  ;;  %v5252_v21 = vshll.u32 %v4990_v16, 16 }
 0x186   : > { %8002 = vmatmul.mubr.bf16.vlgmr.msra.gmra.mxu0 %v11072_v27  ;;  %v5258_v15 = vshll.u32 %v10112_v3, 16  ;;  %v5262_v27 = vshrl.u32 %v10112_v3, 16  ;;  %v5189_v29 = vsel %vm8444_vm11, %v5184_v45, %v10053_v18  ;;  %v10146_v33 = vsel %vm8826_vm14, %v5838_v49, %v5839_v10 }
 0x187   : > { %8005 = vmatprep.mubr.bf16.mxu0 %v11074_v31  ;;  %v10139_v6 = vpop.f32.mrf.mxu0  ;;  %v5227_v62 = vrot.slane %v5225_v43, 4  ;;  %v5230_v58 = vrot.slane %v5228_v56, 5  ;;  %v5199_v38 = vsel %vm8444_vm11, %v5194_v1, %v5198_v28  ;;  %v5220_v26 = vshll.u32 %v10090_v42, 16 }
 0x188   : > { %v10151_v22 = vrot.slane %v5234_v57, 5  ;;  %v5240_v16 = vrot.slane %v5238_v13, 4  ;;  %v10155_v34 = vrot.slane %v5207_v50, 4  ;;  %v5217_v18 = vor.u32 %v5216_v17, %v10130_v25 }
 0x189   : > { %v10153_v31 = vpop.f32.mrf.mxu0  ;;  %v7057_v45 = vrot.slane %v5723_v51, 9  ;;  %v5843_v10 = vrot.slane %v10098_v59, 5  ;;  %v10159_v49 = vpop.f32.mrf.mxu1  ;;  %v11076_v43 = vcombine.low %v9715_v20, %v9721_v9  ;;  %v5251_v42 = vrot.slane %v5249_v54, 4  ;;  %v4992_v51 = vld [vmem:[#allocation2 + $0x98] sm:$0x1] }
 0x18a   : > { %11075 = vst [vmem:[#allocation33_spill] sm:$0xff] %v10159_v49  ;;  %v5254_v56 = vrot.slane %v5252_v21, 5  ;;  %v10164_v1 = vrot.slane %v5258_v15, 5  ;;  %v5264_v28 = vrot.slane %v5262_v27, 4  ;;  %v10169_v13 = vcombine.low %v5189_v29, %v5199_v38  ;;  %v5724_v49 = vld [vmem:[#allocation2 + $0x90] sm:$0xe] }
 0x18b   : > { %v10167_v57 = vpop.f32.mrf.mxu0  ;;  %v5231_v50 = vor.u32 %v5230_v58, %v5227_v62  ;;  %v5244_v17 = vshll.u32 %v4989_v37, 16  ;;  %v10173_v20 = vpop.f32.mrf.mxu1  ;;  %v5222_v9 = vrot.slane %v5220_v26, 5  ;;  %v5846_v54 = vrot.slane %v4989_v37, 5 }
 0x18c   : > { %7886 = vmatmul.mubr.bf16.gmra.mxu1 %v11076_v43  ;;  %11077 = vst [vmem:[#allocation34_spill] sm:$0xff] %v10173_v20  ;;  %v5241_v21 = vor.u32 %v5240_v16, %v10151_v22  ;;  %v5850_v15 = vrot.slane %v10112_v3, 5  ;;  %v11078_v27 = vcombine.low %v9935_v40, %v9948_v30  ;;  %v5213_v62 = vsel %vm8444_vm11, %v10155_v34, %v10130_v25 }
 0x18d   : > { %7953 = vmatprep.mubr.bf16.mxu1 %v9918_v2  ;;  %v4993_v2 = vld [vmem:[#allocation2 + $0x9c] sm:$0xf]  ;;  %v10180_v29 = vpop.f32.mrf.mxu0  ;;  %v5218_v58 = vrot.slane %v5217_v18, 4  ;;  %v10188_v38 = vsel %vm8826_vm14, %v7057_v45, %v5843_v10  ;;  %v5845_v26 = vrot.slane %v5843_v10, 4  ;;  %v10190_v37 = vpop.f32.mrf.mxu1  ;;  %v11080_v3 = vcombine.low %v9961_v32, %v9976_v23 }
 0x18e   : > { %8006 = vmatmul.mubr.bf16.gmra.mxu0 %v11078_v27  ;;  %11079 = vst [vmem:[#allocation35_spill] sm:$0xff] %v10190_v37  ;;  %v7058_v40 = vrot.slane %v5724_v49, 9  ;;  %v5255_v30 = vor.u32 %v5254_v56, %v5251_v42  ;;  %v5265_v16 = vor.u32 %v5264_v28, %v10164_v1  ;;  %v5268_v43 = vshll.u32 %v4992_v51, 16  ;;  %v4994_v27 = vld [vmem:[#allocation2 + $0xa0] sm:$0xf] }
 0x18f   : > { %8009 = vmatprep.mubr.bf16.mxu0 %v11080_v3  ;;  %v10196_v59 = vpop.f32.mrf.mxu0  ;;  %v5232_v25 = vrot.slane %v5231_v50, 4  ;;  %v5246_v34 = vrot.slane %v5244_v17, 5  ;;  %v5273_v18 = vshrl.u32 %v4993_v2, 16  ;;  %v5276_v45 = vshll.u32 %v4993_v2, 16  ;;  %v10198_v20 = vpop.f32.mrf.mxu1  ;;  %v10208_v56 = vld [vmem:[#allocation2 + $0xa4] sm:$0x1] }
 0x190   : > { %11081 = vst [vmem:[#allocation36_spill] sm:$0xff] %v10198_v20  ;;  %v5242_v10 = vrot.slane %v5241_v21, 4  ;;  %v5852_v37 = vrot.slane %v5850_v15, 4  ;;  %v5853_v55 = vrot.slane %v4992_v51, 5  ;;  %v5857_v32 = vrot.slane %v4994_v27, 5 }
 0x191   : > { %v10200_v23 = vpop.f32.mrf.mxu0  ;;  %v5223_v49 = vsel %vm8444_vm11, %v5218_v58, %v5222_v9  ;;  %v10206_v42 = vsel %vm8826_vm14, %v5845_v26, %v5846_v54  ;;  %v5282_v28 = vshll.u32 %v4994_v27, 16  ;;  %v5286_v50 = vshrl.u32 %v4994_v27, 16  ;;  %v7667_v17 = vpop.f32.mrf.mxu1  ;;  %v4996_v20 = vld [vmem:[#allocation2 + $0xa8] sm:$0xf] }
 0x192   : > { %v10213_v51 = vsel %vm8826_vm14, %v7058_v40, %v5850_v15  ;;  %v5256_v21 = vrot.slane %v5255_v30, 4  ;;  %v5266_v2 = vrot.slane %v5265_v16, 4  ;;  %v5270_v3 = vrot.slane %v5268_v43, 5 }
 0x193   : > { %v10216_v9 = vpop.f32.mrf.mxu0  ;;  %v5237_v54 = vsel %vm8444_vm11, %v5232_v25, %v10151_v22  ;;  %v7059_v58 = vrot.slane %v5725_v24, 9  ;;  %v5275_v26 = vrot.slane %v5273_v18, 4  ;;  %v5278_v27 = vrot.slane %v5276_v45, 5  ;;  %v4997_v18 = vld [vmem:[#allocation2 + $0xac] sm:$0xf] }
 0x194   : > { %7954 = vmatmul.mubr.bf16.vlgmr.msra.gmra.mxu1 %v9925_v14  ;;  %v2323_v14 = vpop.f32.mrf.mxu1  ;;  %v5247_v15 = vsel %vm8444_vm11, %v5242_v10, %v5246_v34  ;;  %v10225_v40 = vsel %vm8826_vm14, %v5852_v37, %v5853_v55  ;;  %v5859_v30 = vrot.slane %v5857_v32, 4  ;;  %v11082_v16 = vcombine.low %v10011_v0, %v10029_v47 }
 0x195   : > { %7957 = vmatprep.mubr.bf16.mxu1 %v9999_v12  ;;  %v5860_v12 = vrot.slane %v10208_v56, 5  ;;  %v10231_v22 = vpop.f32.mrf.mxu0  ;;  %v10233_v24 = vcombine.low %v5213_v62, %v5223_v49  ;;  %v10237_v25 = vrot.slane %v5282_v28, 5  ;;  %v5288_v34 = vrot.slane %v5286_v50, 4  ;;  %v5726_v62 = vld [vmem:[#allocation2 + $0xa8] sm:$0xe] }
 0x196   : > { %8010 = vmatmul.mubr.bf16.gmra.mxu0 %v11082_v16  ;;  %v7668_v55 = vpop.f32.mrf.mxu1  ;;  %v11083_v37 = vcombine.low %v10059_v39, %v10063_v63  ;;  %v5261_v0 = vsel %vm8444_vm11, %v5256_v21, %v10164_v1  ;;  %v5271_v47 = vsel %vm8444_vm11, %v5266_v2, %v5270_v3  ;;  %v5297_v45 = vshrl.u32 %v4996_v20, 16  ;;  %v579_v16 = vld [vmem:[#allocation2 + $0xd4] sm:$0x1]  ;;  %v10261_v2 = vld [vmem:[#allocation2 + $0xb0] sm:$0x1] }
 0x197   : > { %v5300_v10 = vshll.u32 %v4996_v20, 16  ;;  %v10247_v49 = vpop.f32.mrf.mxu0  ;;  %v10249_v28 = vcombine.low %v5237_v54, %v5247_v15  ;;  %v10255_v39 = vsel %vm8826_vm14, %v7059_v58, %v5857_v32  ;;  %v5279_v63 = vor.u32 %v5278_v27, %v5275_v26 }
 0x198   : > { %8013 = vmatprep.mubr.bf16.mxu0 %v11083_v37  ;;  %11084 = vst [vmem:[#allocation37_spill] sm:$0xff] %v10247_v49  ;;  %v2326_v1 = vpop.f32.mrf.mxu1  ;;  %v10259_v21 = vsel %vm8826_vm14, %v5859_v30, %v5860_v12  ;;  %v5864_v20 = vrot.slane %v4997_v18, 5  ;;  %v5306_v3 = vshll.u32 %v4997_v18, 16  ;;  %v5310_v54 = vshrl.u32 %v4997_v18, 16  ;;  %v11088_v18 = vld [vmem:[#allocation9_spill] sm:$0xff] }
 0x199   : > { %11085 = vst [vmem:[#allocation38_spill] sm:$0xff] %v10249_v28  ;;  %v10263_v15 = vpop.f32.mrf.mxu0  ;;  %v10265_v37 = vcombine.low %v5261_v0, %v5271_v47  ;;  %v5289_v50 = vor.u32 %v5288_v34, %v10237_v25  ;;  %v5292_v32 = vshll.u32 %v10208_v56, 16  ;;  %v7060_v58 = vrot.slane %v5726_v62, 9 }
 0x19a   : > { %11086 = vst [vmem:[#allocation39_spill] sm:$0xff] %v10263_v15  ;;  %v2332_v26 = vadd.f32 %v7667_v17, %v9717_v53  ;;  %v7671_v27 = vpop.f32.mrf.mxu1  ;;  %v5299_v30 = vrot.slane %v5297_v45, 4  ;;  %v5302_v12 = vrot.slane %v5300_v10, 5  ;;  %v580_v49 = vsel %vm8343_vm4, 0, %v579_v16  ;;  %v11089_v15 = vld [vmem:[#allocation8_spill] sm:$0xff]  ;;  %v11090_v17 = vld [vmem:[#allocation7_spill] sm:$0xff] }
 0x19b   : > { %v2324_v28 = vadd.f32 %v2323_v14, %v11088_v18  ;;  %v2335_v0 = vadd.f32 %v7668_v55, %v11089_v15  ;;  %v10276_v34 = vpop.f32.mrf.mxu0  ;;  %v10278_v56 = vrot.slane %v5279_v63, 4  ;;  %v5867_v53 = vrot.slane %v10261_v2, 5  ;;  %581 = vst [vmem:[#allocation2 + $0xd4] sm:$0x1] %v580_v49  ;;  %v11091_v10 = vld [vmem:[#allocation5_spill] sm:$0xff]  ;;  %v11092_v16 = vld [vmem:[#allocation6_spill] sm:$0xff] }
 0x19c   : > { %7958 = vmatmul.mubr.bf16.gmra.mxu1 %v10005_v46  ;;  %v2327_v46 = vadd.f32 %v2326_v1, %v11090_v17  ;;  %v2339_v47 = vpop.f32.mrf.mxu1  ;;  %v5866_v62 = vrot.slane %v5864_v20, 4  ;;  %v10282_v45 = vrot.slane %v5306_v3, 5  ;;  %v5312_v43 = vrot.slane %v5310_v54, 4  ;;  %v11096_v17 = vld [vmem:[#allocation10_spill] sm:$0xff] }
 0x19d   : > { %7961 = vmatprep.mubr.bf16.mxu1 %v10049_v5  ;;  %v2348_v14 = vadd.f32 %v7671_v27, %v11091_v10  ;;  %v2340_v55 = vadd.f32 %v2339_v47, %v11092_v16  ;;  %v11093_v5 = vcombine.low %v10080_v8, %v10088_v48  ;;  %v10289_v63 = vpop.f32.mrf.mxu0  ;;  %v10293_v15 = vrot.slane %v5292_v32, 5  ;;  %v11095_v48 = vld [vmem:[#allocation28_spill] sm:$0xff] }
 0x19e   : > { %v7672_v1 = vpop.f32.mrf.mxu1  ;;  %v11094_v3 = vcombine.low %v10128_v36, %v10146_v33  ;;  %v10298_v54 = vrot.slane %v5289_v50, 4  ;;  %v10302_v27 = vsel %vm8826_vm14, %v7060_v58, %v5864_v20  ;;  %v5303_v8 = vor.u32 %v5302_v12, %v5299_v30  ;;  %v5727_v33 = vld [vmem:[#allocation2 + $0xb4] sm:$0xe]  ;;  %v11097_v16 = vld [vmem:[#allocation12_spill] sm:$0xff] }
 0x19f   : > { %8014 = vmatmul.mubr.bf16.gmra.mxu0 %v11093_v5  ;;  %v10305_v18 = vadd.f32 %v11095_v48, %v2332_v26  ;;  %v2351_v47 = vadd.f32 %v7672_v1, %v11096_v17  ;;  %v10308_v10 = vpop.f32.mrf.mxu0  ;;  %v10315_v50 = vadd.f32 %v10047_v35, %v2324_v28  ;;  %v10318_v20 = vadd.f32 %v10055_v11, %v2335_v0  ;;  %v10332_v35 = vld [vmem:[#allocation2 + $0xb8] sm:$0xf]  ;;  %v10334_v11 = vld [vmem:[#allocation2 + $0xbc] sm:$0x1]  ;;  %v4999_v28 = vld [vmem:[#allocation2 + $0xb4] sm:$0xf] }
 0x1a0   : > { %8017 = vmatprep.mubr.bf16.mxu0 %v11094_v3  ;;  %v2342_v32 = vpop.f32.mrf.mxu1  ;;  %v10322_v58 = vsel %vm8826_vm14, %v5866_v62, %v5867_v53  ;;  %v5313_v26 = vor.u32 %v5312_v43, %v10282_v45  ;;  %v5316_v30 = vshll.u32 %v10261_v2, 16  ;;  %v10327_v12 = vadd.f32 %v10082_v60, %v2327_v46  ;;  %v11099_v3 = vld [vmem:[#allocation14_spill] sm:$0xff] }
 0x1a1   : > { %v2343_v5 = vadd.f32 %v2342_v32, %v11097_v16  ;;  %v10330_v1 = vpop.f32.mrf.mxu0  ;;  %v10337_v0 = vadd.f32 %v10096_v4, %v2348_v14  ;;  %v10340_v53 = vadd.f32 %v10117_v44, %v2340_v55  ;;  %v10343_v2 = vadd.f32 %v10124_v41, %v2351_v47  ;;  %v5003_v55 = vld [vmem:[#allocation2 + $0xc4] sm:$0xf] }
 0x1a2   : > { %v7675_v60 = vpop.f32.mrf.mxu1  ;;  %v10350_v62 = vrot.slane %v5303_v8, 4  ;;  %v7061_v43 = vrot.slane %v5727_v33, 9  ;;  %v5871_v4 = vrot.slane %v10332_v35, 5  ;;  %v1353_v14 = vld [vmem:[#allocation2 + $0xd4] sm:$0x1]  ;;  %v10364_v33 = vrot.slane %v5316_v30, 5 }
 0x1a3   : > { %11098 = vst [vmem:[#allocation4_spill] sm:$0xff] %v10343_v2  ;;  %v2364_v44 = vadd.f32 %v7675_v60, %v11099_v3  ;;  %v10355_v41 = vpop.f32.mrf.mxu0  ;;  %v1354_v17 = vsel %vm8332_vm3, 0, %v1353_v14  ;;  %v10362_v8 = vadd.f32 %v10139_v6, %v2343_v5  ;;  %v5874_v32 = vrot.slane %v10334_v11, 5  ;;  %v5728_v60 = vld [vmem:[#allocation2 + $0xc0] sm:$0xe] }
 0x1a4   : > { %7962 = vmatmul.mubr.bf16.gmra.mxu1 %v10105_v7  ;;  %v2355_v47 = vpop.f32.mrf.mxu1  ;;  %v5321_v16 = vshrl.u32 %v4999_v28, 16  ;;  %1355 = vst [vmem:[#allocation2 + $0xd4] sm:$0x1] %v1354_v17  ;;  %v11102_v3 = vld [vmem:[#allocation16_spill] sm:$0xff]  ;;  %v11103_v7 = vcombine.low %v10188_v38, %v10206_v42  ;;  %v5314_v14 = vrot.slane %v5313_v26, 4  ;;  %v5324_v6 = vshll.u32 %v4999_v28, 16 }
 0x1a5   : > { %7965 = vmatprep.mubr.bf16.mxu1 %v10107_v19  ;;  %11101 = vst [vmem:[#allocation9_spill] sm:$0xff] %v10362_v8  ;;  %v5878_v19 = vrot.slane %v5003_v55, 5  ;;  %v2356_v36 = vadd.f32 %v2355_v47, %v11102_v3  ;;  %v10371_v48 = vpop.f32.mrf.mxu0  ;;  %v10373_v5 = vld [vmem:[#allocation2 + $0xc8] sm:$0x1]  ;;  %v5002_v30 = vld [vmem:[#allocation2 + $0xc0] sm:$0xf]  ;;  %v10376_v46 = vadd.f32 %v10153_v31, %v2364_v44  ;;  %v11105_v17 = vcombine.low %v10213_v51, %v10225_v40 }
 0x1a6   : > { %v7676_v49 = vpop.f32.mrf.mxu1  ;;  %v5309_v38 = vsel %vm8444_vm11, %v10350_v62, %v10282_v45  ;;  %v10387_v42 = vsel %vm8826_vm14, %v7061_v43, %v5871_v4  ;;  %v5873_v26 = vrot.slane %v5871_v4, 4  ;;  %v5330_v28 = vshll.u32 %v10332_v35, 16 }
 0x1a7   : > { %8018 = vmatmul.mubr.bf16.gmra.mxu0 %v11103_v7  ;;  %11104 = vst [vmem:[#allocation8_spill] sm:$0xff] %v10376_v46  ;;  %v11106_v7 = vld [vmem:[#allocation18_spill] sm:$0xff]  ;;  %v10391_v44 = vpop.f32.mrf.mxu0  ;;  %v5334_v47 = vshrl.u32 %v10332_v35, 16  ;;  %v7062_v51 = vrot.slane %v5728_v60, 9  ;;  %v10395_v40 = vadd.f32 %v10167_v57, %v2356_v36  ;;  %v5881_v45 = vrot.slane %v10373_v5, 5  ;;  %v11107_v46 = vld [vmem:[#allocation20_spill] sm:$0xff] }
 0x1a8   : > { %8021 = vmatprep.mubr.bf16.mxu0 %v11105_v17  ;;  %v2367_v31 = vadd.f32 %v7676_v49, %v11106_v7  ;;  %v2358_v3 = vpop.f32.mrf.mxu1  ;;  %v5880_v17 = vrot.slane %v5878_v19, 4  ;;  %v5345_v62 = vshrl.u32 %v5002_v30, 16  ;;  %v5348_v43 = vshll.u32 %v5002_v30, 16  ;;  %v11109_v30 = vld [vmem:[#allocation22_spill] sm:$0xff] }
 0x1a9   : > { %v2359_v4 = vadd.f32 %v2358_v3, %v11107_v46  ;;  %v10399_v8 = vpop.f32.mrf.mxu0  ;;  %v5354_v2 = vshll.u32 %v5003_v55, 16  ;;  %v5358_v49 = vshrl.u32 %v5003_v55, 16  ;;  %v5319_v57 = vsel %vm8444_vm11, %v5314_v14, %v10364_v33 }
 0x1aa   : > { %v10402_v7 = vadd.f32 %v10180_v29, %v2367_v31  ;;  %v7679_v35 = vpop.f32.mrf.mxu1  ;;  %v10410_v36 = vsel %vm8826_vm14, %v5873_v26, %v5874_v32  ;;  %v5323_v60 = vrot.slane %v5321_v16, 4  ;;  %v5326_v46 = vrot.slane %v5324_v6, 5  ;;  %v11110_v6 = vld [vmem:[#allocation24_spill] sm:$0xff] }
 0x1ab   : > { %v2380_v3 = vadd.f32 %v7679_v35, %v11109_v30  ;;  %v10414_v55 = vrot.slane %v5330_v28, 5  ;;  %v5336_v29 = vrot.slane %v5334_v47, 4  ;;  %v10416_v31 = vpop.f32.mrf.mxu0  ;;  %v5879_v33 = vsel %vm8826_vm14, %v7062_v51, %v5878_v19 }
 0x1ac   : > { %11108 = vst [vmem:[#allocation7_spill] sm:$0xff] %v10402_v7  ;;  %7966 = vmatmul.mubr.bf16.gmra.mxu1 %v10169_v13  ;;  %v10419_v13 = vadd.f32 %v10196_v59, %v2359_v4  ;;  %v2371_v7 = vpop.f32.mrf.mxu1  ;;  %v5882_v32 = vsel %vm8826_vm14, %v5880_v17, %v5881_v45  ;;  %v5347_v16 = vrot.slane %v5345_v62, 4  ;;  %v5350_v14 = vrot.slane %v5348_v43, 5  ;;  %v5006_v4 = vld [vmem:[#allocation2 + $0xd0] sm:$0xf]  ;;  %v11115_v43 = vld [vmem:[#allocation25_spill] sm:$0xff] }
 0x1ad   : > { %7969 = vmatprep.mubr.bf16.mxu1 %v10233_v24  ;;  %v2372_v26 = vadd.f32 %v2371_v7, %v11110_v6  ;;  %v11111_v24 = vcombine.low %v10255_v39, %v10259_v21  ;;  %v10429_v28 = vpop.f32.mrf.mxu0  ;;  %v10431_v47 = vrot.slane %v5354_v2, 5  ;;  %v5360_v59 = vrot.slane %v5358_v49, 4  ;;  %v5729_v45 = vld [vmem:[#allocation2 + $0xcc] sm:$0xe] }
 0x1ae   : > { %v10434_v35 = vadd.f32 %v10200_v23, %v2380_v3  ;;  %v7680_v19 = vpop.f32.mrf.mxu1  ;;  %v11112_v51 = vsel %vm8444_vm11, %v10298_v54, %v10293_v15  ;;  %v11113_v39 = vsel %vm8444_vm11, %v10278_v56, %v10237_v25  ;;  %v11114_v2 = vcombine.low %v10302_v27, %v10322_v58  ;;  %v10459_v25 = vld [vmem:[#allocation2 + $0xd4] sm:$0x1]  ;;  %v5005_v56 = vld [vmem:[#allocation2 + $0xcc] sm:$0xf]  ;;  %v11116_v3 = vld [vmem:[#allocation27_spill] sm:$0xff] }
 0x1af   : > { %8022 = vmatmul.mubr.bf16.gmra.mxu0 %v11111_v24  ;;  %v10446_v21 = vcombine.low %v11113_v39, %v11112_v51  ;;  %v10451_v17 = vcombine.low %v5309_v38, %v5319_v57  ;;  %v5340_v23 = vshll.u32 %v10334_v11, 16  ;;  %v5885_v62 = vrot.slane %v5006_v4, 5  ;;  %v10457_v7 = vpop.f32.mrf.mxu0 }
 0x1b0   : > { %8025 = vmatprep.mubr.bf16.mxu0 %v11114_v2  ;;  %v2383_v49 = vadd.f32 %v7680_v19, %v11115_v43  ;;  %v7093_v15 = vcombine.low %v10387_v42, %v10410_v36  ;;  %v5327_v54 = vor.u32 %v5326_v46, %v5323_v60  ;;  %v10462_v27 = vadd.f32 %v10216_v9, %v2372_v26  ;;  %v2374_v58 = vpop.f32.mrf.mxu1  ;;  %v11117_v9 = vld [vmem:[#allocation38_spill] sm:$0xff] }
 0x1b1   : > { %v5337_v38 = vor.u32 %v5336_v29, %v10414_v55  ;;  %v7094_v11 = vcombine.low %v5879_v33, %v5882_v32  ;;  %v5351_v57 = vor.u32 %v5350_v14, %v5347_v16  ;;  %v5364_v30 = vshll.u32 %v10373_v5, 16  ;;  %v10467_v24 = vpop.f32.mrf.mxu0  ;;  %v11118_v16 = vld [vmem:[#allocation11_spill] sm:$0xff] }
 0x1b2   : > { %v2375_v6 = vadd.f32 %v2374_v58, %v11116_v3  ;;  %v5361_v42 = vor.u32 %v5360_v59, %v10431_v47  ;;  %v7063_v36 = vrot.slane %v5729_v45, 9  ;;  %v10471_v60 = vadd.f32 %v10231_v22, %v2383_v49  ;;  %v11119_v59 = vld [vmem:[#allocation37_spill] sm:$0xff] }
 0x1b3   : > { %v7683_v46 = vpop.f32.mrf.mxu1  ;;  %v5887_v26 = vrot.slane %v5885_v62, 4  ;;  %v5888_v29 = vrot.slane %v10459_v25, 5  ;;  %v5369_v33 = vshrl.u32 %v5005_v56, 16  ;;  %v5372_v32 = vshll.u32 %v5005_v56, 16  ;;  %v10477_v51 = vpop.f32.mrf.mxu0  ;;  %v11120_v58 = vld [vmem:[#allocation13_spill] sm:$0xff] }
 0x1b4   : > { %7970 = vmatmul.mubr.bf16.gmra.mxu1 %v11117_v9  ;;  %v2396_v5 = vadd.f32 %v7683_v46, %v11118_v16  ;;  %v5378_v14 = vshll.u32 %v5006_v4, 16  ;;  %v5382_v19 = vshrl.u32 %v5006_v4, 16  ;;  %v10480_v39 = vadd.f32 %v11119_v59, %v2375_v6  ;;  %v11121_v4 = vld [vmem:[#allocation39_spill] sm:$0xff] }
 0x1b5   : > { %7973 = vmatprep.mubr.bf16.mxu1 %v10265_v37  ;;  %v2387_v22 = vpop.f32.mrf.mxu1  ;;  %v5328_v2 = vrot.slane %v5327_v54, 4  ;;  %v5338_v45 = vrot.slane %v5337_v38, 4  ;;  %v5342_v43 = vrot.slane %v5340_v23, 5  ;;  %v5366_v49 = vrot.slane %v5364_v30, 5  ;;  %v10485_v37 = vpop.f32.mrf.mxu0  ;;  %v11122_v30 = vld [vmem:[#allocation15_spill] sm:$0xff] }
 0x1b6   : > { %v2388_v3 = vadd.f32 %v2387_v22, %v11120_v58  ;;  %v5352_v56 = vrot.slane %v5351_v57, 4  ;;  %v5886_v46 = vsel %vm8826_vm14, %v7063_v36, %v5885_v62  ;;  %v10488_v9 = vadd.f32 %v11121_v4, %v2396_v5  ;;  %v11123_v5 = vld [vmem:[#allocation17_spill] sm:$0xff] }
 0x1b7   : > { %8026 = vmatmul.mubr.bf16.gmra.mxu0 %v7093_v15  ;;  %v7684_v16 = vpop.f32.mrf.mxu1  ;;  %v5362_v6 = vrot.slane %v5361_v42, 4  ;;  %v5889_v54 = vsel %vm8826_vm14, %v5887_v26, %v5888_v29  ;;  %v5371_v23 = vrot.slane %v5369_v33, 4  ;;  %v5374_v38 = vrot.slane %v5372_v32, 5  ;;  %v10493_v22 = vpop.f32.mrf.mxu0 }
 0x1b8   : > { %8029 = vmatprep.mubr.bf16.mxu0 %v7094_v11  ;;  %v2399_v59 = vadd.f32 %v7684_v16, %v11122_v30  ;;  %v5380_v15 = vrot.slane %v5378_v14, 5  ;;  %v5384_v57 = vrot.slane %v5382_v19, 4  ;;  %v10496_v62 = vadd.f32 %v10276_v34, %v2388_v3  ;;  %v11124_v14 = vld [vmem:[#allocation19_spill] sm:$0xff] }
 0x1b9   : > { %v2390_v36 = vpop.f32.mrf.mxu1  ;;  %v5333_v11 = vsel %vm8444_vm11, %v5328_v2, %v10414_v55  ;;  %v7095_v61 = vcombine.low %v5886_v46, %v5889_v54  ;;  %v10502_v42 = vpop.f32.mrf.mxu0  ;;  %v5343_v34 = vsel %vm8444_vm11, %v5338_v45, %v5342_v43  ;;  %v5357_v33 = vsel %vm8444_vm11, %v5352_v56, %v10431_v47  ;;  %v11125_v43 = vld [vmem:[#allocation21_spill] sm:$0xff] }
 0x1ba   : > { %v2391_v58 = vadd.f32 %v2390_v36, %v11123_v5  ;;  %v10505_v26 = vadd.f32 %v10289_v63, %v2399_v59  ;;  %v5367_v32 = vsel %vm8444_vm11, %v5362_v6, %v5366_v49  ;;  %v5375_v55 = vor.u32 %v5374_v38, %v5371_v23  ;;  %v11126_v6 = vld [vmem:[#allocation23_spill] sm:$0xff]  ;;  %v11127_v59 = vld [vmem:[#allocation26_spill] sm:$0xff] }
 0x1bb   : > { %v7687_v29 = vpop.f32.mrf.mxu1  ;;  %v5385_v63 = vor.u32 %v5384_v57, %v5380_v15  ;;  %v5388_v2 = vshll.u32 %v10459_v25, 16  ;;  %v10518_v3 = vpop.f32.mrf.mxu0  ;;  %v7037_v4 = vcombine.low %v5333_v11, %v5343_v34 }
 0x1bc   : > { %7974 = vmatmul.mubr.bf16.gmra.mxu1 %v10446_v21  ;;  %v2412_v19 = vadd.f32 %v7687_v29, %v11124_v14  ;;  %v10521_v21 = vadd.f32 %v10308_v10, %v2391_v58  ;;  %v5376_v16 = vrot.slane %v5375_v55, 4  ;;  %v11128_v58 = vld [vmem:[#allocation29_spill] sm:$0xff] }
 0x1bd   : > { %7977 = vmatprep.mubr.bf16.mxu1 %v10451_v17  ;;  %v2403_v45 = vpop.f32.mrf.mxu1  ;;  %v10524_v47 = vpop.f32.mrf.mxu0  ;;  %v7038_v17 = vcombine.low %v5357_v33, %v5367_v32  ;;  %v5386_v54 = vrot.slane %v5385_v63, 4  ;;  %v5390_v23 = vrot.slane %v5388_v2, 5  ;;  %v11129_v32 = vld [vmem:[#allocation30_spill] sm:$0xff]  ;;  %v11130_v2 = vld [vmem:[#allocation31_spill] sm:$0xff] }
 0x1be   : > { %v2404_v46 = vadd.f32 %v2403_v45, %v11125_v43  ;;  %v10527_v49 = vadd.f32 %v10330_v1, %v2412_v19 }
 0x1bf   : > { %8030 = vmatmul.mubr.bf16.gmra.mxu0 %v7095_v61  ;;  %v7688_v56 = vpop.f32.mrf.mxu1  ;;  %v10530_v38 = vpop.f32.mrf.mxu0  ;;  %v5381_v61 = vsel %vm8444_vm11, %v5376_v16, %v5380_v15  ;;  %v11132_v16 = vld [vmem:[#allocation33_spill] sm:$0xff] }
 0x1c0   : > { %v2415_v25 = vadd.f32 %v7688_v56, %v11126_v6  ;;  %v10533_v10 = vadd.f32 %v10355_v41, %v2404_v46  ;;  %v5391_v41 = vsel %vm8444_vm11, %v5386_v54, %v5390_v23  ;;  %v11131_v46 = vld [vmem:[#allocation32_spill] sm:$0xff]  ;;  %v11133_v23 = vld [vmem:[#allocation34_spill] sm:$0xff] }
 0x1c1   : > { %v2406_v30 = vpop.f32.mrf.mxu1  ;;  %v10536_v36 = vpop.f32.mrf.mxu0  ;;  %v7039_v63 = vcombine.low %v5381_v61, %v5391_v41  ;;  %v11135_v41 = vld [vmem:[#allocation36_spill] sm:$0xff] }
 0x1c2   : > { %v2407_v57 = vadd.f32 %v2406_v30, %v11127_v59  ;;  %v10539_v1 = vadd.f32 %v10371_v48, %v2415_v25 }
 0x1c3   : > { %v3932_v29 = vpop.f32.mrf.mxu0 }
 0x1c4   : > { %v7691_v5 = vpop.f32.mrf.mxu1  ;;  %7978 = vmatmul.mubr.bf16.gmra.mxu1 %v7037_v4  ;;  %v10547_v34 = vadd.f32 %v10391_v44, %v2407_v57 }
 0x1c5   : > { %v2428_v11 = vadd.f32 %v7691_v5, %v11128_v58  ;;  %7981 = vmatprep.mubr.bf16.mxu1 %v7038_v17  ;;  %v7816_v48 = vpop.f32.mrf.mxu0  ;;  %v11134_v5 = vld [vmem:[#allocation35_spill] sm:$0xff] }
 0x1c6   : > { %v2419_v33 = vpop.f32.mrf.mxu1 }
 0x1c7   : > { %v2420_v55 = vadd.f32 %v2419_v33, %v11129_v32  ;;  %v10551_v14 = vadd.f32 %v10399_v8, %v2428_v11  ;;  %v3935_v43 = vpop.f32.mrf.mxu0 }
 0x1c8   : > { %v7692_v19 = vpop.f32.mrf.mxu1 }
 0x1c9   : > { %v2431_v45 = vadd.f32 %v7692_v19, %v11130_v2  ;;  %v10555_v15 = vadd.f32 %v10416_v31, %v2420_v55  ;;  %v7819_v44 = vpop.f32.mrf.mxu0 }
 0x1ca   : > { %v2422_v52 = vpop.f32.mrf.mxu1 }
 0x1cb   : > { %v2423_v56 = vadd.f32 %v2422_v52, %v11131_v46  ;;  %v10559_v4 = vadd.f32 %v10429_v28, %v2431_v45  ;;  %v3948_v6 = vpop.f32.mrf.mxu0 }
 0x1cc   : > { %v7695_v17 = vpop.f32.mrf.mxu1  ;;  %7982 = vmatmul.mubr.bf16.gmra.mxu1 %v7039_v63 }
 0x1cd   : > { %v2444_v8 = vadd.f32 %v7695_v17, %v11132_v16  ;;  %v10563_v25 = vadd.f32 %v10457_v7, %v2423_v56  ;;  %v7820_v31 = vpop.f32.mrf.mxu0 }
 0x1ce   : > { %v2435_v54 = vpop.f32.mrf.mxu1 }
 0x1cf   : > { %v2436_v30 = vadd.f32 %v2435_v54, %v11133_v23  ;;  %v10567_v59 = vadd.f32 %v10467_v24, %v2444_v8  ;;  %v3951_v28 = vpop.f32.mrf.mxu0 }
 0x1d0   : > { %v7696_v57 = vpop.f32.mrf.mxu1 }
 0x1d1   : > { %v2447_v58 = vadd.f32 %v7696_v57, %v11134_v5  ;;  %v10571_v11 = vadd.f32 %v10477_v51, %v2436_v30  ;;  %v7823_v32 = vpop.f32.mrf.mxu0 }
 0x1d2   : > { %v2438_v61 = vpop.f32.mrf.mxu1 }
 0x1d3   : > { %v2439_v33 = vadd.f32 %v2438_v61, %v11135_v41  ;;  %v10575_v7 = vadd.f32 %v10485_v37, %v2447_v58  ;;  %v3964_v63 = vpop.f32.mrf.mxu0 }
 0x1d4   : > { %v7763_v55 = vpop.f32.mrf.mxu1 }
 0x1d5   : > { %v3291_v19 = vadd.f32 %v7763_v55, %v10305_v18  ;;  %v10579_v24 = vadd.f32 %v10493_v22, %v2439_v33  ;;  %v7824_v52 = vpop.f32.mrf.mxu0  ;;  %v11137_v33 = vld [vmem:[#allocation9_spill] sm:$0xff] }
 0x1d6   : > { %v3162_v2 = vpop.f32.mrf.mxu1 }
 0x1d7   : > { %v3289_v45 = vadd.f32 %v3162_v2, %v10315_v50  ;;  %v10583_v51 = vadd.f32 %v10502_v42, %v3291_v19  ;;  %v3967_v17 = vpop.f32.mrf.mxu0  ;;  %v11138_v2 = vld [vmem:[#allocation8_spill] sm:$0xff] }
 0x1d8   : > { %v7764_v46 = vpop.f32.mrf.mxu1 }
 0x1d9   : > { %v3292_v56 = vadd.f32 %v7764_v46, %v10318_v20  ;;  %v10587_v37 = vadd.f32 %v10518_v3, %v3289_v45  ;;  %v7827_v8 = vpop.f32.mrf.mxu0 }
 0x1da   : > { %v3165_v16 = vpop.f32.mrf.mxu1 }
 0x1db   : > { %v3290_v18 = vadd.f32 %v3165_v16, %v10327_v12  ;;  %v10591_v22 = vadd.f32 %v10524_v47, %v3292_v56  ;;  %v3980_v23 = vpop.f32.mrf.mxu0  ;;  %v11136_v12 = vld [vmem:[#allocation4_spill] sm:$0xff] }
 0x1dc   : > { %v7767_v54 = vpop.f32.mrf.mxu1 }
 0x1dd   : > { %v3295_v50 = vadd.f32 %v7767_v54, %v10337_v0  ;;  %v10595_v42 = vadd.f32 %v10530_v38, %v3290_v18  ;;  %v7828_v57 = vpop.f32.mrf.mxu0  ;;  %v11139_v54 = vld [vmem:[#allocation7_spill] sm:$0xff] }
 0x1de   : > { %v3178_v30 = vpop.f32.mrf.mxu1 }
 0x1df   : > { %v3293_v20 = vadd.f32 %v3178_v30, %v10340_v53  ;;  %v10599_v3 = vadd.f32 %v10536_v36, %v3295_v50  ;;  %v3983_v61 = vpop.f32.mrf.mxu0 }
 0x1e0   : > { %v7768_v5 = vpop.f32.mrf.mxu1 }
 0x1e1   : > { %v3296_v58 = vadd.f32 %v7768_v5, %v11136_v12  ;;  %v10602_v47 = vadd.f32 %v3932_v29, %v3293_v20  ;;  %v7831_v55 = vpop.f32.mrf.mxu0 }
 0x1e2   : > { %v3181_v41 = vpop.f32.mrf.mxu1 }
 0x1e3   : > { %v3294_v0 = vadd.f32 %v3181_v41, %v11137_v33  ;;  %v10605_v19 = vadd.f32 %v7816_v48, %v3296_v58  ;;  %v3996_v53 = vpop.f32.mrf.mxu0 }
 0x1e4   : > { %v7771_v38 = vpop.f32.mrf.mxu1 }
 0x1e5   : > { %v3299_v45 = vadd.f32 %v7771_v38, %v11138_v2  ;;  %v10608_v46 = vadd.f32 %v3935_v43, %v3294_v0  ;;  %v7832_v16 = vpop.f32.mrf.mxu0 }
 0x1e6   : > { %v3194_v36 = vpop.f32.mrf.mxu1 }
 0x1e7   : > { %v3297_v56 = vadd.f32 %v3194_v36, %v10395_v40  ;;  %v10611_v18 = vadd.f32 %v7819_v44, %v3299_v45  ;;  %v3999_v5 = vpop.f32.mrf.mxu0 }
 0x1e8   : > { %v7772_v29 = vpop.f32.mrf.mxu1 }
 0x1e9   : > { %v3300_v50 = vadd.f32 %v7772_v29, %v11139_v54  ;;  %v10614_v30 = vadd.f32 %v3948_v6, %v3297_v56  ;;  %v7835_v33 = vpop.f32.mrf.mxu0 }
 0x1ea   : > { %v3197_v20 = vpop.f32.mrf.mxu1 }
 0x1eb   : > { %v3298_v48 = vadd.f32 %v3197_v20, %v10419_v13  ;;  %v10617_v12 = vadd.f32 %v7820_v31, %v3300_v50  ;;  %v4012_v45 = vpop.f32.mrf.mxu0 }
 0x1ec   : > { %v7775_v58 = vpop.f32.mrf.mxu1 }
 0x1ed   : > { %v3303_v43 = vadd.f32 %v7775_v58, %v10434_v35  ;;  %v10620_v41 = vadd.f32 %v3951_v28, %v3298_v48  ;;  %v7836_v29 = vpop.f32.mrf.mxu0 }
 0x1ee   : > { %v3210_v40 = vpop.f32.mrf.mxu1 }
 0x1ef   : > { %v3301_v44 = vadd.f32 %v3210_v40, %v10462_v27  ;;  %v10623_v0 = vadd.f32 %v7823_v32, %v3303_v43  ;;  %v4015_v20 = vpop.f32.mrf.mxu0 }
 0x1f0   : > { %v7776_v38 = vpop.f32.mrf.mxu1 }
 0x1f1   : > { %v3304_v6 = vadd.f32 %v7776_v38, %v10471_v60  ;;  %v10626_v2 = vadd.f32 %v3964_v63, %v3301_v44 }
 0x1f2   : > { %v3213_v13 = vpop.f32.mrf.mxu1 }
 0x1f3   : > { %v3302_v31 = vadd.f32 %v3213_v13, %v10480_v39  ;;  %v10629_v36 = vadd.f32 %v7824_v52, %v3304_v6 }
 0x1f4   : > { %v7779_v35 = vpop.f32.mrf.mxu1 }
 0x1f5   : > { %v3307_v28 = vadd.f32 %v7779_v35, %v10488_v9  ;;  %v10632_v56 = vadd.f32 %v3967_v17, %v3302_v31 }
 0x1f6   : > { %v3226_v27 = vpop.f32.mrf.mxu1 }
 0x1f7   : > { %v3305_v32 = vadd.f32 %v3226_v27, %v10496_v62  ;;  %v10635_v54 = vadd.f32 %v7827_v8, %v3307_v28 }
 0x1f8   : > { %v7780_v60 = vpop.f32.mrf.mxu1 }
 0x1f9   : > { %v3308_v63 = vadd.f32 %v7780_v60, %v10505_v26  ;;  %v10638_v50 = vadd.f32 %v3980_v23, %v3305_v32 }
 0x1fa   : > { %v3229_v39 = vpop.f32.mrf.mxu1 }
 0x1fb   : > { %v3306_v52 = vadd.f32 %v3229_v39, %v10521_v21  ;;  %v10641_v48 = vadd.f32 %v7828_v57, %v3308_v63 }
 0x1fc   : > { %v7783_v9 = vpop.f32.mrf.mxu1 }
 0x1fd   : > { %v3311_v17 = vadd.f32 %v7783_v9, %v10527_v49  ;;  %v10644_v58 = vadd.f32 %v3983_v61, %v3306_v52  ;;  %v7839_v43 = vpop.f32.mrf.mxu0 }
 0x1fe   : > { %v3242_v62 = vpop.f32.mrf.mxu1 }
 0x1ff   : > { %v3309_v8 = vadd.f32 %v3242_v62, %v10533_v10  ;;  %v10647_v40 = vadd.f32 %v7831_v55, %v3311_v17  ;;  %v4028_v44 = vpop.f32.mrf.mxu0 }
 0x200   : > { %v7784_v26 = vpop.f32.mrf.mxu1 }
 0x201   : > { %v3312_v23 = vadd.f32 %v7784_v26, %v10539_v1  ;;  %v10650_v38 = vadd.f32 %v3996_v53, %v3309_v8  ;;  %v7840_v6 = vpop.f32.mrf.mxu0 }
 0x202   : > { %v3245_v21 = vpop.f32.mrf.mxu1 }
 0x203   : > { %11140 = vst [vmem:[#allocation5_spill] sm:$0xff] %v10650_v38  ;;  %v3310_v57 = vadd.f32 %v3245_v21, %v10547_v34  ;;  %v10653_v13 = vadd.f32 %v7832_v16, %v3312_v23  ;;  %v4031_v31 = vpop.f32.mrf.mxu0 }
 0x204   : > { %v7787_v49 = vpop.f32.mrf.mxu1 }
 0x205   : > { %11141 = vst [vmem:[#allocation6_spill] sm:$0xff] %v10653_v13  ;;  %v3315_v61 = vadd.f32 %v7787_v49, %v10551_v14  ;;  %v10656_v10 = vadd.f32 %v3999_v5, %v3310_v57  ;;  %v7907_v28 = vpop.f32.mrf.mxu0 }
 0x206   : > { %v3258_v55 = vpop.f32.mrf.mxu1 }
 0x207   : > { %11142 = vst [vmem:[#allocation28_spill] sm:$0xff] %v10656_v10  ;;  %v3313_v35 = vadd.f32 %v3258_v55, %v10555_v15  ;;  %v10659_v1 = vadd.f32 %v7835_v33, %v3315_v61  ;;  %v4801_v32 = vpop.f32.mrf.mxu0 }
 0x208   : > { %v7788_v53 = vpop.f32.mrf.mxu1 }
 0x209   : > { %v3316_v27 = vadd.f32 %v7788_v53, %v10559_v4  ;;  %v10662_v34 = vadd.f32 %v4012_v45, %v3313_v35  ;;  %v10665_v63 = vpop.f32.mrf.mxu0 }
 0x20a   : > { %v3261_v16 = vpop.f32.mrf.mxu1 }
 0x20b   : > { %11143 = vst [vmem:[#allocation10_spill] sm:$0xff] %v10662_v34  ;;  %v3314_v60 = vadd.f32 %v3261_v16, %v10563_v25  ;;  %v10667_v14 = vadd.f32 %v7836_v29, %v3316_v27  ;;  %v10670_v15 = vpop.f32.mrf.mxu0 }
 0x20c   : > { %v7791_v5 = vpop.f32.mrf.mxu1 }
 0x20d   : > { %11144 = vst [vmem:[#allocation12_spill] sm:$0xff] %v10667_v14  ;;  %v3319_v39 = vadd.f32 %v7791_v5, %v10567_v59  ;;  %v10672_v33 = vadd.f32 %v4015_v20, %v3314_v60  ;;  %v7911_v9 = vpop.f32.mrf.mxu0 }
 0x20e   : > { %v3274_v52 = vpop.f32.mrf.mxu1 }
 0x20f   : > { %11145 = vst [vmem:[#allocation14_spill] sm:$0xff] %v10672_v33  ;;  %v3317_v4 = vadd.f32 %v3274_v52, %v10571_v11  ;;  %v10675_v45 = vadd.f32 %v7839_v43, %v3319_v39  ;;  %v10678_v62 = vpop.f32.mrf.mxu0 }
 0x210   : > { %v7792_v17 = vpop.f32.mrf.mxu1 }
 0x211   : > { %v3320_v25 = vadd.f32 %v7792_v17, %v10575_v7  ;;  %v10680_v29 = vadd.f32 %v4028_v44, %v3317_v4  ;;  %v10683_v26 = vpop.f32.mrf.mxu0 }
 0x212   : > { %v3277_v8 = vpop.f32.mrf.mxu1 }
 0x213   : > { %11146 = vst [vmem:[#allocation3_spill] sm:$0xff] %v10680_v29  ;;  %v3318_v59 = vadd.f32 %v3277_v8, %v10579_v24  ;;  %v10685_v20 = vadd.f32 %v7840_v6, %v3320_v25  ;;  %v10688_v21 = vpop.f32.mrf.mxu0 }
 0x214   : > { %v7859_v23 = vpop.f32.mrf.mxu1 }
 0x215   : > { %11147 = vst [vmem:[#allocation16_spill] sm:$0xff] %v10685_v20  ;;  %v4543_v11 = vadd.f32 %v7859_v23, %v10583_v51  ;;  %v10690_v43 = vadd.f32 %v4031_v31, %v3318_v59 }
 0x216   : > { %v4414_v57 = vpop.f32.mrf.mxu1  ;;  %v7915_v49 = vpop.f32.mrf.mxu0 }
 0x217   : > { %11148 = vst [vmem:[#allocation18_spill] sm:$0xff] %v10690_v43  ;;  %v4541_v7 = vadd.f32 %v4414_v57, %v10587_v37  ;;  %v10693_v44 = vadd.f32 %v7907_v28, %v4543_v11 }
 0x218   : > { %v10695_v61 = vpop.f32.mrf.mxu1  ;;  %v10697_v24 = vpop.f32.mrf.mxu0 }
 0x219   : > { %v10699_v55 = vadd.f32 %v4801_v32, %v4541_v7 }
 0x21a   : > { %v10701_v6 = vpop.f32.mrf.mxu1  ;;  %v10703_v35 = vpop.f32.mrf.mxu0 }
 0x21c   : > { %v7863_v51 = vpop.f32.mrf.mxu1  ;;  %v10706_v53 = vpop.f32.mrf.mxu0 }
 0x21d   : > { %v4547_v31 = vadd.f32 %v7863_v51, %v10599_v3 }
 0x21e   : > { %v10708_v27 = vpop.f32.mrf.mxu1  ;;  %v7919_v37 = vpop.f32.mrf.mxu0 }
 0x21f   : > { %v10710_v28 = vadd.f32 %v7911_v9, %v4547_v31 }
 0x220   : > { %v10712_v16 = vpop.f32.mrf.mxu1  ;;  %v10714_v60 = vpop.f32.mrf.mxu0 }
 0x222   : > { %v10716_v32 = vpop.f32.mrf.mxu1  ;;  %v10718_v5 = vpop.f32.mrf.mxu0 }
 0x224   : > { %v7867_v39 = vpop.f32.mrf.mxu1  ;;  %v10721_v4 = vpop.f32.mrf.mxu0 }
 0x225   : > { %v4551_v52 = vadd.f32 %v7867_v39, %v10611_v18 }
 0x226   : > { %v10723_v3 = vpop.f32.mrf.mxu1  ;;  %v7923_v17 = vpop.f32.mrf.mxu0 }
 0x227   : > { %v10725_v25 = vadd.f32 %v7915_v49, %v4551_v52 }
 0x228   : > { %v10727_v9 = vpop.f32.mrf.mxu1  ;;  %v10729_v8 = vpop.f32.mrf.mxu0 }
 0x22a   : > { %v10731_v59 = vpop.f32.mrf.mxu1  ;;  %v10733_v23 = vpop.f32.mrf.mxu0 }
 0x22b   : > { %11149 = vst [vmem:[#allocation20_spill] sm:$0xff] %v10733_v23 }
 0x22c   : > { %v7871_v11 = vpop.f32.mrf.mxu1  ;;  %v10736_v7 = vpop.f32.mrf.mxu0 }
 0x22d   : > { %v4555_v57 = vadd.f32 %v7871_v11, %v10623_v0  ;;  %11150 = vst [vmem:[#allocation22_spill] sm:$0xff] %v10736_v7 }
 0x22e   : > { %v10738_v18 = vpop.f32.mrf.mxu1  ;;  %v7927_v51 = vpop.f32.mrf.mxu0 }
 0x22f   : > { %v10740_v31 = vadd.f32 %v7919_v37, %v4555_v57 }
 0x230   : > { %v10742_v49 = vpop.f32.mrf.mxu1  ;;  %v10744_v39 = vpop.f32.mrf.mxu0 }
 0x231   : > { %11151 = vst [vmem:[#allocation24_spill] sm:$0xff] %v10744_v39 }
 0x232   : > { %v10746_v52 = vpop.f32.mrf.mxu1  ;;  %v10748_v43 = vpop.f32.mrf.mxu0 }
 0x233   : > { %11152 = vst [vmem:[#allocation25_spill] sm:$0xff] %v10748_v43 }
 0x234   : > { %v7875_v20 = vpop.f32.mrf.mxu1  ;;  %v10751_v33 = vpop.f32.mrf.mxu0 }
 0x235   : > { %v4559_v29 = vadd.f32 %v7875_v20, %v10635_v54  ;;  %11153 = vst [vmem:[#allocation27_spill] sm:$0xff] %v10751_v33 }
 0x236   : > { %v10753_v0 = vpop.f32.mrf.mxu1  ;;  %v7931_v11 = vpop.f32.mrf.mxu0 }
 0x237   : > { %v10755_v14 = vadd.f32 %v7923_v17, %v4559_v29 }
 0x238   : > { %v10757_v37 = vpop.f32.mrf.mxu1  ;;  %v10759_v57 = vpop.f32.mrf.mxu0 }
 0x239   : > { %11154 = vst [vmem:[#allocation38_spill] sm:$0xff] %v10755_v14  ;;  %11155 = vst [vmem:[#allocation11_spill] sm:$0xff] %v10759_v57 }
 0x23a   : > { %v10761_v34 = vpop.f32.mrf.mxu1  ;;  %v10763_v39 = vpop.f32.mrf.mxu0 }
 0x23b   : > { %11156 = vst [vmem:[#allocation37_spill] sm:$0xff] %v10763_v39 }
 0x23c   : > { %v7879_v10 = vpop.f32.mrf.mxu1  ;;  %v10766_v7 = vpop.f32.mrf.mxu0 }
 0x23d   : > { %v4563_v43 = vadd.f32 %v7879_v10, %v10647_v40  ;;  %11157 = vst [vmem:[#allocation13_spill] sm:$0xff] %v10766_v7 }
 0x23e   : > { %v10768_v54 = vpop.f32.mrf.mxu1  ;;  %v7935_v20 = vpop.f32.mrf.mxu0 }
 0x23f   : > { %11158 = vst [vmem:[#allocation39_spill] sm:$0xff] %v10768_v54  ;;  %v10770_v33 = vadd.f32 %v7927_v51, %v4563_v43 }
 0x240   : > { %v10772_v29 = vpop.f32.mrf.mxu1  ;;  %v10774_v17 = vpop.f32.mrf.mxu0 }
 0x241   : > { %11159 = vst [vmem:[#allocation15_spill] sm:$0xff] %v10770_v33  ;;  %11160 = vst [vmem:[#allocation17_spill] sm:$0xff] %v10772_v29 }
 0x242   : > { %11161 = vst [vmem:[#allocation19_spill] sm:$0xff] %v10774_v17  ;;  %v10776_v13 = vpop.f32.mrf.mxu1  ;;  %v10778_v57 = vpop.f32.mrf.mxu0 }
 0x243   : > { %11162 = vst [vmem:[#allocation21_spill] sm:$0xff] %v10776_v13  ;;  %11163 = vst [vmem:[#allocation23_spill] sm:$0xff] %v10778_v57 }
 0x244   : > { %v7883_v38 = vpop.f32.mrf.mxu1  ;;  %v10781_v14 = vpop.f32.mrf.mxu0 }
 0x245   : > { %v4567_v39 = vadd.f32 %v7883_v38, %v10659_v1  ;;  %11164 = vst [vmem:[#allocation26_spill] sm:$0xff] %v10781_v14 }
 0x246   : > { %v10783_v40 = vpop.f32.mrf.mxu1  ;;  %v8003_v10 = vpop.f32.mrf.mxu0 }
 0x247   : > { %11165 = vst [vmem:[#allocation29_spill] sm:$0xff] %v10783_v40  ;;  %v10785_v7 = vadd.f32 %v7931_v11, %v4567_v39  ;;  %v4544_v11 = vadd.f32 %v10695_v61, %v10591_v22 }
 0x248   : > { %v10787_v43 = vpop.f32.mrf.mxu1  ;;  %v6053_v51 = vpop.f32.mrf.mxu0 }
 0x249   : > { %11166 = vst [vmem:[#allocation30_spill] sm:$0xff] %v10785_v7  ;;  %11167 = vst [vmem:[#allocation31_spill] sm:$0xff] %v10787_v43  ;;  %v4542_v43 = vadd.f32 %v10701_v6, %v10595_v42  ;;  %v4545_v42 = vadd.f32 %v10708_v27, %v10602_v47  ;;  %v4548_v6 = vadd.f32 %v10712_v16, %v10605_v19 }
 0x24a   : > { %v10789_v33 = vpop.f32.mrf.mxu1  ;;  %v8004_v17 = vpop.f32.mrf.mxu0 }
 0x24b   : > { %11168 = vst [vmem:[#allocation32_spill] sm:$0xff] %v10789_v33  ;;  %v4929_v22 = vadd.f32 %v10670_v15, %v4542_v43  ;;  %v4932_v16 = vadd.f32 %v10678_v62, %v4545_v42  ;;  %v4552_v42 = vadd.f32 %v10727_v9, %v10617_v12 }
 0x24c   : > { %v7887_v29 = vpop.f32.mrf.mxu1  ;;  %v6056_v57 = vpop.f32.mrf.mxu0 }
 0x24d   : > { %v4571_v13 = vadd.f32 %v7887_v29, %v10675_v45 }
 0x24e   : > { %v10792_v54 = vpop.f32.mrf.mxu1  ;;  %v8007_v38 = vpop.f32.mrf.mxu0 }
 0x24f   : > { %11169 = vst [vmem:[#allocation33_spill] sm:$0xff] %v10792_v54  ;;  %v10794_v1 = vadd.f32 %v7935_v20, %v4571_v13  ;;  %v4931_v20 = vadd.f32 %v10665_v63, %v4544_v11 }
 0x250   : > { %v10796_v14 = vpop.f32.mrf.mxu1  ;;  %v6069_v40 = vpop.f32.mrf.mxu0 }
 0x251   : > { %11170 = vst [vmem:[#allocation34_spill] sm:$0xff] %v10794_v1  ;;  %11171 = vst [vmem:[#allocation35_spill] sm:$0xff] %v10796_v14 }
 0x252   : > { %v10798_v39 = vpop.f32.mrf.mxu1  ;;  %v8008_v7 = vpop.f32.mrf.mxu0 }
 0x253   : > { %11172 = vst [vmem:[#allocation36_spill] sm:$0xff] %v10798_v39 }
 0x254   : > { %v7955_v33 = vpop.f32.mrf.mxu1  ;;  %v6072_v45 = vpop.f32.mrf.mxu0 }
 0x255   : > { %v5684_v54 = vadd.f32 %v7955_v33, %v10693_v44 }
 0x256   : > { %v5555_v29 = vpop.f32.mrf.mxu1  ;;  %v10807_v1 = vpop.f32.mrf.mxu0 }
 0x257   : > { %v5682_v13 = vadd.f32 %v5555_v29, %v10699_v55  ;;  %v6182_v44 = vadd.f32 %v8003_v10, %v5684_v54 }
 0x258   : > { %v7956_v39 = vpop.f32.mrf.mxu1  ;;  %v10810_v61 = vpop.f32.mrf.mxu0 }
 0x259   : > { %v5685_v14 = vadd.f32 %v7956_v39, %v4931_v20  ;;  %v6180_v55 = vadd.f32 %v6053_v51, %v5682_v13  ;;  %v4546_v39 = vadd.f32 %v10716_v32, %v10608_v46  ;;  %v4935_v46 = vadd.f32 %v10683_v26, %v4548_v6 }
 0x25a   : > { %v5558_v33 = vpop.f32.mrf.mxu1  ;;  %v10816_v63 = vpop.f32.mrf.mxu0 }
 0x25b   : > { %v6183_v29 = vadd.f32 %v8004_v17, %v5685_v14  ;;  %v5683_v23 = vadd.f32 %v5558_v33, %v4929_v22  ;;  %v6409_v32 = vmul.f32 %v6180_v55, %v6180_v55  ;;  %v4933_v13 = vadd.f32 %v10688_v21, %v4546_v39 }
 0x25c   : > { %v7959_v47 = vpop.f32.mrf.mxu1  ;;  %v10827_v27 = vpop.f32.mrf.mxu0 }
 0x25d   : > { %v7283_v15 = vpack.c.bf16 %v6183_v29, %v6182_v44  ;;  %v6181_v19 = vadd.f32 %v6056_v57, %v5683_v23  ;;  %v5688_v14 = vadd.f32 %v7959_v47, %v10710_v28  ;;  %v4549_v23 = vadd.f32 %v10723_v3, %v10614_v30 }
 0x25e   : > { %v5571_v54 = vpop.f32.mrf.mxu1  ;;  %v6411_v28 = vmul.f32 %v6182_v44, %v6182_v44  ;;  %v6412_v6 = vmul.f32 %v6183_v29, %v6183_v29 }
 0x25f   : > { %7370 = vst [vmem:[%s10825_s13 + $0x8] sm:$0xff] %v7283_v15   ;;  %v7278_v17 = vpack.c.bf16 %v6181_v19, %v6180_v55  ;;  %v6372_v10 = vadd.f32 %v6181_v19, %v6180_v55  ;;  %v6410_v43 = vmul.f32 %v6181_v19, %v6181_v19  ;;  %v10833_v51 = vpop.f32.mrf.mxu0  ;;  %v5686_v57 = vadd.f32 %v5571_v54, %v4932_v16 }
 0x260   : > { %v7960_v11 = vpop.f32.mrf.mxu1  ;;  %v6186_v33 = vadd.f32 %v8007_v38, %v5688_v14  ;;  %v4936_v16 = vadd.f32 %v10697_v24, %v4549_v23  ;;  %v4553_v23 = vadd.f32 %v10738_v18, %v10626_v2 }
 0x261   : > { %7279 = vst [vmem:[%s10825_s13] sm:$0xff] %v7278_v17   ;;  %v6373_v62 = vadd.f32 %v6372_v10, %v6182_v44  ;;  %v6441_v20 = vadd.f32 %v6410_v43, %v6409_v32  ;;  %v5689_v22 = vadd.f32 %v7960_v11, %v4935_v46  ;;  %v10839_v26 = vpop.f32.mrf.mxu0  ;;  %v6184_v55 = vadd.f32 %v6069_v40, %v5686_v57 }
 0x262   : > { %v5574_v47 = vpop.f32.mrf.mxu1  ;;  %v4550_v44 = vadd.f32 %v10731_v59, %v10620_v41  ;;  %v4939_v17 = vadd.f32 %v10703_v35, %v4552_v42 }
 0x263   : > { %v6442_v15 = vadd.f32 %v6441_v20, %v6411_v28  ;;  %v6374_v30 = vadd.f32 %v6373_v62, %v6183_v29  ;;  %v6187_v3 = vadd.f32 %v8008_v7, %v5689_v22  ;;  %v5687_v19 = vadd.f32 %v5574_v47, %v4933_v13  ;;  %v10843_v21 = vpop.f32.mrf.mxu0 }
 0x264   : > { %v7963_v39 = vpop.f32.mrf.mxu1  ;;  %v6413_v46 = vmul.f32 %v6184_v55, %v6184_v55  ;;  %v4937_v11 = vadd.f32 %v10706_v53, %v4550_v44 }
 0x265   : > { %v6375_v54 = vadd.f32 %v6374_v30, %v6184_v55  ;;  %v6443_v12 = vadd.f32 %v6442_v15, %v6412_v6  ;;  %v7293_v9 = vpack.c.bf16 %v6187_v3, %v6186_v33  ;;  %v10848_v38 = vpop.f32.mrf.mxu0  ;;  %v6185_v40 = vadd.f32 %v6072_v45, %v5687_v19 }
 0x266   : > { %v5587_v14 = vpop.f32.mrf.mxu1  ;;  %v5692_v7 = vadd.f32 %v7963_v39, %v10725_v25  ;;  %v4556_v45 = vadd.f32 %v10742_v49, %v10629_v36  ;;  %v6415_v25 = vmul.f32 %v6186_v33, %v6186_v33  ;;  %v6416_v36 = vmul.f32 %v6187_v3, %v6187_v3 }
 0x267   : > { %v6444_v32 = vadd.f32 %v6443_v12, %v6413_v46  ;;  %7372 = vst [vmem:[%s10825_s13 + $0x18] sm:$0xff] %v7293_v9   ;;  %v5690_v29 = vadd.f32 %v5587_v14, %v4936_v16  ;;  %v10853_v41 = vpop.f32.mrf.mxu0  ;;  %v7288_v59 = vpack.c.bf16 %v6185_v40, %v6184_v55  ;;  %v6376_v24 = vadd.f32 %v6375_v54, %v6185_v40 }
 0x268   : > { %v6414_v10 = vmul.f32 %v6185_v40, %v6185_v40  ;;  %v7964_v43 = vpop.f32.mrf.mxu1  ;;  %v6190_v22 = vadd.f32 %v10807_v1, %v5692_v7  ;;  %v4554_v55 = vadd.f32 %v10746_v52, %v10632_v56  ;;  %v4943_v44 = vadd.f32 %v10718_v5, %v4556_v45 }
 0x269   : > { %v5693_v57 = vadd.f32 %v7964_v43, %v4939_v17  ;;  %v10860_v13 = vpop.f32.mrf.mxu0  ;;  %7371 = vst [vmem:[%s10825_s13 + $0x10] sm:$0xff] %v7288_v59   ;;  %v6377_v35 = vadd.f32 %v6376_v24, %v6186_v33  ;;  %v6188_v62 = vadd.f32 %v10810_v61, %v5690_v29  ;;  %v4940_v61 = vadd.f32 %v10714_v60, %v4553_v23 }
 0x26a   : > { %v6445_v28 = vadd.f32 %v6444_v32, %v6414_v10  ;;  %v5590_v20 = vpop.f32.mrf.mxu1  ;;  %v4557_v46 = vadd.f32 %v10753_v0, %v10638_v50  ;;  %v4560_v12 = vadd.f32 %v10757_v37, %v10641_v48  ;;  %v4941_v5 = vadd.f32 %v10721_v4, %v4554_v55 }
 0x26b   : > { %v6191_v42 = vadd.f32 %v10816_v63, %v5693_v57  ;;  %v5691_v2 = vadd.f32 %v5590_v20, %v4937_v11  ;;  %v10866_v18 = vpop.f32.mrf.mxu0  ;;  %v6378_v53 = vadd.f32 %v6377_v35, %v6187_v3  ;;  %v6417_v63 = vmul.f32 %v6188_v62, %v6188_v62  ;;  %v11174_v20 = vld [vmem:[#allocation38_spill] sm:$0xff] }
 0x26c   : > { %v6446_v49 = vadd.f32 %v6445_v28, %v6415_v25  ;;  %v7967_v6 = vpop.f32.mrf.mxu1  ;;  %v6419_v14 = vmul.f32 %v6190_v22, %v6190_v22  ;;  %v4558_v10 = vadd.f32 %v10761_v34, %v10644_v58  ;;  %v11173_v25 = vld [vmem:[#allocation20_spill] sm:$0xff] }
 0x26d   : > { %v7303_v33 = vpack.c.bf16 %v6191_v42, %v6190_v22  ;;  %v6189_v47 = vadd.f32 %v10827_v27, %v5691_v2  ;;  %v10872_v15 = vpop.f32.mrf.mxu0  ;;  %v6379_v1 = vadd.f32 %v6378_v53, %v6188_v62  ;;  %v5696_v16 = vadd.f32 %v7967_v6, %v10740_v31  ;;  %v11177_v53 = vld [vmem:[#allocation6_spill] sm:$0xff]  ;;  %v11178_v6 = vld [vmem:[#allocation17_spill] sm:$0xff] }
 0x26e   : > { %v6447_v30 = vadd.f32 %v6446_v49, %v6416_v36  ;;  %v5603_v19 = vpop.f32.mrf.mxu1  ;;  %v6420_v48 = vmul.f32 %v6191_v42, %v6191_v42  ;;  %v4947_v35 = vadd.f32 %v11173_v25, %v4560_v12  ;;  %v11176_v36 = vld [vmem:[#allocation39_spill] sm:$0xff]  ;;  %v4564_v55 = vadd.f32 %v11178_v6, %v11177_v53  ;;  %v11180_v12 = vld [vmem:[#allocation28_spill] sm:$0xff] }
 0x26f   : > { %7374 = vst [vmem:[%s10825_s13 + $0x28] sm:$0xff] %v7303_v33   ;;  %v7298_v3 = vpack.c.bf16 %v6189_v47, %v6188_v62  ;;  %v6418_v39 = vmul.f32 %v6189_v47, %v6189_v47  ;;  %v5694_v56 = vadd.f32 %v5603_v19, %v4940_v61  ;;  %v10877_v52 = vpop.f32.mrf.mxu0  ;;  %v6380_v54 = vadd.f32 %v6379_v1, %v6189_v47  ;;  %v11179_v47 = vld [vmem:[#allocation22_spill] sm:$0xff] }
 0x270   : > { %v6448_v27 = vadd.f32 %v6447_v30, %v6417_v63  ;;  %v7968_v60 = vpop.f32.mrf.mxu1  ;;  %v6194_v17 = vadd.f32 %v10833_v51, %v5696_v16  ;;  %v4945_v61 = vadd.f32 %v11179_v47, %v4558_v10  ;;  %v11190_v47 = vld [vmem:[#allocation14_spill] sm:$0xff] }
 0x271   : > { %7373 = vst [vmem:[%s10825_s13 + $0x20] sm:$0xff] %v7298_v3   ;;  %v5697_v9 = vadd.f32 %v7968_v60, %v4943_v44  ;;  %v10885_v40 = vpop.f32.mrf.mxu0  ;;  %v6381_v31 = vadd.f32 %v6380_v54, %v6190_v22  ;;  %v6192_v7 = vadd.f32 %v10839_v26, %v5694_v56  ;;  %v4944_v26 = vadd.f32 %v10729_v8, %v4557_v46  ;;  %v11175_v8 = vld [vmem:[#allocation5_spill] sm:$0xff] }
 0x272   : > { %v6449_v32 = vadd.f32 %v6448_v27, %v6418_v39  ;;  %v5606_v29 = vpop.f32.mrf.mxu1  ;;  %v4561_v49 = vadd.f32 %v11176_v36, %v11175_v8  ;;  %v6423_v1 = vmul.f32 %v6194_v17, %v6194_v17 }
 0x273   : > { %v6195_v59 = vadd.f32 %v10843_v21, %v5697_v9  ;;  %v5695_v50 = vadd.f32 %v5606_v29, %v4941_v5  ;;  %v10890_v0 = vpop.f32.mrf.mxu0  ;;  %v6382_v24 = vadd.f32 %v6381_v31, %v6191_v42  ;;  %v6421_v21 = vmul.f32 %v6192_v7, %v6192_v7  ;;  %v11181_v9 = vld [vmem:[#allocation21_spill] sm:$0xff] }
 0x274   : > { %v6450_v37 = vadd.f32 %v6449_v32, %v6419_v14  ;;  %v7971_v4 = vpop.f32.mrf.mxu1  ;;  %v4562_v5 = vadd.f32 %v11181_v9, %v11180_v12 }
 0x275   : > { %v7313_v43 = vpack.c.bf16 %v6195_v59, %v6194_v17  ;;  %v6193_v23 = vadd.f32 %v10848_v38, %v5695_v50  ;;  %v10896_v45 = vpop.f32.mrf.mxu0  ;;  %v6383_v51 = vadd.f32 %v6382_v24, %v6192_v7  ;;  %v5700_v22 = vadd.f32 %v7971_v4, %v11174_v20 }
 0x276   : > { %v6451_v57 = vadd.f32 %v6450_v37, %v6420_v48  ;;  %v5619_v11 = vpop.f32.mrf.mxu1  ;;  %v6424_v56 = vmul.f32 %v6195_v59, %v6195_v59  ;;  %v11184_v37 = vld [vmem:[#allocation15_spill] sm:$0xff] }
 0x277   : > { %7376 = vst [vmem:[%s10825_s13 + $0x38] sm:$0xff] %v7313_v43   ;;  %v7308_v28 = vpack.c.bf16 %v6193_v23, %v6192_v7  ;;  %v6422_v62 = vmul.f32 %v6193_v23, %v6193_v23  ;;  %v5698_v58 = vadd.f32 %v5619_v11, %v4944_v26  ;;  %v6384_v42 = vadd.f32 %v6383_v51, %v6193_v23  ;;  %v10901_v2 = vpop.f32.mrf.mxu0  ;;  %v11186_v51 = vld [vmem:[#allocation29_spill] sm:$0xff]  ;;  %v11188_v11 = vld [vmem:[#allocation31_spill] sm:$0xff] }
 0x278   : > { %v6452_v34 = vadd.f32 %v6451_v57, %v6421_v21  ;;  %v7972_v38 = vpop.f32.mrf.mxu1  ;;  %v6198_v3 = vadd.f32 %v10853_v41, %v5700_v22  ;;  %v11187_v57 = vld [vmem:[#allocation12_spill] sm:$0xff] }
 0x279   : > { %7375 = vst [vmem:[%s10825_s13 + $0x30] sm:$0xff] %v7308_v28   ;;  %v5701_v33 = vadd.f32 %v7972_v38, %v4947_v35  ;;  %v6385_v63 = vadd.f32 %v6384_v42, %v6194_v17  ;;  %v6196_v19 = vadd.f32 %v10860_v13, %v5698_v58  ;;  %v10912_v46 = vpop.f32.mrf.mxu0  ;;  %v11182_v13 = vld [vmem:[#allocation24_spill] sm:$0xff]  ;;  %v11183_v17 = vld [vmem:[#allocation25_spill] sm:$0xff]  ;;  %v4568_v25 = vadd.f32 %v11188_v11, %v11187_v57  ;;  %v11189_v28 = vld [vmem:[#allocation27_spill] sm:$0xff] }
 0x27a   : > { %v6453_v30 = vadd.f32 %v6452_v34, %v6422_v62  ;;  %v5622_v44 = vpop.f32.mrf.mxu1  ;;  %v4948_v32 = vadd.f32 %v11182_v13, %v4561_v49  ;;  %v4951_v50 = vadd.f32 %v11183_v17, %v4564_v55  ;;  %v4949_v62 = vadd.f32 %v11189_v28, %v4562_v5  ;;  %v11196_v13 = vld [vmem:[#allocation33_spill] sm:$0xff] }
 0x27b   : > { %v6199_v39 = vadd.f32 %v10866_v18, %v5701_v33  ;;  %v5699_v16 = vadd.f32 %v5622_v44, %v4945_v61  ;;  %v6386_v54 = vadd.f32 %v6385_v63, %v6195_v59  ;;  %v6425_v41 = vmul.f32 %v6196_v19, %v6196_v19  ;;  %v8028_v26 = vpop.f32.mrf.mxu0  ;;  %v11191_v61 = vld [vmem:[#allocation32_spill] sm:$0xff]  ;;  %v11199_v17 = vld [vmem:[#allocation13_spill] sm:$0xff] }
 0x27c   : > { %v6454_v27 = vadd.f32 %v6453_v30, %v6423_v1  ;;  %v7975_v60 = vpop.f32.mrf.mxu1  ;;  %v6427_v20 = vmul.f32 %v6198_v3, %v6198_v3  ;;  %v4566_v1 = vadd.f32 %v11191_v61, %v11190_v47 }
 0x27d   : > { %v7323_v14 = vpack.c.bf16 %v6199_v39, %v6198_v3  ;;  %v6197_v31 = vadd.f32 %v10872_v15, %v5699_v16  ;;  %v6387_v7 = vadd.f32 %v6386_v54, %v6196_v19  ;;  %v5704_v24 = vadd.f32 %v7975_v60, %v11184_v37  ;;  %v11185_v15 = vld [vmem:[#allocation10_spill] sm:$0xff]  ;;  %v6152_v33 = vpop.f32.mrf.mxu0  ;;  %v11193_v16 = vld [vmem:[#allocation37_spill] sm:$0xff] }
 0x27e   : > { %v6455_v18 = vadd.f32 %v6454_v27, %v6424_v56  ;;  %v5635_v29 = vpop.f32.mrf.mxu1  ;;  %v4565_v21 = vadd.f32 %v11186_v51, %v11185_v15  ;;  %v6428_v49 = vmul.f32 %v6199_v39, %v6199_v39  ;;  %v4955_v56 = vadd.f32 %v11193_v16, %v4568_v25  ;;  %v11194_v54 = vld [vmem:[#allocation30_spill] sm:$0xff] }
 0x27f   : > { %7378 = vst [vmem:[%s10825_s13 + $0x48] sm:$0xff] %v7323_v14   ;;  %v7318_v59 = vpack.c.bf16 %v6197_v31, %v6196_v19  ;;  %v6426_v48 = vmul.f32 %v6197_v31, %v6197_v31  ;;  %v5702_v4 = vadd.f32 %v5635_v29, %v4948_v32  ;;  %v6388_v43 = vadd.f32 %v6387_v7, %v6197_v31  ;;  %v11192_v19 = vld [vmem:[#allocation11_spill] sm:$0xff]  ;;  %v8031_v31 = vpop.f32.mrf.mxu0  ;;  %v11197_v7 = vld [vmem:[#allocation16_spill] sm:$0xff]  ;;  %v11200_v25 = vld [vmem:[#allocation18_spill] sm:$0xff] }
 0x280   : > { %v6456_v10 = vadd.f32 %v6455_v18, %v6425_v41  ;;  %v7976_v23 = vpop.f32.mrf.mxu1  ;;  %v6202_v38 = vadd.f32 %v10877_v52, %v5704_v24  ;;  %v11198_v41 = vld [vmem:[#allocation35_spill] sm:$0xff] }
 0x281   : > { %7377 = vst [vmem:[%s10825_s13 + $0x40] sm:$0xff] %v7318_v59   ;;  %v5705_v35 = vadd.f32 %v7976_v23, %v4951_v50  ;;  %v6389_v22 = vadd.f32 %v6388_v43, %v6198_v3  ;;  %v6200_v34 = vadd.f32 %v10885_v40, %v5702_v4  ;;  %v4952_v40 = vadd.f32 %v11192_v19, %v4565_v21  ;;  %v6165_v11 = vpop.f32.mrf.mxu0 }
 0x282   : > { %v6457_v58 = vadd.f32 %v6456_v10, %v6426_v48  ;;  %v5638_v42 = vpop.f32.mrf.mxu1  ;;  %v4572_v18 = vadd.f32 %v11198_v41, %v11197_v7  ;;  %v4953_v50 = vadd.f32 %v11199_v17, %v4566_v1  ;;  %v6431_v59 = vmul.f32 %v6202_v38, %v6202_v38 }
 0x283   : > { %v6203_v8 = vadd.f32 %v10890_v0, %v5705_v35  ;;  %v5703_v36 = vadd.f32 %v5638_v42, %v4949_v62  ;;  %v6390_v6 = vadd.f32 %v6389_v22, %v6199_v39  ;;  %v6429_v52 = vmul.f32 %v6200_v34, %v6200_v34  ;;  %v11201_v35 = vld [vmem:[#allocation36_spill] sm:$0xff]  ;;  %v11202_v22 = vld [vmem:[#allocation19_spill] sm:$0xff]  ;;  %v8032_v61 = vpop.f32.mrf.mxu0 }
 0x284   : > { %v6458_v53 = vadd.f32 %v6457_v58, %v6427_v20  ;;  %v7979_v55 = vpop.f32.mrf.mxu1  ;;  %v4570_v28 = vadd.f32 %v11201_v35, %v11200_v25 }
 0x285   : > { %v7333_v63 = vpack.c.bf16 %v6203_v8, %v6202_v38  ;;  %v6201_v30 = vadd.f32 %v10896_v45, %v5703_v36  ;;  %v6391_v44 = vadd.f32 %v6390_v6, %v6200_v34  ;;  %v5708_v60 = vadd.f32 %v7979_v55, %v11194_v54  ;;  %v11195_v45 = vld [vmem:[#allocation3_spill] sm:$0xff] }
 0x286   : > { %v6459_v3 = vadd.f32 %v6458_v53, %v6428_v49  ;;  %v5651_v0 = vpop.f32.mrf.mxu1  ;;  %v4569_v32 = vadd.f32 %v11196_v13, %v11195_v45  ;;  %v6432_v15 = vmul.f32 %v6203_v8, %v6203_v8 }
 0x287   : > { %7380 = vst [vmem:[%s10825_s13 + $0x58] sm:$0xff] %v7333_v63   ;;  %v7328_v27 = vpack.c.bf16 %v6201_v30, %v6200_v34  ;;  %v6430_v39 = vmul.f32 %v6201_v30, %v6201_v30  ;;  %v5706_v12 = vadd.f32 %v5651_v0, %v4952_v40  ;;  %v6392_v5 = vadd.f32 %v6391_v44, %v6201_v30  ;;  %v11205_v63 = vld [vmem:[#allocation26_spill] sm:$0xff] }
 0x288   : > { %v6460_v9 = vadd.f32 %v6459_v3, %v6429_v52  ;;  %v7980_v14 = vpop.f32.mrf.mxu1  ;;  %v6206_v10 = vadd.f32 %v10901_v2, %v5708_v60  ;;  %v4956_v58 = vadd.f32 %v11202_v22, %v4569_v32  ;;  %v4957_v30 = vadd.f32 %v11205_v63, %v4570_v28  ;;  %v6168_v60 = vpop.f32.mrf.mxu0 }
 0x289   : > { %7379 = vst [vmem:[%s10825_s13 + $0x50] sm:$0xff] %v7328_v27   ;;  %v5709_v29 = vadd.f32 %v7980_v14, %v4955_v56  ;;  %v6393_v48 = vadd.f32 %v6392_v5, %v6202_v38  ;;  %v6204_v24 = vadd.f32 %v10912_v46, %v5706_v12 }
 0x28a   : > { %v6461_v37 = vadd.f32 %v6460_v9, %v6430_v39  ;;  %v5654_v4 = vpop.f32.mrf.mxu1  ;;  %v6435_v19 = vmul.f32 %v6206_v10, %v6206_v10 }
 0x28b   : > { %v6207_v43 = vadd.f32 %v8028_v26, %v5709_v29  ;;  %v5707_v23 = vadd.f32 %v5654_v4, %v4953_v50  ;;  %v6394_v21 = vadd.f32 %v6393_v48, %v6203_v8  ;;  %v6433_v34 = vmul.f32 %v6204_v24, %v6204_v24  ;;  %v11203_v26 = vld [vmem:[#allocation23_spill] sm:$0xff]  ;;  %v11204_v8 = vld [vmem:[#allocation34_spill] sm:$0xff] }
 0x28c   : > { %v6462_v51 = vadd.f32 %v6461_v37, %v6431_v59  ;;  %v7983_v57 = vpop.f32.mrf.mxu1  ;;  %v4959_v38 = vadd.f32 %v11203_v26, %v4572_v18 }
 0x28d   : > { %v7343_v62 = vpack.c.bf16 %v6207_v43, %v6206_v10  ;;  %v6205_v20 = vadd.f32 %v6152_v33, %v5707_v23  ;;  %v6395_v46 = vadd.f32 %v6394_v21, %v6204_v24  ;;  %v5712_v53 = vadd.f32 %v7983_v57, %v11204_v8 }
 0x28e   : > { %v6463_v42 = vadd.f32 %v6462_v51, %v6432_v15  ;;  %v5667_v2 = vpop.f32.mrf.mxu1  ;;  %v6436_v27 = vmul.f32 %v6207_v43, %v6207_v43 }
 0x28f   : > { %7382 = vst [vmem:[%s10825_s13 + $0x68] sm:$0xff] %v7343_v62   ;;  %v7338_v36 = vpack.c.bf16 %v6205_v20, %v6204_v24  ;;  %v6434_v49 = vmul.f32 %v6205_v20, %v6205_v20  ;;  %v5710_v6 = vadd.f32 %v5667_v2, %v4956_v58  ;;  %v6396_v47 = vadd.f32 %v6395_v46, %v6205_v20 }
 0x290   : > { %v6464_v55 = vadd.f32 %v6463_v42, %v6433_v34  ;;  %v7984_v1 = vpop.f32.mrf.mxu1  ;;  %v6210_v0 = vadd.f32 %v8031_v31, %v5712_v53 }
 0x291   : > { %7381 = vst [vmem:[%s10825_s13 + $0x60] sm:$0xff] %v7338_v36   ;;  %v5713_v33 = vadd.f32 %v7984_v1, %v4959_v38  ;;  %v6397_v40 = vadd.f32 %v6396_v47, %v6206_v10  ;;  %v6208_v52 = vadd.f32 %v6165_v11, %v5710_v6 }
 0x292   : > { %v6465_v44 = vadd.f32 %v6464_v55, %v6434_v49  ;;  %v5670_v3 = vpop.f32.mrf.mxu1  ;;  %v6439_v18 = vmul.f32 %v6210_v0, %v6210_v0 }
 0x293   : > { %v6211_v16 = vadd.f32 %v8032_v61, %v5713_v33  ;;  %v5711_v56 = vadd.f32 %v5670_v3, %v4957_v30  ;;  %v6398_v54 = vadd.f32 %v6397_v40, %v6207_v43  ;;  %v6437_v14 = vmul.f32 %v6208_v52, %v6208_v52 }
 0x294   : > { %v6466_v39 = vadd.f32 %v6465_v44, %v6435_v19 }
 0x295   : > { %v7353_v12 = vpack.c.bf16 %v6211_v16, %v6210_v0  ;;  %v6209_v9 = vadd.f32 %v6168_v60, %v5711_v56  ;;  %v6399_v5 = vadd.f32 %v6398_v54, %v6208_v52  ;;  %v6440_v17 = vmul.f32 %v6211_v16, %v6211_v16 }
 0x296   : > { %v6467_v45 = vadd.f32 %v6466_v39, %v6436_v27 }
 0x297   : > { %7384 = vst [vmem:[%s10825_s13 + $0x78] sm:$0xff] %v7353_v12   ;;  %v7348_v13 = vpack.c.bf16 %v6209_v9, %v6208_v52  ;;  %v6438_v32 = vmul.f32 %v6209_v9, %v6209_v9  ;;  %v6400_v41 = vadd.f32 %v6399_v5, %v6209_v9 }
 0x298   : > { %v6468_v7 = vadd.f32 %v6467_v45, %v6437_v14 }
 0x299   : > { %7383 = vst [vmem:[%s10825_s13 + $0x70] sm:$0xff] %v7348_v13   ;;  %v6401_v31 = vadd.f32 %v6400_v41, %v6210_v0 }
 0x29a   : > { %v6469_v29 = vadd.f32 %v6468_v7, %v6438_v32 }
 0x29b   : > { %v6402_v50 = vadd.f32 %v6401_v31, %v6211_v16 }
 0x29c   : > { %v6470_v59 = vadd.f32 %v6469_v29, %v6439_v18 }
 0x29d   : > { %v6403_v48 = vrot.slane %v6402_v50, 4 }
 0x29e   : > { %v6471_v37 = vadd.f32 %v6470_v59, %v6440_v17 }
 0x29f   : > { %v6404_v24 = vadd.f32 %v6403_v48, %v6402_v50 }
 0x2a0   : > { %v6472_v4 = vrot.slane %v6471_v37, 4 }
 0x2a1   : > { %v6405_v10 = vrot.slane %v6404_v24, 2 }
 0x2a2   : > { %v6473_v43 = vadd.f32 %v6472_v4, %v6471_v37 }
 0x2a3   : > { %v6406_v23 = vadd.f32 %v6405_v10, %v6404_v24 }
 0x2a4   : > { %v6474_v15 = vrot.slane %v6473_v43, 2 }
 0x2a5   : > { %v6407_v51 = vrot.slane %v6406_v23, 1 }
 0x2a6   : > { %v6475_v21 = vadd.f32 %v6474_v15, %v6473_v43 }
 0x2a7   : > { %v6408_v11 = vadd.f32 %v6407_v51, %v6406_v23 }
 0x2a8   : > { %v6476_v57 = vrot.slane %v6475_v21, 1 }
 0x2aa   : > { %v6477_v25 = vadd.f32 %v6476_v57, %v6475_v21 }
 0x2ac   : > { %v6479_v35 = vsel %vm469_vm0, %v6408_v11, %v6477_v25 }
 0x2ad   : > { %6480 = vst [vmem:[%s465_s17] sm:$0x3] %v6479_v35 }
 0x2ae PF: > { %s18_s2 = sadd.s32 1, %s8247_s2   ;;  %s11206_s23 = smov %s8243_s24 }
 0x2af   : > { %p15_p5 = scmp.ge.s32.totalorder %s18_s2, 4   ;;  %s11207_s24 = smov %s11209_s25 }
 0x2b1   :  { %17 = sbr.rel (!%p15_p5) target bundleno = 2 (0x2), region = 120 }

</bundles_post_ra>
